<compile_context>
chip_gen: v6e
topology: v6e:2x2x1
jax: 0.10.0
libtpu: 0.0.40
codegen_flags: <defaults>
</compile_context>

<pallas_src>
import numpy as np
import jax
import jax.numpy as jnp
from jax import lax
from jax.experimental import pallas as pl
from jax.experimental.pallas import tpu as pltpu


# ----------------------------------------------------------------------------
# Pallas kernel: full NMT forward scoring
# ----------------------------------------------------------------------------
def nmt_kernel(
    x_src_ref,   # (S, Bp, E)    embedded source (batch padded to Bp)
    y_in_ref,    # (T-1, Bp, E)  embedded target inputs (target_padded[:-1])
    valid_ref,   # (S, Bp, 1)    1.0 where t < source_length else 0.0
    amask_ref,   # (Bp, 1, S)    same validity, batch-major, for attention
    gold_ref,    # (T-1, Bp, 1)  gold target ids; -1 where masked (pad)
    wih_f_ref, whh_f_ref, b_f_ref,     # encoder fwd LSTM (E,4H),(H,4H),(1,4H)
    wih_b_ref, whh_b_ref, b_b_ref,     # encoder bwd LSTM
    whp_f_ref, whp_b_ref,              # h_projection split (H,H),(H,H)
    wcp_f_ref, wcp_b_ref,              # c_projection split
    watt_f_ref, watt_b_ref,            # att_projection split
    wdy_ref, wdo_ref, wdh_ref, b_d_ref,  # decoder LSTMCell (E,4H),(H,4H),(H,4H),(1,4H)
    wco_h_ref, wco_af_ref, wco_ab_ref,   # combined_output_projection split (H,H) x3
    wvoc_ref,                            # target_vocab_projection (H,V)
    out_ref,                             # (1,1) scalar score
    enc_f_ref, enc_b_ref,                # scratch: (S,Bp,H) fwd / bwd encoder outputs
    gxf_ref, gxb_ref, gy_ref,            # scratch: hoisted input-gate projections
):
    S, Bp, E = x_src_ref.shape
    Tm1 = y_in_ref.shape[0]
    H = whh_f_ref.shape[0]
    G = 4 * H
    V = wvoc_ref.shape[1]
    f32 = jnp.float32
    NEG = jnp.float32(-1e30)

    def lstm_gates(gates, c_prev):
        # PyTorch gate order: i, f, g, o
        i = jax.nn.sigmoid(gates[:, 0 * H:1 * H])
        f = jax.nn.sigmoid(gates[:, 1 * H:2 * H])
        g = jnp.tanh(gates[:, 2 * H:3 * H])
        o = jax.nn.sigmoid(gates[:, 3 * H:4 * H])
        c_new = f * c_prev + i * g
        return o * jnp.tanh(c_new), c_new

    # ---- hoisted input projections (one big MXU matmul each, biases folded) --
    x2 = x_src_ref[...].reshape(S * Bp, E)
    gxf_ref[...] = (jnp.dot(x2, wih_f_ref[...], preferred_element_type=f32)
                    + b_f_ref[...]).reshape(S, Bp, G)
    gxb_ref[...] = (jnp.dot(x2, wih_b_ref[...], preferred_element_type=f32)
                    + b_b_ref[...]).reshape(S, Bp, G)
    y2 = y_in_ref[...].reshape(Tm1 * Bp, E)
    gy_ref[...] = (jnp.dot(y2, wdy_ref[...], preferred_element_type=f32)
                   + b_d_ref[...]).reshape(Tm1, Bp, G)

    whh_f = whh_f_ref[...]
    whh_b = whh_b_ref[...]
    h0 = jnp.zeros((Bp, H), f32)

    # ---- fused bidirectional encoder (packed-sequence semantics) ------------
    # forward direction handles timestep i, backward handles S-1-i in the same
    # serial step (independent recurrences -> doubled ILP per iteration).
    def enc_body(i, carry):
        hf, cf, hb, cb = carry

        vf = valid_ref[i]                                       # (Bp, 1)
        gf = gxf_ref[i] + jnp.dot(hf, whh_f, preferred_element_type=f32)
        hfn, cfn = lstm_gates(gf, cf)
        enc_f_ref[i] = jnp.where(vf > 0, hfn, 0.0)              # pads -> zeros
        hf = jnp.where(vf > 0, hfn, hf)                         # carry last valid
        cf = jnp.where(vf > 0, cfn, cf)

        tb = S - 1 - i
        vb = valid_ref[tb]
        gb = gxb_ref[tb] + jnp.dot(hb, whh_b, preferred_element_type=f32)
        hbn, cbn = lstm_gates(gb, cb)
        enc_b_ref[tb] = jnp.where(vb > 0, hbn, 0.0)
        hb = jnp.where(vb > 0, hbn, hb)
        cb = jnp.where(vb > 0, cbn, cb)
        return hf, cf, hb, cb

    hf_last, cf_last, hb_last, cb_last = lax.fori_loop(
        0, S, enc_body, (h0, h0, h0, h0), unroll=True)

    # ---- decoder init state (h_projection / c_projection) -------------------
    dec_h0 = (jnp.dot(hf_last, whp_f_ref[...], preferred_element_type=f32)
              + jnp.dot(hb_last, whp_b_ref[...], preferred_element_type=f32))
    dec_c0 = (jnp.dot(cf_last, wcp_f_ref[...], preferred_element_type=f32)
              + jnp.dot(cb_last, wcp_b_ref[...], preferred_element_type=f32))

    # ---- batch-major encoder tensors + attention projection (one-time) ------
    enc_f_b = pltpu.einshape("sbh->bsh", enc_f_ref[...])        # (Bp, S, H)
    enc_b_b = pltpu.einshape("sbh->bsh", enc_b_ref[...])        # (Bp, S, H)
    proj_b = (jnp.dot(enc_f_b.reshape(Bp * S, H), watt_f_ref[...],
                      preferred_element_type=f32)
              + jnp.dot(enc_b_b.reshape(Bp * S, H), watt_b_ref[...],
                        preferred_element_type=f32)).reshape(Bp, S, H)
    amask = amask_ref[...]                                      # (Bp, 1, S)

    wdo = wdo_ref[...]; wdh = wdh_ref[...]
    wco_h = wco_h_ref[...]; wco_af = wco_af_ref[...]; wco_ab = wco_ab_ref[...]
    wvoc = wvoc_ref[...]
    iota_v = lax.broadcasted_iota(jnp.int32, (Bp, V), 1)        # hoisted

    # ---- decoder loop + scoring ----------------------------------------------
    def dec_body(t, carry):
        h, c, o_prev, acc = carry
        # LSTMCell on Ybar_t = [Y_t ; o_prev]; Y-part precomputed in gy_ref
        gates = (gy_ref[t]
                 + jnp.dot(o_prev, wdo, preferred_element_type=f32)
                 + jnp.dot(h, wdh, preferred_element_type=f32))
        h_new, c_new = lstm_gates(gates, c)

        # Luong attention on the MXU (flash-style batched einsums)
        hq = h_new.reshape(Bp, 1, H)
        e = jnp.einsum("bqh,bsh->bqs", hq, proj_b,
                       preferred_element_type=f32)              # (Bp,1,S)
        e = jnp.where(amask > 0, e, NEG)                        # mask pads
        e = e - jnp.max(e, axis=-1, keepdims=True)
        p = jnp.exp(e)
        alpha = p * pl.reciprocal(jnp.sum(p, axis=-1, keepdims=True), approx=True)
        a_f = jnp.einsum("bqs,bsh->bqh", alpha, enc_f_b,
                         preferred_element_type=f32).reshape(Bp, H)
        a_b = jnp.einsum("bqs,bsh->bqh", alpha, enc_b_b,
                         preferred_element_type=f32).reshape(Bp, H)

        # combined_output_projection on U_t = [dec_hidden ; a_t], then tanh
        v = (jnp.dot(h_new, wco_h, preferred_element_type=f32)
             + jnp.dot(a_f, wco_af, preferred_element_type=f32)
             + jnp.dot(a_b, wco_ab, preferred_element_type=f32))
        o_t = jnp.tanh(v)                                       # dropout = identity

        # target_vocab_projection + log_softmax; accumulate gold log-probs into
        # a (Bp,V) vreg accumulator (single reduce after the loop).
        logits = jnp.dot(o_t, wvoc, preferred_element_type=f32)  # (Bp, V)
        lmax = jnp.max(logits, axis=-1, keepdims=True)
        lse = jnp.log(jnp.sum(jnp.exp(logits - lmax), axis=-1, keepdims=True)) + lmax
        logp = logits - lse
        gold = gold_ref[t]                                       # (Bp,1), -1 = masked
        acc = acc + jnp.where(iota_v == gold, logp, 0.0)
        return h_new, c_new, o_t, acc

    init = (dec_h0, dec_c0, jnp.zeros((Bp, H), f32), jnp.zeros((Bp, V), f32))
    _, _, _, acc = lax.fori_loop(0, Tm1, dec_body, init, unroll=True)
    out_ref[...] = jnp.sum(acc, keepdims=True)                   # one final reduce


# ----------------------------------------------------------------------------
# Wrapper
# ----------------------------------------------------------------------------
def nmt_forward_pallas(args):
    x_src, y_in = args[0], args[1]
    S, Bp, _ = x_src.shape
    Tm1 = y_in.shape[0]
    H = args[6].shape[0]  # whh_f is (H, 4H)
    return pl.pallas_call(
        nmt_kernel,
        out_shape=jax.ShapeDtypeStruct((1, 1), jnp.float32),
        in_specs=[pl.BlockSpec(memory_space=pltpu.MemorySpace.VMEM)] * len(args),
        out_specs=pl.BlockSpec(memory_space=pltpu.MemorySpace.VMEM),
        scratch_shapes=[
            pltpu.VMEM((S, Bp, H), jnp.float32),        # enc_f
            pltpu.VMEM((S, Bp, H), jnp.float32),        # enc_b
            pltpu.VMEM((S, Bp, 4 * H), jnp.float32),    # X @ Wih_f + b_f
            pltpu.VMEM((S, Bp, 4 * H), jnp.float32),    # X @ Wih_b + b_b
            pltpu.VMEM((Tm1, Bp, 4 * H), jnp.float32),  # Y @ Wdy + b_d
        ],
    )(*args)


# ----------------------------------------------------------------------------
# Pure-JAX reference (same math) for the correctness check
# ----------------------------------------------------------------------------
def nmt_reference(x_src, y_in, valid, gold_sel, w):
    (wih_f, whh_f, b_f, wih_b, whh_b, b_b,
     whp_f, whp_b, wcp_f, wcp_b, watt_f, watt_b,
     wdy, wdo, wdh, b_d, wco_h, wco_af, wco_ab, wvoc) = w
    S, B, _ = x_src.shape
    H = whh_f.shape[0]
    V = wvoc.shape[1]

    def cell(gates, c):
        i = jax.nn.sigmoid(gates[:, :H]); f = jax.nn.sigmoid(gates[:, H:2 * H])
        g = jnp.tanh(gates[:, 2 * H:3 * H]); o = jax.nn.sigmoid(gates[:, 3 * H:])
        c_new = f * c + i * g
        return o * jnp.tanh(c_new), c_new

    h = jnp.zeros((B, H)); c = jnp.zeros((B, H)); enc_f = []
    for t in range(S):
        hn, cn = cell(x_src[t] @ wih_f + h @ whh_f + b_f, c)
        v = valid[t]
        enc_f.append(jnp.where(v > 0, hn, 0.0))
        h = jnp.where(v > 0, hn, h); c = jnp.where(v > 0, cn, c)
    hf_last, cf_last = h, c
    enc_f = jnp.stack(enc_f, 0)

    h = jnp.zeros((B, H)); c = jnp.zeros((B, H)); enc_b = [None] * S
    for t in range(S - 1, -1, -1):
        hn, cn = cell(x_src[t] @ wih_b + h @ whh_b + b_b, c)
        v = valid[t]
        enc_b[t] = jnp.where(v > 0, hn, 0.0)
        h = jnp.where(v > 0, hn, h); c = jnp.where(v > 0, cn, c)
    hb_last, cb_last = h, c
    enc_b = jnp.stack(enc_b, 0)

    dec_h = hf_last @ whp_f + hb_last @ whp_b
    dec_c = cf_last @ wcp_f + cb_last @ wcp_b
    proj = enc_f @ watt_f + enc_b @ watt_b

    vocab_iota = jnp.arange(V)[None, :]
    o_prev = jnp.zeros((B, H)); score = jnp.float32(0.0)
    for t in range(y_in.shape[0]):
        hn, cn = cell(y_in[t] @ wdy + o_prev @ wdo + dec_h @ wdh + b_d, dec_c)
        e = jnp.sum(proj * hn[None], axis=-1, keepdims=True)
        e = jnp.where(valid > 0, e, -1e30)
        e = e - jnp.max(e, axis=0, keepdims=True)
        p = jnp.exp(e)
        alpha = p / jnp.sum(p, axis=0, keepdims=True)
        a_f = jnp.sum(alpha * enc_f, axis=0)
        a_b = jnp.sum(alpha * enc_b, axis=0)
        o_t = jnp.tanh(hn @ wco_h + a_f @ wco_af + a_b @ wco_ab)
        logp = jax.nn.log_softmax(o_t @ wvoc, axis=-1)
        oh = (gold_sel[t][:, None] == vocab_iota)
        score = score + jnp.sum(jnp.where(oh, logp, 0.0))
        dec_h, dec_c, o_prev = hn, cn, o_t
    return score


# ----------------------------------------------------------------------------
# Main
# ----------------------------------------------------------------------------
if __name__ == "__main__":
    H, E = 32, 32          # hidden_size, word_embed_size
    Vt, Vsrc = 128, 96     # target / source vocab sizes
    S, B, T = 8, 2, 8      # src_len, batch, tgt_len
    Bp = 8                 # batch padded to a full sublane
    src_lengths = [8, 5]   # sorted descending (pack_padded_sequence requirement)
    tgt_lengths = [8, 6]
    PAD, SOS, EOS = 0, 1, 2

    key = jax.random.PRNGKey(0)
    ks = list(jax.random.split(key, 32))

    def rnd(k, shape, scale=0.1):
        return (scale * jax.random.normal(k, shape)).astype(jnp.float32)

    # Parameters (pre-transposed to (in, out); concat-inputs split into blocks)
    emb_src = rnd(ks[0], (Vsrc, E))
    emb_tgt = rnd(ks[1], (Vt, E))
    wih_f = rnd(ks[2], (E, 4 * H)); whh_f = rnd(ks[3], (H, 4 * H)); b_f = rnd(ks[4], (1, 4 * H))
    wih_b = rnd(ks[5], (E, 4 * H)); whh_b = rnd(ks[6], (H, 4 * H)); b_b = rnd(ks[7], (1, 4 * H))
    whp_f = rnd(ks[8], (H, H)); whp_b = rnd(ks[9], (H, H))
    wcp_f = rnd(ks[10], (H, H)); wcp_b = rnd(ks[11], (H, H))
    watt_f = rnd(ks[12], (H, H)); watt_b = rnd(ks[13], (H, H))
    wdy = rnd(ks[14], (E, 4 * H)); wdo = rnd(ks[15], (H, 4 * H))
    wdh = rnd(ks[16], (H, 4 * H)); b_d = rnd(ks[17], (1, 4 * H))
    wco_h = rnd(ks[18], (H, H)); wco_af = rnd(ks[19], (H, H)); wco_ab = rnd(ks[20], (H, H))
    wvoc = rnd(ks[21], (H, Vt))

    # Token ids (deterministic)
    src_ids = np.array(jax.random.randint(ks[22], (S, B), 3, Vsrc))
    tgt_ids = np.array(jax.random.randint(ks[23], (T, B), 3, Vt))
    for b in range(B):
        src_ids[src_lengths[b]:, b] = PAD
        tgt_ids[0, b] = SOS
        tgt_ids[tgt_lengths[b] - 1, b] = EOS
        tgt_ids[tgt_lengths[b]:, b] = PAD
    src_ids = jnp.asarray(src_ids, jnp.int32)
    tgt_ids = jnp.asarray(tgt_ids, jnp.int32)

    # Glue: embedding lookup (stand-in for char-CNN ModelEmbeddings), validity
    # mask, gold target ids with -1 at masked (pad) positions.
    x_src = jnp.take(emb_src, src_ids, axis=0)            # (S, B, E)
    y_in = jnp.take(emb_tgt, tgt_ids[:-1], axis=0)        # (T-1, B, E)
    t_idx = jnp.arange(S)[:, None]
    valid = (t_idx < jnp.asarray(src_lengths)[None, :]).astype(jnp.float32)[:, :, None]
    gold = tgt_ids[1:]                                     # (T-1, B)
    gold_sel = jnp.where(gold != PAD, gold, -1).astype(jnp.int32)

    # Batch padded to Bp: padded columns have zero inputs, zero validity and
    # gold id -1, so they are inert and contribute nothing to the score.
    def pad_batch(a, axis=1, value=0):
        pad = [(0, 0)] * a.ndim
        pad[axis] = (0, Bp - B)
        return jnp.pad(a, pad, constant_values=value)

    x_src_p = pad_batch(x_src)
    y_in_p = pad_batch(y_in)
    valid_p = pad_batch(valid)
    gold_p = pad_batch(gold_sel, axis=1, value=-1)[:, :, None]
    amask_p = jnp.transpose(valid_p[:, :, 0], (1, 0))[:, None, :]   # (Bp, 1, S)

    weights = (wih_f, whh_f, b_f, wih_b, whh_b, b_b,
               whp_f, whp_b, wcp_f, wcp_b, watt_f, watt_b,
               wdy, wdo, wdh, b_d, wco_h, wco_af, wco_ab, wvoc)
    args = (x_src_p, y_in_p, valid_p, amask_p, gold_p) + weights

    out = nmt_forward_pallas(args)
    out = jax.block_until_ready(out)
    got = float(out[0, 0])

    ref = float(nmt_reference(x_src, y_in, valid, gold_sel, weights))
    assert abs(got - ref) <= max(2e-3 * abs(ref), 5e-2), (got, ref)

    print("KERNEL_OK")
</pallas_src>

<mosaic_0001>
module attributes {stable_mosaic.version = 11 : i64} {
  func.func @nmt_kernel(%arg0: memref<8x8x32xf32, #tpu.memory_space<vmem>>, %arg1: memref<7x8x32xf32, #tpu.memory_space<vmem>>, %arg2: memref<8x8x1xf32, #tpu.memory_space<vmem>>, %arg3: memref<8x1x8xf32, #tpu.memory_space<vmem>>, %arg4: memref<7x8x1xi32, #tpu.memory_space<vmem>>, %arg5: memref<32x128xf32, #tpu.memory_space<vmem>>, %arg6: memref<32x128xf32, #tpu.memory_space<vmem>>, %arg7: memref<1x128xf32, #tpu.memory_space<vmem>>, %arg8: memref<32x128xf32, #tpu.memory_space<vmem>>, %arg9: memref<32x128xf32, #tpu.memory_space<vmem>>, %arg10: memref<1x128xf32, #tpu.memory_space<vmem>>, %arg11: memref<32x32xf32, #tpu.memory_space<vmem>>, %arg12: memref<32x32xf32, #tpu.memory_space<vmem>>, %arg13: memref<32x32xf32, #tpu.memory_space<vmem>>, %arg14: memref<32x32xf32, #tpu.memory_space<vmem>>, %arg15: memref<32x32xf32, #tpu.memory_space<vmem>>, %arg16: memref<32x32xf32, #tpu.memory_space<vmem>>, %arg17: memref<32x128xf32, #tpu.memory_space<vmem>>, %arg18: memref<32x128xf32, #tpu.memory_space<vmem>>, %arg19: memref<32x128xf32, #tpu.memory_space<vmem>>, %arg20: memref<1x128xf32, #tpu.memory_space<vmem>>, %arg21: memref<32x32xf32, #tpu.memory_space<vmem>>, %arg22: memref<32x32xf32, #tpu.memory_space<vmem>>, %arg23: memref<32x32xf32, #tpu.memory_space<vmem>>, %arg24: memref<32x128xf32, #tpu.memory_space<vmem>>, %arg25: memref<1x1xf32, #tpu.memory_space<vmem>>, %arg26: memref<8x8x32xf32, #tpu.memory_space<vmem>>, %arg27: memref<8x8x32xf32, #tpu.memory_space<vmem>>, %arg28: memref<8x8x128xf32, #tpu.memory_space<vmem>>, %arg29: memref<8x8x128xf32, #tpu.memory_space<vmem>>, %arg30: memref<7x8x128xf32, #tpu.memory_space<vmem>>) attributes {dimension_semantics = [], scalar_prefetch = 0 : i64, scratch_operands = 5 : i64, tpu.core_type = #tpu.core_type<tc>} {
    %c0 = arith.constant 0 : index
    %c0_0 = arith.constant 0 : index
    %c0_1 = arith.constant 0 : index
    %0 = vector.load %arg0[%c0, %c0_0, %c0_1] : memref<8x8x32xf32, #tpu.memory_space<vmem>>, vector<8x8x32xf32>
    %1 = vector.shape_cast %0 : vector<8x8x32xf32> to vector<64x32xf32>
    %c0_2 = arith.constant 0 : index
    %c0_3 = arith.constant 0 : index
    %2 = vector.load %arg5[%c0_2, %c0_3] : memref<32x128xf32, #tpu.memory_space<vmem>>, vector<32x128xf32>
    %cst = arith.constant dense<0.000000e+00> : vector<64x128xf32>
    %3 = tpu.matmul %1, %2, %cst {dimension_numbers = #tpu.dot_dimension_numbers<[1], [0], [0], [1], [0, 0, 1, 1], [], []>} : vector<64x32xf32>, vector<32x128xf32>, vector<64x128xf32> -> vector<64x128xf32>
    %c0_4 = arith.constant 0 : index
    %c0_5 = arith.constant 0 : index
    %4 = vector.load %arg7[%c0_4, %c0_5] : memref<1x128xf32, #tpu.memory_space<vmem>>, vector<1x128xf32>
    %5 = vector.broadcast %4 : vector<1x128xf32> to vector<64x128xf32>
    %6 = arith.addf %3, %5 : vector<64x128xf32>
    %7 = vector.shape_cast %6 : vector<64x128xf32> to vector<8x8x128xf32>
    %c0_6 = arith.constant 0 : index
    %c0_7 = arith.constant 0 : index
    %c0_8 = arith.constant 0 : index
    %8 = vector.load %arg28[%c0_6, %c0_7, %c0_8] : memref<8x8x128xf32, #tpu.memory_space<vmem>>, vector<8x8x128xf32>
    tpu.vector_store %arg28[%c0_6, %c0_7, %c0_8], %7 {strides = array<i32>} : memref<8x8x128xf32, #tpu.memory_space<vmem>>, vector<8x8x128xf32>,
    %c0_9 = arith.constant 0 : index
    %c0_10 = arith.constant 0 : index
    %9 = vector.load %arg8[%c0_9, %c0_10] : memref<32x128xf32, #tpu.memory_space<vmem>>, vector<32x128xf32>
    %cst_11 = arith.constant dense<0.000000e+00> : vector<64x128xf32>
    %10 = tpu.matmul %1, %9, %cst_11 {dimension_numbers = #tpu.dot_dimension_numbers<[1], [0], [0], [1], [0, 0, 1, 1], [], []>} : vector<64x32xf32>, vector<32x128xf32>, vector<64x128xf32> -> vector<64x128xf32>
    %c0_12 = arith.constant 0 : index
    %c0_13 = arith.constant 0 : index
    %11 = vector.load %arg10[%c0_12, %c0_13] : memref<1x128xf32, #tpu.memory_space<vmem>>, vector<1x128xf32>
    %12 = vector.broadcast %11 : vector<1x128xf32> to vector<64x128xf32>
    %13 = arith.addf %10, %12 : vector<64x128xf32>
    %14 = vector.shape_cast %13 : vector<64x128xf32> to vector<8x8x128xf32>
    %c0_14 = arith.constant 0 : index
    %c0_15 = arith.constant 0 : index
    %c0_16 = arith.constant 0 : index
    %15 = vector.load %arg29[%c0_14, %c0_15, %c0_16] : memref<8x8x128xf32, #tpu.memory_space<vmem>>, vector<8x8x128xf32>
    tpu.vector_store %arg29[%c0_14, %c0_15, %c0_16], %14 {strides = array<i32>} : memref<8x8x128xf32, #tpu.memory_space<vmem>>, vector<8x8x128xf32>,
    %c0_17 = arith.constant 0 : index
    %c0_18 = arith.constant 0 : index
    %c0_19 = arith.constant 0 : index
    %16 = vector.load %arg1[%c0_17, %c0_18, %c0_19] : memref<7x8x32xf32, #tpu.memory_space<vmem>>, vector<7x8x32xf32>
    %17 = vector.shape_cast %16 : vector<7x8x32xf32> to vector<56x32xf32>
    %c0_20 = arith.constant 0 : index
    %c0_21 = arith.constant 0 : index
    %18 = vector.load %arg17[%c0_20, %c0_21] : memref<32x128xf32, #tpu.memory_space<vmem>>, vector<32x128xf32>
    %cst_22 = arith.constant dense<0.000000e+00> : vector<56x128xf32>
    %19 = tpu.matmul %17, %18, %cst_22 {dimension_numbers = #tpu.dot_dimension_numbers<[1], [0], [0], [1], [0, 0, 1, 1], [], []>} : vector<56x32xf32>, vector<32x128xf32>, vector<56x128xf32> -> vector<56x128xf32>
    %c0_23 = arith.constant 0 : index
    %c0_24 = arith.constant 0 : index
    %20 = vector.load %arg20[%c0_23, %c0_24] : memref<1x128xf32, #tpu.memory_space<vmem>>, vector<1x128xf32>
    %21 = vector.broadcast %20 : vector<1x128xf32> to vector<56x128xf32>
    %22 = arith.addf %19, %21 : vector<56x128xf32>
    %23 = vector.shape_cast %22 : vector<56x128xf32> to vector<7x8x128xf32>
    %c0_25 = arith.constant 0 : index
    %c0_26 = arith.constant 0 : index
    %c0_27 = arith.constant 0 : index
    %24 = vector.load %arg30[%c0_25, %c0_26, %c0_27] : memref<7x8x128xf32, #tpu.memory_space<vmem>>, vector<7x8x128xf32>
    tpu.vector_store %arg30[%c0_25, %c0_26, %c0_27], %23 {strides = array<i32>} : memref<7x8x128xf32, #tpu.memory_space<vmem>>, vector<7x8x128xf32>,
    %c0_28 = arith.constant 0 : index
    %c0_29 = arith.constant 0 : index
    %25 = vector.load %arg6[%c0_28, %c0_29] : memref<32x128xf32, #tpu.memory_space<vmem>>, vector<32x128xf32>
    %c0_30 = arith.constant 0 : index
    %c0_31 = arith.constant 0 : index
    %26 = vector.load %arg9[%c0_30, %c0_31] : memref<32x128xf32, #tpu.memory_space<vmem>>, vector<32x128xf32>
    %cst_32 = arith.constant 0.000000e+00 : f32
    %27 = vector.broadcast %cst_32 : f32 to vector<8x32xf32>
    %c0_i32 = arith.constant 0 : i32
    %28 = arith.index_cast %c0_i32 : i32 to index
    %c0_33 = arith.constant 0 : index
    %c0_34 = arith.constant 0 : index
    %29 = vector.load %arg2[%28, %c0_33, %c0_34] : memref<8x8x1xf32, #tpu.memory_space<vmem>>, vector<1x8x1xf32>
    %30 = vector.shape_cast %29 : vector<1x8x1xf32> to vector<8x1xf32>
    %31 = arith.index_cast %c0_i32 : i32 to index
    %c0_35 = arith.constant 0 : index
    %c0_36 = arith.constant 0 : index
    %32 = vector.load %arg28[%31, %c0_35, %c0_36] : memref<8x8x128xf32, #tpu.memory_space<vmem>>, vector<1x8x128xf32>
    %33 = vector.shape_cast %32 : vector<1x8x128xf32> to vector<8x128xf32>
    %cst_37 = arith.constant dense<0.000000e+00> : vector<8x128xf32>
    %34 = tpu.matmul %27, %25, %cst_37 {dimension_numbers = #tpu.dot_dimension_numbers<[1], [0], [0], [1], [0, 0, 1, 1], [], []>} : vector<8x32xf32>, vector<32x128xf32>, vector<8x128xf32> -> vector<8x128xf32>
    %35 = arith.addf %33, %34 : vector<8x128xf32>
    %36 = vector.extract_strided_slice %35 {offsets = [0, 0], sizes = [8, 32], strides = [1, 1]} : vector<8x128xf32> to vector<8x32xf32>
    %37 = arith.negf %36 : vector<8x32xf32>
    %38 = math.exp %37 : vector<8x32xf32>
    %cst_38 = arith.constant 1.000000e+00 : f32
    %39 = vector.broadcast %cst_38 : f32 to vector<8x32xf32>
    %40 = arith.addf %39, %38 : vector<8x32xf32>
    %41 = arith.divf %39, %40 : vector<8x32xf32>
    %42 = vector.extract_strided_slice %35 {offsets = [0, 32], sizes = [8, 32], strides = [1, 1]} : vector<8x128xf32> to vector<8x32xf32>
    %43 = arith.negf %42 : vector<8x32xf32>
    %44 = math.exp %43 : vector<8x32xf32>
    %cst_39 = arith.constant 1.000000e+00 : f32
    %45 = vector.broadcast %cst_39 : f32 to vector<8x32xf32>
    %46 = arith.addf %45, %44 : vector<8x32xf32>
    %47 = arith.divf %45, %46 : vector<8x32xf32>
    %48 = vector.extract_strided_slice %35 {offsets = [0, 64], sizes = [8, 32], strides = [1, 1]} : vector<8x128xf32> to vector<8x32xf32>
    %49 = math.tanh %48 : vector<8x32xf32>
    %50 = vector.extract_strided_slice %35 {offsets = [0, 96], sizes = [8, 32], strides = [1, 1]} : vector<8x128xf32> to vector<8x32xf32>
    %51 = arith.negf %50 : vector<8x32xf32>
    %52 = math.exp %51 : vector<8x32xf32>
    %cst_40 = arith.constant 1.000000e+00 : f32
    %53 = vector.broadcast %cst_40 : f32 to vector<8x32xf32>
    %54 = arith.addf %53, %52 : vector<8x32xf32>
    %55 = arith.divf %53, %54 : vector<8x32xf32>
    %56 = arith.mulf %47, %27 : vector<8x32xf32>
    %57 = arith.mulf %41, %49 : vector<8x32xf32>
    %58 = arith.addf %56, %57 : vector<8x32xf32>
    %59 = math.tanh %58 : vector<8x32xf32>
    %60 = arith.mulf %55, %59 : vector<8x32xf32>
    %cst_41 = arith.constant 0.000000e+00 : f32
    %61 = vector.broadcast %cst_41 : f32 to vector<8x1xf32>
    %62 = arith.cmpf ogt, %30, %61 : vector<8x1xf32>
    %cst_42 = arith.constant 0.000000e+00 : f32
    %63 = vector.shape_cast %62 : vector<8x1xi1> to vector<8x1xi1>
    %64 = vector.broadcast %63 : vector<8x1xi1> to vector<8x32xi1>
    %65 = vector.broadcast %cst_42 : f32 to vector<8x32xf32>
    %66 = arith.select %64, %60, %65 : vector<8x32xi1>, vector<8x32xf32>
    %67 = arith.index_cast %c0_i32 : i32 to index
    %c0_43 = arith.constant 0 : index
    %c0_44 = arith.constant 0 : index
    %68 = vector.load %arg26[%67, %c0_43, %c0_44] : memref<8x8x32xf32, #tpu.memory_space<vmem>>, vector<1x8x32xf32>
    %69 = vector.shape_cast %68 : vector<1x8x32xf32> to vector<8x32xf32>
    %70 = vector.shape_cast %66 : vector<8x32xf32> to vector<1x8x32xf32>
    tpu.vector_store %arg26[%67, %c0_43, %c0_44], %70 {strides = array<i32>} : memref<8x8x32xf32, #tpu.memory_space<vmem>>, vector<1x8x32xf32>,
    %cst_45 = arith.constant 0.000000e+00 : f32
    %71 = vector.broadcast %cst_45 : f32 to vector<8x1xf32>
    %72 = arith.cmpf ogt, %30, %71 : vector<8x1xf32>
    %73 = vector.shape_cast %72 : vector<8x1xi1> to vector<8x1xi1>
    %74 = vector.broadcast %73 : vector<8x1xi1> to vector<8x32xi1>
    %75 = arith.select %74, %60, %27 : vector<8x32xi1>, vector<8x32xf32>
    %cst_46 = arith.constant 0.000000e+00 : f32
    %76 = vector.broadcast %cst_46 : f32 to vector<8x1xf32>
    %77 = arith.cmpf ogt, %30, %76 : vector<8x1xf32>
    %78 = vector.shape_cast %77 : vector<8x1xi1> to vector<8x1xi1>
    %79 = vector.broadcast %78 : vector<8x1xi1> to vector<8x32xi1>
    %80 = arith.select %79, %58, %27 : vector<8x32xi1>, vector<8x32xf32>
    %c7_i32 = arith.constant 7 : i32
    %81 = arith.subi %c7_i32, %c0_i32 : i32
    %82 = arith.index_cast %81 : i32 to index
    %c0_47 = arith.constant 0 : index
    %c0_48 = arith.constant 0 : index
    %83 = vector.load %arg2[%82, %c0_47, %c0_48] : memref<8x8x1xf32, #tpu.memory_space<vmem>>, vector<1x8x1xf32>
    %84 = vector.shape_cast %83 : vector<1x8x1xf32> to vector<8x1xf32>
    %85 = arith.index_cast %81 : i32 to index
    %c0_49 = arith.constant 0 : index
    %c0_50 = arith.constant 0 : index
    %86 = vector.load %arg29[%85, %c0_49, %c0_50] : memref<8x8x128xf32, #tpu.memory_space<vmem>>, vector<1x8x128xf32>
    %87 = vector.shape_cast %86 : vector<1x8x128xf32> to vector<8x128xf32>
    %cst_51 = arith.constant dense<0.000000e+00> : vector<8x128xf32>
    %88 = tpu.matmul %27, %26, %cst_51 {dimension_numbers = #tpu.dot_dimension_numbers<[1], [0], [0], [1], [0, 0, 1, 1], [], []>} : vector<8x32xf32>, vector<32x128xf32>, vector<8x128xf32> -> vector<8x128xf32>
    %89 = arith.addf %87, %88 : vector<8x128xf32>
    %90 = vector.extract_strided_slice %89 {offsets = [0, 0], sizes = [8, 32], strides = [1, 1]} : vector<8x128xf32> to vector<8x32xf32>
    %91 = arith.negf %90 : vector<8x32xf32>
    %92 = math.exp %91 : vector<8x32xf32>
    %cst_52 = arith.constant 1.000000e+00 : f32
    %93 = vector.broadcast %cst_52 : f32 to vector<8x32xf32>
    %94 = arith.addf %93, %92 : vector<8x32xf32>
    %95 = arith.divf %93, %94 : vector<8x32xf32>
    %96 = vector.extract_strided_slice %89 {offsets = [0, 32], sizes = [8, 32], strides = [1, 1]} : vector<8x128xf32> to vector<8x32xf32>
    %97 = arith.negf %96 : vector<8x32xf32>
    %98 = math.exp %97 : vector<8x32xf32>
    %cst_53 = arith.constant 1.000000e+00 : f32
    %99 = vector.broadcast %cst_53 : f32 to vector<8x32xf32>
    %100 = arith.addf %99, %98 : vector<8x32xf32>
    %101 = arith.divf %99, %100 : vector<8x32xf32>
    %102 = vector.extract_strided_slice %89 {offsets = [0, 64], sizes = [8, 32], strides = [1, 1]} : vector<8x128xf32> to vector<8x32xf32>
    %103 = math.tanh %102 : vector<8x32xf32>
    %104 = vector.extract_strided_slice %89 {offsets = [0, 96], sizes = [8, 32], strides = [1, 1]} : vector<8x128xf32> to vector<8x32xf32>
    %105 = arith.negf %104 : vector<8x32xf32>
    %106 = math.exp %105 : vector<8x32xf32>
    %cst_54 = arith.constant 1.000000e+00 : f32
    %107 = vector.broadcast %cst_54 : f32 to vector<8x32xf32>
    %108 = arith.addf %107, %106 : vector<8x32xf32>
    %109 = arith.divf %107, %108 : vector<8x32xf32>
    %110 = arith.mulf %101, %27 : vector<8x32xf32>
    %111 = arith.mulf %95, %103 : vector<8x32xf32>
    %112 = arith.addf %110, %111 : vector<8x32xf32>
    %113 = math.tanh %112 : vector<8x32xf32>
    %114 = arith.mulf %109, %113 : vector<8x32xf32>
    %cst_55 = arith.constant 0.000000e+00 : f32
    %115 = vector.broadcast %cst_55 : f32 to vector<8x1xf32>
    %116 = arith.cmpf ogt, %84, %115 : vector<8x1xf32>
    %cst_56 = arith.constant 0.000000e+00 : f32
    %117 = vector.shape_cast %116 : vector<8x1xi1> to vector<8x1xi1>
    %118 = vector.broadcast %117 : vector<8x1xi1> to vector<8x32xi1>
    %119 = vector.broadcast %cst_56 : f32 to vector<8x32xf32>
    %120 = arith.select %118, %114, %119 : vector<8x32xi1>, vector<8x32xf32>
    %121 = arith.index_cast %81 : i32 to index
    %c0_57 = arith.constant 0 : index
    %c0_58 = arith.constant 0 : index
    %122 = vector.load %arg27[%121, %c0_57, %c0_58] : memref<8x8x32xf32, #tpu.memory_space<vmem>>, vector<1x8x32xf32>
    %123 = vector.shape_cast %122 : vector<1x8x32xf32> to vector<8x32xf32>
    %124 = vector.shape_cast %120 : vector<8x32xf32> to vector<1x8x32xf32>
    tpu.vector_store %arg27[%121, %c0_57, %c0_58], %124 {strides = array<i32>} : memref<8x8x32xf32, #tpu.memory_space<vmem>>, vector<1x8x32xf32>,
    %cst_59 = arith.constant 0.000000e+00 : f32
    %125 = vector.broadcast %cst_59 : f32 to vector<8x1xf32>
    %126 = arith.cmpf ogt, %84, %125 : vector<8x1xf32>
    %127 = vector.shape_cast %126 : vector<8x1xi1> to vector<8x1xi1>
    %128 = vector.broadcast %127 : vector<8x1xi1> to vector<8x32xi1>
    %129 = arith.select %128, %114, %27 : vector<8x32xi1>, vector<8x32xf32>
    %cst_60 = arith.constant 0.000000e+00 : f32
    %130 = vector.broadcast %cst_60 : f32 to vector<8x1xf32>
    %131 = arith.cmpf ogt, %84, %130 : vector<8x1xf32>
    %132 = vector.shape_cast %131 : vector<8x1xi1> to vector<8x1xi1>
    %133 = vector.broadcast %132 : vector<8x1xi1> to vector<8x32xi1>
    %134 = arith.select %133, %112, %27 : vector<8x32xi1>, vector<8x32xf32>
    %c1_i32 = arith.constant 1 : i32
    %135 = arith.index_cast %c1_i32 : i32 to index
    %c0_61 = arith.constant 0 : index
    %c0_62 = arith.constant 0 : index
    %136 = vector.load %arg2[%135, %c0_61, %c0_62] : memref<8x8x1xf32, #tpu.memory_space<vmem>>, vector<1x8x1xf32>
    %137 = vector.shape_cast %136 : vector<1x8x1xf32> to vector<8x1xf32>
    %138 = arith.index_cast %c1_i32 : i32 to index
    %c0_63 = arith.constant 0 : index
    %c0_64 = arith.constant 0 : index
    %139 = vector.load %arg28[%138, %c0_63, %c0_64] : memref<8x8x128xf32, #tpu.memory_space<vmem>>, vector<1x8x128xf32>
    %140 = vector.shape_cast %139 : vector<1x8x128xf32> to vector<8x128xf32>
    %cst_65 = arith.constant dense<0.000000e+00> : vector<8x128xf32>
    %141 = tpu.matmul %75, %25, %cst_65 {dimension_numbers = #tpu.dot_dimension_numbers<[1], [0], [0], [1], [0, 0, 1, 1], [], []>} : vector<8x32xf32>, vector<32x128xf32>, vector<8x128xf32> -> vector<8x128xf32>
    %142 = arith.addf %140, %141 : vector<8x128xf32>
    %143 = vector.extract_strided_slice %142 {offsets = [0, 0], sizes = [8, 32], strides = [1, 1]} : vector<8x128xf32> to vector<8x32xf32>
    %144 = arith.negf %143 : vector<8x32xf32>
    %145 = math.exp %144 : vector<8x32xf32>
    %cst_66 = arith.constant 1.000000e+00 : f32
    %146 = vector.broadcast %cst_66 : f32 to vector<8x32xf32>
    %147 = arith.addf %146, %145 : vector<8x32xf32>
    %148 = arith.divf %146, %147 : vector<8x32xf32>
    %149 = vector.extract_strided_slice %142 {offsets = [0, 32], sizes = [8, 32], strides = [1, 1]} : vector<8x128xf32> to vector<8x32xf32>
    %150 = arith.negf %149 : vector<8x32xf32>
    %151 = math.exp %150 : vector<8x32xf32>
    %cst_67 = arith.constant 1.000000e+00 : f32
    %152 = vector.broadcast %cst_67 : f32 to vector<8x32xf32>
    %153 = arith.addf %152, %151 : vector<8x32xf32>
    %154 = arith.divf %152, %153 : vector<8x32xf32>
    %155 = vector.extract_strided_slice %142 {offsets = [0, 64], sizes = [8, 32], strides = [1, 1]} : vector<8x128xf32> to vector<8x32xf32>
    %156 = math.tanh %155 : vector<8x32xf32>
    %157 = vector.extract_strided_slice %142 {offsets = [0, 96], sizes = [8, 32], strides = [1, 1]} : vector<8x128xf32> to vector<8x32xf32>
    %158 = arith.negf %157 : vector<8x32xf32>
    %159 = math.exp %158 : vector<8x32xf32>
    %cst_68 = arith.constant 1.000000e+00 : f32
    %160 = vector.broadcast %cst_68 : f32 to vector<8x32xf32>
    %161 = arith.addf %160, %159 : vector<8x32xf32>
    %162 = arith.divf %160, %161 : vector<8x32xf32>
    %163 = arith.mulf %154, %80 : vector<8x32xf32>
    %164 = arith.mulf %148, %156 : vector<8x32xf32>
    %165 = arith.addf %163, %164 : vector<8x32xf32>
    %166 = math.tanh %165 : vector<8x32xf32>
    %167 = arith.mulf %162, %166 : vector<8x32xf32>
    %cst_69 = arith.constant 0.000000e+00 : f32
    %168 = vector.broadcast %cst_69 : f32 to vector<8x1xf32>
    %169 = arith.cmpf ogt, %137, %168 : vector<8x1xf32>
    %cst_70 = arith.constant 0.000000e+00 : f32
    %170 = vector.shape_cast %169 : vector<8x1xi1> to vector<8x1xi1>
    %171 = vector.broadcast %170 : vector<8x1xi1> to vector<8x32xi1>
    %172 = vector.broadcast %cst_70 : f32 to vector<8x32xf32>
    %173 = arith.select %171, %167, %172 : vector<8x32xi1>, vector<8x32xf32>
    %174 = arith.index_cast %c1_i32 : i32 to index
    %c0_71 = arith.constant 0 : index
    %c0_72 = arith.constant 0 : index
    %175 = vector.load %arg26[%174, %c0_71, %c0_72] : memref<8x8x32xf32, #tpu.memory_space<vmem>>, vector<1x8x32xf32>
    %176 = vector.shape_cast %175 : vector<1x8x32xf32> to vector<8x32xf32>
    %177 = vector.shape_cast %173 : vector<8x32xf32> to vector<1x8x32xf32>
    tpu.vector_store %arg26[%174, %c0_71, %c0_72], %177 {strides = array<i32>} : memref<8x8x32xf32, #tpu.memory_space<vmem>>, vector<1x8x32xf32>,
    %cst_73 = arith.constant 0.000000e+00 : f32
    %178 = vector.broadcast %cst_73 : f32 to vector<8x1xf32>
    %179 = arith.cmpf ogt, %137, %178 : vector<8x1xf32>
    %180 = vector.shape_cast %179 : vector<8x1xi1> to vector<8x1xi1>
    %181 = vector.broadcast %180 : vector<8x1xi1> to vector<8x32xi1>
    %182 = arith.select %181, %167, %75 : vector<8x32xi1>, vector<8x32xf32>
    %cst_74 = arith.constant 0.000000e+00 : f32
    %183 = vector.broadcast %cst_74 : f32 to vector<8x1xf32>
    %184 = arith.cmpf ogt, %137, %183 : vector<8x1xf32>
    %185 = vector.shape_cast %184 : vector<8x1xi1> to vector<8x1xi1>
    %186 = vector.broadcast %185 : vector<8x1xi1> to vector<8x32xi1>
    %187 = arith.select %186, %165, %80 : vector<8x32xi1>, vector<8x32xf32>
    %c7_i32_75 = arith.constant 7 : i32
    %188 = arith.subi %c7_i32_75, %c1_i32 : i32
    %189 = arith.index_cast %188 : i32 to index
    %c0_76 = arith.constant 0 : index
    %c0_77 = arith.constant 0 : index
    %190 = vector.load %arg2[%189, %c0_76, %c0_77] : memref<8x8x1xf32, #tpu.memory_space<vmem>>, vector<1x8x1xf32>
    %191 = vector.shape_cast %190 : vector<1x8x1xf32> to vector<8x1xf32>
    %192 = arith.index_cast %188 : i32 to index
    %c0_78 = arith.constant 0 : index
    %c0_79 = arith.constant 0 : index
    %193 = vector.load %arg29[%192, %c0_78, %c0_79] : memref<8x8x128xf32, #tpu.memory_space<vmem>>, vector<1x8x128xf32>
    %194 = vector.shape_cast %193 : vector<1x8x128xf32> to vector<8x128xf32>
    %cst_80 = arith.constant dense<0.000000e+00> : vector<8x128xf32>
    %195 = tpu.matmul %129, %26, %cst_80 {dimension_numbers = #tpu.dot_dimension_numbers<[1], [0], [0], [1], [0, 0, 1, 1], [], []>} : vector<8x32xf32>, vector<32x128xf32>, vector<8x128xf32> -> vector<8x128xf32>
    %196 = arith.addf %194, %195 : vector<8x128xf32>
    %197 = vector.extract_strided_slice %196 {offsets = [0, 0], sizes = [8, 32], strides = [1, 1]} : vector<8x128xf32> to vector<8x32xf32>
    %198 = arith.negf %197 : vector<8x32xf32>
    %199 = math.exp %198 : vector<8x32xf32>
    %cst_81 = arith.constant 1.000000e+00 : f32
    %200 = vector.broadcast %cst_81 : f32 to vector<8x32xf32>
    %201 = arith.addf %200, %199 : vector<8x32xf32>
    %202 = arith.divf %200, %201 : vector<8x32xf32>
    %203 = vector.extract_strided_slice %196 {offsets = [0, 32], sizes = [8, 32], strides = [1, 1]} : vector<8x128xf32> to vector<8x32xf32>
    %204 = arith.negf %203 : vector<8x32xf32>
    %205 = math.exp %204 : vector<8x32xf32>
    %cst_82 = arith.constant 1.000000e+00 : f32
    %206 = vector.broadcast %cst_82 : f32 to vector<8x32xf32>
    %207 = arith.addf %206, %205 : vector<8x32xf32>
    %208 = arith.divf %206, %207 : vector<8x32xf32>
    %209 = vector.extract_strided_slice %196 {offsets = [0, 64], sizes = [8, 32], strides = [1, 1]} : vector<8x128xf32> to vector<8x32xf32>
    %210 = math.tanh %209 : vector<8x32xf32>
    %211 = vector.extract_strided_slice %196 {offsets = [0, 96], sizes = [8, 32], strides = [1, 1]} : vector<8x128xf32> to vector<8x32xf32>
    %212 = arith.negf %211 : vector<8x32xf32>
    %213 = math.exp %212 : vector<8x32xf32>
    %cst_83 = arith.constant 1.000000e+00 : f32
    %214 = vector.broadcast %cst_83 : f32 to vector<8x32xf32>
    %215 = arith.addf %214, %213 : vector<8x32xf32>
    %216 = arith.divf %214, %215 : vector<8x32xf32>
    %217 = arith.mulf %208, %134 : vector<8x32xf32>
    %218 = arith.mulf %202, %210 : vector<8x32xf32>
    %219 = arith.addf %217, %218 : vector<8x32xf32>
    %220 = math.tanh %219 : vector<8x32xf32>
    %221 = arith.mulf %216, %220 : vector<8x32xf32>
    %cst_84 = arith.constant 0.000000e+00 : f32
    %222 = vector.broadcast %cst_84 : f32 to vector<8x1xf32>
    %223 = arith.cmpf ogt, %191, %222 : vector<8x1xf32>
    %cst_85 = arith.constant 0.000000e+00 : f32
    %224 = vector.shape_cast %223 : vector<8x1xi1> to vector<8x1xi1>
    %225 = vector.broadcast %224 : vector<8x1xi1> to vector<8x32xi1>
    %226 = vector.broadcast %cst_85 : f32 to vector<8x32xf32>
    %227 = arith.select %225, %221, %226 : vector<8x32xi1>, vector<8x32xf32>
    %228 = arith.index_cast %188 : i32 to index
    %c0_86 = arith.constant 0 : index
    %c0_87 = arith.constant 0 : index
    %229 = vector.load %arg27[%228, %c0_86, %c0_87] : memref<8x8x32xf32, #tpu.memory_space<vmem>>, vector<1x8x32xf32>
    %230 = vector.shape_cast %229 : vector<1x8x32xf32> to vector<8x32xf32>
    %231 = vector.shape_cast %227 : vector<8x32xf32> to vector<1x8x32xf32>
    tpu.vector_store %arg27[%228, %c0_86, %c0_87], %231 {strides = array<i32>} : memref<8x8x32xf32, #tpu.memory_space<vmem>>, vector<1x8x32xf32>,
    %cst_88 = arith.constant 0.000000e+00 : f32
    %232 = vector.broadcast %cst_88 : f32 to vector<8x1xf32>
    %233 = arith.cmpf ogt, %191, %232 : vector<8x1xf32>
    %234 = vector.shape_cast %233 : vector<8x1xi1> to vector<8x1xi1>
    %235 = vector.broadcast %234 : vector<8x1xi1> to vector<8x32xi1>
    %236 = arith.select %235, %221, %129 : vector<8x32xi1>, vector<8x32xf32>
    %cst_89 = arith.constant 0.000000e+00 : f32
    %237 = vector.broadcast %cst_89 : f32 to vector<8x1xf32>
    %238 = arith.cmpf ogt, %191, %237 : vector<8x1xf32>
    %239 = vector.shape_cast %238 : vector<8x1xi1> to vector<8x1xi1>
    %240 = vector.broadcast %239 : vector<8x1xi1> to vector<8x32xi1>
    %241 = arith.select %240, %219, %134 : vector<8x32xi1>, vector<8x32xf32>
    %c2_i32 = arith.constant 2 : i32
    %242 = arith.index_cast %c2_i32 : i32 to index
    %c0_90 = arith.constant 0 : index
    %c0_91 = arith.constant 0 : index
    %243 = vector.load %arg2[%242, %c0_90, %c0_91] : memref<8x8x1xf32, #tpu.memory_space<vmem>>, vector<1x8x1xf32>
    %244 = vector.shape_cast %243 : vector<1x8x1xf32> to vector<8x1xf32>
    %245 = arith.index_cast %c2_i32 : i32 to index
    %c0_92 = arith.constant 0 : index
    %c0_93 = arith.constant 0 : index
    %246 = vector.load %arg28[%245, %c0_92, %c0_93] : memref<8x8x128xf32, #tpu.memory_space<vmem>>, vector<1x8x128xf32>
    %247 = vector.shape_cast %246 : vector<1x8x128xf32> to vector<8x128xf32>
    %cst_94 = arith.constant dense<0.000000e+00> : vector<8x128xf32>
    %248 = tpu.matmul %182, %25, %cst_94 {dimension_numbers = #tpu.dot_dimension_numbers<[1], [0], [0], [1], [0, 0, 1, 1], [], []>} : vector<8x32xf32>, vector<32x128xf32>, vector<8x128xf32> -> vector<8x128xf32>
    %249 = arith.addf %247, %248 : vector<8x128xf32>
    %250 = vector.extract_strided_slice %249 {offsets = [0, 0], sizes = [8, 32], strides = [1, 1]} : vector<8x128xf32> to vector<8x32xf32>
    %251 = arith.negf %250 : vector<8x32xf32>
    %252 = math.exp %251 : vector<8x32xf32>
    %cst_95 = arith.constant 1.000000e+00 : f32
    %253 = vector.broadcast %cst_95 : f32 to vector<8x32xf32>
    %254 = arith.addf %253, %252 : vector<8x32xf32>
    %255 = arith.divf %253, %254 : vector<8x32xf32>
    %256 = vector.extract_strided_slice %249 {offsets = [0, 32], sizes = [8, 32], strides = [1, 1]} : vector<8x128xf32> to vector<8x32xf32>
    %257 = arith.negf %256 : vector<8x32xf32>
    %258 = math.exp %257 : vector<8x32xf32>
    %cst_96 = arith.constant 1.000000e+00 : f32
    %259 = vector.broadcast %cst_96 : f32 to vector<8x32xf32>
    %260 = arith.addf %259, %258 : vector<8x32xf32>
    %261 = arith.divf %259, %260 : vector<8x32xf32>
    %262 = vector.extract_strided_slice %249 {offsets = [0, 64], sizes = [8, 32], strides = [1, 1]} : vector<8x128xf32> to vector<8x32xf32>
    %263 = math.tanh %262 : vector<8x32xf32>
    %264 = vector.extract_strided_slice %249 {offsets = [0, 96], sizes = [8, 32], strides = [1, 1]} : vector<8x128xf32> to vector<8x32xf32>
    %265 = arith.negf %264 : vector<8x32xf32>
    %266 = math.exp %265 : vector<8x32xf32>
    %cst_97 = arith.constant 1.000000e+00 : f32
    %267 = vector.broadcast %cst_97 : f32 to vector<8x32xf32>
    %268 = arith.addf %267, %266 : vector<8x32xf32>
    %269 = arith.divf %267, %268 : vector<8x32xf32>
    %270 = arith.mulf %261, %187 : vector<8x32xf32>
    %271 = arith.mulf %255, %263 : vector<8x32xf32>
    %272 = arith.addf %270, %271 : vector<8x32xf32>
    %273 = math.tanh %272 : vector<8x32xf32>
    %274 = arith.mulf %269, %273 : vector<8x32xf32>
    %cst_98 = arith.constant 0.000000e+00 : f32
    %275 = vector.broadcast %cst_98 : f32 to vector<8x1xf32>
    %276 = arith.cmpf ogt, %244, %275 : vector<8x1xf32>
    %cst_99 = arith.constant 0.000000e+00 : f32
    %277 = vector.shape_cast %276 : vector<8x1xi1> to vector<8x1xi1>
    %278 = vector.broadcast %277 : vector<8x1xi1> to vector<8x32xi1>
    %279 = vector.broadcast %cst_99 : f32 to vector<8x32xf32>
    %280 = arith.select %278, %274, %279 : vector<8x32xi1>, vector<8x32xf32>
    %281 = arith.index_cast %c2_i32 : i32 to index
    %c0_100 = arith.constant 0 : index
    %c0_101 = arith.constant 0 : index
    %282 = vector.load %arg26[%281, %c0_100, %c0_101] : memref<8x8x32xf32, #tpu.memory_space<vmem>>, vector<1x8x32xf32>
    %283 = vector.shape_cast %282 : vector<1x8x32xf32> to vector<8x32xf32>
    %284 = vector.shape_cast %280 : vector<8x32xf32> to vector<1x8x32xf32>
    tpu.vector_store %arg26[%281, %c0_100, %c0_101], %284 {strides = array<i32>} : memref<8x8x32xf32, #tpu.memory_space<vmem>>, vector<1x8x32xf32>,
    %cst_102 = arith.constant 0.000000e+00 : f32
    %285 = vector.broadcast %cst_102 : f32 to vector<8x1xf32>
    %286 = arith.cmpf ogt, %244, %285 : vector<8x1xf32>
    %287 = vector.shape_cast %286 : vector<8x1xi1> to vector<8x1xi1>
    %288 = vector.broadcast %287 : vector<8x1xi1> to vector<8x32xi1>
    %289 = arith.select %288, %274, %182 : vector<8x32xi1>, vector<8x32xf32>
    %cst_103 = arith.constant 0.000000e+00 : f32
    %290 = vector.broadcast %cst_103 : f32 to vector<8x1xf32>
    %291 = arith.cmpf ogt, %244, %290 : vector<8x1xf32>
    %292 = vector.shape_cast %291 : vector<8x1xi1> to vector<8x1xi1>
    %293 = vector.broadcast %292 : vector<8x1xi1> to vector<8x32xi1>
    %294 = arith.select %293, %272, %187 : vector<8x32xi1>, vector<8x32xf32>
    %c7_i32_104 = arith.constant 7 : i32
    %295 = arith.subi %c7_i32_104, %c2_i32 : i32
    %296 = arith.index_cast %295 : i32 to index
    %c0_105 = arith.constant 0 : index
    %c0_106 = arith.constant 0 : index
    %297 = vector.load %arg2[%296, %c0_105, %c0_106] : memref<8x8x1xf32, #tpu.memory_space<vmem>>, vector<1x8x1xf32>
    %298 = vector.shape_cast %297 : vector<1x8x1xf32> to vector<8x1xf32>
    %299 = arith.index_cast %295 : i32 to index
    %c0_107 = arith.constant 0 : index
    %c0_108 = arith.constant 0 : index
    %300 = vector.load %arg29[%299, %c0_107, %c0_108] : memref<8x8x128xf32, #tpu.memory_space<vmem>>, vector<1x8x128xf32>
    %301 = vector.shape_cast %300 : vector<1x8x128xf32> to vector<8x128xf32>
    %cst_109 = arith.constant dense<0.000000e+00> : vector<8x128xf32>
    %302 = tpu.matmul %236, %26, %cst_109 {dimension_numbers = #tpu.dot_dimension_numbers<[1], [0], [0], [1], [0, 0, 1, 1], [], []>} : vector<8x32xf32>, vector<32x128xf32>, vector<8x128xf32> -> vector<8x128xf32>
    %303 = arith.addf %301, %302 : vector<8x128xf32>
    %304 = vector.extract_strided_slice %303 {offsets = [0, 0], sizes = [8, 32], strides = [1, 1]} : vector<8x128xf32> to vector<8x32xf32>
    %305 = arith.negf %304 : vector<8x32xf32>
    %306 = math.exp %305 : vector<8x32xf32>
    %cst_110 = arith.constant 1.000000e+00 : f32
    %307 = vector.broadcast %cst_110 : f32 to vector<8x32xf32>
    %308 = arith.addf %307, %306 : vector<8x32xf32>
    %309 = arith.divf %307, %308 : vector<8x32xf32>
    %310 = vector.extract_strided_slice %303 {offsets = [0, 32], sizes = [8, 32], strides = [1, 1]} : vector<8x128xf32> to vector<8x32xf32>
    %311 = arith.negf %310 : vector<8x32xf32>
    %312 = math.exp %311 : vector<8x32xf32>
    %cst_111 = arith.constant 1.000000e+00 : f32
    %313 = vector.broadcast %cst_111 : f32 to vector<8x32xf32>
    %314 = arith.addf %313, %312 : vector<8x32xf32>
    %315 = arith.divf %313, %314 : vector<8x32xf32>
    %316 = vector.extract_strided_slice %303 {offsets = [0, 64], sizes = [8, 32], strides = [1, 1]} : vector<8x128xf32> to vector<8x32xf32>
    %317 = math.tanh %316 : vector<8x32xf32>
    %318 = vector.extract_strided_slice %303 {offsets = [0, 96], sizes = [8, 32], strides = [1, 1]} : vector<8x128xf32> to vector<8x32xf32>
    %319 = arith.negf %318 : vector<8x32xf32>
    %320 = math.exp %319 : vector<8x32xf32>
    %cst_112 = arith.constant 1.000000e+00 : f32
    %321 = vector.broadcast %cst_112 : f32 to vector<8x32xf32>
    %322 = arith.addf %321, %320 : vector<8x32xf32>
    %323 = arith.divf %321, %322 : vector<8x32xf32>
    %324 = arith.mulf %315, %241 : vector<8x32xf32>
    %325 = arith.mulf %309, %317 : vector<8x32xf32>
    %326 = arith.addf %324, %325 : vector<8x32xf32>
    %327 = math.tanh %326 : vector<8x32xf32>
    %328 = arith.mulf %323, %327 : vector<8x32xf32>
    %cst_113 = arith.constant 0.000000e+00 : f32
    %329 = vector.broadcast %cst_113 : f32 to vector<8x1xf32>
    %330 = arith.cmpf ogt, %298, %329 : vector<8x1xf32>
    %cst_114 = arith.constant 0.000000e+00 : f32
    %331 = vector.shape_cast %330 : vector<8x1xi1> to vector<8x1xi1>
    %332 = vector.broadcast %331 : vector<8x1xi1> to vector<8x32xi1>
    %333 = vector.broadcast %cst_114 : f32 to vector<8x32xf32>
    %334 = arith.select %332, %328, %333 : vector<8x32xi1>, vector<8x32xf32>
    %335 = arith.index_cast %295 : i32 to index
    %c0_115 = arith.constant 0 : index
    %c0_116 = arith.constant 0 : index
    %336 = vector.load %arg27[%335, %c0_115, %c0_116] : memref<8x8x32xf32, #tpu.memory_space<vmem>>, vector<1x8x32xf32>
    %337 = vector.shape_cast %336 : vector<1x8x32xf32> to vector<8x32xf32>
    %338 = vector.shape_cast %334 : vector<8x32xf32> to vector<1x8x32xf32>
    tpu.vector_store %arg27[%335, %c0_115, %c0_116], %338 {strides = array<i32>} : memref<8x8x32xf32, #tpu.memory_space<vmem>>, vector<1x8x32xf32>,
    %cst_117 = arith.constant 0.000000e+00 : f32
    %339 = vector.broadcast %cst_117 : f32 to vector<8x1xf32>
    %340 = arith.cmpf ogt, %298, %339 : vector<8x1xf32>
    %341 = vector.shape_cast %340 : vector<8x1xi1> to vector<8x1xi1>
    %342 = vector.broadcast %341 : vector<8x1xi1> to vector<8x32xi1>
    %343 = arith.select %342, %328, %236 : vector<8x32xi1>, vector<8x32xf32>
    %cst_118 = arith.constant 0.000000e+00 : f32
    %344 = vector.broadcast %cst_118 : f32 to vector<8x1xf32>
    %345 = arith.cmpf ogt, %298, %344 : vector<8x1xf32>
    %346 = vector.shape_cast %345 : vector<8x1xi1> to vector<8x1xi1>
    %347 = vector.broadcast %346 : vector<8x1xi1> to vector<8x32xi1>
    %348 = arith.select %347, %326, %241 : vector<8x32xi1>, vector<8x32xf32>
    %c3_i32 = arith.constant 3 : i32
    %349 = arith.index_cast %c3_i32 : i32 to index
    %c0_119 = arith.constant 0 : index
    %c0_120 = arith.constant 0 : index
    %350 = vector.load %arg2[%349, %c0_119, %c0_120] : memref<8x8x1xf32, #tpu.memory_space<vmem>>, vector<1x8x1xf32>
    %351 = vector.shape_cast %350 : vector<1x8x1xf32> to vector<8x1xf32>
    %352 = arith.index_cast %c3_i32 : i32 to index
    %c0_121 = arith.constant 0 : index
    %c0_122 = arith.constant 0 : index
    %353 = vector.load %arg28[%352, %c0_121, %c0_122] : memref<8x8x128xf32, #tpu.memory_space<vmem>>, vector<1x8x128xf32>
    %354 = vector.shape_cast %353 : vector<1x8x128xf32> to vector<8x128xf32>
    %cst_123 = arith.constant dense<0.000000e+00> : vector<8x128xf32>
    %355 = tpu.matmul %289, %25, %cst_123 {dimension_numbers = #tpu.dot_dimension_numbers<[1], [0], [0], [1], [0, 0, 1, 1], [], []>} : vector<8x32xf32>, vector<32x128xf32>, vector<8x128xf32> -> vector<8x128xf32>
    %356 = arith.addf %354, %355 : vector<8x128xf32>
    %357 = vector.extract_strided_slice %356 {offsets = [0, 0], sizes = [8, 32], strides = [1, 1]} : vector<8x128xf32> to vector<8x32xf32>
    %358 = arith.negf %357 : vector<8x32xf32>
    %359 = math.exp %358 : vector<8x32xf32>
    %cst_124 = arith.constant 1.000000e+00 : f32
    %360 = vector.broadcast %cst_124 : f32 to vector<8x32xf32>
    %361 = arith.addf %360, %359 : vector<8x32xf32>
    %362 = arith.divf %360, %361 : vector<8x32xf32>
    %363 = vector.extract_strided_slice %356 {offsets = [0, 32], sizes = [8, 32], strides = [1, 1]} : vector<8x128xf32> to vector<8x32xf32>
    %364 = arith.negf %363 : vector<8x32xf32>
    %365 = math.exp %364 : vector<8x32xf32>
    %cst_125 = arith.constant 1.000000e+00 : f32
    %366 = vector.broadcast %cst_125 : f32 to vector<8x32xf32>
    %367 = arith.addf %366, %365 : vector<8x32xf32>
    %368 = arith.divf %366, %367 : vector<8x32xf32>
    %369 = vector.extract_strided_slice %356 {offsets = [0, 64], sizes = [8, 32], strides = [1, 1]} : vector<8x128xf32> to vector<8x32xf32>
    %370 = math.tanh %369 : vector<8x32xf32>
    %371 = vector.extract_strided_slice %356 {offsets = [0, 96], sizes = [8, 32], strides = [1, 1]} : vector<8x128xf32> to vector<8x32xf32>
    %372 = arith.negf %371 : vector<8x32xf32>
    %373 = math.exp %372 : vector<8x32xf32>
    %cst_126 = arith.constant 1.000000e+00 : f32
    %374 = vector.broadcast %cst_126 : f32 to vector<8x32xf32>
    %375 = arith.addf %374, %373 : vector<8x32xf32>
    %376 = arith.divf %374, %375 : vector<8x32xf32>
    %377 = arith.mulf %368, %294 : vector<8x32xf32>
    %378 = arith.mulf %362, %370 : vector<8x32xf32>
    %379 = arith.addf %377, %378 : vector<8x32xf32>
    %380 = math.tanh %379 : vector<8x32xf32>
    %381 = arith.mulf %376, %380 : vector<8x32xf32>
    %cst_127 = arith.constant 0.000000e+00 : f32
    %382 = vector.broadcast %cst_127 : f32 to vector<8x1xf32>
    %383 = arith.cmpf ogt, %351, %382 : vector<8x1xf32>
    %cst_128 = arith.constant 0.000000e+00 : f32
    %384 = vector.shape_cast %383 : vector<8x1xi1> to vector<8x1xi1>
    %385 = vector.broadcast %384 : vector<8x1xi1> to vector<8x32xi1>
    %386 = vector.broadcast %cst_128 : f32 to vector<8x32xf32>
    %387 = arith.select %385, %381, %386 : vector<8x32xi1>, vector<8x32xf32>
    %388 = arith.index_cast %c3_i32 : i32 to index
    %c0_129 = arith.constant 0 : index
    %c0_130 = arith.constant 0 : index
    %389 = vector.load %arg26[%388, %c0_129, %c0_130] : memref<8x8x32xf32, #tpu.memory_space<vmem>>, vector<1x8x32xf32>
    %390 = vector.shape_cast %389 : vector<1x8x32xf32> to vector<8x32xf32>
    %391 = vector.shape_cast %387 : vector<8x32xf32> to vector<1x8x32xf32>
    tpu.vector_store %arg26[%388, %c0_129, %c0_130], %391 {strides = array<i32>} : memref<8x8x32xf32, #tpu.memory_space<vmem>>, vector<1x8x32xf32>,
    %cst_131 = arith.constant 0.000000e+00 : f32
    %392 = vector.broadcast %cst_131 : f32 to vector<8x1xf32>
    %393 = arith.cmpf ogt, %351, %392 : vector<8x1xf32>
    %394 = vector.shape_cast %393 : vector<8x1xi1> to vector<8x1xi1>
    %395 = vector.broadcast %394 : vector<8x1xi1> to vector<8x32xi1>
    %396 = arith.select %395, %381, %289 : vector<8x32xi1>, vector<8x32xf32>
    %cst_132 = arith.constant 0.000000e+00 : f32
    %397 = vector.broadcast %cst_132 : f32 to vector<8x1xf32>
    %398 = arith.cmpf ogt, %351, %397 : vector<8x1xf32>
    %399 = vector.shape_cast %398 : vector<8x1xi1> to vector<8x1xi1>
    %400 = vector.broadcast %399 : vector<8x1xi1> to vector<8x32xi1>
    %401 = arith.select %400, %379, %294 : vector<8x32xi1>, vector<8x32xf32>
    %c7_i32_133 = arith.constant 7 : i32
    %402 = arith.subi %c7_i32_133, %c3_i32 : i32
    %403 = arith.index_cast %402 : i32 to index
    %c0_134 = arith.constant 0 : index
    %c0_135 = arith.constant 0 : index
    %404 = vector.load %arg2[%403, %c0_134, %c0_135] : memref<8x8x1xf32, #tpu.memory_space<vmem>>, vector<1x8x1xf32>
    %405 = vector.shape_cast %404 : vector<1x8x1xf32> to vector<8x1xf32>
    %406 = arith.index_cast %402 : i32 to index
    %c0_136 = arith.constant 0 : index
    %c0_137 = arith.constant 0 : index
    %407 = vector.load %arg29[%406, %c0_136, %c0_137] : memref<8x8x128xf32, #tpu.memory_space<vmem>>, vector<1x8x128xf32>
    %408 = vector.shape_cast %407 : vector<1x8x128xf32> to vector<8x128xf32>
    %cst_138 = arith.constant dense<0.000000e+00> : vector<8x128xf32>
    %409 = tpu.matmul %343, %26, %cst_138 {dimension_numbers = #tpu.dot_dimension_numbers<[1], [0], [0], [1], [0, 0, 1, 1], [], []>} : vector<8x32xf32>, vector<32x128xf32>, vector<8x128xf32> -> vector<8x128xf32>
    %410 = arith.addf %408, %409 : vector<8x128xf32>
    %411 = vector.extract_strided_slice %410 {offsets = [0, 0], sizes = [8, 32], strides = [1, 1]} : vector<8x128xf32> to vector<8x32xf32>
    %412 = arith.negf %411 : vector<8x32xf32>
    %413 = math.exp %412 : vector<8x32xf32>
    %cst_139 = arith.constant 1.000000e+00 : f32
    %414 = vector.broadcast %cst_139 : f32 to vector<8x32xf32>
    %415 = arith.addf %414, %413 : vector<8x32xf32>
    %416 = arith.divf %414, %415 : vector<8x32xf32>
    %417 = vector.extract_strided_slice %410 {offsets = [0, 32], sizes = [8, 32], strides = [1, 1]} : vector<8x128xf32> to vector<8x32xf32>
    %418 = arith.negf %417 : vector<8x32xf32>
    %419 = math.exp %418 : vector<8x32xf32>
    %cst_140 = arith.constant 1.000000e+00 : f32
    %420 = vector.broadcast %cst_140 : f32 to vector<8x32xf32>
    %421 = arith.addf %420, %419 : vector<8x32xf32>
    %422 = arith.divf %420, %421 : vector<8x32xf32>
    %423 = vector.extract_strided_slice %410 {offsets = [0, 64], sizes = [8, 32], strides = [1, 1]} : vector<8x128xf32> to vector<8x32xf32>
    %424 = math.tanh %423 : vector<8x32xf32>
    %425 = vector.extract_strided_slice %410 {offsets = [0, 96], sizes = [8, 32], strides = [1, 1]} : vector<8x128xf32> to vector<8x32xf32>
    %426 = arith.negf %425 : vector<8x32xf32>
    %427 = math.exp %426 : vector<8x32xf32>
    %cst_141 = arith.constant 1.000000e+00 : f32
    %428 = vector.broadcast %cst_141 : f32 to vector<8x32xf32>
    %429 = arith.addf %428, %427 : vector<8x32xf32>
    %430 = arith.divf %428, %429 : vector<8x32xf32>
    %431 = arith.mulf %422, %348 : vector<8x32xf32>
    %432 = arith.mulf %416, %424 : vector<8x32xf32>
    %433 = arith.addf %431, %432 : vector<8x32xf32>
    %434 = math.tanh %433 : vector<8x32xf32>
    %435 = arith.mulf %430, %434 : vector<8x32xf32>
    %cst_142 = arith.constant 0.000000e+00 : f32
    %436 = vector.broadcast %cst_142 : f32 to vector<8x1xf32>
    %437 = arith.cmpf ogt, %405, %436 : vector<8x1xf32>
    %cst_143 = arith.constant 0.000000e+00 : f32
    %438 = vector.shape_cast %437 : vector<8x1xi1> to vector<8x1xi1>
    %439 = vector.broadcast %438 : vector<8x1xi1> to vector<8x32xi1>
    %440 = vector.broadcast %cst_143 : f32 to vector<8x32xf32>
    %441 = arith.select %439, %435, %440 : vector<8x32xi1>, vector<8x32xf32>
    %442 = arith.index_cast %402 : i32 to index
    %c0_144 = arith.constant 0 : index
    %c0_145 = arith.constant 0 : index
    %443 = vector.load %arg27[%442, %c0_144, %c0_145] : memref<8x8x32xf32, #tpu.memory_space<vmem>>, vector<1x8x32xf32>
    %444 = vector.shape_cast %443 : vector<1x8x32xf32> to vector<8x32xf32>
    %445 = vector.shape_cast %441 : vector<8x32xf32> to vector<1x8x32xf32>
    tpu.vector_store %arg27[%442, %c0_144, %c0_145], %445 {strides = array<i32>} : memref<8x8x32xf32, #tpu.memory_space<vmem>>, vector<1x8x32xf32>,
    %cst_146 = arith.constant 0.000000e+00 : f32
    %446 = vector.broadcast %cst_146 : f32 to vector<8x1xf32>
    %447 = arith.cmpf ogt, %405, %446 : vector<8x1xf32>
    %448 = vector.shape_cast %447 : vector<8x1xi1> to vector<8x1xi1>
    %449 = vector.broadcast %448 : vector<8x1xi1> to vector<8x32xi1>
    %450 = arith.select %449, %435, %343 : vector<8x32xi1>, vector<8x32xf32>
    %cst_147 = arith.constant 0.000000e+00 : f32
    %451 = vector.broadcast %cst_147 : f32 to vector<8x1xf32>
    %452 = arith.cmpf ogt, %405, %451 : vector<8x1xf32>
    %453 = vector.shape_cast %452 : vector<8x1xi1> to vector<8x1xi1>
    %454 = vector.broadcast %453 : vector<8x1xi1> to vector<8x32xi1>
    %455 = arith.select %454, %433, %348 : vector<8x32xi1>, vector<8x32xf32>
    %c4_i32 = arith.constant 4 : i32
    %456 = arith.index_cast %c4_i32 : i32 to index
    %c0_148 = arith.constant 0 : index
    %c0_149 = arith.constant 0 : index
    %457 = vector.load %arg2[%456, %c0_148, %c0_149] : memref<8x8x1xf32, #tpu.memory_space<vmem>>, vector<1x8x1xf32>
    %458 = vector.shape_cast %457 : vector<1x8x1xf32> to vector<8x1xf32>
    %459 = arith.index_cast %c4_i32 : i32 to index
    %c0_150 = arith.constant 0 : index
    %c0_151 = arith.constant 0 : index
    %460 = vector.load %arg28[%459, %c0_150, %c0_151] : memref<8x8x128xf32, #tpu.memory_space<vmem>>, vector<1x8x128xf32>
    %461 = vector.shape_cast %460 : vector<1x8x128xf32> to vector<8x128xf32>
    %cst_152 = arith.constant dense<0.000000e+00> : vector<8x128xf32>
    %462 = tpu.matmul %396, %25, %cst_152 {dimension_numbers = #tpu.dot_dimension_numbers<[1], [0], [0], [1], [0, 0, 1, 1], [], []>} : vector<8x32xf32>, vector<32x128xf32>, vector<8x128xf32> -> vector<8x128xf32>
    %463 = arith.addf %461, %462 : vector<8x128xf32>
    %464 = vector.extract_strided_slice %463 {offsets = [0, 0], sizes = [8, 32], strides = [1, 1]} : vector<8x128xf32> to vector<8x32xf32>
    %465 = arith.negf %464 : vector<8x32xf32>
    %466 = math.exp %465 : vector<8x32xf32>
    %cst_153 = arith.constant 1.000000e+00 : f32
    %467 = vector.broadcast %cst_153 : f32 to vector<8x32xf32>
    %468 = arith.addf %467, %466 : vector<8x32xf32>
    %469 = arith.divf %467, %468 : vector<8x32xf32>
    %470 = vector.extract_strided_slice %463 {offsets = [0, 32], sizes = [8, 32], strides = [1, 1]} : vector<8x128xf32> to vector<8x32xf32>
    %471 = arith.negf %470 : vector<8x32xf32>
    %472 = math.exp %471 : vector<8x32xf32>
    %cst_154 = arith.constant 1.000000e+00 : f32
    %473 = vector.broadcast %cst_154 : f32 to vector<8x32xf32>
    %474 = arith.addf %473, %472 : vector<8x32xf32>
    %475 = arith.divf %473, %474 : vector<8x32xf32>
    %476 = vector.extract_strided_slice %463 {offsets = [0, 64], sizes = [8, 32], strides = [1, 1]} : vector<8x128xf32> to vector<8x32xf32>
    %477 = math.tanh %476 : vector<8x32xf32>
    %478 = vector.extract_strided_slice %463 {offsets = [0, 96], sizes = [8, 32], strides = [1, 1]} : vector<8x128xf32> to vector<8x32xf32>
    %479 = arith.negf %478 : vector<8x32xf32>
    %480 = math.exp %479 : vector<8x32xf32>
    %cst_155 = arith.constant 1.000000e+00 : f32
    %481 = vector.broadcast %cst_155 : f32 to vector<8x32xf32>
    %482 = arith.addf %481, %480 : vector<8x32xf32>
    %483 = arith.divf %481, %482 : vector<8x32xf32>
    %484 = arith.mulf %475, %401 : vector<8x32xf32>
    %485 = arith.mulf %469, %477 : vector<8x32xf32>
    %486 = arith.addf %484, %485 : vector<8x32xf32>
    %487 = math.tanh %486 : vector<8x32xf32>
    %488 = arith.mulf %483, %487 : vector<8x32xf32>
    %cst_156 = arith.constant 0.000000e+00 : f32
    %489 = vector.broadcast %cst_156 : f32 to vector<8x1xf32>
    %490 = arith.cmpf ogt, %458, %489 : vector<8x1xf32>
    %cst_157 = arith.constant 0.000000e+00 : f32
    %491 = vector.shape_cast %490 : vector<8x1xi1> to vector<8x1xi1>
    %492 = vector.broadcast %491 : vector<8x1xi1> to vector<8x32xi1>
    %493 = vector.broadcast %cst_157 : f32 to vector<8x32xf32>
    %494 = arith.select %492, %488, %493 : vector<8x32xi1>, vector<8x32xf32>
    %495 = arith.index_cast %c4_i32 : i32 to index
    %c0_158 = arith.constant 0 : index
    %c0_159 = arith.constant 0 : index
    %496 = vector.load %arg26[%495, %c0_158, %c0_159] : memref<8x8x32xf32, #tpu.memory_space<vmem>>, vector<1x8x32xf32>
    %497 = vector.shape_cast %496 : vector<1x8x32xf32> to vector<8x32xf32>
    %498 = vector.shape_cast %494 : vector<8x32xf32> to vector<1x8x32xf32>
    tpu.vector_store %arg26[%495, %c0_158, %c0_159], %498 {strides = array<i32>} : memref<8x8x32xf32, #tpu.memory_space<vmem>>, vector<1x8x32xf32>,
    %cst_160 = arith.constant 0.000000e+00 : f32
    %499 = vector.broadcast %cst_160 : f32 to vector<8x1xf32>
    %500 = arith.cmpf ogt, %458, %499 : vector<8x1xf32>
    %501 = vector.shape_cast %500 : vector<8x1xi1> to vector<8x1xi1>
    %502 = vector.broadcast %501 : vector<8x1xi1> to vector<8x32xi1>
    %503 = arith.select %502, %488, %396 : vector<8x32xi1>, vector<8x32xf32>
    %cst_161 = arith.constant 0.000000e+00 : f32
    %504 = vector.broadcast %cst_161 : f32 to vector<8x1xf32>
    %505 = arith.cmpf ogt, %458, %504 : vector<8x1xf32>
    %506 = vector.shape_cast %505 : vector<8x1xi1> to vector<8x1xi1>
    %507 = vector.broadcast %506 : vector<8x1xi1> to vector<8x32xi1>
    %508 = arith.select %507, %486, %401 : vector<8x32xi1>, vector<8x32xf32>
    %c7_i32_162 = arith.constant 7 : i32
    %509 = arith.subi %c7_i32_162, %c4_i32 : i32
    %510 = arith.index_cast %509 : i32 to index
    %c0_163 = arith.constant 0 : index
    %c0_164 = arith.constant 0 : index
    %511 = vector.load %arg2[%510, %c0_163, %c0_164] : memref<8x8x1xf32, #tpu.memory_space<vmem>>, vector<1x8x1xf32>
    %512 = vector.shape_cast %511 : vector<1x8x1xf32> to vector<8x1xf32>
    %513 = arith.index_cast %509 : i32 to index
    %c0_165 = arith.constant 0 : index
    %c0_166 = arith.constant 0 : index
    %514 = vector.load %arg29[%513, %c0_165, %c0_166] : memref<8x8x128xf32, #tpu.memory_space<vmem>>, vector<1x8x128xf32>
    %515 = vector.shape_cast %514 : vector<1x8x128xf32> to vector<8x128xf32>
    %cst_167 = arith.constant dense<0.000000e+00> : vector<8x128xf32>
    %516 = tpu.matmul %450, %26, %cst_167 {dimension_numbers = #tpu.dot_dimension_numbers<[1], [0], [0], [1], [0, 0, 1, 1], [], []>} : vector<8x32xf32>, vector<32x128xf32>, vector<8x128xf32> -> vector<8x128xf32>
    %517 = arith.addf %515, %516 : vector<8x128xf32>
    %518 = vector.extract_strided_slice %517 {offsets = [0, 0], sizes = [8, 32], strides = [1, 1]} : vector<8x128xf32> to vector<8x32xf32>
    %519 = arith.negf %518 : vector<8x32xf32>
    %520 = math.exp %519 : vector<8x32xf32>
    %cst_168 = arith.constant 1.000000e+00 : f32
    %521 = vector.broadcast %cst_168 : f32 to vector<8x32xf32>
    %522 = arith.addf %521, %520 : vector<8x32xf32>
    %523 = arith.divf %521, %522 : vector<8x32xf32>
    %524 = vector.extract_strided_slice %517 {offsets = [0, 32], sizes = [8, 32], strides = [1, 1]} : vector<8x128xf32> to vector<8x32xf32>
    %525 = arith.negf %524 : vector<8x32xf32>
    %526 = math.exp %525 : vector<8x32xf32>
    %cst_169 = arith.constant 1.000000e+00 : f32
    %527 = vector.broadcast %cst_169 : f32 to vector<8x32xf32>
    %528 = arith.addf %527, %526 : vector<8x32xf32>
    %529 = arith.divf %527, %528 : vector<8x32xf32>
    %530 = vector.extract_strided_slice %517 {offsets = [0, 64], sizes = [8, 32], strides = [1, 1]} : vector<8x128xf32> to vector<8x32xf32>
    %531 = math.tanh %530 : vector<8x32xf32>
    %532 = vector.extract_strided_slice %517 {offsets = [0, 96], sizes = [8, 32], strides = [1, 1]} : vector<8x128xf32> to vector<8x32xf32>
    %533 = arith.negf %532 : vector<8x32xf32>
    %534 = math.exp %533 : vector<8x32xf32>
    %cst_170 = arith.constant 1.000000e+00 : f32
    %535 = vector.broadcast %cst_170 : f32 to vector<8x32xf32>
    %536 = arith.addf %535, %534 : vector<8x32xf32>
    %537 = arith.divf %535, %536 : vector<8x32xf32>
    %538 = arith.mulf %529, %455 : vector<8x32xf32>
    %539 = arith.mulf %523, %531 : vector<8x32xf32>
    %540 = arith.addf %538, %539 : vector<8x32xf32>
    %541 = math.tanh %540 : vector<8x32xf32>
    %542 = arith.mulf %537, %541 : vector<8x32xf32>
    %cst_171 = arith.constant 0.000000e+00 : f32
    %543 = vector.broadcast %cst_171 : f32 to vector<8x1xf32>
    %544 = arith.cmpf ogt, %512, %543 : vector<8x1xf32>
    %cst_172 = arith.constant 0.000000e+00 : f32
    %545 = vector.shape_cast %544 : vector<8x1xi1> to vector<8x1xi1>
    %546 = vector.broadcast %545 : vector<8x1xi1> to vector<8x32xi1>
    %547 = vector.broadcast %cst_172 : f32 to vector<8x32xf32>
    %548 = arith.select %546, %542, %547 : vector<8x32xi1>, vector<8x32xf32>
    %549 = arith.index_cast %509 : i32 to index
    %c0_173 = arith.constant 0 : index
    %c0_174 = arith.constant 0 : index
    %550 = vector.load %arg27[%549, %c0_173, %c0_174] : memref<8x8x32xf32, #tpu.memory_space<vmem>>, vector<1x8x32xf32>
    %551 = vector.shape_cast %550 : vector<1x8x32xf32> to vector<8x32xf32>
    %552 = vector.shape_cast %548 : vector<8x32xf32> to vector<1x8x32xf32>
    tpu.vector_store %arg27[%549, %c0_173, %c0_174], %552 {strides = array<i32>} : memref<8x8x32xf32, #tpu.memory_space<vmem>>, vector<1x8x32xf32>,
    %cst_175 = arith.constant 0.000000e+00 : f32
    %553 = vector.broadcast %cst_175 : f32 to vector<8x1xf32>
    %554 = arith.cmpf ogt, %512, %553 : vector<8x1xf32>
    %555 = vector.shape_cast %554 : vector<8x1xi1> to vector<8x1xi1>
    %556 = vector.broadcast %555 : vector<8x1xi1> to vector<8x32xi1>
    %557 = arith.select %556, %542, %450 : vector<8x32xi1>, vector<8x32xf32>
    %cst_176 = arith.constant 0.000000e+00 : f32
    %558 = vector.broadcast %cst_176 : f32 to vector<8x1xf32>
    %559 = arith.cmpf ogt, %512, %558 : vector<8x1xf32>
    %560 = vector.shape_cast %559 : vector<8x1xi1> to vector<8x1xi1>
    %561 = vector.broadcast %560 : vector<8x1xi1> to vector<8x32xi1>
    %562 = arith.select %561, %540, %455 : vector<8x32xi1>, vector<8x32xf32>
    %c5_i32 = arith.constant 5 : i32
    %563 = arith.index_cast %c5_i32 : i32 to index
    %c0_177 = arith.constant 0 : index
    %c0_178 = arith.constant 0 : index
    %564 = vector.load %arg2[%563, %c0_177, %c0_178] : memref<8x8x1xf32, #tpu.memory_space<vmem>>, vector<1x8x1xf32>
    %565 = vector.shape_cast %564 : vector<1x8x1xf32> to vector<8x1xf32>
    %566 = arith.index_cast %c5_i32 : i32 to index
    %c0_179 = arith.constant 0 : index
    %c0_180 = arith.constant 0 : index
    %567 = vector.load %arg28[%566, %c0_179, %c0_180] : memref<8x8x128xf32, #tpu.memory_space<vmem>>, vector<1x8x128xf32>
    %568 = vector.shape_cast %567 : vector<1x8x128xf32> to vector<8x128xf32>
    %cst_181 = arith.constant dense<0.000000e+00> : vector<8x128xf32>
    %569 = tpu.matmul %503, %25, %cst_181 {dimension_numbers = #tpu.dot_dimension_numbers<[1], [0], [0], [1], [0, 0, 1, 1], [], []>} : vector<8x32xf32>, vector<32x128xf32>, vector<8x128xf32> -> vector<8x128xf32>
    %570 = arith.addf %568, %569 : vector<8x128xf32>
    %571 = vector.extract_strided_slice %570 {offsets = [0, 0], sizes = [8, 32], strides = [1, 1]} : vector<8x128xf32> to vector<8x32xf32>
    %572 = arith.negf %571 : vector<8x32xf32>
    %573 = math.exp %572 : vector<8x32xf32>
    %cst_182 = arith.constant 1.000000e+00 : f32
    %574 = vector.broadcast %cst_182 : f32 to vector<8x32xf32>
    %575 = arith.addf %574, %573 : vector<8x32xf32>
    %576 = arith.divf %574, %575 : vector<8x32xf32>
    %577 = vector.extract_strided_slice %570 {offsets = [0, 32], sizes = [8, 32], strides = [1, 1]} : vector<8x128xf32> to vector<8x32xf32>
    %578 = arith.negf %577 : vector<8x32xf32>
    %579 = math.exp %578 : vector<8x32xf32>
    %cst_183 = arith.constant 1.000000e+00 : f32
    %580 = vector.broadcast %cst_183 : f32 to vector<8x32xf32>
    %581 = arith.addf %580, %579 : vector<8x32xf32>
    %582 = arith.divf %580, %581 : vector<8x32xf32>
    %583 = vector.extract_strided_slice %570 {offsets = [0, 64], sizes = [8, 32], strides = [1, 1]} : vector<8x128xf32> to vector<8x32xf32>
    %584 = math.tanh %583 : vector<8x32xf32>
    %585 = vector.extract_strided_slice %570 {offsets = [0, 96], sizes = [8, 32], strides = [1, 1]} : vector<8x128xf32> to vector<8x32xf32>
    %586 = arith.negf %585 : vector<8x32xf32>
    %587 = math.exp %586 : vector<8x32xf32>
    %cst_184 = arith.constant 1.000000e+00 : f32
    %588 = vector.broadcast %cst_184 : f32 to vector<8x32xf32>
    %589 = arith.addf %588, %587 : vector<8x32xf32>
    %590 = arith.divf %588, %589 : vector<8x32xf32>
    %591 = arith.mulf %582, %508 : vector<8x32xf32>
    %592 = arith.mulf %576, %584 : vector<8x32xf32>
    %593 = arith.addf %591, %592 : vector<8x32xf32>
    %594 = math.tanh %593 : vector<8x32xf32>
    %595 = arith.mulf %590, %594 : vector<8x32xf32>
    %cst_185 = arith.constant 0.000000e+00 : f32
    %596 = vector.broadcast %cst_185 : f32 to vector<8x1xf32>
    %597 = arith.cmpf ogt, %565, %596 : vector<8x1xf32>
    %cst_186 = arith.constant 0.000000e+00 : f32
    %598 = vector.shape_cast %597 : vector<8x1xi1> to vector<8x1xi1>
    %599 = vector.broadcast %598 : vector<8x1xi1> to vector<8x32xi1>
    %600 = vector.broadcast %cst_186 : f32 to vector<8x32xf32>
    %601 = arith.select %599, %595, %600 : vector<8x32xi1>, vector<8x32xf32>
    %602 = arith.index_cast %c5_i32 : i32 to index
    %c0_187 = arith.constant 0 : index
    %c0_188 = arith.constant 0 : index
    %603 = vector.load %arg26[%602, %c0_187, %c0_188] : memref<8x8x32xf32, #tpu.memory_space<vmem>>, vector<1x8x32xf32>
    %604 = vector.shape_cast %603 : vector<1x8x32xf32> to vector<8x32xf32>
    %605 = vector.shape_cast %601 : vector<8x32xf32> to vector<1x8x32xf32>
    tpu.vector_store %arg26[%602, %c0_187, %c0_188], %605 {strides = array<i32>} : memref<8x8x32xf32, #tpu.memory_space<vmem>>, vector<1x8x32xf32>,
    %cst_189 = arith.constant 0.000000e+00 : f32
    %606 = vector.broadcast %cst_189 : f32 to vector<8x1xf32>
    %607 = arith.cmpf ogt, %565, %606 : vector<8x1xf32>
    %608 = vector.shape_cast %607 : vector<8x1xi1> to vector<8x1xi1>
    %609 = vector.broadcast %608 : vector<8x1xi1> to vector<8x32xi1>
    %610 = arith.select %609, %595, %503 : vector<8x32xi1>, vector<8x32xf32>
    %cst_190 = arith.constant 0.000000e+00 : f32
    %611 = vector.broadcast %cst_190 : f32 to vector<8x1xf32>
    %612 = arith.cmpf ogt, %565, %611 : vector<8x1xf32>
    %613 = vector.shape_cast %612 : vector<8x1xi1> to vector<8x1xi1>
    %614 = vector.broadcast %613 : vector<8x1xi1> to vector<8x32xi1>
    %615 = arith.select %614, %593, %508 : vector<8x32xi1>, vector<8x32xf32>
    %c7_i32_191 = arith.constant 7 : i32
    %616 = arith.subi %c7_i32_191, %c5_i32 : i32
    %617 = arith.index_cast %616 : i32 to index
    %c0_192 = arith.constant 0 : index
    %c0_193 = arith.constant 0 : index
    %618 = vector.load %arg2[%617, %c0_192, %c0_193] : memref<8x8x1xf32, #tpu.memory_space<vmem>>, vector<1x8x1xf32>
    %619 = vector.shape_cast %618 : vector<1x8x1xf32> to vector<8x1xf32>
    %620 = arith.index_cast %616 : i32 to index
    %c0_194 = arith.constant 0 : index
    %c0_195 = arith.constant 0 : index
    %621 = vector.load %arg29[%620, %c0_194, %c0_195] : memref<8x8x128xf32, #tpu.memory_space<vmem>>, vector<1x8x128xf32>
    %622 = vector.shape_cast %621 : vector<1x8x128xf32> to vector<8x128xf32>
    %cst_196 = arith.constant dense<0.000000e+00> : vector<8x128xf32>
    %623 = tpu.matmul %557, %26, %cst_196 {dimension_numbers = #tpu.dot_dimension_numbers<[1], [0], [0], [1], [0, 0, 1, 1], [], []>} : vector<8x32xf32>, vector<32x128xf32>, vector<8x128xf32> -> vector<8x128xf32>
    %624 = arith.addf %622, %623 : vector<8x128xf32>
    %625 = vector.extract_strided_slice %624 {offsets = [0, 0], sizes = [8, 32], strides = [1, 1]} : vector<8x128xf32> to vector<8x32xf32>
    %626 = arith.negf %625 : vector<8x32xf32>
    %627 = math.exp %626 : vector<8x32xf32>
    %cst_197 = arith.constant 1.000000e+00 : f32
    %628 = vector.broadcast %cst_197 : f32 to vector<8x32xf32>
    %629 = arith.addf %628, %627 : vector<8x32xf32>
    %630 = arith.divf %628, %629 : vector<8x32xf32>
    %631 = vector.extract_strided_slice %624 {offsets = [0, 32], sizes = [8, 32], strides = [1, 1]} : vector<8x128xf32> to vector<8x32xf32>
    %632 = arith.negf %631 : vector<8x32xf32>
    %633 = math.exp %632 : vector<8x32xf32>
    %cst_198 = arith.constant 1.000000e+00 : f32
    %634 = vector.broadcast %cst_198 : f32 to vector<8x32xf32>
    %635 = arith.addf %634, %633 : vector<8x32xf32>
    %636 = arith.divf %634, %635 : vector<8x32xf32>
    %637 = vector.extract_strided_slice %624 {offsets = [0, 64], sizes = [8, 32], strides = [1, 1]} : vector<8x128xf32> to vector<8x32xf32>
    %638 = math.tanh %637 : vector<8x32xf32>
    %639 = vector.extract_strided_slice %624 {offsets = [0, 96], sizes = [8, 32], strides = [1, 1]} : vector<8x128xf32> to vector<8x32xf32>
    %640 = arith.negf %639 : vector<8x32xf32>
    %641 = math.exp %640 : vector<8x32xf32>
    %cst_199 = arith.constant 1.000000e+00 : f32
    %642 = vector.broadcast %cst_199 : f32 to vector<8x32xf32>
    %643 = arith.addf %642, %641 : vector<8x32xf32>
    %644 = arith.divf %642, %643 : vector<8x32xf32>
    %645 = arith.mulf %636, %562 : vector<8x32xf32>
    %646 = arith.mulf %630, %638 : vector<8x32xf32>
    %647 = arith.addf %645, %646 : vector<8x32xf32>
    %648 = math.tanh %647 : vector<8x32xf32>
    %649 = arith.mulf %644, %648 : vector<8x32xf32>
    %cst_200 = arith.constant 0.000000e+00 : f32
    %650 = vector.broadcast %cst_200 : f32 to vector<8x1xf32>
    %651 = arith.cmpf ogt, %619, %650 : vector<8x1xf32>
    %cst_201 = arith.constant 0.000000e+00 : f32
    %652 = vector.shape_cast %651 : vector<8x1xi1> to vector<8x1xi1>
    %653 = vector.broadcast %652 : vector<8x1xi1> to vector<8x32xi1>
    %654 = vector.broadcast %cst_201 : f32 to vector<8x32xf32>
    %655 = arith.select %653, %649, %654 : vector<8x32xi1>, vector<8x32xf32>
    %656 = arith.index_cast %616 : i32 to index
    %c0_202 = arith.constant 0 : index
    %c0_203 = arith.constant 0 : index
    %657 = vector.load %arg27[%656, %c0_202, %c0_203] : memref<8x8x32xf32, #tpu.memory_space<vmem>>, vector<1x8x32xf32>
    %658 = vector.shape_cast %657 : vector<1x8x32xf32> to vector<8x32xf32>
    %659 = vector.shape_cast %655 : vector<8x32xf32> to vector<1x8x32xf32>
    tpu.vector_store %arg27[%656, %c0_202, %c0_203], %659 {strides = array<i32>} : memref<8x8x32xf32, #tpu.memory_space<vmem>>, vector<1x8x32xf32>,
    %cst_204 = arith.constant 0.000000e+00 : f32
    %660 = vector.broadcast %cst_204 : f32 to vector<8x1xf32>
    %661 = arith.cmpf ogt, %619, %660 : vector<8x1xf32>
    %662 = vector.shape_cast %661 : vector<8x1xi1> to vector<8x1xi1>
    %663 = vector.broadcast %662 : vector<8x1xi1> to vector<8x32xi1>
    %664 = arith.select %663, %649, %557 : vector<8x32xi1>, vector<8x32xf32>
    %cst_205 = arith.constant 0.000000e+00 : f32
    %665 = vector.broadcast %cst_205 : f32 to vector<8x1xf32>
    %666 = arith.cmpf ogt, %619, %665 : vector<8x1xf32>
    %667 = vector.shape_cast %666 : vector<8x1xi1> to vector<8x1xi1>
    %668 = vector.broadcast %667 : vector<8x1xi1> to vector<8x32xi1>
    %669 = arith.select %668, %647, %562 : vector<8x32xi1>, vector<8x32xf32>
    %c6_i32 = arith.constant 6 : i32
    %670 = arith.index_cast %c6_i32 : i32 to index
    %c0_206 = arith.constant 0 : index
    %c0_207 = arith.constant 0 : index
    %671 = vector.load %arg2[%670, %c0_206, %c0_207] : memref<8x8x1xf32, #tpu.memory_space<vmem>>, vector<1x8x1xf32>
    %672 = vector.shape_cast %671 : vector<1x8x1xf32> to vector<8x1xf32>
    %673 = arith.index_cast %c6_i32 : i32 to index
    %c0_208 = arith.constant 0 : index
    %c0_209 = arith.constant 0 : index
    %674 = vector.load %arg28[%673, %c0_208, %c0_209] : memref<8x8x128xf32, #tpu.memory_space<vmem>>, vector<1x8x128xf32>
    %675 = vector.shape_cast %674 : vector<1x8x128xf32> to vector<8x128xf32>
    %cst_210 = arith.constant dense<0.000000e+00> : vector<8x128xf32>
    %676 = tpu.matmul %610, %25, %cst_210 {dimension_numbers = #tpu.dot_dimension_numbers<[1], [0], [0], [1], [0, 0, 1, 1], [], []>} : vector<8x32xf32>, vector<32x128xf32>, vector<8x128xf32> -> vector<8x128xf32>
    %677 = arith.addf %675, %676 : vector<8x128xf32>
    %678 = vector.extract_strided_slice %677 {offsets = [0, 0], sizes = [8, 32], strides = [1, 1]} : vector<8x128xf32> to vector<8x32xf32>
    %679 = arith.negf %678 : vector<8x32xf32>
    %680 = math.exp %679 : vector<8x32xf32>
    %cst_211 = arith.constant 1.000000e+00 : f32
    %681 = vector.broadcast %cst_211 : f32 to vector<8x32xf32>
    %682 = arith.addf %681, %680 : vector<8x32xf32>
    %683 = arith.divf %681, %682 : vector<8x32xf32>
    %684 = vector.extract_strided_slice %677 {offsets = [0, 32], sizes = [8, 32], strides = [1, 1]} : vector<8x128xf32> to vector<8x32xf32>
    %685 = arith.negf %684 : vector<8x32xf32>
    %686 = math.exp %685 : vector<8x32xf32>
    %cst_212 = arith.constant 1.000000e+00 : f32
    %687 = vector.broadcast %cst_212 : f32 to vector<8x32xf32>
    %688 = arith.addf %687, %686 : vector<8x32xf32>
    %689 = arith.divf %687, %688 : vector<8x32xf32>
    %690 = vector.extract_strided_slice %677 {offsets = [0, 64], sizes = [8, 32], strides = [1, 1]} : vector<8x128xf32> to vector<8x32xf32>
    %691 = math.tanh %690 : vector<8x32xf32>
    %692 = vector.extract_strided_slice %677 {offsets = [0, 96], sizes = [8, 32], strides = [1, 1]} : vector<8x128xf32> to vector<8x32xf32>
    %693 = arith.negf %692 : vector<8x32xf32>
    %694 = math.exp %693 : vector<8x32xf32>
    %cst_213 = arith.constant 1.000000e+00 : f32
    %695 = vector.broadcast %cst_213 : f32 to vector<8x32xf32>
    %696 = arith.addf %695, %694 : vector<8x32xf32>
    %697 = arith.divf %695, %696 : vector<8x32xf32>
    %698 = arith.mulf %689, %615 : vector<8x32xf32>
    %699 = arith.mulf %683, %691 : vector<8x32xf32>
    %700 = arith.addf %698, %699 : vector<8x32xf32>
    %701 = math.tanh %700 : vector<8x32xf32>
    %702 = arith.mulf %697, %701 : vector<8x32xf32>
    %cst_214 = arith.constant 0.000000e+00 : f32
    %703 = vector.broadcast %cst_214 : f32 to vector<8x1xf32>
    %704 = arith.cmpf ogt, %672, %703 : vector<8x1xf32>
    %cst_215 = arith.constant 0.000000e+00 : f32
    %705 = vector.shape_cast %704 : vector<8x1xi1> to vector<8x1xi1>
    %706 = vector.broadcast %705 : vector<8x1xi1> to vector<8x32xi1>
    %707 = vector.broadcast %cst_215 : f32 to vector<8x32xf32>
    %708 = arith.select %706, %702, %707 : vector<8x32xi1>, vector<8x32xf32>
    %709 = arith.index_cast %c6_i32 : i32 to index
    %c0_216 = arith.constant 0 : index
    %c0_217 = arith.constant 0 : index
    %710 = vector.load %arg26[%709, %c0_216, %c0_217] : memref<8x8x32xf32, #tpu.memory_space<vmem>>, vector<1x8x32xf32>
    %711 = vector.shape_cast %710 : vector<1x8x32xf32> to vector<8x32xf32>
    %712 = vector.shape_cast %708 : vector<8x32xf32> to vector<1x8x32xf32>
    tpu.vector_store %arg26[%709, %c0_216, %c0_217], %712 {strides = array<i32>} : memref<8x8x32xf32, #tpu.memory_space<vmem>>, vector<1x8x32xf32>,
    %cst_218 = arith.constant 0.000000e+00 : f32
    %713 = vector.broadcast %cst_218 : f32 to vector<8x1xf32>
    %714 = arith.cmpf ogt, %672, %713 : vector<8x1xf32>
    %715 = vector.shape_cast %714 : vector<8x1xi1> to vector<8x1xi1>
    %716 = vector.broadcast %715 : vector<8x1xi1> to vector<8x32xi1>
    %717 = arith.select %716, %702, %610 : vector<8x32xi1>, vector<8x32xf32>
    %cst_219 = arith.constant 0.000000e+00 : f32
    %718 = vector.broadcast %cst_219 : f32 to vector<8x1xf32>
    %719 = arith.cmpf ogt, %672, %718 : vector<8x1xf32>
    %720 = vector.shape_cast %719 : vector<8x1xi1> to vector<8x1xi1>
    %721 = vector.broadcast %720 : vector<8x1xi1> to vector<8x32xi1>
    %722 = arith.select %721, %700, %615 : vector<8x32xi1>, vector<8x32xf32>
    %c7_i32_220 = arith.constant 7 : i32
    %723 = arith.subi %c7_i32_220, %c6_i32 : i32
    %724 = arith.index_cast %723 : i32 to index
    %c0_221 = arith.constant 0 : index
    %c0_222 = arith.constant 0 : index
    %725 = vector.load %arg2[%724, %c0_221, %c0_222] : memref<8x8x1xf32, #tpu.memory_space<vmem>>, vector<1x8x1xf32>
    %726 = vector.shape_cast %725 : vector<1x8x1xf32> to vector<8x1xf32>
    %727 = arith.index_cast %723 : i32 to index
    %c0_223 = arith.constant 0 : index
    %c0_224 = arith.constant 0 : index
    %728 = vector.load %arg29[%727, %c0_223, %c0_224] : memref<8x8x128xf32, #tpu.memory_space<vmem>>, vector<1x8x128xf32>
    %729 = vector.shape_cast %728 : vector<1x8x128xf32> to vector<8x128xf32>
    %cst_225 = arith.constant dense<0.000000e+00> : vector<8x128xf32>
    %730 = tpu.matmul %664, %26, %cst_225 {dimension_numbers = #tpu.dot_dimension_numbers<[1], [0], [0], [1], [0, 0, 1, 1], [], []>} : vector<8x32xf32>, vector<32x128xf32>, vector<8x128xf32> -> vector<8x128xf32>
    %731 = arith.addf %729, %730 : vector<8x128xf32>
    %732 = vector.extract_strided_slice %731 {offsets = [0, 0], sizes = [8, 32], strides = [1, 1]} : vector<8x128xf32> to vector<8x32xf32>
    %733 = arith.negf %732 : vector<8x32xf32>
    %734 = math.exp %733 : vector<8x32xf32>
    %cst_226 = arith.constant 1.000000e+00 : f32
    %735 = vector.broadcast %cst_226 : f32 to vector<8x32xf32>
    %736 = arith.addf %735, %734 : vector<8x32xf32>
    %737 = arith.divf %735, %736 : vector<8x32xf32>
    %738 = vector.extract_strided_slice %731 {offsets = [0, 32], sizes = [8, 32], strides = [1, 1]} : vector<8x128xf32> to vector<8x32xf32>
    %739 = arith.negf %738 : vector<8x32xf32>
    %740 = math.exp %739 : vector<8x32xf32>
    %cst_227 = arith.constant 1.000000e+00 : f32
    %741 = vector.broadcast %cst_227 : f32 to vector<8x32xf32>
    %742 = arith.addf %741, %740 : vector<8x32xf32>
    %743 = arith.divf %741, %742 : vector<8x32xf32>
    %744 = vector.extract_strided_slice %731 {offsets = [0, 64], sizes = [8, 32], strides = [1, 1]} : vector<8x128xf32> to vector<8x32xf32>
    %745 = math.tanh %744 : vector<8x32xf32>
    %746 = vector.extract_strided_slice %731 {offsets = [0, 96], sizes = [8, 32], strides = [1, 1]} : vector<8x128xf32> to vector<8x32xf32>
    %747 = arith.negf %746 : vector<8x32xf32>
    %748 = math.exp %747 : vector<8x32xf32>
    %cst_228 = arith.constant 1.000000e+00 : f32
    %749 = vector.broadcast %cst_228 : f32 to vector<8x32xf32>
    %750 = arith.addf %749, %748 : vector<8x32xf32>
    %751 = arith.divf %749, %750 : vector<8x32xf32>
    %752 = arith.mulf %743, %669 : vector<8x32xf32>
    %753 = arith.mulf %737, %745 : vector<8x32xf32>
    %754 = arith.addf %752, %753 : vector<8x32xf32>
    %755 = math.tanh %754 : vector<8x32xf32>
    %756 = arith.mulf %751, %755 : vector<8x32xf32>
    %cst_229 = arith.constant 0.000000e+00 : f32
    %757 = vector.broadcast %cst_229 : f32 to vector<8x1xf32>
    %758 = arith.cmpf ogt, %726, %757 : vector<8x1xf32>
    %cst_230 = arith.constant 0.000000e+00 : f32
    %759 = vector.shape_cast %758 : vector<8x1xi1> to vector<8x1xi1>
    %760 = vector.broadcast %759 : vector<8x1xi1> to vector<8x32xi1>
    %761 = vector.broadcast %cst_230 : f32 to vector<8x32xf32>
    %762 = arith.select %760, %756, %761 : vector<8x32xi1>, vector<8x32xf32>
    %763 = arith.index_cast %723 : i32 to index
    %c0_231 = arith.constant 0 : index
    %c0_232 = arith.constant 0 : index
    %764 = vector.load %arg27[%763, %c0_231, %c0_232] : memref<8x8x32xf32, #tpu.memory_space<vmem>>, vector<1x8x32xf32>
    %765 = vector.shape_cast %764 : vector<1x8x32xf32> to vector<8x32xf32>
    %766 = vector.shape_cast %762 : vector<8x32xf32> to vector<1x8x32xf32>
    tpu.vector_store %arg27[%763, %c0_231, %c0_232], %766 {strides = array<i32>} : memref<8x8x32xf32, #tpu.memory_space<vmem>>, vector<1x8x32xf32>,
    %cst_233 = arith.constant 0.000000e+00 : f32
    %767 = vector.broadcast %cst_233 : f32 to vector<8x1xf32>
    %768 = arith.cmpf ogt, %726, %767 : vector<8x1xf32>
    %769 = vector.shape_cast %768 : vector<8x1xi1> to vector<8x1xi1>
    %770 = vector.broadcast %769 : vector<8x1xi1> to vector<8x32xi1>
    %771 = arith.select %770, %756, %664 : vector<8x32xi1>, vector<8x32xf32>
    %cst_234 = arith.constant 0.000000e+00 : f32
    %772 = vector.broadcast %cst_234 : f32 to vector<8x1xf32>
    %773 = arith.cmpf ogt, %726, %772 : vector<8x1xf32>
    %774 = vector.shape_cast %773 : vector<8x1xi1> to vector<8x1xi1>
    %775 = vector.broadcast %774 : vector<8x1xi1> to vector<8x32xi1>
    %776 = arith.select %775, %754, %669 : vector<8x32xi1>, vector<8x32xf32>
    %c7_i32_235 = arith.constant 7 : i32
    %777 = arith.index_cast %c7_i32_235 : i32 to index
    %c0_236 = arith.constant 0 : index
    %c0_237 = arith.constant 0 : index
    %778 = vector.load %arg2[%777, %c0_236, %c0_237] : memref<8x8x1xf32, #tpu.memory_space<vmem>>, vector<1x8x1xf32>
    %779 = vector.shape_cast %778 : vector<1x8x1xf32> to vector<8x1xf32>
    %780 = arith.index_cast %c7_i32_235 : i32 to index
    %c0_238 = arith.constant 0 : index
    %c0_239 = arith.constant 0 : index
    %781 = vector.load %arg28[%780, %c0_238, %c0_239] : memref<8x8x128xf32, #tpu.memory_space<vmem>>, vector<1x8x128xf32>
    %782 = vector.shape_cast %781 : vector<1x8x128xf32> to vector<8x128xf32>
    %cst_240 = arith.constant dense<0.000000e+00> : vector<8x128xf32>
    %783 = tpu.matmul %717, %25, %cst_240 {dimension_numbers = #tpu.dot_dimension_numbers<[1], [0], [0], [1], [0, 0, 1, 1], [], []>} : vector<8x32xf32>, vector<32x128xf32>, vector<8x128xf32> -> vector<8x128xf32>
    %784 = arith.addf %782, %783 : vector<8x128xf32>
    %785 = vector.extract_strided_slice %784 {offsets = [0, 0], sizes = [8, 32], strides = [1, 1]} : vector<8x128xf32> to vector<8x32xf32>
    %786 = arith.negf %785 : vector<8x32xf32>
    %787 = math.exp %786 : vector<8x32xf32>
    %cst_241 = arith.constant 1.000000e+00 : f32
    %788 = vector.broadcast %cst_241 : f32 to vector<8x32xf32>
    %789 = arith.addf %788, %787 : vector<8x32xf32>
    %790 = arith.divf %788, %789 : vector<8x32xf32>
    %791 = vector.extract_strided_slice %784 {offsets = [0, 32], sizes = [8, 32], strides = [1, 1]} : vector<8x128xf32> to vector<8x32xf32>
    %792 = arith.negf %791 : vector<8x32xf32>
    %793 = math.exp %792 : vector<8x32xf32>
    %cst_242 = arith.constant 1.000000e+00 : f32
    %794 = vector.broadcast %cst_242 : f32 to vector<8x32xf32>
    %795 = arith.addf %794, %793 : vector<8x32xf32>
    %796 = arith.divf %794, %795 : vector<8x32xf32>
    %797 = vector.extract_strided_slice %784 {offsets = [0, 64], sizes = [8, 32], strides = [1, 1]} : vector<8x128xf32> to vector<8x32xf32>
    %798 = math.tanh %797 : vector<8x32xf32>
    %799 = vector.extract_strided_slice %784 {offsets = [0, 96], sizes = [8, 32], strides = [1, 1]} : vector<8x128xf32> to vector<8x32xf32>
    %800 = arith.negf %799 : vector<8x32xf32>
    %801 = math.exp %800 : vector<8x32xf32>
    %cst_243 = arith.constant 1.000000e+00 : f32
    %802 = vector.broadcast %cst_243 : f32 to vector<8x32xf32>
    %803 = arith.addf %802, %801 : vector<8x32xf32>
    %804 = arith.divf %802, %803 : vector<8x32xf32>
    %805 = arith.mulf %796, %722 : vector<8x32xf32>
    %806 = arith.mulf %790, %798 : vector<8x32xf32>
    %807 = arith.addf %805, %806 : vector<8x32xf32>
    %808 = math.tanh %807 : vector<8x32xf32>
    %809 = arith.mulf %804, %808 : vector<8x32xf32>
    %cst_244 = arith.constant 0.000000e+00 : f32
    %810 = vector.broadcast %cst_244 : f32 to vector<8x1xf32>
    %811 = arith.cmpf ogt, %779, %810 : vector<8x1xf32>
    %cst_245 = arith.constant 0.000000e+00 : f32
    %812 = vector.shape_cast %811 : vector<8x1xi1> to vector<8x1xi1>
    %813 = vector.broadcast %812 : vector<8x1xi1> to vector<8x32xi1>
    %814 = vector.broadcast %cst_245 : f32 to vector<8x32xf32>
    %815 = arith.select %813, %809, %814 : vector<8x32xi1>, vector<8x32xf32>
    %816 = arith.index_cast %c7_i32_235 : i32 to index
    %c0_246 = arith.constant 0 : index
    %c0_247 = arith.constant 0 : index
    %817 = vector.load %arg26[%816, %c0_246, %c0_247] : memref<8x8x32xf32, #tpu.memory_space<vmem>>, vector<1x8x32xf32>
    %818 = vector.shape_cast %817 : vector<1x8x32xf32> to vector<8x32xf32>
    %819 = vector.shape_cast %815 : vector<8x32xf32> to vector<1x8x32xf32>
    tpu.vector_store %arg26[%816, %c0_246, %c0_247], %819 {strides = array<i32>} : memref<8x8x32xf32, #tpu.memory_space<vmem>>, vector<1x8x32xf32>,
    %cst_248 = arith.constant 0.000000e+00 : f32
    %820 = vector.broadcast %cst_248 : f32 to vector<8x1xf32>
    %821 = arith.cmpf ogt, %779, %820 : vector<8x1xf32>
    %822 = vector.shape_cast %821 : vector<8x1xi1> to vector<8x1xi1>
    %823 = vector.broadcast %822 : vector<8x1xi1> to vector<8x32xi1>
    %824 = arith.select %823, %809, %717 : vector<8x32xi1>, vector<8x32xf32>
    %cst_249 = arith.constant 0.000000e+00 : f32
    %825 = vector.broadcast %cst_249 : f32 to vector<8x1xf32>
    %826 = arith.cmpf ogt, %779, %825 : vector<8x1xf32>
    %827 = vector.shape_cast %826 : vector<8x1xi1> to vector<8x1xi1>
    %828 = vector.broadcast %827 : vector<8x1xi1> to vector<8x32xi1>
    %829 = arith.select %828, %807, %722 : vector<8x32xi1>, vector<8x32xf32>
    %c7_i32_250 = arith.constant 7 : i32
    %830 = arith.subi %c7_i32_250, %c7_i32_235 : i32
    %831 = arith.index_cast %830 : i32 to index
    %c0_251 = arith.constant 0 : index
    %c0_252 = arith.constant 0 : index
    %832 = vector.load %arg2[%831, %c0_251, %c0_252] : memref<8x8x1xf32, #tpu.memory_space<vmem>>, vector<1x8x1xf32>
    %833 = vector.shape_cast %832 : vector<1x8x1xf32> to vector<8x1xf32>
    %834 = arith.index_cast %830 : i32 to index
    %c0_253 = arith.constant 0 : index
    %c0_254 = arith.constant 0 : index
    %835 = vector.load %arg29[%834, %c0_253, %c0_254] : memref<8x8x128xf32, #tpu.memory_space<vmem>>, vector<1x8x128xf32>
    %836 = vector.shape_cast %835 : vector<1x8x128xf32> to vector<8x128xf32>
    %cst_255 = arith.constant dense<0.000000e+00> : vector<8x128xf32>
    %837 = tpu.matmul %771, %26, %cst_255 {dimension_numbers = #tpu.dot_dimension_numbers<[1], [0], [0], [1], [0, 0, 1, 1], [], []>} : vector<8x32xf32>, vector<32x128xf32>, vector<8x128xf32> -> vector<8x128xf32>
    %838 = arith.addf %836, %837 : vector<8x128xf32>
    %839 = vector.extract_strided_slice %838 {offsets = [0, 0], sizes = [8, 32], strides = [1, 1]} : vector<8x128xf32> to vector<8x32xf32>
    %840 = arith.negf %839 : vector<8x32xf32>
    %841 = math.exp %840 : vector<8x32xf32>
    %cst_256 = arith.constant 1.000000e+00 : f32
    %842 = vector.broadcast %cst_256 : f32 to vector<8x32xf32>
    %843 = arith.addf %842, %841 : vector<8x32xf32>
    %844 = arith.divf %842, %843 : vector<8x32xf32>
    %845 = vector.extract_strided_slice %838 {offsets = [0, 32], sizes = [8, 32], strides = [1, 1]} : vector<8x128xf32> to vector<8x32xf32>
    %846 = arith.negf %845 : vector<8x32xf32>
    %847 = math.exp %846 : vector<8x32xf32>
    %cst_257 = arith.constant 1.000000e+00 : f32
    %848 = vector.broadcast %cst_257 : f32 to vector<8x32xf32>
    %849 = arith.addf %848, %847 : vector<8x32xf32>
    %850 = arith.divf %848, %849 : vector<8x32xf32>
    %851 = vector.extract_strided_slice %838 {offsets = [0, 64], sizes = [8, 32], strides = [1, 1]} : vector<8x128xf32> to vector<8x32xf32>
    %852 = math.tanh %851 : vector<8x32xf32>
    %853 = vector.extract_strided_slice %838 {offsets = [0, 96], sizes = [8, 32], strides = [1, 1]} : vector<8x128xf32> to vector<8x32xf32>
    %854 = arith.negf %853 : vector<8x32xf32>
    %855 = math.exp %854 : vector<8x32xf32>
    %cst_258 = arith.constant 1.000000e+00 : f32
    %856 = vector.broadcast %cst_258 : f32 to vector<8x32xf32>
    %857 = arith.addf %856, %855 : vector<8x32xf32>
    %858 = arith.divf %856, %857 : vector<8x32xf32>
    %859 = arith.mulf %850, %776 : vector<8x32xf32>
    %860 = arith.mulf %844, %852 : vector<8x32xf32>
    %861 = arith.addf %859, %860 : vector<8x32xf32>
    %862 = math.tanh %861 : vector<8x32xf32>
    %863 = arith.mulf %858, %862 : vector<8x32xf32>
    %cst_259 = arith.constant 0.000000e+00 : f32
    %864 = vector.broadcast %cst_259 : f32 to vector<8x1xf32>
    %865 = arith.cmpf ogt, %833, %864 : vector<8x1xf32>
    %cst_260 = arith.constant 0.000000e+00 : f32
    %866 = vector.shape_cast %865 : vector<8x1xi1> to vector<8x1xi1>
    %867 = vector.broadcast %866 : vector<8x1xi1> to vector<8x32xi1>
    %868 = vector.broadcast %cst_260 : f32 to vector<8x32xf32>
    %869 = arith.select %867, %863, %868 : vector<8x32xi1>, vector<8x32xf32>
    %870 = arith.index_cast %830 : i32 to index
    %c0_261 = arith.constant 0 : index
    %c0_262 = arith.constant 0 : index
    %871 = vector.load %arg27[%870, %c0_261, %c0_262] : memref<8x8x32xf32, #tpu.memory_space<vmem>>, vector<1x8x32xf32>
    %872 = vector.shape_cast %871 : vector<1x8x32xf32> to vector<8x32xf32>
    %873 = vector.shape_cast %869 : vector<8x32xf32> to vector<1x8x32xf32>
    tpu.vector_store %arg27[%870, %c0_261, %c0_262], %873 {strides = array<i32>} : memref<8x8x32xf32, #tpu.memory_space<vmem>>, vector<1x8x32xf32>,
    %cst_263 = arith.constant 0.000000e+00 : f32
    %874 = vector.broadcast %cst_263 : f32 to vector<8x1xf32>
    %875 = arith.cmpf ogt, %833, %874 : vector<8x1xf32>
    %876 = vector.shape_cast %875 : vector<8x1xi1> to vector<8x1xi1>
    %877 = vector.broadcast %876 : vector<8x1xi1> to vector<8x32xi1>
    %878 = arith.select %877, %863, %771 : vector<8x32xi1>, vector<8x32xf32>
    %cst_264 = arith.constant 0.000000e+00 : f32
    %879 = vector.broadcast %cst_264 : f32 to vector<8x1xf32>
    %880 = arith.cmpf ogt, %833, %879 : vector<8x1xf32>
    %881 = vector.shape_cast %880 : vector<8x1xi1> to vector<8x1xi1>
    %882 = vector.broadcast %881 : vector<8x1xi1> to vector<8x32xi1>
    %883 = arith.select %882, %861, %776 : vector<8x32xi1>, vector<8x32xf32>
    %c8_i32 = arith.constant 8 : i32
    %c0_265 = arith.constant 0 : index
    %c0_266 = arith.constant 0 : index
    %884 = vector.load %arg11[%c0_265, %c0_266] : memref<32x32xf32, #tpu.memory_space<vmem>>, vector<32x32xf32>
    %cst_267 = arith.constant dense<0.000000e+00> : vector<8x32xf32>
    %885 = tpu.matmul %824, %884, %cst_267 {dimension_numbers = #tpu.dot_dimension_numbers<[1], [0], [0], [1], [0, 0, 1, 1], [], []>} : vector<8x32xf32>, vector<32x32xf32>, vector<8x32xf32> -> vector<8x32xf32>
    %c0_268 = arith.constant 0 : index
    %c0_269 = arith.constant 0 : index
    %886 = vector.load %arg12[%c0_268, %c0_269] : memref<32x32xf32, #tpu.memory_space<vmem>>, vector<32x32xf32>
    %cst_270 = arith.constant dense<0.000000e+00> : vector<8x32xf32>
    %887 = tpu.matmul %878, %886, %cst_270 {dimension_numbers = #tpu.dot_dimension_numbers<[1], [0], [0], [1], [0, 0, 1, 1], [], []>} : vector<8x32xf32>, vector<32x32xf32>, vector<8x32xf32> -> vector<8x32xf32>
    %888 = arith.addf %885, %887 : vector<8x32xf32>
    %c0_271 = arith.constant 0 : index
    %c0_272 = arith.constant 0 : index
    %889 = vector.load %arg13[%c0_271, %c0_272] : memref<32x32xf32, #tpu.memory_space<vmem>>, vector<32x32xf32>
    %cst_273 = arith.constant dense<0.000000e+00> : vector<8x32xf32>
    %890 = tpu.matmul %829, %889, %cst_273 {dimension_numbers = #tpu.dot_dimension_numbers<[1], [0], [0], [1], [0, 0, 1, 1], [], []>} : vector<8x32xf32>, vector<32x32xf32>, vector<8x32xf32> -> vector<8x32xf32>
    %c0_274 = arith.constant 0 : index
    %c0_275 = arith.constant 0 : index
    %891 = vector.load %arg14[%c0_274, %c0_275] : memref<32x32xf32, #tpu.memory_space<vmem>>, vector<32x32xf32>
    %cst_276 = arith.constant dense<0.000000e+00> : vector<8x32xf32>
    %892 = tpu.matmul %883, %891, %cst_276 {dimension_numbers = #tpu.dot_dimension_numbers<[1], [0], [0], [1], [0, 0, 1, 1], [], []>} : vector<8x32xf32>, vector<32x32xf32>, vector<8x32xf32> -> vector<8x32xf32>
    %893 = arith.addf %890, %892 : vector<8x32xf32>
    %c0_277 = arith.constant 0 : index
    %c0_278 = arith.constant 0 : index
    %c0_279 = arith.constant 0 : index
    %894 = vector.load %arg26[%c0_277, %c0_278, %c0_279] : memref<8x8x32xf32, #tpu.memory_space<vmem>>, vector<8x8x32xf32>
    %895 = tpu.transpose %894, [1, 0, 2] : vector<8x8x32xf32> -> vector<8x8x32xf32>
    %c0_280 = arith.constant 0 : index
    %c0_281 = arith.constant 0 : index
    %c0_282 = arith.constant 0 : index
    %896 = vector.load %arg27[%c0_280, %c0_281, %c0_282] : memref<8x8x32xf32, #tpu.memory_space<vmem>>, vector<8x8x32xf32>
    %897 = tpu.transpose %896, [1, 0, 2] : vector<8x8x32xf32> -> vector<8x8x32xf32>
    %898 = vector.shape_cast %895 : vector<8x8x32xf32> to vector<64x32xf32>
    %c0_283 = arith.constant 0 : index
    %c0_284 = arith.constant 0 : index
    %899 = vector.load %arg15[%c0_283, %c0_284] : memref<32x32xf32, #tpu.memory_space<vmem>>, vector<32x32xf32>
    %cst_285 = arith.constant dense<0.000000e+00> : vector<64x32xf32>
    %900 = tpu.matmul %898, %899, %cst_285 {dimension_numbers = #tpu.dot_dimension_numbers<[1], [0], [0], [1], [0, 0, 1, 1], [], []>} : vector<64x32xf32>, vector<32x32xf32>, vector<64x32xf32> -> vector<64x32xf32>
    %901 = vector.shape_cast %897 : vector<8x8x32xf32> to vector<64x32xf32>
    %c0_286 = arith.constant 0 : index
    %c0_287 = arith.constant 0 : index
    %902 = vector.load %arg16[%c0_286, %c0_287] : memref<32x32xf32, #tpu.memory_space<vmem>>, vector<32x32xf32>
    %cst_288 = arith.constant dense<0.000000e+00> : vector<64x32xf32>
    %903 = tpu.matmul %901, %902, %cst_288 {dimension_numbers = #tpu.dot_dimension_numbers<[1], [0], [0], [1], [0, 0, 1, 1], [], []>} : vector<64x32xf32>, vector<32x32xf32>, vector<64x32xf32> -> vector<64x32xf32>
    %904 = arith.addf %900, %903 : vector<64x32xf32>
    %905 = vector.shape_cast %904 : vector<64x32xf32> to vector<8x8x32xf32>
    %c0_289 = arith.constant 0 : index
    %c0_290 = arith.constant 0 : index
    %c0_291 = arith.constant 0 : index
    %906 = vector.load %arg3[%c0_289, %c0_290, %c0_291] : memref<8x1x8xf32, #tpu.memory_space<vmem>>, vector<8x1x8xf32>
    %c0_292 = arith.constant 0 : index
    %c0_293 = arith.constant 0 : index
    %907 = vector.load %arg18[%c0_292, %c0_293] : memref<32x128xf32, #tpu.memory_space<vmem>>, vector<32x128xf32>
    %c0_294 = arith.constant 0 : index
    %c0_295 = arith.constant 0 : index
    %908 = vector.load %arg19[%c0_294, %c0_295] : memref<32x128xf32, #tpu.memory_space<vmem>>, vector<32x128xf32>
    %c0_296 = arith.constant 0 : index
    %c0_297 = arith.constant 0 : index
    %909 = vector.load %arg21[%c0_296, %c0_297] : memref<32x32xf32, #tpu.memory_space<vmem>>, vector<32x32xf32>
    %c0_298 = arith.constant 0 : index
    %c0_299 = arith.constant 0 : index
    %910 = vector.load %arg22[%c0_298, %c0_299] : memref<32x32xf32, #tpu.memory_space<vmem>>, vector<32x32xf32>
    %c0_300 = arith.constant 0 : index
    %c0_301 = arith.constant 0 : index
    %911 = vector.load %arg23[%c0_300, %c0_301] : memref<32x32xf32, #tpu.memory_space<vmem>>, vector<32x32xf32>
    %c0_302 = arith.constant 0 : index
    %c0_303 = arith.constant 0 : index
    %912 = vector.load %arg24[%c0_302, %c0_303] : memref<32x128xf32, #tpu.memory_space<vmem>>, vector<32x128xf32>
    %913 = tpu.iota {dimensions = array<i32: 1>} : vector<8x128xi32>
    %cst_304 = arith.constant 0.000000e+00 : f32
    %914 = vector.broadcast %cst_304 : f32 to vector<8x32xf32>
    %cst_305 = arith.constant 0.000000e+00 : f32
    %915 = vector.broadcast %cst_305 : f32 to vector<8x128xf32>
    %cst_306 = arith.constant -1.000000e+30 : f32
    %c0_i32_307 = arith.constant 0 : i32
    %916 = arith.index_cast %c0_i32_307 : i32 to index
    %c0_308 = arith.constant 0 : index
    %c0_309 = arith.constant 0 : index
    %917 = vector.load %arg30[%916, %c0_308, %c0_309] : memref<7x8x128xf32, #tpu.memory_space<vmem>>, vector<1x8x128xf32>
    %918 = vector.shape_cast %917 : vector<1x8x128xf32> to vector<8x128xf32>
    %cst_310 = arith.constant dense<0.000000e+00> : vector<8x128xf32>
    %919 = tpu.matmul %914, %907, %cst_310 {dimension_numbers = #tpu.dot_dimension_numbers<[1], [0], [0], [1], [0, 0, 1, 1], [], []>} : vector<8x32xf32>, vector<32x128xf32>, vector<8x128xf32> -> vector<8x128xf32>
    %920 = arith.addf %918, %919 : vector<8x128xf32>
    %cst_311 = arith.constant dense<0.000000e+00> : vector<8x128xf32>
    %921 = tpu.matmul %888, %908, %cst_311 {dimension_numbers = #tpu.dot_dimension_numbers<[1], [0], [0], [1], [0, 0, 1, 1], [], []>} : vector<8x32xf32>, vector<32x128xf32>, vector<8x128xf32> -> vector<8x128xf32>
    %922 = arith.addf %920, %921 : vector<8x128xf32>
    %923 = vector.extract_strided_slice %922 {offsets = [0, 0], sizes = [8, 32], strides = [1, 1]} : vector<8x128xf32> to vector<8x32xf32>
    %924 = arith.negf %923 : vector<8x32xf32>
    %925 = math.exp %924 : vector<8x32xf32>
    %cst_312 = arith.constant 1.000000e+00 : f32
    %926 = vector.broadcast %cst_312 : f32 to vector<8x32xf32>
    %927 = arith.addf %926, %925 : vector<8x32xf32>
    %928 = arith.divf %926, %927 : vector<8x32xf32>
    %929 = vector.extract_strided_slice %922 {offsets = [0, 32], sizes = [8, 32], strides = [1, 1]} : vector<8x128xf32> to vector<8x32xf32>
    %930 = arith.negf %929 : vector<8x32xf32>
    %931 = math.exp %930 : vector<8x32xf32>
    %cst_313 = arith.constant 1.000000e+00 : f32
    %932 = vector.broadcast %cst_313 : f32 to vector<8x32xf32>
    %933 = arith.addf %932, %931 : vector<8x32xf32>
    %934 = arith.divf %932, %933 : vector<8x32xf32>
    %935 = vector.extract_strided_slice %922 {offsets = [0, 64], sizes = [8, 32], strides = [1, 1]} : vector<8x128xf32> to vector<8x32xf32>
    %936 = math.tanh %935 : vector<8x32xf32>
    %937 = vector.extract_strided_slice %922 {offsets = [0, 96], sizes = [8, 32], strides = [1, 1]} : vector<8x128xf32> to vector<8x32xf32>
    %938 = arith.negf %937 : vector<8x32xf32>
    %939 = math.exp %938 : vector<8x32xf32>
    %cst_314 = arith.constant 1.000000e+00 : f32
    %940 = vector.broadcast %cst_314 : f32 to vector<8x32xf32>
    %941 = arith.addf %940, %939 : vector<8x32xf32>
    %942 = arith.divf %940, %941 : vector<8x32xf32>
    %943 = arith.mulf %934, %893 : vector<8x32xf32>
    %944 = arith.mulf %928, %936 : vector<8x32xf32>
    %945 = arith.addf %943, %944 : vector<8x32xf32>
    %946 = math.tanh %945 : vector<8x32xf32>
    %947 = arith.mulf %942, %946 : vector<8x32xf32>
    %948 = vector.shape_cast %947 : vector<8x32xf32> to vector<8x1x32xf32>
    "tpu.trace_start"() <{level = 10 : i32, message = "bqh,bsh->bqs"}> : () -> ()
    %cst_315 = arith.constant dense<0.000000e+00> : vector<8x1x8xf32>
    %949 = tpu.matmul %948, %905, %cst_315 {dimension_numbers = #tpu.dot_dimension_numbers<[2], [2], [1], [1], [0, 0, 0, 1, 1, 1], [0], [0]>} : vector<8x1x32xf32>, vector<8x8x32xf32>, vector<8x1x8xf32> -> vector<8x1x8xf32>
    %cst_316 = arith.constant 0.000000e+00 : f32
    "tpu.trace_stop"() : () -> ()
    %950 = vector.broadcast %cst_316 : f32 to vector<8x1x8xf32>
    %951 = arith.cmpf ogt, %906, %950 : vector<8x1x8xf32>
    %952 = vector.broadcast %cst_306 : f32 to vector<8x1x8xf32>
    %953 = arith.select %951, %949, %952 : vector<8x1x8xi1>, vector<8x1x8xf32>
    %cst_317 = arith.constant dense<0xFF800000> : vector<8x1xf32>
    %954 = vector.multi_reduction <maximumf>, %953, %cst_317 [2] : vector<8x1x8xf32> to vector<8x1xf32>
    %955 = vector.shape_cast %954 : vector<8x1xf32> to vector<8x1x1xf32>
    %956 = vector.broadcast %955 : vector<8x1x1xf32> to vector<8x1x8xf32>
    %957 = arith.subf %953, %956 : vector<8x1x8xf32>
    %958 = math.exp %957 : vector<8x1x8xf32>
    %cst_318 = arith.constant dense<0.000000e+00> : vector<8x1xf32>
    %959 = vector.multi_reduction <add>, %958, %cst_318 [2] : vector<8x1x8xf32> to vector<8x1xf32>
    %960 = vector.shape_cast %959 : vector<8x1xf32> to vector<8x1x1xf32>
    %961 = tpu.reciprocal %960 {approx = true} : vector<8x1x1xf32> -> vector<8x1x1xf32>
    %962 = vector.broadcast %961 : vector<8x1x1xf32> to vector<8x1x8xf32>
    %963 = arith.mulf %958, %962 : vector<8x1x8xf32>
    "tpu.trace_start"() <{level = 10 : i32, message = "bqs,bsh->bqh"}> : () -> ()
    %cst_319 = arith.constant dense<0.000000e+00> : vector<8x1x32xf32>
    %964 = tpu.matmul %963, %895, %cst_319 {dimension_numbers = #tpu.dot_dimension_numbers<[2], [1], [1], [2], [0, 0, 0, 1, 1, 2], [0], [0]>} : vector<8x1x8xf32>, vector<8x8x32xf32>, vector<8x1x32xf32> -> vector<8x1x32xf32>
    "tpu.trace_stop"() : () -> ()
    %965 = vector.shape_cast %964 : vector<8x1x32xf32> to vector<8x32xf32>
    "tpu.trace_start"() <{level = 10 : i32, message = "bqs,bsh->bqh"}> : () -> ()
    %cst_320 = arith.constant dense<0.000000e+00> : vector<8x1x32xf32>
    %966 = tpu.matmul %963, %897, %cst_320 {dimension_numbers = #tpu.dot_dimension_numbers<[2], [1], [1], [2], [0, 0, 0, 1, 1, 2], [0], [0]>} : vector<8x1x8xf32>, vector<8x8x32xf32>, vector<8x1x32xf32> -> vector<8x1x32xf32>
    "tpu.trace_stop"() : () -> ()
    %967 = vector.shape_cast %966 : vector<8x1x32xf32> to vector<8x32xf32>
    %cst_321 = arith.constant dense<0.000000e+00> : vector<8x32xf32>
    %968 = tpu.matmul %947, %909, %cst_321 {dimension_numbers = #tpu.dot_dimension_numbers<[1], [0], [0], [1], [0, 0, 1, 1], [], []>} : vector<8x32xf32>, vector<32x32xf32>, vector<8x32xf32> -> vector<8x32xf32>
    %cst_322 = arith.constant dense<0.000000e+00> : vector<8x32xf32>
    %969 = tpu.matmul %965, %910, %cst_322 {dimension_numbers = #tpu.dot_dimension_numbers<[1], [0], [0], [1], [0, 0, 1, 1], [], []>} : vector<8x32xf32>, vector<32x32xf32>, vector<8x32xf32> -> vector<8x32xf32>
    %970 = arith.addf %968, %969 : vector<8x32xf32>
    %cst_323 = arith.constant dense<0.000000e+00> : vector<8x32xf32>
    %971 = tpu.matmul %967, %911, %cst_323 {dimension_numbers = #tpu.dot_dimension_numbers<[1], [0], [0], [1], [0, 0, 1, 1], [], []>} : vector<8x32xf32>, vector<32x32xf32>, vector<8x32xf32> -> vector<8x32xf32>
    %972 = arith.addf %970, %971 : vector<8x32xf32>
    %973 = math.tanh %972 : vector<8x32xf32>
    %cst_324 = arith.constant dense<0.000000e+00> : vector<8x128xf32>
    %974 = tpu.matmul %973, %912, %cst_324 {dimension_numbers = #tpu.dot_dimension_numbers<[1], [0], [0], [1], [0, 0, 1, 1], [], []>} : vector<8x32xf32>, vector<32x128xf32>, vector<8x128xf32> -> vector<8x128xf32>
    %cst_325 = arith.constant dense<0xFF800000> : vector<8xf32>
    %975 = vector.multi_reduction <maximumf>, %974, %cst_325 [1] : vector<8x128xf32> to vector<8xf32>
    %976 = vector.shape_cast %975 : vector<8xf32> to vector<8x1xf32>
    %977 = vector.broadcast %976 : vector<8x1xf32> to vector<8x128xf32>
    %978 = arith.subf %974, %977 : vector<8x128xf32>
    %979 = math.exp %978 : vector<8x128xf32>
    %cst_326 = arith.constant dense<0.000000e+00> : vector<8xf32>
    %980 = vector.multi_reduction <add>, %979, %cst_326 [1] : vector<8x128xf32> to vector<8xf32>
    %981 = vector.shape_cast %980 : vector<8xf32> to vector<8x1xf32>
    %982 = math.log %981 : vector<8x1xf32>
    %983 = arith.addf %982, %976 : vector<8x1xf32>
    %984 = vector.broadcast %983 : vector<8x1xf32> to vector<8x128xf32>
    %985 = arith.subf %974, %984 : vector<8x128xf32>
    %986 = arith.index_cast %c0_i32_307 : i32 to index
    %c0_327 = arith.constant 0 : index
    %c0_328 = arith.constant 0 : index
    %987 = vector.load %arg4[%986, %c0_327, %c0_328] : memref<7x8x1xi32, #tpu.memory_space<vmem>>, vector<1x8x1xi32>
    %988 = vector.shape_cast %987 : vector<1x8x1xi32> to vector<8x1xi32>
    %989 = vector.broadcast %988 : vector<8x1xi32> to vector<8x128xi32>
    %990 = arith.cmpi eq, %913, %989 : vector<8x128xi32>
    %cst_329 = arith.constant 0.000000e+00 : f32
    %991 = vector.broadcast %cst_329 : f32 to vector<8x128xf32>
    %992 = arith.select %990, %985, %991 : vector<8x128xi1>, vector<8x128xf32>
    %993 = arith.addf %915, %992 : vector<8x128xf32>
    %c1_i32_330 = arith.constant 1 : i32
    %994 = arith.index_cast %c1_i32_330 : i32 to index
    %c0_331 = arith.constant 0 : index
    %c0_332 = arith.constant 0 : index
    %995 = vector.load %arg30[%994, %c0_331, %c0_332] : memref<7x8x128xf32, #tpu.memory_space<vmem>>, vector<1x8x128xf32>
    %996 = vector.shape_cast %995 : vector<1x8x128xf32> to vector<8x128xf32>
    %cst_333 = arith.constant dense<0.000000e+00> : vector<8x128xf32>
    %997 = tpu.matmul %973, %907, %cst_333 {dimension_numbers = #tpu.dot_dimension_numbers<[1], [0], [0], [1], [0, 0, 1, 1], [], []>} : vector<8x32xf32>, vector<32x128xf32>, vector<8x128xf32> -> vector<8x128xf32>
    %998 = arith.addf %996, %997 : vector<8x128xf32>
    %cst_334 = arith.constant dense<0.000000e+00> : vector<8x128xf32>
    %999 = tpu.matmul %947, %908, %cst_334 {dimension_numbers = #tpu.dot_dimension_numbers<[1], [0], [0], [1], [0, 0, 1, 1], [], []>} : vector<8x32xf32>, vector<32x128xf32>, vector<8x128xf32> -> vector<8x128xf32>
    %1000 = arith.addf %998, %999 : vector<8x128xf32>
    %1001 = vector.extract_strided_slice %1000 {offsets = [0, 0], sizes = [8, 32], strides = [1, 1]} : vector<8x128xf32> to vector<8x32xf32>
    %1002 = arith.negf %1001 : vector<8x32xf32>
    %1003 = math.exp %1002 : vector<8x32xf32>
    %cst_335 = arith.constant 1.000000e+00 : f32
    %1004 = vector.broadcast %cst_335 : f32 to vector<8x32xf32>
    %1005 = arith.addf %1004, %1003 : vector<8x32xf32>
    %1006 = arith.divf %1004, %1005 : vector<8x32xf32>
    %1007 = vector.extract_strided_slice %1000 {offsets = [0, 32], sizes = [8, 32], strides = [1, 1]} : vector<8x128xf32> to vector<8x32xf32>
    %1008 = arith.negf %1007 : vector<8x32xf32>
    %1009 = math.exp %1008 : vector<8x32xf32>
    %cst_336 = arith.constant 1.000000e+00 : f32
    %1010 = vector.broadcast %cst_336 : f32 to vector<8x32xf32>
    %1011 = arith.addf %1010, %1009 : vector<8x32xf32>
    %1012 = arith.divf %1010, %1011 : vector<8x32xf32>
    %1013 = vector.extract_strided_slice %1000 {offsets = [0, 64], sizes = [8, 32], strides = [1, 1]} : vector<8x128xf32> to vector<8x32xf32>
    %1014 = math.tanh %1013 : vector<8x32xf32>
    %1015 = vector.extract_strided_slice %1000 {offsets = [0, 96], sizes = [8, 32], strides = [1, 1]} : vector<8x128xf32> to vector<8x32xf32>
    %1016 = arith.negf %1015 : vector<8x32xf32>
    %1017 = math.exp %1016 : vector<8x32xf32>
    %cst_337 = arith.constant 1.000000e+00 : f32
    %1018 = vector.broadcast %cst_337 : f32 to vector<8x32xf32>
    %1019 = arith.addf %1018, %1017 : vector<8x32xf32>
    %1020 = arith.divf %1018, %1019 : vector<8x32xf32>
    %1021 = arith.mulf %1012, %945 : vector<8x32xf32>
    %1022 = arith.mulf %1006, %1014 : vector<8x32xf32>
    %1023 = arith.addf %1021, %1022 : vector<8x32xf32>
    %1024 = math.tanh %1023 : vector<8x32xf32>
    %1025 = arith.mulf %1020, %1024 : vector<8x32xf32>
    %1026 = vector.shape_cast %1025 : vector<8x32xf32> to vector<8x1x32xf32>
    "tpu.trace_start"() <{level = 10 : i32, message = "bqh,bsh->bqs"}> : () -> ()
    %cst_338 = arith.constant dense<0.000000e+00> : vector<8x1x8xf32>
    %1027 = tpu.matmul %1026, %905, %cst_338 {dimension_numbers = #tpu.dot_dimension_numbers<[2], [2], [1], [1], [0, 0, 0, 1, 1, 1], [0], [0]>} : vector<8x1x32xf32>, vector<8x8x32xf32>, vector<8x1x8xf32> -> vector<8x1x8xf32>
    %cst_339 = arith.constant 0.000000e+00 : f32
    "tpu.trace_stop"() : () -> ()
    %1028 = vector.broadcast %cst_339 : f32 to vector<8x1x8xf32>
    %1029 = arith.cmpf ogt, %906, %1028 : vector<8x1x8xf32>
    %1030 = vector.broadcast %cst_306 : f32 to vector<8x1x8xf32>
    %1031 = arith.select %1029, %1027, %1030 : vector<8x1x8xi1>, vector<8x1x8xf32>
    %cst_340 = arith.constant dense<0xFF800000> : vector<8x1xf32>
    %1032 = vector.multi_reduction <maximumf>, %1031, %cst_340 [2] : vector<8x1x8xf32> to vector<8x1xf32>
    %1033 = vector.shape_cast %1032 : vector<8x1xf32> to vector<8x1x1xf32>
    %1034 = vector.broadcast %1033 : vector<8x1x1xf32> to vector<8x1x8xf32>
    %1035 = arith.subf %1031, %1034 : vector<8x1x8xf32>
    %1036 = math.exp %1035 : vector<8x1x8xf32>
    %cst_341 = arith.constant dense<0.000000e+00> : vector<8x1xf32>
    %1037 = vector.multi_reduction <add>, %1036, %cst_341 [2] : vector<8x1x8xf32> to vector<8x1xf32>
    %1038 = vector.shape_cast %1037 : vector<8x1xf32> to vector<8x1x1xf32>
    %1039 = tpu.reciprocal %1038 {approx = true} : vector<8x1x1xf32> -> vector<8x1x1xf32>
    %1040 = vector.broadcast %1039 : vector<8x1x1xf32> to vector<8x1x8xf32>
    %1041 = arith.mulf %1036, %1040 : vector<8x1x8xf32>
    "tpu.trace_start"() <{level = 10 : i32, message = "bqs,bsh->bqh"}> : () -> ()
    %cst_342 = arith.constant dense<0.000000e+00> : vector<8x1x32xf32>
    %1042 = tpu.matmul %1041, %895, %cst_342 {dimension_numbers = #tpu.dot_dimension_numbers<[2], [1], [1], [2], [0, 0, 0, 1, 1, 2], [0], [0]>} : vector<8x1x8xf32>, vector<8x8x32xf32>, vector<8x1x32xf32> -> vector<8x1x32xf32>
    "tpu.trace_stop"() : () -> ()
    %1043 = vector.shape_cast %1042 : vector<8x1x32xf32> to vector<8x32xf32>
    "tpu.trace_start"() <{level = 10 : i32, message = "bqs,bsh->bqh"}> : () -> ()
    %cst_343 = arith.constant dense<0.000000e+00> : vector<8x1x32xf32>
    %1044 = tpu.matmul %1041, %897, %cst_343 {dimension_numbers = #tpu.dot_dimension_numbers<[2], [1], [1], [2], [0, 0, 0, 1, 1, 2], [0], [0]>} : vector<8x1x8xf32>, vector<8x8x32xf32>, vector<8x1x32xf32> -> vector<8x1x32xf32>
    "tpu.trace_stop"() : () -> ()
    %1045 = vector.shape_cast %1044 : vector<8x1x32xf32> to vector<8x32xf32>
    %cst_344 = arith.constant dense<0.000000e+00> : vector<8x32xf32>
    %1046 = tpu.matmul %1025, %909, %cst_344 {dimension_numbers = #tpu.dot_dimension_numbers<[1], [0], [0], [1], [0, 0, 1, 1], [], []>} : vector<8x32xf32>, vector<32x32xf32>, vector<8x32xf32> -> vector<8x32xf32>
    %cst_345 = arith.constant dense<0.000000e+00> : vector<8x32xf32>
    %1047 = tpu.matmul %1043, %910, %cst_345 {dimension_numbers = #tpu.dot_dimension_numbers<[1], [0], [0], [1], [0, 0, 1, 1], [], []>} : vector<8x32xf32>, vector<32x32xf32>, vector<8x32xf32> -> vector<8x32xf32>
    %1048 = arith.addf %1046, %1047 : vector<8x32xf32>
    %cst_346 = arith.constant dense<0.000000e+00> : vector<8x32xf32>
    %1049 = tpu.matmul %1045, %911, %cst_346 {dimension_numbers = #tpu.dot_dimension_numbers<[1], [0], [0], [1], [0, 0, 1, 1], [], []>} : vector<8x32xf32>, vector<32x32xf32>, vector<8x32xf32> -> vector<8x32xf32>
    %1050 = arith.addf %1048, %1049 : vector<8x32xf32>
    %1051 = math.tanh %1050 : vector<8x32xf32>
    %cst_347 = arith.constant dense<0.000000e+00> : vector<8x128xf32>
    %1052 = tpu.matmul %1051, %912, %cst_347 {dimension_numbers = #tpu.dot_dimension_numbers<[1], [0], [0], [1], [0, 0, 1, 1], [], []>} : vector<8x32xf32>, vector<32x128xf32>, vector<8x128xf32> -> vector<8x128xf32>
    %cst_348 = arith.constant dense<0xFF800000> : vector<8xf32>
    %1053 = vector.multi_reduction <maximumf>, %1052, %cst_348 [1] : vector<8x128xf32> to vector<8xf32>
    %1054 = vector.shape_cast %1053 : vector<8xf32> to vector<8x1xf32>
    %1055 = vector.broadcast %1054 : vector<8x1xf32> to vector<8x128xf32>
    %1056 = arith.subf %1052, %1055 : vector<8x128xf32>
    %1057 = math.exp %1056 : vector<8x128xf32>
    %cst_349 = arith.constant dense<0.000000e+00> : vector<8xf32>
    %1058 = vector.multi_reduction <add>, %1057, %cst_349 [1] : vector<8x128xf32> to vector<8xf32>
    %1059 = vector.shape_cast %1058 : vector<8xf32> to vector<8x1xf32>
    %1060 = math.log %1059 : vector<8x1xf32>
    %1061 = arith.addf %1060, %1054 : vector<8x1xf32>
    %1062 = vector.broadcast %1061 : vector<8x1xf32> to vector<8x128xf32>
    %1063 = arith.subf %1052, %1062 : vector<8x128xf32>
    %1064 = arith.index_cast %c1_i32_330 : i32 to index
    %c0_350 = arith.constant 0 : index
    %c0_351 = arith.constant 0 : index
    %1065 = vector.load %arg4[%1064, %c0_350, %c0_351] : memref<7x8x1xi32, #tpu.memory_space<vmem>>, vector<1x8x1xi32>
    %1066 = vector.shape_cast %1065 : vector<1x8x1xi32> to vector<8x1xi32>
    %1067 = vector.broadcast %1066 : vector<8x1xi32> to vector<8x128xi32>
    %1068 = arith.cmpi eq, %913, %1067 : vector<8x128xi32>
    %cst_352 = arith.constant 0.000000e+00 : f32
    %1069 = vector.broadcast %cst_352 : f32 to vector<8x128xf32>
    %1070 = arith.select %1068, %1063, %1069 : vector<8x128xi1>, vector<8x128xf32>
    %1071 = arith.addf %993, %1070 : vector<8x128xf32>
    %c2_i32_353 = arith.constant 2 : i32
    %1072 = arith.index_cast %c2_i32_353 : i32 to index
    %c0_354 = arith.constant 0 : index
    %c0_355 = arith.constant 0 : index
    %1073 = vector.load %arg30[%1072, %c0_354, %c0_355] : memref<7x8x128xf32, #tpu.memory_space<vmem>>, vector<1x8x128xf32>
    %1074 = vector.shape_cast %1073 : vector<1x8x128xf32> to vector<8x128xf32>
    %cst_356 = arith.constant dense<0.000000e+00> : vector<8x128xf32>
    %1075 = tpu.matmul %1051, %907, %cst_356 {dimension_numbers = #tpu.dot_dimension_numbers<[1], [0], [0], [1], [0, 0, 1, 1], [], []>} : vector<8x32xf32>, vector<32x128xf32>, vector<8x128xf32> -> vector<8x128xf32>
    %1076 = arith.addf %1074, %1075 : vector<8x128xf32>
    %cst_357 = arith.constant dense<0.000000e+00> : vector<8x128xf32>
    %1077 = tpu.matmul %1025, %908, %cst_357 {dimension_numbers = #tpu.dot_dimension_numbers<[1], [0], [0], [1], [0, 0, 1, 1], [], []>} : vector<8x32xf32>, vector<32x128xf32>, vector<8x128xf32> -> vector<8x128xf32>
    %1078 = arith.addf %1076, %1077 : vector<8x128xf32>
    %1079 = vector.extract_strided_slice %1078 {offsets = [0, 0], sizes = [8, 32], strides = [1, 1]} : vector<8x128xf32> to vector<8x32xf32>
    %1080 = arith.negf %1079 : vector<8x32xf32>
    %1081 = math.exp %1080 : vector<8x32xf32>
    %cst_358 = arith.constant 1.000000e+00 : f32
    %1082 = vector.broadcast %cst_358 : f32 to vector<8x32xf32>
    %1083 = arith.addf %1082, %1081 : vector<8x32xf32>
    %1084 = arith.divf %1082, %1083 : vector<8x32xf32>
    %1085 = vector.extract_strided_slice %1078 {offsets = [0, 32], sizes = [8, 32], strides = [1, 1]} : vector<8x128xf32> to vector<8x32xf32>
    %1086 = arith.negf %1085 : vector<8x32xf32>
    %1087 = math.exp %1086 : vector<8x32xf32>
    %cst_359 = arith.constant 1.000000e+00 : f32
    %1088 = vector.broadcast %cst_359 : f32 to vector<8x32xf32>
    %1089 = arith.addf %1088, %1087 : vector<8x32xf32>
    %1090 = arith.divf %1088, %1089 : vector<8x32xf32>
    %1091 = vector.extract_strided_slice %1078 {offsets = [0, 64], sizes = [8, 32], strides = [1, 1]} : vector<8x128xf32> to vector<8x32xf32>
    %1092 = math.tanh %1091 : vector<8x32xf32>
    %1093 = vector.extract_strided_slice %1078 {offsets = [0, 96], sizes = [8, 32], strides = [1, 1]} : vector<8x128xf32> to vector<8x32xf32>
    %1094 = arith.negf %1093 : vector<8x32xf32>
    %1095 = math.exp %1094 : vector<8x32xf32>
    %cst_360 = arith.constant 1.000000e+00 : f32
    %1096 = vector.broadcast %cst_360 : f32 to vector<8x32xf32>
    %1097 = arith.addf %1096, %1095 : vector<8x32xf32>
    %1098 = arith.divf %1096, %1097 : vector<8x32xf32>
    %1099 = arith.mulf %1090, %1023 : vector<8x32xf32>
    %1100 = arith.mulf %1084, %1092 : vector<8x32xf32>
    %1101 = arith.addf %1099, %1100 : vector<8x32xf32>
    %1102 = math.tanh %1101 : vector<8x32xf32>
    %1103 = arith.mulf %1098, %1102 : vector<8x32xf32>
    %1104 = vector.shape_cast %1103 : vector<8x32xf32> to vector<8x1x32xf32>
    "tpu.trace_start"() <{level = 10 : i32, message = "bqh,bsh->bqs"}> : () -> ()
    %cst_361 = arith.constant dense<0.000000e+00> : vector<8x1x8xf32>
    %1105 = tpu.matmul %1104, %905, %cst_361 {dimension_numbers = #tpu.dot_dimension_numbers<[2], [2], [1], [1], [0, 0, 0, 1, 1, 1], [0], [0]>} : vector<8x1x32xf32>, vector<8x8x32xf32>, vector<8x1x8xf32> -> vector<8x1x8xf32>
    %cst_362 = arith.constant 0.000000e+00 : f32
    "tpu.trace_stop"() : () -> ()
    %1106 = vector.broadcast %cst_362 : f32 to vector<8x1x8xf32>
    %1107 = arith.cmpf ogt, %906, %1106 : vector<8x1x8xf32>
    %1108 = vector.broadcast %cst_306 : f32 to vector<8x1x8xf32>
    %1109 = arith.select %1107, %1105, %1108 : vector<8x1x8xi1>, vector<8x1x8xf32>
    %cst_363 = arith.constant dense<0xFF800000> : vector<8x1xf32>
    %1110 = vector.multi_reduction <maximumf>, %1109, %cst_363 [2] : vector<8x1x8xf32> to vector<8x1xf32>
    %1111 = vector.shape_cast %1110 : vector<8x1xf32> to vector<8x1x1xf32>
    %1112 = vector.broadcast %1111 : vector<8x1x1xf32> to vector<8x1x8xf32>
    %1113 = arith.subf %1109, %1112 : vector<8x1x8xf32>
    %1114 = math.exp %1113 : vector<8x1x8xf32>
    %cst_364 = arith.constant dense<0.000000e+00> : vector<8x1xf32>
    %1115 = vector.multi_reduction <add>, %1114, %cst_364 [2] : vector<8x1x8xf32> to vector<8x1xf32>
    %1116 = vector.shape_cast %1115 : vector<8x1xf32> to vector<8x1x1xf32>
    %1117 = tpu.reciprocal %1116 {approx = true} : vector<8x1x1xf32> -> vector<8x1x1xf32>
    %1118 = vector.broadcast %1117 : vector<8x1x1xf32> to vector<8x1x8xf32>
    %1119 = arith.mulf %1114, %1118 : vector<8x1x8xf32>
    "tpu.trace_start"() <{level = 10 : i32, message = "bqs,bsh->bqh"}> : () -> ()
    %cst_365 = arith.constant dense<0.000000e+00> : vector<8x1x32xf32>
    %1120 = tpu.matmul %1119, %895, %cst_365 {dimension_numbers = #tpu.dot_dimension_numbers<[2], [1], [1], [2], [0, 0, 0, 1, 1, 2], [0], [0]>} : vector<8x1x8xf32>, vector<8x8x32xf32>, vector<8x1x32xf32> -> vector<8x1x32xf32>
    "tpu.trace_stop"() : () -> ()
    %1121 = vector.shape_cast %1120 : vector<8x1x32xf32> to vector<8x32xf32>
    "tpu.trace_start"() <{level = 10 : i32, message = "bqs,bsh->bqh"}> : () -> ()
    %cst_366 = arith.constant dense<0.000000e+00> : vector<8x1x32xf32>
    %1122 = tpu.matmul %1119, %897, %cst_366 {dimension_numbers = #tpu.dot_dimension_numbers<[2], [1], [1], [2], [0, 0, 0, 1, 1, 2], [0], [0]>} : vector<8x1x8xf32>, vector<8x8x32xf32>, vector<8x1x32xf32> -> vector<8x1x32xf32>
    "tpu.trace_stop"() : () -> ()
    %1123 = vector.shape_cast %1122 : vector<8x1x32xf32> to vector<8x32xf32>
    %cst_367 = arith.constant dense<0.000000e+00> : vector<8x32xf32>
    %1124 = tpu.matmul %1103, %909, %cst_367 {dimension_numbers = #tpu.dot_dimension_numbers<[1], [0], [0], [1], [0, 0, 1, 1], [], []>} : vector<8x32xf32>, vector<32x32xf32>, vector<8x32xf32> -> vector<8x32xf32>
    %cst_368 = arith.constant dense<0.000000e+00> : vector<8x32xf32>
    %1125 = tpu.matmul %1121, %910, %cst_368 {dimension_numbers = #tpu.dot_dimension_numbers<[1], [0], [0], [1], [0, 0, 1, 1], [], []>} : vector<8x32xf32>, vector<32x32xf32>, vector<8x32xf32> -> vector<8x32xf32>
    %1126 = arith.addf %1124, %1125 : vector<8x32xf32>
    %cst_369 = arith.constant dense<0.000000e+00> : vector<8x32xf32>
    %1127 = tpu.matmul %1123, %911, %cst_369 {dimension_numbers = #tpu.dot_dimension_numbers<[1], [0], [0], [1], [0, 0, 1, 1], [], []>} : vector<8x32xf32>, vector<32x32xf32>, vector<8x32xf32> -> vector<8x32xf32>
    %1128 = arith.addf %1126, %1127 : vector<8x32xf32>
    %1129 = math.tanh %1128 : vector<8x32xf32>
    %cst_370 = arith.constant dense<0.000000e+00> : vector<8x128xf32>
    %1130 = tpu.matmul %1129, %912, %cst_370 {dimension_numbers = #tpu.dot_dimension_numbers<[1], [0], [0], [1], [0, 0, 1, 1], [], []>} : vector<8x32xf32>, vector<32x128xf32>, vector<8x128xf32> -> vector<8x128xf32>
    %cst_371 = arith.constant dense<0xFF800000> : vector<8xf32>
    %1131 = vector.multi_reduction <maximumf>, %1130, %cst_371 [1] : vector<8x128xf32> to vector<8xf32>
    %1132 = vector.shape_cast %1131 : vector<8xf32> to vector<8x1xf32>
    %1133 = vector.broadcast %1132 : vector<8x1xf32> to vector<8x128xf32>
    %1134 = arith.subf %1130, %1133 : vector<8x128xf32>
    %1135 = math.exp %1134 : vector<8x128xf32>
    %cst_372 = arith.constant dense<0.000000e+00> : vector<8xf32>
    %1136 = vector.multi_reduction <add>, %1135, %cst_372 [1] : vector<8x128xf32> to vector<8xf32>
    %1137 = vector.shape_cast %1136 : vector<8xf32> to vector<8x1xf32>
    %1138 = math.log %1137 : vector<8x1xf32>
    %1139 = arith.addf %1138, %1132 : vector<8x1xf32>
    %1140 = vector.broadcast %1139 : vector<8x1xf32> to vector<8x128xf32>
    %1141 = arith.subf %1130, %1140 : vector<8x128xf32>
    %1142 = arith.index_cast %c2_i32_353 : i32 to index
    %c0_373 = arith.constant 0 : index
    %c0_374 = arith.constant 0 : index
    %1143 = vector.load %arg4[%1142, %c0_373, %c0_374] : memref<7x8x1xi32, #tpu.memory_space<vmem>>, vector<1x8x1xi32>
    %1144 = vector.shape_cast %1143 : vector<1x8x1xi32> to vector<8x1xi32>
    %1145 = vector.broadcast %1144 : vector<8x1xi32> to vector<8x128xi32>
    %1146 = arith.cmpi eq, %913, %1145 : vector<8x128xi32>
    %cst_375 = arith.constant 0.000000e+00 : f32
    %1147 = vector.broadcast %cst_375 : f32 to vector<8x128xf32>
    %1148 = arith.select %1146, %1141, %1147 : vector<8x128xi1>, vector<8x128xf32>
    %1149 = arith.addf %1071, %1148 : vector<8x128xf32>
    %c3_i32_376 = arith.constant 3 : i32
    %1150 = arith.index_cast %c3_i32_376 : i32 to index
    %c0_377 = arith.constant 0 : index
    %c0_378 = arith.constant 0 : index
    %1151 = vector.load %arg30[%1150, %c0_377, %c0_378] : memref<7x8x128xf32, #tpu.memory_space<vmem>>, vector<1x8x128xf32>
    %1152 = vector.shape_cast %1151 : vector<1x8x128xf32> to vector<8x128xf32>
    %cst_379 = arith.constant dense<0.000000e+00> : vector<8x128xf32>
    %1153 = tpu.matmul %1129, %907, %cst_379 {dimension_numbers = #tpu.dot_dimension_numbers<[1], [0], [0], [1], [0, 0, 1, 1], [], []>} : vector<8x32xf32>, vector<32x128xf32>, vector<8x128xf32> -> vector<8x128xf32>
    %1154 = arith.addf %1152, %1153 : vector<8x128xf32>
    %cst_380 = arith.constant dense<0.000000e+00> : vector<8x128xf32>
    %1155 = tpu.matmul %1103, %908, %cst_380 {dimension_numbers = #tpu.dot_dimension_numbers<[1], [0], [0], [1], [0, 0, 1, 1], [], []>} : vector<8x32xf32>, vector<32x128xf32>, vector<8x128xf32> -> vector<8x128xf32>
    %1156 = arith.addf %1154, %1155 : vector<8x128xf32>
    %1157 = vector.extract_strided_slice %1156 {offsets = [0, 0], sizes = [8, 32], strides = [1, 1]} : vector<8x128xf32> to vector<8x32xf32>
    %1158 = arith.negf %1157 : vector<8x32xf32>
    %1159 = math.exp %1158 : vector<8x32xf32>
    %cst_381 = arith.constant 1.000000e+00 : f32
    %1160 = vector.broadcast %cst_381 : f32 to vector<8x32xf32>
    %1161 = arith.addf %1160, %1159 : vector<8x32xf32>
    %1162 = arith.divf %1160, %1161 : vector<8x32xf32>
    %1163 = vector.extract_strided_slice %1156 {offsets = [0, 32], sizes = [8, 32], strides = [1, 1]} : vector<8x128xf32> to vector<8x32xf32>
    %1164 = arith.negf %1163 : vector<8x32xf32>
    %1165 = math.exp %1164 : vector<8x32xf32>
    %cst_382 = arith.constant 1.000000e+00 : f32
    %1166 = vector.broadcast %cst_382 : f32 to vector<8x32xf32>
    %1167 = arith.addf %1166, %1165 : vector<8x32xf32>
    %1168 = arith.divf %1166, %1167 : vector<8x32xf32>
    %1169 = vector.extract_strided_slice %1156 {offsets = [0, 64], sizes = [8, 32], strides = [1, 1]} : vector<8x128xf32> to vector<8x32xf32>
    %1170 = math.tanh %1169 : vector<8x32xf32>
    %1171 = vector.extract_strided_slice %1156 {offsets = [0, 96], sizes = [8, 32], strides = [1, 1]} : vector<8x128xf32> to vector<8x32xf32>
    %1172 = arith.negf %1171 : vector<8x32xf32>
    %1173 = math.exp %1172 : vector<8x32xf32>
    %cst_383 = arith.constant 1.000000e+00 : f32
    %1174 = vector.broadcast %cst_383 : f32 to vector<8x32xf32>
    %1175 = arith.addf %1174, %1173 : vector<8x32xf32>
    %1176 = arith.divf %1174, %1175 : vector<8x32xf32>
    %1177 = arith.mulf %1168, %1101 : vector<8x32xf32>
    %1178 = arith.mulf %1162, %1170 : vector<8x32xf32>
    %1179 = arith.addf %1177, %1178 : vector<8x32xf32>
    %1180 = math.tanh %1179 : vector<8x32xf32>
    %1181 = arith.mulf %1176, %1180 : vector<8x32xf32>
    %1182 = vector.shape_cast %1181 : vector<8x32xf32> to vector<8x1x32xf32>
    "tpu.trace_start"() <{level = 10 : i32, message = "bqh,bsh->bqs"}> : () -> ()
    %cst_384 = arith.constant dense<0.000000e+00> : vector<8x1x8xf32>
    %1183 = tpu.matmul %1182, %905, %cst_384 {dimension_numbers = #tpu.dot_dimension_numbers<[2], [2], [1], [1], [0, 0, 0, 1, 1, 1], [0], [0]>} : vector<8x1x32xf32>, vector<8x8x32xf32>, vector<8x1x8xf32> -> vector<8x1x8xf32>
    %cst_385 = arith.constant 0.000000e+00 : f32
    "tpu.trace_stop"() : () -> ()
    %1184 = vector.broadcast %cst_385 : f32 to vector<8x1x8xf32>
    %1185 = arith.cmpf ogt, %906, %1184 : vector<8x1x8xf32>
    %1186 = vector.broadcast %cst_306 : f32 to vector<8x1x8xf32>
    %1187 = arith.select %1185, %1183, %1186 : vector<8x1x8xi1>, vector<8x1x8xf32>
    %cst_386 = arith.constant dense<0xFF800000> : vector<8x1xf32>
    %1188 = vector.multi_reduction <maximumf>, %1187, %cst_386 [2] : vector<8x1x8xf32> to vector<8x1xf32>
    %1189 = vector.shape_cast %1188 : vector<8x1xf32> to vector<8x1x1xf32>
    %1190 = vector.broadcast %1189 : vector<8x1x1xf32> to vector<8x1x8xf32>
    %1191 = arith.subf %1187, %1190 : vector<8x1x8xf32>
    %1192 = math.exp %1191 : vector<8x1x8xf32>
    %cst_387 = arith.constant dense<0.000000e+00> : vector<8x1xf32>
    %1193 = vector.multi_reduction <add>, %1192, %cst_387 [2] : vector<8x1x8xf32> to vector<8x1xf32>
    %1194 = vector.shape_cast %1193 : vector<8x1xf32> to vector<8x1x1xf32>
    %1195 = tpu.reciprocal %1194 {approx = true} : vector<8x1x1xf32> -> vector<8x1x1xf32>
    %1196 = vector.broadcast %1195 : vector<8x1x1xf32> to vector<8x1x8xf32>
    %1197 = arith.mulf %1192, %1196 : vector<8x1x8xf32>
    "tpu.trace_start"() <{level = 10 : i32, message = "bqs,bsh->bqh"}> : () -> ()
    %cst_388 = arith.constant dense<0.000000e+00> : vector<8x1x32xf32>
    %1198 = tpu.matmul %1197, %895, %cst_388 {dimension_numbers = #tpu.dot_dimension_numbers<[2], [1], [1], [2], [0, 0, 0, 1, 1, 2], [0], [0]>} : vector<8x1x8xf32>, vector<8x8x32xf32>, vector<8x1x32xf32> -> vector<8x1x32xf32>
    "tpu.trace_stop"() : () -> ()
    %1199 = vector.shape_cast %1198 : vector<8x1x32xf32> to vector<8x32xf32>
    "tpu.trace_start"() <{level = 10 : i32, message = "bqs,bsh->bqh"}> : () -> ()
    %cst_389 = arith.constant dense<0.000000e+00> : vector<8x1x32xf32>
    %1200 = tpu.matmul %1197, %897, %cst_389 {dimension_numbers = #tpu.dot_dimension_numbers<[2], [1], [1], [2], [0, 0, 0, 1, 1, 2], [0], [0]>} : vector<8x1x8xf32>, vector<8x8x32xf32>, vector<8x1x32xf32> -> vector<8x1x32xf32>
    "tpu.trace_stop"() : () -> ()
    %1201 = vector.shape_cast %1200 : vector<8x1x32xf32> to vector<8x32xf32>
    %cst_390 = arith.constant dense<0.000000e+00> : vector<8x32xf32>
    %1202 = tpu.matmul %1181, %909, %cst_390 {dimension_numbers = #tpu.dot_dimension_numbers<[1], [0], [0], [1], [0, 0, 1, 1], [], []>} : vector<8x32xf32>, vector<32x32xf32>, vector<8x32xf32> -> vector<8x32xf32>
    %cst_391 = arith.constant dense<0.000000e+00> : vector<8x32xf32>
    %1203 = tpu.matmul %1199, %910, %cst_391 {dimension_numbers = #tpu.dot_dimension_numbers<[1], [0], [0], [1], [0, 0, 1, 1], [], []>} : vector<8x32xf32>, vector<32x32xf32>, vector<8x32xf32> -> vector<8x32xf32>
    %1204 = arith.addf %1202, %1203 : vector<8x32xf32>
    %cst_392 = arith.constant dense<0.000000e+00> : vector<8x32xf32>
    %1205 = tpu.matmul %1201, %911, %cst_392 {dimension_numbers = #tpu.dot_dimension_numbers<[1], [0], [0], [1], [0, 0, 1, 1], [], []>} : vector<8x32xf32>, vector<32x32xf32>, vector<8x32xf32> -> vector<8x32xf32>
    %1206 = arith.addf %1204, %1205 : vector<8x32xf32>
    %1207 = math.tanh %1206 : vector<8x32xf32>
    %cst_393 = arith.constant dense<0.000000e+00> : vector<8x128xf32>
    %1208 = tpu.matmul %1207, %912, %cst_393 {dimension_numbers = #tpu.dot_dimension_numbers<[1], [0], [0], [1], [0, 0, 1, 1], [], []>} : vector<8x32xf32>, vector<32x128xf32>, vector<8x128xf32> -> vector<8x128xf32>
    %cst_394 = arith.constant dense<0xFF800000> : vector<8xf32>
    %1209 = vector.multi_reduction <maximumf>, %1208, %cst_394 [1] : vector<8x128xf32> to vector<8xf32>
    %1210 = vector.shape_cast %1209 : vector<8xf32> to vector<8x1xf32>
    %1211 = vector.broadcast %1210 : vector<8x1xf32> to vector<8x128xf32>
    %1212 = arith.subf %1208, %1211 : vector<8x128xf32>
    %1213 = math.exp %1212 : vector<8x128xf32>
    %cst_395 = arith.constant dense<0.000000e+00> : vector<8xf32>
    %1214 = vector.multi_reduction <add>, %1213, %cst_395 [1] : vector<8x128xf32> to vector<8xf32>
    %1215 = vector.shape_cast %1214 : vector<8xf32> to vector<8x1xf32>
    %1216 = math.log %1215 : vector<8x1xf32>
    %1217 = arith.addf %1216, %1210 : vector<8x1xf32>
    %1218 = vector.broadcast %1217 : vector<8x1xf32> to vector<8x128xf32>
    %1219 = arith.subf %1208, %1218 : vector<8x128xf32>
    %1220 = arith.index_cast %c3_i32_376 : i32 to index
    %c0_396 = arith.constant 0 : index
    %c0_397 = arith.constant 0 : index
    %1221 = vector.load %arg4[%1220, %c0_396, %c0_397] : memref<7x8x1xi32, #tpu.memory_space<vmem>>, vector<1x8x1xi32>
    %1222 = vector.shape_cast %1221 : vector<1x8x1xi32> to vector<8x1xi32>
    %1223 = vector.broadcast %1222 : vector<8x1xi32> to vector<8x128xi32>
    %1224 = arith.cmpi eq, %913, %1223 : vector<8x128xi32>
    %cst_398 = arith.constant 0.000000e+00 : f32
    %1225 = vector.broadcast %cst_398 : f32 to vector<8x128xf32>
    %1226 = arith.select %1224, %1219, %1225 : vector<8x128xi1>, vector<8x128xf32>
    %1227 = arith.addf %1149, %1226 : vector<8x128xf32>
    %c4_i32_399 = arith.constant 4 : i32
    %1228 = arith.index_cast %c4_i32_399 : i32 to index
    %c0_400 = arith.constant 0 : index
    %c0_401 = arith.constant 0 : index
    %1229 = vector.load %arg30[%1228, %c0_400, %c0_401] : memref<7x8x128xf32, #tpu.memory_space<vmem>>, vector<1x8x128xf32>
    %1230 = vector.shape_cast %1229 : vector<1x8x128xf32> to vector<8x128xf32>
    %cst_402 = arith.constant dense<0.000000e+00> : vector<8x128xf32>
    %1231 = tpu.matmul %1207, %907, %cst_402 {dimension_numbers = #tpu.dot_dimension_numbers<[1], [0], [0], [1], [0, 0, 1, 1], [], []>} : vector<8x32xf32>, vector<32x128xf32>, vector<8x128xf32> -> vector<8x128xf32>
    %1232 = arith.addf %1230, %1231 : vector<8x128xf32>
    %cst_403 = arith.constant dense<0.000000e+00> : vector<8x128xf32>
    %1233 = tpu.matmul %1181, %908, %cst_403 {dimension_numbers = #tpu.dot_dimension_numbers<[1], [0], [0], [1], [0, 0, 1, 1], [], []>} : vector<8x32xf32>, vector<32x128xf32>, vector<8x128xf32> -> vector<8x128xf32>
    %1234 = arith.addf %1232, %1233 : vector<8x128xf32>
    %1235 = vector.extract_strided_slice %1234 {offsets = [0, 0], sizes = [8, 32], strides = [1, 1]} : vector<8x128xf32> to vector<8x32xf32>
    %1236 = arith.negf %1235 : vector<8x32xf32>
    %1237 = math.exp %1236 : vector<8x32xf32>
    %cst_404 = arith.constant 1.000000e+00 : f32
    %1238 = vector.broadcast %cst_404 : f32 to vector<8x32xf32>
    %1239 = arith.addf %1238, %1237 : vector<8x32xf32>
    %1240 = arith.divf %1238, %1239 : vector<8x32xf32>
    %1241 = vector.extract_strided_slice %1234 {offsets = [0, 32], sizes = [8, 32], strides = [1, 1]} : vector<8x128xf32> to vector<8x32xf32>
    %1242 = arith.negf %1241 : vector<8x32xf32>
    %1243 = math.exp %1242 : vector<8x32xf32>
    %cst_405 = arith.constant 1.000000e+00 : f32
    %1244 = vector.broadcast %cst_405 : f32 to vector<8x32xf32>
    %1245 = arith.addf %1244, %1243 : vector<8x32xf32>
    %1246 = arith.divf %1244, %1245 : vector<8x32xf32>
    %1247 = vector.extract_strided_slice %1234 {offsets = [0, 64], sizes = [8, 32], strides = [1, 1]} : vector<8x128xf32> to vector<8x32xf32>
    %1248 = math.tanh %1247 : vector<8x32xf32>
    %1249 = vector.extract_strided_slice %1234 {offsets = [0, 96], sizes = [8, 32], strides = [1, 1]} : vector<8x128xf32> to vector<8x32xf32>
    %1250 = arith.negf %1249 : vector<8x32xf32>
    %1251 = math.exp %1250 : vector<8x32xf32>
    %cst_406 = arith.constant 1.000000e+00 : f32
    %1252 = vector.broadcast %cst_406 : f32 to vector<8x32xf32>
    %1253 = arith.addf %1252, %1251 : vector<8x32xf32>
    %1254 = arith.divf %1252, %1253 : vector<8x32xf32>
    %1255 = arith.mulf %1246, %1179 : vector<8x32xf32>
    %1256 = arith.mulf %1240, %1248 : vector<8x32xf32>
    %1257 = arith.addf %1255, %1256 : vector<8x32xf32>
    %1258 = math.tanh %1257 : vector<8x32xf32>
    %1259 = arith.mulf %1254, %1258 : vector<8x32xf32>
    %1260 = vector.shape_cast %1259 : vector<8x32xf32> to vector<8x1x32xf32>
    "tpu.trace_start"() <{level = 10 : i32, message = "bqh,bsh->bqs"}> : () -> ()
    %cst_407 = arith.constant dense<0.000000e+00> : vector<8x1x8xf32>
    %1261 = tpu.matmul %1260, %905, %cst_407 {dimension_numbers = #tpu.dot_dimension_numbers<[2], [2], [1], [1], [0, 0, 0, 1, 1, 1], [0], [0]>} : vector<8x1x32xf32>, vector<8x8x32xf32>, vector<8x1x8xf32> -> vector<8x1x8xf32>
    %cst_408 = arith.constant 0.000000e+00 : f32
    "tpu.trace_stop"() : () -> ()
    %1262 = vector.broadcast %cst_408 : f32 to vector<8x1x8xf32>
    %1263 = arith.cmpf ogt, %906, %1262 : vector<8x1x8xf32>
    %1264 = vector.broadcast %cst_306 : f32 to vector<8x1x8xf32>
    %1265 = arith.select %1263, %1261, %1264 : vector<8x1x8xi1>, vector<8x1x8xf32>
    %cst_409 = arith.constant dense<0xFF800000> : vector<8x1xf32>
    %1266 = vector.multi_reduction <maximumf>, %1265, %cst_409 [2] : vector<8x1x8xf32> to vector<8x1xf32>
    %1267 = vector.shape_cast %1266 : vector<8x1xf32> to vector<8x1x1xf32>
    %1268 = vector.broadcast %1267 : vector<8x1x1xf32> to vector<8x1x8xf32>
    %1269 = arith.subf %1265, %1268 : vector<8x1x8xf32>
    %1270 = math.exp %1269 : vector<8x1x8xf32>
    %cst_410 = arith.constant dense<0.000000e+00> : vector<8x1xf32>
    %1271 = vector.multi_reduction <add>, %1270, %cst_410 [2] : vector<8x1x8xf32> to vector<8x1xf32>
    %1272 = vector.shape_cast %1271 : vector<8x1xf32> to vector<8x1x1xf32>
    %1273 = tpu.reciprocal %1272 {approx = true} : vector<8x1x1xf32> -> vector<8x1x1xf32>
    %1274 = vector.broadcast %1273 : vector<8x1x1xf32> to vector<8x1x8xf32>
    %1275 = arith.mulf %1270, %1274 : vector<8x1x8xf32>
    "tpu.trace_start"() <{level = 10 : i32, message = "bqs,bsh->bqh"}> : () -> ()
    %cst_411 = arith.constant dense<0.000000e+00> : vector<8x1x32xf32>
    %1276 = tpu.matmul %1275, %895, %cst_411 {dimension_numbers = #tpu.dot_dimension_numbers<[2], [1], [1], [2], [0, 0, 0, 1, 1, 2], [0], [0]>} : vector<8x1x8xf32>, vector<8x8x32xf32>, vector<8x1x32xf32> -> vector<8x1x32xf32>
    "tpu.trace_stop"() : () -> ()
    %1277 = vector.shape_cast %1276 : vector<8x1x32xf32> to vector<8x32xf32>
    "tpu.trace_start"() <{level = 10 : i32, message = "bqs,bsh->bqh"}> : () -> ()
    %cst_412 = arith.constant dense<0.000000e+00> : vector<8x1x32xf32>
    %1278 = tpu.matmul %1275, %897, %cst_412 {dimension_numbers = #tpu.dot_dimension_numbers<[2], [1], [1], [2], [0, 0, 0, 1, 1, 2], [0], [0]>} : vector<8x1x8xf32>, vector<8x8x32xf32>, vector<8x1x32xf32> -> vector<8x1x32xf32>
    "tpu.trace_stop"() : () -> ()
    %1279 = vector.shape_cast %1278 : vector<8x1x32xf32> to vector<8x32xf32>
    %cst_413 = arith.constant dense<0.000000e+00> : vector<8x32xf32>
    %1280 = tpu.matmul %1259, %909, %cst_413 {dimension_numbers = #tpu.dot_dimension_numbers<[1], [0], [0], [1], [0, 0, 1, 1], [], []>} : vector<8x32xf32>, vector<32x32xf32>, vector<8x32xf32> -> vector<8x32xf32>
    %cst_414 = arith.constant dense<0.000000e+00> : vector<8x32xf32>
    %1281 = tpu.matmul %1277, %910, %cst_414 {dimension_numbers = #tpu.dot_dimension_numbers<[1], [0], [0], [1], [0, 0, 1, 1], [], []>} : vector<8x32xf32>, vector<32x32xf32>, vector<8x32xf32> -> vector<8x32xf32>
    %1282 = arith.addf %1280, %1281 : vector<8x32xf32>
    %cst_415 = arith.constant dense<0.000000e+00> : vector<8x32xf32>
    %1283 = tpu.matmul %1279, %911, %cst_415 {dimension_numbers = #tpu.dot_dimension_numbers<[1], [0], [0], [1], [0, 0, 1, 1], [], []>} : vector<8x32xf32>, vector<32x32xf32>, vector<8x32xf32> -> vector<8x32xf32>
    %1284 = arith.addf %1282, %1283 : vector<8x32xf32>
    %1285 = math.tanh %1284 : vector<8x32xf32>
    %cst_416 = arith.constant dense<0.000000e+00> : vector<8x128xf32>
    %1286 = tpu.matmul %1285, %912, %cst_416 {dimension_numbers = #tpu.dot_dimension_numbers<[1], [0], [0], [1], [0, 0, 1, 1], [], []>} : vector<8x32xf32>, vector<32x128xf32>, vector<8x128xf32> -> vector<8x128xf32>
    %cst_417 = arith.constant dense<0xFF800000> : vector<8xf32>
    %1287 = vector.multi_reduction <maximumf>, %1286, %cst_417 [1] : vector<8x128xf32> to vector<8xf32>
    %1288 = vector.shape_cast %1287 : vector<8xf32> to vector<8x1xf32>
    %1289 = vector.broadcast %1288 : vector<8x1xf32> to vector<8x128xf32>
    %1290 = arith.subf %1286, %1289 : vector<8x128xf32>
    %1291 = math.exp %1290 : vector<8x128xf32>
    %cst_418 = arith.constant dense<0.000000e+00> : vector<8xf32>
    %1292 = vector.multi_reduction <add>, %1291, %cst_418 [1] : vector<8x128xf32> to vector<8xf32>
    %1293 = vector.shape_cast %1292 : vector<8xf32> to vector<8x1xf32>
    %1294 = math.log %1293 : vector<8x1xf32>
    %1295 = arith.addf %1294, %1288 : vector<8x1xf32>
    %1296 = vector.broadcast %1295 : vector<8x1xf32> to vector<8x128xf32>
    %1297 = arith.subf %1286, %1296 : vector<8x128xf32>
    %1298 = arith.index_cast %c4_i32_399 : i32 to index
    %c0_419 = arith.constant 0 : index
    %c0_420 = arith.constant 0 : index
    %1299 = vector.load %arg4[%1298, %c0_419, %c0_420] : memref<7x8x1xi32, #tpu.memory_space<vmem>>, vector<1x8x1xi32>
    %1300 = vector.shape_cast %1299 : vector<1x8x1xi32> to vector<8x1xi32>
    %1301 = vector.broadcast %1300 : vector<8x1xi32> to vector<8x128xi32>
    %1302 = arith.cmpi eq, %913, %1301 : vector<8x128xi32>
    %cst_421 = arith.constant 0.000000e+00 : f32
    %1303 = vector.broadcast %cst_421 : f32 to vector<8x128xf32>
    %1304 = arith.select %1302, %1297, %1303 : vector<8x128xi1>, vector<8x128xf32>
    %1305 = arith.addf %1227, %1304 : vector<8x128xf32>
    %c5_i32_422 = arith.constant 5 : i32
    %1306 = arith.index_cast %c5_i32_422 : i32 to index
    %c0_423 = arith.constant 0 : index
    %c0_424 = arith.constant 0 : index
    %1307 = vector.load %arg30[%1306, %c0_423, %c0_424] : memref<7x8x128xf32, #tpu.memory_space<vmem>>, vector<1x8x128xf32>
    %1308 = vector.shape_cast %1307 : vector<1x8x128xf32> to vector<8x128xf32>
    %cst_425 = arith.constant dense<0.000000e+00> : vector<8x128xf32>
    %1309 = tpu.matmul %1285, %907, %cst_425 {dimension_numbers = #tpu.dot_dimension_numbers<[1], [0], [0], [1], [0, 0, 1, 1], [], []>} : vector<8x32xf32>, vector<32x128xf32>, vector<8x128xf32> -> vector<8x128xf32>
    %1310 = arith.addf %1308, %1309 : vector<8x128xf32>
    %cst_426 = arith.constant dense<0.000000e+00> : vector<8x128xf32>
    %1311 = tpu.matmul %1259, %908, %cst_426 {dimension_numbers = #tpu.dot_dimension_numbers<[1], [0], [0], [1], [0, 0, 1, 1], [], []>} : vector<8x32xf32>, vector<32x128xf32>, vector<8x128xf32> -> vector<8x128xf32>
    %1312 = arith.addf %1310, %1311 : vector<8x128xf32>
    %1313 = vector.extract_strided_slice %1312 {offsets = [0, 0], sizes = [8, 32], strides = [1, 1]} : vector<8x128xf32> to vector<8x32xf32>
    %1314 = arith.negf %1313 : vector<8x32xf32>
    %1315 = math.exp %1314 : vector<8x32xf32>
    %cst_427 = arith.constant 1.000000e+00 : f32
    %1316 = vector.broadcast %cst_427 : f32 to vector<8x32xf32>
    %1317 = arith.addf %1316, %1315 : vector<8x32xf32>
    %1318 = arith.divf %1316, %1317 : vector<8x32xf32>
    %1319 = vector.extract_strided_slice %1312 {offsets = [0, 32], sizes = [8, 32], strides = [1, 1]} : vector<8x128xf32> to vector<8x32xf32>
    %1320 = arith.negf %1319 : vector<8x32xf32>
    %1321 = math.exp %1320 : vector<8x32xf32>
    %cst_428 = arith.constant 1.000000e+00 : f32
    %1322 = vector.broadcast %cst_428 : f32 to vector<8x32xf32>
    %1323 = arith.addf %1322, %1321 : vector<8x32xf32>
    %1324 = arith.divf %1322, %1323 : vector<8x32xf32>
    %1325 = vector.extract_strided_slice %1312 {offsets = [0, 64], sizes = [8, 32], strides = [1, 1]} : vector<8x128xf32> to vector<8x32xf32>
    %1326 = math.tanh %1325 : vector<8x32xf32>
    %1327 = vector.extract_strided_slice %1312 {offsets = [0, 96], sizes = [8, 32], strides = [1, 1]} : vector<8x128xf32> to vector<8x32xf32>
    %1328 = arith.negf %1327 : vector<8x32xf32>
    %1329 = math.exp %1328 : vector<8x32xf32>
    %cst_429 = arith.constant 1.000000e+00 : f32
    %1330 = vector.broadcast %cst_429 : f32 to vector<8x32xf32>
    %1331 = arith.addf %1330, %1329 : vector<8x32xf32>
    %1332 = arith.divf %1330, %1331 : vector<8x32xf32>
    %1333 = arith.mulf %1324, %1257 : vector<8x32xf32>
    %1334 = arith.mulf %1318, %1326 : vector<8x32xf32>
    %1335 = arith.addf %1333, %1334 : vector<8x32xf32>
    %1336 = math.tanh %1335 : vector<8x32xf32>
    %1337 = arith.mulf %1332, %1336 : vector<8x32xf32>
    %1338 = vector.shape_cast %1337 : vector<8x32xf32> to vector<8x1x32xf32>
    "tpu.trace_start"() <{level = 10 : i32, message = "bqh,bsh->bqs"}> : () -> ()
    %cst_430 = arith.constant dense<0.000000e+00> : vector<8x1x8xf32>
    %1339 = tpu.matmul %1338, %905, %cst_430 {dimension_numbers = #tpu.dot_dimension_numbers<[2], [2], [1], [1], [0, 0, 0, 1, 1, 1], [0], [0]>} : vector<8x1x32xf32>, vector<8x8x32xf32>, vector<8x1x8xf32> -> vector<8x1x8xf32>
    %cst_431 = arith.constant 0.000000e+00 : f32
    "tpu.trace_stop"() : () -> ()
    %1340 = vector.broadcast %cst_431 : f32 to vector<8x1x8xf32>
    %1341 = arith.cmpf ogt, %906, %1340 : vector<8x1x8xf32>
    %1342 = vector.broadcast %cst_306 : f32 to vector<8x1x8xf32>
    %1343 = arith.select %1341, %1339, %1342 : vector<8x1x8xi1>, vector<8x1x8xf32>
    %cst_432 = arith.constant dense<0xFF800000> : vector<8x1xf32>
    %1344 = vector.multi_reduction <maximumf>, %1343, %cst_432 [2] : vector<8x1x8xf32> to vector<8x1xf32>
    %1345 = vector.shape_cast %1344 : vector<8x1xf32> to vector<8x1x1xf32>
    %1346 = vector.broadcast %1345 : vector<8x1x1xf32> to vector<8x1x8xf32>
    %1347 = arith.subf %1343, %1346 : vector<8x1x8xf32>
    %1348 = math.exp %1347 : vector<8x1x8xf32>
    %cst_433 = arith.constant dense<0.000000e+00> : vector<8x1xf32>
    %1349 = vector.multi_reduction <add>, %1348, %cst_433 [2] : vector<8x1x8xf32> to vector<8x1xf32>
    %1350 = vector.shape_cast %1349 : vector<8x1xf32> to vector<8x1x1xf32>
    %1351 = tpu.reciprocal %1350 {approx = true} : vector<8x1x1xf32> -> vector<8x1x1xf32>
    %1352 = vector.broadcast %1351 : vector<8x1x1xf32> to vector<8x1x8xf32>
    %1353 = arith.mulf %1348, %1352 : vector<8x1x8xf32>
    "tpu.trace_start"() <{level = 10 : i32, message = "bqs,bsh->bqh"}> : () -> ()
    %cst_434 = arith.constant dense<0.000000e+00> : vector<8x1x32xf32>
    %1354 = tpu.matmul %1353, %895, %cst_434 {dimension_numbers = #tpu.dot_dimension_numbers<[2], [1], [1], [2], [0, 0, 0, 1, 1, 2], [0], [0]>} : vector<8x1x8xf32>, vector<8x8x32xf32>, vector<8x1x32xf32> -> vector<8x1x32xf32>
    "tpu.trace_stop"() : () -> ()
    %1355 = vector.shape_cast %1354 : vector<8x1x32xf32> to vector<8x32xf32>
    "tpu.trace_start"() <{level = 10 : i32, message = "bqs,bsh->bqh"}> : () -> ()
    %cst_435 = arith.constant dense<0.000000e+00> : vector<8x1x32xf32>
    %1356 = tpu.matmul %1353, %897, %cst_435 {dimension_numbers = #tpu.dot_dimension_numbers<[2], [1], [1], [2], [0, 0, 0, 1, 1, 2], [0], [0]>} : vector<8x1x8xf32>, vector<8x8x32xf32>, vector<8x1x32xf32> -> vector<8x1x32xf32>
    "tpu.trace_stop"() : () -> ()
    %1357 = vector.shape_cast %1356 : vector<8x1x32xf32> to vector<8x32xf32>
    %cst_436 = arith.constant dense<0.000000e+00> : vector<8x32xf32>
    %1358 = tpu.matmul %1337, %909, %cst_436 {dimension_numbers = #tpu.dot_dimension_numbers<[1], [0], [0], [1], [0, 0, 1, 1], [], []>} : vector<8x32xf32>, vector<32x32xf32>, vector<8x32xf32> -> vector<8x32xf32>
    %cst_437 = arith.constant dense<0.000000e+00> : vector<8x32xf32>
    %1359 = tpu.matmul %1355, %910, %cst_437 {dimension_numbers = #tpu.dot_dimension_numbers<[1], [0], [0], [1], [0, 0, 1, 1], [], []>} : vector<8x32xf32>, vector<32x32xf32>, vector<8x32xf32> -> vector<8x32xf32>
    %1360 = arith.addf %1358, %1359 : vector<8x32xf32>
    %cst_438 = arith.constant dense<0.000000e+00> : vector<8x32xf32>
    %1361 = tpu.matmul %1357, %911, %cst_438 {dimension_numbers = #tpu.dot_dimension_numbers<[1], [0], [0], [1], [0, 0, 1, 1], [], []>} : vector<8x32xf32>, vector<32x32xf32>, vector<8x32xf32> -> vector<8x32xf32>
    %1362 = arith.addf %1360, %1361 : vector<8x32xf32>
    %1363 = math.tanh %1362 : vector<8x32xf32>
    %cst_439 = arith.constant dense<0.000000e+00> : vector<8x128xf32>
    %1364 = tpu.matmul %1363, %912, %cst_439 {dimension_numbers = #tpu.dot_dimension_numbers<[1], [0], [0], [1], [0, 0, 1, 1], [], []>} : vector<8x32xf32>, vector<32x128xf32>, vector<8x128xf32> -> vector<8x128xf32>
    %cst_440 = arith.constant dense<0xFF800000> : vector<8xf32>
    %1365 = vector.multi_reduction <maximumf>, %1364, %cst_440 [1] : vector<8x128xf32> to vector<8xf32>
    %1366 = vector.shape_cast %1365 : vector<8xf32> to vector<8x1xf32>
    %1367 = vector.broadcast %1366 : vector<8x1xf32> to vector<8x128xf32>
    %1368 = arith.subf %1364, %1367 : vector<8x128xf32>
    %1369 = math.exp %1368 : vector<8x128xf32>
    %cst_441 = arith.constant dense<0.000000e+00> : vector<8xf32>
    %1370 = vector.multi_reduction <add>, %1369, %cst_441 [1] : vector<8x128xf32> to vector<8xf32>
    %1371 = vector.shape_cast %1370 : vector<8xf32> to vector<8x1xf32>
    %1372 = math.log %1371 : vector<8x1xf32>
    %1373 = arith.addf %1372, %1366 : vector<8x1xf32>
    %1374 = vector.broadcast %1373 : vector<8x1xf32> to vector<8x128xf32>
    %1375 = arith.subf %1364, %1374 : vector<8x128xf32>
    %1376 = arith.index_cast %c5_i32_422 : i32 to index
    %c0_442 = arith.constant 0 : index
    %c0_443 = arith.constant 0 : index
    %1377 = vector.load %arg4[%1376, %c0_442, %c0_443] : memref<7x8x1xi32, #tpu.memory_space<vmem>>, vector<1x8x1xi32>
    %1378 = vector.shape_cast %1377 : vector<1x8x1xi32> to vector<8x1xi32>
    %1379 = vector.broadcast %1378 : vector<8x1xi32> to vector<8x128xi32>
    %1380 = arith.cmpi eq, %913, %1379 : vector<8x128xi32>
    %cst_444 = arith.constant 0.000000e+00 : f32
    %1381 = vector.broadcast %cst_444 : f32 to vector<8x128xf32>
    %1382 = arith.select %1380, %1375, %1381 : vector<8x128xi1>, vector<8x128xf32>
    %1383 = arith.addf %1305, %1382 : vector<8x128xf32>
    %c6_i32_445 = arith.constant 6 : i32
    %1384 = arith.index_cast %c6_i32_445 : i32 to index
    %c0_446 = arith.constant 0 : index
    %c0_447 = arith.constant 0 : index
    %1385 = vector.load %arg30[%1384, %c0_446, %c0_447] : memref<7x8x128xf32, #tpu.memory_space<vmem>>, vector<1x8x128xf32>
    %1386 = vector.shape_cast %1385 : vector<1x8x128xf32> to vector<8x128xf32>
    %cst_448 = arith.constant dense<0.000000e+00> : vector<8x128xf32>
    %1387 = tpu.matmul %1363, %907, %cst_448 {dimension_numbers = #tpu.dot_dimension_numbers<[1], [0], [0], [1], [0, 0, 1, 1], [], []>} : vector<8x32xf32>, vector<32x128xf32>, vector<8x128xf32> -> vector<8x128xf32>
    %1388 = arith.addf %1386, %1387 : vector<8x128xf32>
    %cst_449 = arith.constant dense<0.000000e+00> : vector<8x128xf32>
    %1389 = tpu.matmul %1337, %908, %cst_449 {dimension_numbers = #tpu.dot_dimension_numbers<[1], [0], [0], [1], [0, 0, 1, 1], [], []>} : vector<8x32xf32>, vector<32x128xf32>, vector<8x128xf32> -> vector<8x128xf32>
    %1390 = arith.addf %1388, %1389 : vector<8x128xf32>
    %1391 = vector.extract_strided_slice %1390 {offsets = [0, 0], sizes = [8, 32], strides = [1, 1]} : vector<8x128xf32> to vector<8x32xf32>
    %1392 = arith.negf %1391 : vector<8x32xf32>
    %1393 = math.exp %1392 : vector<8x32xf32>
    %cst_450 = arith.constant 1.000000e+00 : f32
    %1394 = vector.broadcast %cst_450 : f32 to vector<8x32xf32>
    %1395 = arith.addf %1394, %1393 : vector<8x32xf32>
    %1396 = arith.divf %1394, %1395 : vector<8x32xf32>
    %1397 = vector.extract_strided_slice %1390 {offsets = [0, 32], sizes = [8, 32], strides = [1, 1]} : vector<8x128xf32> to vector<8x32xf32>
    %1398 = arith.negf %1397 : vector<8x32xf32>
    %1399 = math.exp %1398 : vector<8x32xf32>
    %cst_451 = arith.constant 1.000000e+00 : f32
    %1400 = vector.broadcast %cst_451 : f32 to vector<8x32xf32>
    %1401 = arith.addf %1400, %1399 : vector<8x32xf32>
    %1402 = arith.divf %1400, %1401 : vector<8x32xf32>
    %1403 = vector.extract_strided_slice %1390 {offsets = [0, 64], sizes = [8, 32], strides = [1, 1]} : vector<8x128xf32> to vector<8x32xf32>
    %1404 = math.tanh %1403 : vector<8x32xf32>
    %1405 = vector.extract_strided_slice %1390 {offsets = [0, 96], sizes = [8, 32], strides = [1, 1]} : vector<8x128xf32> to vector<8x32xf32>
    %1406 = arith.negf %1405 : vector<8x32xf32>
    %1407 = math.exp %1406 : vector<8x32xf32>
    %cst_452 = arith.constant 1.000000e+00 : f32
    %1408 = vector.broadcast %cst_452 : f32 to vector<8x32xf32>
    %1409 = arith.addf %1408, %1407 : vector<8x32xf32>
    %1410 = arith.divf %1408, %1409 : vector<8x32xf32>
    %1411 = arith.mulf %1402, %1335 : vector<8x32xf32>
    %1412 = arith.mulf %1396, %1404 : vector<8x32xf32>
    %1413 = arith.addf %1411, %1412 : vector<8x32xf32>
    %1414 = math.tanh %1413 : vector<8x32xf32>
    %1415 = arith.mulf %1410, %1414 : vector<8x32xf32>
    %1416 = vector.shape_cast %1415 : vector<8x32xf32> to vector<8x1x32xf32>
    "tpu.trace_start"() <{level = 10 : i32, message = "bqh,bsh->bqs"}> : () -> ()
    %cst_453 = arith.constant dense<0.000000e+00> : vector<8x1x8xf32>
    %1417 = tpu.matmul %1416, %905, %cst_453 {dimension_numbers = #tpu.dot_dimension_numbers<[2], [2], [1], [1], [0, 0, 0, 1, 1, 1], [0], [0]>} : vector<8x1x32xf32>, vector<8x8x32xf32>, vector<8x1x8xf32> -> vector<8x1x8xf32>
    %cst_454 = arith.constant 0.000000e+00 : f32
    "tpu.trace_stop"() : () -> ()
    %1418 = vector.broadcast %cst_454 : f32 to vector<8x1x8xf32>
    %1419 = arith.cmpf ogt, %906, %1418 : vector<8x1x8xf32>
    %1420 = vector.broadcast %cst_306 : f32 to vector<8x1x8xf32>
    %1421 = arith.select %1419, %1417, %1420 : vector<8x1x8xi1>, vector<8x1x8xf32>
    %cst_455 = arith.constant dense<0xFF800000> : vector<8x1xf32>
    %1422 = vector.multi_reduction <maximumf>, %1421, %cst_455 [2] : vector<8x1x8xf32> to vector<8x1xf32>
    %1423 = vector.shape_cast %1422 : vector<8x1xf32> to vector<8x1x1xf32>
    %1424 = vector.broadcast %1423 : vector<8x1x1xf32> to vector<8x1x8xf32>
    %1425 = arith.subf %1421, %1424 : vector<8x1x8xf32>
    %1426 = math.exp %1425 : vector<8x1x8xf32>
    %cst_456 = arith.constant dense<0.000000e+00> : vector<8x1xf32>
    %1427 = vector.multi_reduction <add>, %1426, %cst_456 [2] : vector<8x1x8xf32> to vector<8x1xf32>
    %1428 = vector.shape_cast %1427 : vector<8x1xf32> to vector<8x1x1xf32>
    %1429 = tpu.reciprocal %1428 {approx = true} : vector<8x1x1xf32> -> vector<8x1x1xf32>
    %1430 = vector.broadcast %1429 : vector<8x1x1xf32> to vector<8x1x8xf32>
    %1431 = arith.mulf %1426, %1430 : vector<8x1x8xf32>
    "tpu.trace_start"() <{level = 10 : i32, message = "bqs,bsh->bqh"}> : () -> ()
    %cst_457 = arith.constant dense<0.000000e+00> : vector<8x1x32xf32>
    %1432 = tpu.matmul %1431, %895, %cst_457 {dimension_numbers = #tpu.dot_dimension_numbers<[2], [1], [1], [2], [0, 0, 0, 1, 1, 2], [0], [0]>} : vector<8x1x8xf32>, vector<8x8x32xf32>, vector<8x1x32xf32> -> vector<8x1x32xf32>
    "tpu.trace_stop"() : () -> ()
    %1433 = vector.shape_cast %1432 : vector<8x1x32xf32> to vector<8x32xf32>
    "tpu.trace_start"() <{level = 10 : i32, message = "bqs,bsh->bqh"}> : () -> ()
    %cst_458 = arith.constant dense<0.000000e+00> : vector<8x1x32xf32>
    %1434 = tpu.matmul %1431, %897, %cst_458 {dimension_numbers = #tpu.dot_dimension_numbers<[2], [1], [1], [2], [0, 0, 0, 1, 1, 2], [0], [0]>} : vector<8x1x8xf32>, vector<8x8x32xf32>, vector<8x1x32xf32> -> vector<8x1x32xf32>
    "tpu.trace_stop"() : () -> ()
    %1435 = vector.shape_cast %1434 : vector<8x1x32xf32> to vector<8x32xf32>
    %cst_459 = arith.constant dense<0.000000e+00> : vector<8x32xf32>
    %1436 = tpu.matmul %1415, %909, %cst_459 {dimension_numbers = #tpu.dot_dimension_numbers<[1], [0], [0], [1], [0, 0, 1, 1], [], []>} : vector<8x32xf32>, vector<32x32xf32>, vector<8x32xf32> -> vector<8x32xf32>
    %cst_460 = arith.constant dense<0.000000e+00> : vector<8x32xf32>
    %1437 = tpu.matmul %1433, %910, %cst_460 {dimension_numbers = #tpu.dot_dimension_numbers<[1], [0], [0], [1], [0, 0, 1, 1], [], []>} : vector<8x32xf32>, vector<32x32xf32>, vector<8x32xf32> -> vector<8x32xf32>
    %1438 = arith.addf %1436, %1437 : vector<8x32xf32>
    %cst_461 = arith.constant dense<0.000000e+00> : vector<8x32xf32>
    %1439 = tpu.matmul %1435, %911, %cst_461 {dimension_numbers = #tpu.dot_dimension_numbers<[1], [0], [0], [1], [0, 0, 1, 1], [], []>} : vector<8x32xf32>, vector<32x32xf32>, vector<8x32xf32> -> vector<8x32xf32>
    %1440 = arith.addf %1438, %1439 : vector<8x32xf32>
    %1441 = math.tanh %1440 : vector<8x32xf32>
    %cst_462 = arith.constant dense<0.000000e+00> : vector<8x128xf32>
    %1442 = tpu.matmul %1441, %912, %cst_462 {dimension_numbers = #tpu.dot_dimension_numbers<[1], [0], [0], [1], [0, 0, 1, 1], [], []>} : vector<8x32xf32>, vector<32x128xf32>, vector<8x128xf32> -> vector<8x128xf32>
    %cst_463 = arith.constant dense<0xFF800000> : vector<8xf32>
    %1443 = vector.multi_reduction <maximumf>, %1442, %cst_463 [1] : vector<8x128xf32> to vector<8xf32>
    %1444 = vector.shape_cast %1443 : vector<8xf32> to vector<8x1xf32>
    %1445 = vector.broadcast %1444 : vector<8x1xf32> to vector<8x128xf32>
    %1446 = arith.subf %1442, %1445 : vector<8x128xf32>
    %1447 = math.exp %1446 : vector<8x128xf32>
    %cst_464 = arith.constant dense<0.000000e+00> : vector<8xf32>
    %1448 = vector.multi_reduction <add>, %1447, %cst_464 [1] : vector<8x128xf32> to vector<8xf32>
    %1449 = vector.shape_cast %1448 : vector<8xf32> to vector<8x1xf32>
    %1450 = math.log %1449 : vector<8x1xf32>
    %1451 = arith.addf %1450, %1444 : vector<8x1xf32>
    %1452 = vector.broadcast %1451 : vector<8x1xf32> to vector<8x128xf32>
    %1453 = arith.subf %1442, %1452 : vector<8x128xf32>
    %1454 = arith.index_cast %c6_i32_445 : i32 to index
    %c0_465 = arith.constant 0 : index
    %c0_466 = arith.constant 0 : index
    %1455 = vector.load %arg4[%1454, %c0_465, %c0_466] : memref<7x8x1xi32, #tpu.memory_space<vmem>>, vector<1x8x1xi32>
    %1456 = vector.shape_cast %1455 : vector<1x8x1xi32> to vector<8x1xi32>
    %1457 = vector.broadcast %1456 : vector<8x1xi32> to vector<8x128xi32>
    %1458 = arith.cmpi eq, %913, %1457 : vector<8x128xi32>
    %cst_467 = arith.constant 0.000000e+00 : f32
    %1459 = vector.broadcast %cst_467 : f32 to vector<8x128xf32>
    %1460 = arith.select %1458, %1453, %1459 : vector<8x128xi1>, vector<8x128xf32>
    %1461 = arith.addf %1383, %1460 : vector<8x128xf32>
    %c7_i32_468 = arith.constant 7 : i32
    %1462 = vector.shape_cast %1461 : vector<8x128xf32> to vector<1x8x128xf32>
    %cst_469 = arith.constant dense<0.000000e+00> : vector<1xf32>
    %1463 = vector.multi_reduction <add>, %1462, %cst_469 [1, 2] : vector<1x8x128xf32> to vector<1xf32>
    %1464 = vector.shape_cast %1463 : vector<1xf32> to vector<1x1x1xf32>
    %1465 = vector.extract %1464[0, 0, 0] : f32 from vector<1x1x1xf32>
    %1466 = vector.broadcast %1465 : f32 to vector<1x1xf32>
    %c0_470 = arith.constant 0 : index
    %c0_471 = arith.constant 0 : index
    %1467 = vector.load %arg25[%c0_470, %c0_471] : memref<1x1xf32, #tpu.memory_space<vmem>>, vector<1x1xf32>
    tpu.vector_store %arg25[%c0_470, %c0_471], %1466 {strides = array<i32>} : memref<1x1xf32, #tpu.memory_space<vmem>>, vector<1x1xf32>,
    return
  }
}

</mosaic_0001>

<bundles_post_ra>
// kernel: tpu_custom_call.1
= control target key start
LH: loop header
LB: loop body
LE: loop exit
PB: predicated region body
PF: predicated region fallthrough
CT: control target
= control target key end

     0   :  { %s27941_s0 = inlined_call_operand.vmem [shape: f32[8,8,32], index: 0, kind: input, shape index: {}]   ;;  %s27942_s1 = inlined_call_operand.vmem [shape: f32[7,8,32], index: 1, kind: input, shape index: {}]   ;;  %s27943_s2 = inlined_call_operand.vmem [shape: f32[8,8,1], index: 2, kind: input, shape index: {}]   ;;  %s27944_s3 = inlined_call_operand.hbm [shape: f32[8,1,8], index: 3, kind: input, shape index: {}]   ;;  %s27945_s4 = inlined_call_operand.vmem [shape: s32[7,8,1], index: 4, kind: input, shape index: {}]   ;;  %s27946_s5 = inlined_call_operand.hbm [shape: f32[32,128], index: 5, kind: input, shape index: {}]   ;;  %s27947_s6 = inlined_call_operand.hbm [shape: f32[32,128], index: 6, kind: input, shape index: {}]   ;;  %s27948_s7 = inlined_call_operand.vmem [shape: f32[1,128], index: 7, kind: input, shape index: {}]   ;;  %s27949_s8 = inlined_call_operand.hbm [shape: f32[32,128], index: 8, kind: input, shape index: {}]   ;;  %s27950_s9 = inlined_call_operand.hbm [shape: f32[32,128], index: 9, kind: input, shape index: {}]   ;;  %s27951_s10 = inlined_call_operand.hbm [shape: f32[1,128], index: 10, kind: input, shape index: {}]   ;;  %s27952_s11 = inlined_call_operand.vmem [shape: f32[32,32], index: 11, kind: input, shape index: {}]   ;;  %s27953_s12 = inlined_call_operand.hbm [shape: f32[32,32], index: 12, kind: input, shape index: {}]   ;;  %s27954_s13 = inlined_call_operand.hbm [shape: f32[32,32], index: 13, kind: input, shape index: {}]   ;;  %s27955_s14 = inlined_call_operand.hbm [shape: f32[32,32], index: 14, kind: input, shape index: {}]   ;;  %s27956_s15 = inlined_call_operand.hbm [shape: f32[32,32], index: 15, kind: input, shape index: {}]   ;;  %s27957_s16 = inlined_call_operand.hbm [shape: f32[32,32], index: 16, kind: input, shape index: {}]   ;;  %s27958_s17 = inlined_call_operand.hbm [shape: f32[32,128], index: 17, kind: input, shape index: {}]   ;;  %s27959_s18 = inlined_call_operand.hbm [shape: f32[32,128], index: 18, kind: input, shape index: {}]   ;;  %s27960_s19 = inlined_call_operand.hbm [shape: f32[32,128], index: 19, kind: input, shape index: {}]   ;;  %s27961_s20 = inlined_call_operand.vmem [shape: f32[1,128], index: 20, kind: input, shape index: {}]   ;;  %s27962_s21 = inlined_call_operand.hbm [shape: f32[32,32], index: 21, kind: input, shape index: {}]   ;;  %s27963_s22 = inlined_call_operand.hbm [shape: f32[32,32], index: 22, kind: input, shape index: {}]   ;;  %s27964_s23 = inlined_call_operand.hbm [shape: f32[32,32], index: 23, kind: input, shape index: {}]   ;;  %s27965_s24 = inlined_call_operand.hbm [shape: f32[32,128], index: 24, kind: input, shape index: {}]   ;;  %s27966_s25 = inlined_call_operand.hbm [shape: f32[1,1], index: 25, kind: output, shape index: {}]  }
   0x1   :  { %28055 = sst [smem:[#allocation74_spill]] %s27941_s0 }
   0x2   :  { %28056 = sst [smem:[#allocation75_spill]] %s27942_s1 }
   0x3   :  { %28057 = sst [smem:[#allocation76_spill]] %s27943_s2 }
   0x4   :  { %28058 = sst [smem:[#allocation77_spill]] %s27944_s3 }
   0x5   :  { %28059 = sst [smem:[#allocation78_spill]] %s27945_s4 }
   0x6   :  { %28060 = sst [smem:[#allocation79_spill]] %s27946_s5 }
   0x7   :  { %28061 = sst [smem:[#allocation80_spill]] %s27947_s6 }
   0x8   :  { %28062 = sst [smem:[#allocation81_spill]] %s27948_s7 }
   0x9   :  { %28063 = sst [smem:[#allocation82_spill]] %s27949_s8 }
   0xa   :  { %28064 = sst [smem:[#allocation83_spill]] %s27950_s9 }
   0xb   :  { %30 = vsyncpa [#allocation8], 0 }
   0xc   :  { %31 = vsyncpa [#allocation11], 0 }
   0xd   :  { %32 = vsyncpa [#allocation14], 0 }
   0xe   :  { %33 = vsyncpa [#allocation17], 0 }
   0xf   :  { %34 = vsyncpa [#allocation20], 0 }
  0x10   :  { %35 = vsyncpa [#allocation23], 0 }
  0x11   :  { %36 = vsyncpa [#allocation26], 0 }
  0x12   :  { %37 = vsyncpa [#allocation29], 0 }
  0x13   :  { %38 = vsyncpa [#allocation32], 0 }
  0x14   :  { %39 = vsyncpa [#allocation35], 0 }
  0x15   :  { %40 = vsyncpa [#allocation9], 0  ;;  %s24361_s29 = smov [#allocation10]  }
  0x16   :  { %s66_s2 = sshll.u32 %s24361_s29, 4  ;;  %s67_s2 = int_to_ptr.vmem [resolvable:$true] %s66_s2 }
  0x17   :  { %s23967_s6 = scalar_lea.vmem %s67_s2, 512  ;;  %p23972_p1 = scmp.lt.s32.totalorder %s67_s2, %s67_s2 }
  0x18   :  { %p23968_p0 = scmp.ne.s32.totalorder %s67_s2, %s23967_s6  ;;  %p23973_p2 = scmp.lt.s32.totalorder %s23967_s6, %s23967_s6 }
  0x1a   :  { %p23974_p3 = por %p23973_p2, %p23972_p1 }
  0x1c   :  { %p23975_p4 = pnand %p23974_p3, %p23968_p0 }
  0x1e   :  { %23978 = shalt.err (!%p23975_p4)
}
  0x1f   :  { %s24362_s30 = smov 128   ;;  %s24363_s7 = smov 8  }
  0x20   :  { %s28065_s1 = sld [smem:[#allocation79_spill]]  ;;  %s24364_s8 = smov [#allocation13]  }
  0x21   :  { %s92_s27 = sshll.u32 %s24364_s8, 4  ;;  %s24365_s4 = smov [#allocation16]   ;;  %s93_s27 = int_to_ptr.vmem [resolvable:$true] %s92_s27 }
  0x22   :  { %s117_s28 = sshll.u32 %s24365_s4, 4  ;;  %s23987_s9 = scalar_lea.vmem %s93_s27, 512  ;;  %s118_s28 = int_to_ptr.vmem [resolvable:$true] %s117_s28 }
  0x23   :  { %p23988_p5 = scmp.ne.s32.totalorder %s93_s27, %s23987_s9  ;;  %p23992_p6 = scmp.lt.s32.totalorder %s93_s27, %s93_s27 }
  0x24   :  { %p23993_p7 = scmp.lt.s32.totalorder %s23987_s9, %s23987_s9 }
  0x26   :  { %72 = dma.hbm_to_vmem [thread:$0]  %s28065_s1, 512, %s67_s2, [#allocation11], %s24362_s30, %s24362_s30, %s24363_s7  }
  0x27   :  { %p23994_p8 = por %p23993_p7, %p23992_p6 }
  0x29   :  { %p23995_p9 = pnand %p23994_p8, %p23988_p5 }
  0x2b   :  { %23998 = shalt.err (!%p23995_p9)
}
  0x2c   :  { %s28066_s29 = sld [smem:[#allocation82_spill]]  ;;  %s24007_s2 = scalar_lea.vmem %s118_s28, 16 }
  0x2d   :  { %p24008_p10 = scmp.ne.s32.totalorder %s118_s28, %s24007_s2  ;;  %s24011_s6 = scalar_lea.vmem %s118_s28, 32 }
  0x2e   :  { %p24012_p11 = scmp.lt.s32.totalorder %s118_s28, %s118_s28  ;;  %p24013_p12 = scmp.lt.s32.totalorder %s24011_s6, %s24007_s2 }
  0x30   :  { %p24014_p13 = por %p24013_p12, %p24012_p11 }
  0x32   :  { %98 = dma.hbm_to_vmem [thread:$0]  %s28066_s29, 512, %s93_s27, [#allocation14], %s24362_s30, %s24362_s30, %s24363_s7  }
  0x33   :  { %p24015_p0 = pnand %p24014_p13, %p24008_p10 }
  0x35   :  { %24018 = shalt.err (!%p24015_p0)
}
  0x36   :  { %120 = dma.hbm_to_vmem [thread:$0]  %s27951_s10, 16, %s118_s28, [#allocation17]  }
  0x37   :  { %s24366_s1 = smov [#allocation19]   ;;  %s24367_s4 = smov [#allocation22]  }
  0x38   :  { %s140_s8 = sshll.u32 %s24366_s1, 4  ;;  %s164_s9 = sshll.u32 %s24367_s4, 4  ;;  %s141_s8 = int_to_ptr.vmem [resolvable:$true] %s140_s8  ;;  %s165_s9 = int_to_ptr.vmem [resolvable:$true] %s164_s9 }
  0x39   :  { %s24027_s5 = scalar_lea.vmem %s141_s8, 512  ;;  %p24032_p2 = scmp.lt.s32.totalorder %s141_s8, %s141_s8 }
  0x3a   :  { %p24028_p1 = scmp.ne.s32.totalorder %s141_s8, %s24027_s5  ;;  %p24033_p3 = scmp.lt.s32.totalorder %s24027_s5, %s24027_s5 }
  0x3c   :  { %p24034_p4 = por %p24033_p3, %p24032_p2 }
  0x3e   :  { %p24035_p5 = pnand %p24034_p4, %p24028_p1 }
  0x40   :  { %24038 = shalt.err (!%p24035_p5)
}
  0x41   :  { %146 = dma.hbm_to_vmem [thread:$0]  %s27954_s13, 512, %s141_s8, [#allocation20], %s24362_s30, %s24362_s30, %s24363_s7  }
  0x42   :  { %s24047_s10 = scalar_lea.vmem %s165_s9, 512  ;;  %p24052_p7 = scmp.lt.s32.totalorder %s165_s9, %s165_s9 }
  0x43   :  { %p24048_p6 = scmp.ne.s32.totalorder %s165_s9, %s24047_s10  ;;  %p24053_p8 = scmp.lt.s32.totalorder %s24047_s10, %s24047_s10 }
  0x45   :  { %p24054_p9 = por %p24053_p8, %p24052_p7 }
  0x47   :  { %p24055_p10 = pnand %p24054_p9, %p24048_p6 }
  0x49   :  { %24058 = shalt.err (!%p24055_p10)
}
  0x4a   :  { %170 = dma.hbm_to_vmem [thread:$0]  %s27956_s15, 512, %s165_s9, [#allocation23], %s24362_s30, %s24362_s30, %s24363_s7  }
  0x4b   :  { %s24368_s2 = smov [#allocation25]   ;;  %s24369_s3 = smov [#allocation28]  }
  0x4c   :  { %s188_s6 = sshll.u32 %s24368_s2, 4  ;;  %s212_s13 = sshll.u32 %s24369_s3, 4  ;;  %s189_s6 = int_to_ptr.vmem [resolvable:$true] %s188_s6  ;;  %s213_s13 = int_to_ptr.vmem [resolvable:$true] %s212_s13 }
  0x4d   :  { %s24067_s26 = scalar_lea.vmem %s189_s6, 512  ;;  %p24072_p12 = scmp.lt.s32.totalorder %s189_s6, %s189_s6 }
  0x4e   :  { %p24068_p11 = scmp.ne.s32.totalorder %s189_s6, %s24067_s26  ;;  %p24073_p13 = scmp.lt.s32.totalorder %s24067_s26, %s24067_s26 }
  0x50   :  { %p24074_p0 = por %p24073_p13, %p24072_p12 }
  0x52   :  { %p24075_p1 = pnand %p24074_p0, %p24068_p11 }
  0x54   :  { %24078 = shalt.err (!%p24075_p1)
}
  0x55   :  { %194 = dma.hbm_to_vmem [thread:$0]  %s27958_s17, 512, %s189_s6, [#allocation26], %s24362_s30, %s24362_s30, %s24363_s7  }
  0x56   :  { %s24087_s15 = scalar_lea.vmem %s213_s13, 512  ;;  %p24092_p3 = scmp.lt.s32.totalorder %s213_s13, %s213_s13 }
  0x57   :  { %p24088_p2 = scmp.ne.s32.totalorder %s213_s13, %s24087_s15  ;;  %p24093_p4 = scmp.lt.s32.totalorder %s24087_s15, %s24087_s15 }
  0x59   :  { %p24094_p5 = por %p24093_p4, %p24092_p3 }
  0x5b   :  { %p24095_p6 = pnand %p24094_p5, %p24088_p2 }
  0x5d   :  { %24098 = shalt.err (!%p24095_p6)
}
  0x5e   :  { %218 = dma.hbm_to_vmem [thread:$0]  %s27960_s19, 512, %s213_s13, [#allocation29], %s24362_s30, %s24362_s30, %s24363_s7  }
  0x5f   :  { %s24370_s5 = smov [#allocation31]   ;;  %s24371_s0 = smov [#allocation7]  }
  0x60   :  { %s238_s27 = sshll.u32 %s24370_s5, 4  ;;  %s52_s17 = sshll.u32 %s24371_s0, 4  ;;  %s239_s27 = int_to_ptr.vmem [resolvable:$true] %s238_s27  ;;  %s53_s17 = int_to_ptr.vmem [resolvable:$true] %s52_s17 }
  0x61   :  { %s24107_s10 = scalar_lea.vmem %s239_s27, 512  ;;  %p24112_p8 = scmp.lt.s32.totalorder %s239_s27, %s239_s27 }
  0x62   :  { %p24108_p7 = scmp.ne.s32.totalorder %s239_s27, %s24107_s10  ;;  %p24113_p9 = scmp.lt.s32.totalorder %s24107_s10, %s24107_s10 }
  0x64   :  { %p24114_p10 = por %p24113_p9, %p24112_p8 }
  0x66   :  { %p24115_p11 = pnand %p24114_p10, %p24108_p7 }
  0x68   :  { %24118 = shalt.err (!%p24115_p11)
}
  0x69   :  { %244 = dma.hbm_to_vmem [thread:$0]  %s27963_s22, 512, %s239_s27, [#allocation32], %s24362_s30, %s24362_s30, %s24363_s7  }
  0x6a   :  { %s24127_s19 = scalar_lea.vmem %s53_s17, 128  ;;  %p24132_p13 = scmp.lt.s32.totalorder %s53_s17, %s53_s17 }
  0x6b   :  { %p24128_p12 = scmp.ne.s32.totalorder %s53_s17, %s24127_s19  ;;  %p24133_p0 = scmp.lt.s32.totalorder %s24127_s19, %s24127_s19 }
  0x6d   :  { %p24134_p1 = por %p24133_p0, %p24132_p13 }
  0x6f   :  { %p24135_p2 = pnand %p24134_p1, %p24128_p12 }
  0x71   :  { %24138 = shalt.err (!%p24135_p2)
}
  0x72   :  { %s24372_s2 = smov 16   ;;  %s24373_s6 = smov 1  }
  0x73   :  { %s28067_s26 = sld [smem:[#allocation77_spill]]  ;;  %s24374_s1 = smov [#allocation12]  }
  0x74   :  { %s78_s8 = sshll.u32 %s24374_s1, 4  ;;  %s24375_s15 = smov [#allocation15]   ;;  %s79_s8 = int_to_ptr.vmem [resolvable:$true] %s78_s8 }
  0x75   :  { %s104_s4 = sshll.u32 %s24375_s15, 4  ;;  %s24147_s22 = scalar_lea.vmem %s79_s8, 512  ;;  %s105_s4 = int_to_ptr.vmem [resolvable:$true] %s104_s4 }
  0x76   :  { %p24148_p3 = scmp.ne.s32.totalorder %s79_s8, %s24147_s22  ;;  %p24152_p4 = scmp.lt.s32.totalorder %s79_s8, %s79_s8 }
  0x77   :  { %p24153_p5 = scmp.lt.s32.totalorder %s24147_s22, %s24147_s22 }
  0x79   :  { %58 = dma.hbm_to_vmem [thread:$0]  %s28067_s26, 128, %s53_s17, [#allocation8], %s24372_s2, %s24372_s2, %s24373_s6  }
  0x7a   :  { %p24154_p6 = por %p24153_p5, %p24152_p4 }
  0x7c   :  { %p24155_p7 = pnand %p24154_p6, %p24148_p3 }
  0x7e   :  { %24158 = shalt.err (!%p24155_p7)
}
  0x7f   :  { %s28068_s27 = sld [smem:[#allocation80_spill]]  ;;  %s24167_s0 = scalar_lea.vmem %s105_s4, 512 }
  0x80   :  { %p24168_p8 = scmp.ne.s32.totalorder %s105_s4, %s24167_s0  ;;  %p24172_p9 = scmp.lt.s32.totalorder %s105_s4, %s105_s4 }
  0x81   :  { %p24173_p10 = scmp.lt.s32.totalorder %s24167_s0, %s24167_s0 }
  0x83   :  { %p24174_p11 = por %p24173_p10, %p24172_p9 }
  0x85   :  { %84 = dma.hbm_to_vmem [thread:$0]  %s28068_s27, 512, %s79_s8, [#allocation11], %s24362_s30, %s24362_s30, %s24363_s7  }
  0x86   :  { %p24175_p12 = pnand %p24174_p11, %p24168_p8 }
  0x88   :  { %24178 = shalt.err (!%p24175_p12)
}
  0x89   :  { %s28069_s28 = sld [smem:[#allocation83_spill]]  ;;  %s24376_s29 = smov [#allocation18]  }
  0x8a   :  { %s128_s19 = sshll.u32 %s24376_s29, 4  ;;  %s24377_s2 = smov [#allocation21]   ;;  %s129_s19 = int_to_ptr.vmem [resolvable:$true] %s128_s19 }
  0x8b   :  { %s152_s6 = sshll.u32 %s24377_s2, 4  ;;  %s24187_s3 = scalar_lea.vmem %s129_s19, 512  ;;  %s153_s6 = int_to_ptr.vmem [resolvable:$true] %s152_s6 }
  0x8c   :  { %p24188_p13 = scmp.ne.s32.totalorder %s129_s19, %s24187_s3  ;;  %p24192_p0 = scmp.lt.s32.totalorder %s129_s19, %s129_s19 }
  0x8d   :  { %p24193_p1 = scmp.lt.s32.totalorder %s24187_s3, %s24187_s3 }
  0x8f   :  { %110 = dma.hbm_to_vmem [thread:$0]  %s28069_s28, 512, %s105_s4, [#allocation14], %s24362_s30, %s24362_s30, %s24363_s7  }
  0x90   :  { %p24194_p2 = por %p24193_p1, %p24192_p0 }
  0x92   :  { %p24195_p3 = pnand %p24194_p2, %p24188_p13 }
  0x94   :  { %24198 = shalt.err (!%p24195_p3)
}
  0x95   :  { %134 = dma.hbm_to_vmem [thread:$0]  %s27953_s12, 512, %s129_s19, [#allocation17], %s24362_s30, %s24362_s30, %s24363_s7  }
  0x96   :  { %s24207_s1 = scalar_lea.vmem %s153_s6, 512  ;;  %p24212_p5 = scmp.lt.s32.totalorder %s153_s6, %s153_s6 }
  0x97   :  { %p24208_p4 = scmp.ne.s32.totalorder %s153_s6, %s24207_s1  ;;  %p24213_p6 = scmp.lt.s32.totalorder %s24207_s1, %s24207_s1 }
  0x99   :  { %p24214_p7 = por %p24213_p6, %p24212_p5 }
  0x9b   :  { %p24215_p8 = pnand %p24214_p7, %p24208_p4 }
  0x9d   :  { %24218 = shalt.err (!%p24215_p8)
}
  0x9e   :  { %158 = dma.hbm_to_vmem [thread:$0]  %s27955_s14, 512, %s153_s6, [#allocation20], %s24362_s30, %s24362_s30, %s24363_s7  }
  0x9f   :  { %s24378_s4 = smov [#allocation24]   ;;  %s24379_s9 = smov [#allocation27]  }
  0xa0   :  { %s176_s22 = sshll.u32 %s24378_s4, 4  ;;  %s200_s12 = sshll.u32 %s24379_s9, 4  ;;  %s177_s22 = int_to_ptr.vmem [resolvable:$true] %s176_s22  ;;  %s201_s12 = int_to_ptr.vmem [resolvable:$true] %s200_s12 }
  0xa1   :  { %s24227_s5 = scalar_lea.vmem %s177_s22, 512  ;;  %p24232_p10 = scmp.lt.s32.totalorder %s177_s22, %s177_s22 }
  0xa2   :  { %p24228_p9 = scmp.ne.s32.totalorder %s177_s22, %s24227_s5  ;;  %p24233_p11 = scmp.lt.s32.totalorder %s24227_s5, %s24227_s5 }
  0xa4   :  { %p24234_p12 = por %p24233_p11, %p24232_p10 }
  0xa6   :  { %p24235_p13 = pnand %p24234_p12, %p24228_p9 }
  0xa8   :  { %24238 = shalt.err (!%p24235_p13)
}
  0xa9   :  { %182 = dma.hbm_to_vmem [thread:$0]  %s27957_s16, 512, %s177_s22, [#allocation23], %s24362_s30, %s24362_s30, %s24363_s7  }
  0xaa   :  { %s24247_s14 = scalar_lea.vmem %s201_s12, 512  ;;  %p24252_p1 = scmp.lt.s32.totalorder %s201_s12, %s201_s12 }
  0xab   :  { %p24248_p0 = scmp.ne.s32.totalorder %s201_s12, %s24247_s14  ;;  %p24253_p2 = scmp.lt.s32.totalorder %s24247_s14, %s24247_s14 }
  0xad   :  { %p24254_p3 = por %p24253_p2, %p24252_p1 }
  0xaf   :  { %p24255_p4 = pnand %p24254_p3, %p24248_p0 }
  0xb1   :  { %24258 = shalt.err (!%p24255_p4)
}
  0xb2   :  { %206 = dma.hbm_to_vmem [thread:$0]  %s27959_s18, 512, %s201_s12, [#allocation26], %s24362_s30, %s24362_s30, %s24363_s7  }
  0xb3   :  { %s24380_s28 = smov [#allocation30]   ;;  %s24381_s19 = smov [#allocation33]  }
  0xb4   :  { %s226_s29 = sshll.u32 %s24380_s28, 4  ;;  %s250_s16 = sshll.u32 %s24381_s19, 4  ;;  %s227_s29 = int_to_ptr.vmem [resolvable:$true] %s226_s29  ;;  %s251_s16 = int_to_ptr.vmem [resolvable:$true] %s250_s16 }
  0xb5   :  { %s24267_s2 = scalar_lea.vmem %s227_s29, 512  ;;  %p24272_p6 = scmp.lt.s32.totalorder %s227_s29, %s227_s29 }
  0xb6   :  { %p24268_p5 = scmp.ne.s32.totalorder %s227_s29, %s24267_s2  ;;  %p24273_p7 = scmp.lt.s32.totalorder %s24267_s2, %s24267_s2 }
  0xb8   :  { %p24274_p8 = por %p24273_p7, %p24272_p6 }
  0xba   :  { %p24275_p9 = pnand %p24274_p8, %p24268_p5 }
  0xbc   :  { %24278 = shalt.err (!%p24275_p9)
}
  0xbd   :  { %232 = dma.hbm_to_vmem [thread:$0]  %s27962_s21, 512, %s227_s29, [#allocation29], %s24362_s30, %s24362_s30, %s24363_s7  }
  0xbe   :  { %s24287_s18 = scalar_lea.vmem %s251_s16, 512  ;;  %p24292_p11 = scmp.lt.s32.totalorder %s251_s16, %s251_s16 }
  0xbf   :  { %p24288_p10 = scmp.ne.s32.totalorder %s251_s16, %s24287_s18  ;;  %p24293_p12 = scmp.lt.s32.totalorder %s24287_s18, %s24287_s18 }
  0xc1   :  { %p24294_p13 = por %p24293_p12, %p24292_p11 }
  0xc3   :  { %p24295_p0 = pnand %p24294_p13, %p24288_p10 }
  0xc5   :  { %24298 = shalt.err (!%p24295_p0)
}
  0xc6   :  { %256 = dma.hbm_to_vmem [thread:$0]  %s27964_s23, 512, %s251_s16, [#allocation32], %s24362_s30, %s24362_s30, %s24363_s7  }
  0xc7   :  { %s24382_s1 = smov [#allocation34]  }
  0xc8   :  { %s262_s8 = sshll.u32 %s24382_s1, 4  ;;  %s263_s8 = int_to_ptr.vmem [resolvable:$true] %s262_s8 }
  0xc9   :  { %s24307_s15 = scalar_lea.vmem %s263_s8, 512  ;;  %p24312_p2 = scmp.lt.s32.totalorder %s263_s8, %s263_s8 }
  0xca   :  { %p24308_p1 = scmp.ne.s32.totalorder %s263_s8, %s24307_s15  ;;  %p24313_p3 = scmp.lt.s32.totalorder %s24307_s15, %s24307_s15 }
  0xcc   :  { %p24314_p4 = por %p24313_p3, %p24312_p2 }
  0xce   :  { %p24315_p5 = pnand %p24314_p4, %p24308_p1 }
  0xd0   :  { %24318 = shalt.err (!%p24315_p5)
}
  0xd1   :  { %268 = dma.hbm_to_vmem [thread:$0]  %s27965_s24, 512, %s263_s8, [#allocation35], %s24362_s30, %s24362_s30, %s24363_s7  }
  0xd2   :  { %24339 = dma.done.wait [#allocation8], 128  }
  0xd3   :  { %24340 = vsyncadd [#allocation8], 4294967168 }
  0xd4   :  { %24341 = dma.done.wait [#allocation11], 1024  }
  0xd5   :  { %24342 = vsyncadd [#allocation11], 4294966272 }
  0xd6   :  { %24343 = dma.done.wait [#allocation14], 1024  }
  0xd7   :  { %24344 = vsyncadd [#allocation14], 4294966272 }
  0xd8   :  { %24345 = dma.done.wait [#allocation17], 528  }
  0xd9   :  { %24346 = vsyncadd [#allocation17], 4294966768 }
  0xda   :  { %24347 = dma.done.wait [#allocation20], 1024  }
  0xdb   :  { %24348 = vsyncadd [#allocation20], 4294966272 }
  0xdc   :  { %24349 = dma.done.wait [#allocation23], 1024  }
  0xdd   :  { %24350 = vsyncadd [#allocation23], 4294966272 }
  0xde   :  { %24351 = dma.done.wait [#allocation26], 1024  }
  0xdf   :  { %24352 = vsyncadd [#allocation26], 4294966272 }
  0xe0   :  { %24353 = dma.done.wait [#allocation29], 1024  }
  0xe1   :  { %24354 = vsyncadd [#allocation29], 4294966272 }
  0xe2   :  { %24355 = dma.done.wait [#allocation32], 1024  }
  0xe3   :  { %24356 = vsyncadd [#allocation32], 4294966272 }
  0xe4   :  { %24357 = dma.done.wait [#allocation35], 512  }
  0xe5   :  { %24358 = vsyncadd [#allocation35], 4294966784  ;;  %vm342_vm0 = vcmask 261120   ;;  %v483_v0 = vld [vmem:[#allocation13 + $0x18] sm:$0xff]  ;;  %v482_v1 = vld [vmem:[#allocation13 + $0x10] sm:$0xff]  ;;  %s28070_s30 = sld [smem:[#allocation74_spill]] }
  0xe6   :  { %21779 = vmatprep.subr.mxu1 %v483_v0  ;;  %v481_v3 = vld [vmem:[#allocation13 + $0x8] sm:$0xff]  ;;  %v334_v4 = vld [vmem:[#allocation10 + $0x18] sm:$0xff]  ;;  %v333_v5 = vld [vmem:[#allocation10 + $0x10] sm:$0xff]  ;;  %v27973_v12 = vmov 0.0   ;;  %vm24384_vm1 = vmmov 0   ;;  %v24385_v25 = vmov 0  }
  0xe7   :  { %21780 = vmatpush3.msra.mxu1 %v483_v0  ;;  %21759 = vmatprep.subr.mxu0 %v334_v4  ;;  %v480_v6 = vld [vmem:[#allocation13] sm:$0xff]  ;;  %v332_v7 = vld [vmem:[#allocation10 + $0x8] sm:$0xff]  ;;  %v24632_v9 = vld [vmem:[#allocation12 + $0x18] sm:$0xff]  ;;  %s28071_s3 = sld [smem:[#allocation81_spill]]  ;;  %s24386_s18 = smov 64  }
  0xe8   :  { %21781 = vmatprep.subr.mxu1 %v482_v1  ;;  %21760 = vmatpush3.msra.mxu0 %v334_v4  ;;  %v331_v11 = vld [vmem:[#allocation10] sm:$0xff]  ;;  %v24639_v13 = vld [vmem:[#allocation12 + $0x10] sm:$0xff]  ;;  %v24650_v16 = vld [vmem:[#allocation12 + $0x8] sm:$0xff]  ;;  %s28072_s1 = sld [smem:[#allocation76_spill]]  ;;  %s24387_s8 = smov 32  }
  0xe9   :  { %21782 = vmatpush3.msra.mxu1 %v482_v1  ;;  %21761 = vmatprep.subr.mxu0 %v333_v5  ;;  %v24655_v17 = vld [vmem:[#allocation12] sm:$0xff]  ;;  %v24682_v21 = vld [vmem:[#allocation15 + $0x18] sm:$0xff]  ;;  %v24686_v22 = vld [vmem:[#allocation15 + $0x10] sm:$0xff]  ;;  %s28073_s9 = sld [smem:[#allocation75_spill]] }
  0xea   :  { %21783 = vmatprep.subr.mxu1 %v481_v3  ;;  %21762 = vmatpush3.msra.mxu0 %v333_v5  ;;  %v24693_v23 = vld [vmem:[#allocation15 + $0x8] sm:$0xff]  ;;  %v24698_v24 = vld [vmem:[#allocation15] sm:$0xff] }
  0xeb   :  { %v323_v2 = vld [vmem:[%s28070_s30] sm:$0xff]  ;;  %21784 = vmatpush3.msra.mxu1 %v481_v3  ;;  %v324_v8 = vld [vmem:[%s28070_s30 + $0x8] sm:$0xff]  ;;  %v325_v10 = vld [vmem:[%s28070_s30 + $0x10] sm:$0xff]  ;;  %21763 = vmatprep.subr.mxu0 %v332_v7 }
  0xec   :  { %21787 = vmatprep.mubr.msk.f32.mxu1 %vm342_vm0, %v323_v2  ;;  %21785 = vmatprep.subr.mxu1 %v480_v6  ;;  %v326_v14 = vld [vmem:[%s28070_s30 + $0x18] sm:$0xff]  ;;  %v327_v15 = vld [vmem:[%s28070_s30 + $0x20] sm:$0xff]  ;;  %v328_v18 = vld [vmem:[%s28070_s30 + $0x28] sm:$0xff] }
  0xed   :  { %21786 = vmatpush3.msra.mxu1 %v480_v6  ;;  %21764 = vmatpush3.msra.mxu0 %v332_v7  ;;  %v329_v19 = vld [vmem:[%s28070_s30 + $0x30] sm:$0xff]  ;;  %v330_v20 = vld [vmem:[%s28070_s30 + $0x38] sm:$0xff]  ;;  %v24719_v26 = vld [vmem:[#allocation16] ss:$0 sm:$0xff] }
  0xee   :  { %21788 = vmatmul.mubr.msk.f32.vlgmr.msra.gmra.mxu1 %vm342_vm0, %v324_v8  ;;  %21828 = vmatprep.subr.mxu1 %v27973_v12  ;;  %v24741_v37 = vld [vmem:[%s28071_s3] ss:$0 sm:$0xff]  ;;  %v20713_v7 = vld [vmem:[%s28072_s1 + $0x38] sm:$0xff] }
  0xef   :  { %21829 = vmatpush3.msra.mxu1 %v24632_v9  ;;  %21790 = vmatprep.mubr.msk.f32.mxu1 %vm342_vm0, %v325_v10  ;;  %v758_v50 = vld [vmem:[%s28072_s1] sm:$0xff]  ;;  %vm970_vm3 = vcmp.gt.f32.partialorder %v20713_v7, 0.0 }
  0xf0   :  { %21830 = vmatprep.subr.mxu1 %v27973_v12  ;;  %21765 = vmatprep.subr.mxu0 %v331_v11  ;;  %vm858_vm2 = vcmp.gt.f32.partialorder %v758_v50, 0.0 }
  0xf1   :  { %21831 = vmatpush3.msra.mxu1 %v24639_v13  ;;  %21766 = vmatpush3.msra.mxu0 %v331_v11  ;;  %v859_v52 = vsel %vm858_vm2, 1, %v24385_v25 }
  0xf2   :  { %21791 = vmatmul.mubr.msk.f32.gmra.mxu1 %vm342_vm0, %v326_v14  ;;  %21832 = vmatprep.subr.mxu1 %v27973_v12 }
  0xf3   :  { %21793 = vmatprep.mubr.msk.f32.mxu1 %vm342_vm0, %v327_v15  ;;  %21833 = vmatpush3.msra.mxu1 %v24650_v16 }
  0xf4   :  { %21767 = vmatprep.mubr.msk.f32.mxu0 %vm342_vm0, %v323_v2  ;;  %21834 = vmatprep.subr.mxu1 %v27973_v12 }
  0xf5   :  { %21768 = vmatmul.mubr.msk.f32.vlgmr.msra.gmra.mxu0 %vm342_vm0, %v324_v8  ;;  %21835 = vmatpush3.msra.mxu1 %v24655_v17 }
  0xf6   :  { %21794 = vmatmul.mubr.msk.f32.gmra.mxu1 %vm342_vm0, %v328_v18  ;;  %21839 = vmatprep.subr.mxu1 %v27973_v12 }
  0xf7   :  { %21796 = vmatprep.mubr.msk.f32.mxu1 %vm342_vm0, %v329_v19  ;;  %21770 = vmatprep.mubr.msk.f32.mxu0 %vm342_vm0, %v325_v10  ;;  %v971_v10 = vsel %vm970_vm3, 1, %v24385_v25 }
  0xf8   :  { %21799 = vmatprep.subr.mxu0 %v27973_v12  ;;  %23424 = vset.pattern.permute.xlu0 %v24385_v25 }
  0xf9   :  { %21771 = vmatmul.mubr.msk.f32.gmra.mxu0 %vm342_vm0, %v326_v14  ;;  %23425 = vset.pattern.permute.xlu1 %v24385_v25 }
  0xfa   :  { %21797 = vmatmul.mubr.msk.f32.gmra.mxu1 %vm342_vm0, %v330_v20  ;;  %21773 = vmatprep.mubr.msk.f32.mxu0 %vm342_vm0, %v327_v15 }
  0xfb   :  { %21836 = vmatprep.mubr.msk.f32.mxu1 %vm24384_vm1, %v27973_v12 }
  0xfd   :  { %21774 = vmatmul.mubr.msk.f32.gmra.mxu0 %vm342_vm0, %v328_v18 }
  0xfe   :  { %21837 = vmatmul.mubr.f32.vlgmr.msra.gmra.mxu1 %v27973_v12  ;;  %21776 = vmatprep.mubr.msk.f32.mxu0 %vm342_vm0, %v329_v19 }
  0xff   :  { %21840 = vmatpush3.msra.mxu1 %v24682_v21  ;;  %21847 = vmatprep.mubr.msk.f32.mxu1 %vm24384_vm1, %v27973_v12 }
 0x100   :  { %21841 = vmatprep.subr.mxu1 %v27973_v12 }
 0x101   :  { %21842 = vmatpush3.msra.mxu1 %v24686_v22  ;;  %21777 = vmatmul.mubr.msk.f32.gmra.mxu0 %vm342_vm0, %v330_v20 }
 0x102   :  { %21843 = vmatprep.subr.mxu1 %v27973_v12  ;;  %21807 = vmatprep.mubr.msk.f32.mxu0 %vm24384_vm1, %v27973_v12 }
 0x103   :  { %21844 = vmatpush3.msra.mxu1 %v24693_v23 }
 0x104   :  { %21845 = vmatprep.subr.mxu1 %v27973_v12 }
 0x105   :  { %21846 = vmatpush3.msra.mxu1 %v24698_v24 }
 0x106   :  { %21848 = vmatmul.mubr.f32.vlgmr.msra.gmra.mxu1 %v27973_v12  ;;  %21850 = vmatprep.subr.mxu1 %v27973_v12 }
 0x107   :  { %21851 = vmatpush3.msra.mxu1 %v24632_v9  ;;  %21858 = vmatprep.mubr.msk.f32.mxu1 %vm24384_vm1, %v27973_v12 }
 0x108   :  { %21852 = vmatprep.subr.mxu1 %v27973_v12 }
 0x109   :  { %21853 = vmatpush3.msra.mxu1 %v24639_v13 }
 0x10a   :  { %21854 = vmatprep.subr.mxu1 %v27973_v12 }
 0x10b   :  { %21855 = vmatpush3.msra.mxu1 %v24650_v16 }
 0x10c   :  { %21856 = vmatprep.subr.mxu1 %v27973_v12 }
 0x10d   :  { %21857 = vmatpush3.msra.mxu1 %v24655_v17 }
 0x10e   :  { %21861 = vmatprep.subr.mxu1 %v27973_v12 }
 0x1ae   :  { %v21789_v27 = vpop.f32.mrf.mxu1 }
 0x1af   :  { %v24722_v28 = vadd.f32 %v21789_v27, %v24719_v26 }
 0x1b0   :  { %v24724_v29 = vpop.f32.mrf.mxu1 }
 0x1b2   :  { %v21792_v30 = vpop.f32.mrf.mxu1 }
 0x1b3   :  { %v24727_v31 = vadd.f32 %v21792_v30, %v24719_v26 }
 0x1b4   :  { %v24729_v32 = vpop.f32.mrf.mxu1 }
 0x1b5   :  { %v24731_v34 = vpop.f32.mrf.mxu0 }
 0x1b6   :  { %v21795_v33 = vpop.f32.mrf.mxu1 }
 0x1b7   :  { %v24734_v35 = vadd.f32 %v21795_v33, %v24719_v26  ;;  %v433_v39 = vpop.f32.mrf.mxu0 }
 0x1b8   :  { %v24736_v36 = vpop.f32.mrf.mxu1  ;;  %v434_v41 = vadd.f32 %v24741_v37, %v433_v39 }
 0x1ba   :  { %v21798_v38 = vpop.f32.mrf.mxu1 }
 0x1bb   :  { %v593_v45 = vadd.f32 %v21798_v38, %v24719_v26 }
 0x1bc   :  { %v24743_v40 = vpop.f32.mrf.mxu1 }
 0x1be   :  { %v829_v42 = vpop.f32.mrf.mxu1 }
 0x1bf   :  { %v833_v43 = vadd.f32 %v829_v42, %v434_v41  ;;  %v439_v41 = vadd.f32 %v24731_v34, %v24741_v37 }
 0x1c0   :  { %v21838_v44 = vpop.f32.mrf.mxu1 }
 0x1c1   :  { %23426 = vtanh.f32 %v833_v43  ;;  %v20712_v53 = vmul.f32 -1.442695, %v833_v43 }
 0x1c6   :  { %v941_v46 = vpop.f32.mrf.mxu1 }
 0x1c7   :  { %v945_v47 = vadd.f32 %v941_v46, %v593_v45  ;;  %v588_v45 = vadd.f32 %v24719_v26, %v24743_v40  ;;  %v20715_v40 = vld [vmem:[%s28072_s1 + $0x8] sm:$0xff] }
 0x1c8   :  { %v21849_v48 = vpop.f32.mrf.mxu1  ;;  %vm1085_vm6 = vcmp.gt.f32.partialorder %v20715_v40, 0.0 }
 0x1c9   :  { %23428 = vtanh.f32 %v945_v47  ;;  %v20714_v54 = vmul.f32 -1.442695, %v945_v47 }
 0x1ca   :  { %23430 = vpow2.f32 %v20712_v53 }
 0x1cb   :  { %23432 = vpow2.f32 %v20714_v54 }
 0x1ce   :  { %v23427_v49 = vpop.eup %23426 }
 0x1cf   :  { %843 = vrot.lane.b32.xlu0 %v23427_v49, %s24386_s18 }
 0x1d6   :  { %v23429_v51 = vpop.eup %23428 }
 0x1d7   :  { %955 = vrot.lane.b32.xlu0 %v23429_v51, %s24386_s18  ;;  %v23431_v55 = vpop.eup %23430 }
 0x1d8   :  { %v837_v56 = vadd.f32 1.0, %v23431_v55  ;;  %v23433_v57 = vpop.eup %23432 }
 0x1d9   :  { %v949_v58 = vadd.f32 1.0, %v23433_v57 }
 0x1da   :  { %23434 = vrcp.f32 %v837_v56 }
 0x1db   :  { %861 = vperm.xlu0 %23424, %v859_v52   ;;  %23436 = vrcp.f32 %v949_v58 }
 0x1e7   :  { %v23435_v59 = vpop.eup %23434 }
 0x1e8   :  { %v23437_v62 = vpop.eup %23436  ;;  %v841_v1 = vmul.f32 0.0, %v23435_v59 }
 0x1e9   :  { %v953_v4 = vmul.f32 0.0, %v23437_v62 }
 0x241   :  { %v844_v60 = vpop.permute.xlu0 %843 }
 0x242   :  { %v846_v61 = vmul.f32 %v23435_v59, %v844_v60  ;;  %v20718_v60 = vld [vmem:[%s28072_s1 + $0x30] sm:$0xff] }
 0x243   :  { %vm1201_vm7 = vcmp.gt.f32.partialorder %v20718_v60, 0.0 }
 0x244   :  { %848 = vrot.lane.b32.xlu1 %v846_v61, %s24387_s8 }
 0x249   :  { %v956_v63 = vpop.permute.xlu0 %955 }
 0x24a   :  { %v958_v0 = vmul.f32 %v23437_v62, %v956_v63 }
 0x24c   :  { %960 = vrot.lane.b32.xlu1 %v958_v0, %s24387_s8  ;;  %v24834_v0 = vsel %vm1201_vm7, 1, %v24385_v25 }
 0x256   :  { %v24767_v14 = vpop.permute.xlu0 %861 }
 0x257   :  { %vm863_vm4 = vcmp.eq.s32.totalorder %v24767_v14, 1  ;;  %v614_v14 = vld [vmem:[#allocation25 + $0x18] sm:$0xff] }
 0x258   :  { %21800 = vmatpush3.msra.mxu0 %v614_v14 }
 0x259   :  { %21801 = vmatprep.subr.mxu0 %v27973_v12 }
 0x2b6   :  { %v849_v2 = vpop.permute.xlu1 %848 }
 0x2b7   :  { %v24755_v3 = vadd.f32 %v849_v2, %v841_v1 }
 0x2b9   :  { %23438 = vtanh.f32 %v24755_v3  ;;  %v24840_v1 = vsel %vm863_vm4, %v24755_v3, 0.0 }
 0x2be   :  { %v961_v5 = vpop.permute.xlu1 %960 }
 0x2bf   :  { %v24758_v6 = vadd.f32 %v961_v5, %v953_v4 }
 0x2c1   :  { %23440 = vtanh.f32 %v24758_v6 }
 0x2c6   :  { %v23439_v8 = vpop.eup %23438 }
 0x2c7   :  { %854 = vrot.lane.b32.xlu1 %v23439_v8, %s24386_s18 }
 0x2cb   :  { %973 = vperm.xlu1 %23425, %v971_v10  }
 0x2ce   :  { %v23441_v11 = vpop.eup %23440 }
 0x2cf   :  { %966 = vrot.lane.b32.xlu0 %v23441_v11, %s24386_s18 }
 0x339   :  { %v855_v15 = vpop.permute.xlu1 %854 }
 0x33a   :  { %v857_v18 = vmul.f32 %v23435_v59, %v855_v15  ;;  %v24823_v59 = vsel %vm1085_vm6, 1, %v24385_v25  ;;  %v613_v15 = vld [vmem:[#allocation25 + $0x10] sm:$0xff] }
 0x33b   :  { %21802 = vmatpush3.msra.mxu0 %v613_v15 }
 0x33c   :  { %v24772_v19 = vsel %vm863_vm4, %v857_v18, 0.0  ;;  %v612_v18 = vld [vmem:[#allocation25 + $0x8] sm:$0xff]  ;;  %21803 = vmatprep.subr.mxu0 %v27973_v12 }
 0x33d   :  { %866 = vrot.lane.b32.xlu1 %v24772_v19, %s24387_s8  ;;  %21804 = vmatpush3.msra.mxu0 %v612_v18 }
 0x33e   :  { %21805 = vmatprep.subr.mxu0 %v27973_v12 }
 0x341   :  { %v967_v20 = vpop.permute.xlu0 %966 }
 0x342   :  { %v969_v27 = vmul.f32 %v23437_v62, %v967_v20  ;;  %v604_v20 = vld [vmem:[%s28073_s9] sm:$0xff] }
 0x346   :  { %v24776_v30 = vpop.permute.xlu1 %973 }
 0x347   :  { %vm975_vm5 = vcmp.eq.s32.totalorder %v24776_v30, 1  ;;  %v605_v30 = vld [vmem:[%s28073_s9 + $0x8] sm:$0xff] }
 0x348   :  { %v24781_v33 = vsel %vm975_vm5, %v969_v27, 0.0  ;;  %v24850_v7 = vsel %vm975_vm5, %v24758_v6, 0.0  ;;  %v611_v6 = vld [vmem:[#allocation25] sm:$0xff] }
 0x349   :  { %978 = vrot.lane.b32.xlu0 %v24781_v33, %s24387_s8  ;;  %21806 = vmatpush3.msra.mxu0 %v611_v6 }
 0x34a   :  { %21808 = vmatmul.mubr.msk.f32.vlgmr.msra.gmra.mxu0 %vm342_vm0, %v604_v20  ;;  %21872 = vmatprep.subr.mxu0 %v27973_v12 }
 0x34b   :  { %21810 = vmatprep.mubr.msk.f32.mxu0 %vm24384_vm1, %v27973_v12  ;;  %21873 = vmatpush3.msra.mxu0 %v24632_v9 }
 0x34c   :  { %21874 = vmatprep.subr.mxu0 %v27973_v12 }
 0x34d   :  { %21875 = vmatpush3.msra.mxu0 %v24639_v13 }
 0x34e   :  { %21811 = vmatmul.mubr.msk.f32.gmra.mxu0 %vm342_vm0, %v605_v30  ;;  %21876 = vmatprep.subr.mxu0 %v27973_v12 }
 0x34f   :  { %21813 = vmatprep.mubr.msk.f32.mxu0 %vm24384_vm1, %v27973_v12  ;;  %21877 = vmatpush3.msra.mxu0 %v24650_v16 }
 0x350   :  { %21878 = vmatprep.subr.mxu0 %v27973_v12 }
 0x351   :  { %21879 = vmatpush3.msra.mxu0 %v24655_v17 }
 0x352   :  { %21894 = vmatprep.subr.mxu0 %v27973_v12 }
 0x3af   :  { %v867_v38 = vpop.permute.xlu1 %866 }
 0x3b0   :  { %869 = vst.msk [vmem:[#allocation2] sm:$0xff] %vm342_vm0, %v867_v38  ;;  %21859 = vmatmul.mubr.msk.f32.vlgmr.msra.gmra.mxu1 %vm342_vm0, %v867_v38  ;;  %v606_v38 = vld [vmem:[%s28073_s9 + $0x10] sm:$0xff] }
 0x3b1   :  { %21862 = vmatpush3.msra.mxu1 %v24682_v21  ;;  %21869 = vmatprep.mubr.msk.f32.mxu1 %vm24384_vm1, %v27973_v12 }
 0x3b2   :  { %21863 = vmatprep.subr.mxu1 %v27973_v12  ;;  %21814 = vmatmul.mubr.msk.f32.gmra.mxu0 %vm342_vm0, %v606_v38 }
 0x3b3   :  { %21864 = vmatpush3.msra.mxu1 %v24686_v22  ;;  %21816 = vmatprep.mubr.msk.f32.mxu0 %vm24384_vm1, %v27973_v12 }
 0x3b4   :  { %21865 = vmatprep.subr.mxu1 %v27973_v12 }
 0x3b5   :  { %21866 = vmatpush3.msra.mxu1 %v24693_v23 }
 0x3b6   :  { %21867 = vmatprep.subr.mxu1 %v27973_v12 }
 0x3b7   :  { %21868 = vmatpush3.msra.mxu1 %v24698_v24 }
 0x3b8   :  { %21883 = vmatprep.subr.mxu1 %v27973_v12 }
 0x3bb   :  { %v979_v39 = vpop.permute.xlu0 %978 }
 0x3bc   :  { %982 = vst.msk [vmem:[#allocation3 + $0x38] sm:$0xff] %vm342_vm0, %v979_v39  ;;  %21870 = vmatmul.mubr.msk.f32.vlgmr.msra.gmra.mxu1 %vm342_vm0, %v979_v39  ;;  %v607_v39 = vld [vmem:[%s28073_s9 + $0x18] sm:$0xff] }
 0x3bd   :  { %21884 = vmatpush3.msra.mxu1 %v24682_v21  ;;  %21891 = vmatprep.mubr.msk.f32.mxu1 %vm24384_vm1, %v27973_v12 }
 0x3be   :  { %21885 = vmatprep.subr.mxu1 %v27973_v12  ;;  %21817 = vmatmul.mubr.msk.f32.gmra.mxu0 %vm342_vm0, %v607_v39 }
 0x3bf   :  { %21886 = vmatpush3.msra.mxu1 %v24686_v22  ;;  %21819 = vmatprep.mubr.msk.f32.mxu0 %vm24384_vm1, %v27973_v12 }
 0x3c0   :  { %21887 = vmatprep.subr.mxu1 %v27973_v12 }
 0x3c1   :  { %21888 = vmatpush3.msra.mxu1 %v24693_v23 }
 0x3c2   :  { %21889 = vmatprep.subr.mxu1 %v27973_v12 }
 0x3c3   :  { %21890 = vmatpush3.msra.mxu1 %v24698_v24 }
 0x3c4   :  { %21905 = vmatprep.subr.mxu1 %v27973_v12 }
 0x470   :  { %v1056_v42 = vpop.f32.mrf.mxu1 }
 0x471   :  { %v1060_v43 = vadd.f32 %v1056_v42, %v439_v41  ;;  %v608_v41 = vld [vmem:[%s28073_s9 + $0x20] sm:$0xff]  ;;  %v609_v42 = vld [vmem:[%s28073_s9 + $0x28] sm:$0xff] }
 0x472   :  { %v21860_v44 = vpop.f32.mrf.mxu1  ;;  %21820 = vmatmul.mubr.msk.f32.gmra.mxu0 %vm342_vm0, %v608_v41 }
 0x473   :  { %23442 = vtanh.f32 %v1060_v43  ;;  %v20717_v51 = vmul.f32 -1.442695, %v1060_v43  ;;  %21822 = vmatprep.mubr.msk.f32.mxu0 %vm24384_vm1, %v27973_v12  ;;  %v610_v43 = vld [vmem:[%s28073_s9 + $0x30] sm:$0xff] }
 0x476   :  { %21823 = vmatmul.mubr.msk.f32.gmra.mxu0 %vm342_vm0, %v609_v42 }
 0x477   :  { %21825 = vmatprep.mubr.msk.f32.mxu0 %vm24384_vm1, %v27973_v12 }
 0x47a   :  { %21826 = vmatmul.mubr.msk.f32.gmra.mxu0 %vm342_vm0, %v610_v43 }
 0x47b   :  { %21880 = vmatprep.mubr.msk.f32.mxu0 %vm24384_vm1, %v27973_v12 }
 0x47c   :  { %v1172_v46 = vpop.f32.mrf.mxu1 }
 0x47d   :  { %v1176_v47 = vadd.f32 %v1172_v46, %v588_v45 }
 0x47e   :  { %v21871_v48 = vpop.f32.mrf.mxu1 }
 0x47f   :  { %23444 = vtanh.f32 %v1176_v47  ;;  %v20720_v34 = vmul.f32 -1.442695, %v1176_v47 }
 0x480   :  { %v23443_v49 = vpop.eup %23442  ;;  %23446 = vpow2.f32 %v20717_v51 }
 0x481   :  { %1070 = vrot.lane.b32.xlu1 %v23443_v49, %s24386_s18  ;;  %23448 = vpow2.f32 %v20720_v34 }
 0x48c   :  { %v23445_v50 = vpop.eup %23444 }
 0x48d   :  { %1186 = vrot.lane.b32.xlu0 %v23445_v50, %s24386_s18  ;;  %v23447_v52 = vpop.eup %23446 }
 0x48e   :  { %v1064_v53 = vadd.f32 1.0, %v23447_v52  ;;  %v23449_v54 = vpop.eup %23448 }
 0x48f   :  { %v1180_v55 = vadd.f32 1.0, %v23449_v54 }
 0x490   :  { %23450 = vrcp.f32 %v1064_v53 }
 0x491   :  { %23452 = vrcp.f32 %v1180_v55 }
 0x49d   :  { %v24818_v56 = vpop.eup %23450 }
 0x49e   :  { %v24829_v61 = vpop.eup %23452  ;;  %v1068_v2 = vmul.f32 %v24818_v56, %v24840_v1 }
 0x49f   :  { %v1184_v8 = vmul.f32 %v24829_v61, %v24850_v7 }
 0x4f3   :  { %v1071_v57 = vpop.permute.xlu1 %1070 }
 0x4f4   :  { %v1073_v58 = vmul.f32 %v24818_v56, %v1071_v57 }
 0x4f6   :  { %1075 = vrot.lane.b32.xlu1 %v1073_v58, %s24387_s8 }
 0x4fa   :  { %1088 = vperm.xlu1 %23425, %v24823_v59  }
 0x4ff   :  { %v1187_v62 = vpop.permute.xlu0 %1186 }
 0x500   :  { %v1189_v63 = vmul.f32 %v24829_v61, %v1187_v62 }
 0x502   :  { %1191 = vrot.lane.b32.xlu0 %v1189_v63, %s24387_s8 }
 0x506   :  { %1204 = vperm.xlu0 %23424, %v24834_v0  }
 0x568   :  { %v1076_v4 = vpop.permute.xlu1 %1075 }
 0x569   :  { %v24844_v5 = vadd.f32 %v1076_v4, %v1068_v2 }
 0x56b   :  { %23454 = vtanh.f32 %v24844_v5 }
 0x574   :  { %v1192_v10 = vpop.permute.xlu0 %1191 }
 0x575   :  { %v24854_v11 = vadd.f32 %v1192_v10, %v1184_v8  ;;  %v24913_v44 = vpop.permute.xlu1 %1088 }
 0x576   :  { %vm1090_vm8 = vcmp.eq.s32.totalorder %v24913_v44, 1 }
 0x577   :  { %23456 = vtanh.f32 %v24854_v11 }
 0x578   :  { %v23455_v3 = vpop.eup %23454 }
 0x579   :  { %1081 = vrot.lane.b32.xlu1 %v23455_v3, %s24386_s18 }
 0x581   :  { %v24927_v48 = vpop.permute.xlu0 %1204 }
 0x582   :  { %vm1206_vm9 = vcmp.eq.s32.totalorder %v24927_v48, 1 }
 0x584   :  { %v23457_v27 = vpop.eup %23456 }
 0x585   :  { %1197 = vrot.lane.b32.xlu0 %v23457_v27, %s24386_s18 }
 0x5eb   :  { %v1082_v45 = vpop.permute.xlu1 %1081 }
 0x5ec   :  { %v24916_v46 = vmul.f32 %v24818_v56, %v1082_v45 }
 0x5ee   :  { %v24923_v47 = vsel %vm1090_vm8, %v24916_v46, %v24772_v19  ;;  %v24941_v19 = vpop.f32.mrf.mxu0 }
 0x5ef   :  { %1221 = vrot.lane.b32.xlu1 %v24923_v47, %s24387_s8 }
 0x5f0   :  { %v443_v34 = vpop.f32.mrf.mxu0 }
 0x5f1   :  { %v444_v41 = vadd.f32 %v24741_v37, %v443_v34 }
 0x5f2   :  { %v24943_v52 = vpop.f32.mrf.mxu0 }
 0x5f4   :  { %v24945_v53 = vpop.f32.mrf.mxu0 }
 0x5f6   :  { %v24947_v54 = vpop.f32.mrf.mxu0 }
 0x5f7   :  { %v1198_v49 = vpop.permute.xlu0 %1197 }
 0x5f8   :  { %v24930_v50 = vmul.f32 %v24829_v61, %v1198_v49  ;;  %v24949_v55 = vpop.f32.mrf.mxu0 }
 0x5fa   :  { %v24937_v51 = vsel %vm1206_vm9, %v24930_v50, %v24781_v33  ;;  %v24951_v40 = vpop.f32.mrf.mxu0  ;;  %v20704_v33 = vld [vmem:[%s27961_s20] ss:$0 sm:$0xff] }
 0x5fb   :  { %1340 = vrot.lane.b32.xlu0 %v24937_v51, %s24387_s8 }
 0x5fc   :  { %v21809_v56 = vpop.f32.mrf.mxu0 }
 0x5fe   :  { %v714_v57 = vpop.f32.mrf.mxu0 }
 0x5ff   :  { %v24956_v58 = vadd.f32 %v20704_v33, %v714_v57 }
 0x600   :  { %v21812_v60 = vpop.f32.mrf.mxu0 }
 0x602   :  { %v719_v61 = vpop.f32.mrf.mxu0 }
 0x603   :  { %v24958_v62 = vadd.f32 %v20704_v33, %v719_v61 }
 0x604   :  { %v21815_v63 = vpop.f32.mrf.mxu0 }
 0x605   :  { %28074 = vst [vmem:[#allocation48_spill] sm:$0xff] %v24958_v62 }
 0x606   :  { %v724_v2 = vpop.f32.mrf.mxu0 }
 0x607   :  { %v24960_v4 = vadd.f32 %v20704_v33, %v724_v2 }
 0x608   :  { %v21818_v8 = vpop.f32.mrf.mxu0 }
 0x609   :  { %28075 = vst [vmem:[#allocation49_spill] sm:$0xff] %v24960_v4 }
 0x60a   :  { %v729_v10 = vpop.f32.mrf.mxu0 }
 0x60b   :  { %v24962_v3 = vadd.f32 %v20704_v33, %v729_v10 }
 0x60c   :  { %v21821_v14 = vpop.f32.mrf.mxu0 }
 0x60d   :  { %28076 = vst [vmem:[#allocation50_spill] sm:$0xff] %v24962_v3 }
 0x60e   :  { %v734_v15 = vpop.f32.mrf.mxu0 }
 0x60f   :  { %v24964_v18 = vadd.f32 %v20704_v33, %v734_v15 }
 0x610   :  { %v21824_v6 = vpop.f32.mrf.mxu0 }
 0x611   :  { %28077 = vst [vmem:[#allocation51_spill] sm:$0xff] %v24964_v18 }
 0x612   :  { %v739_v20 = vpop.f32.mrf.mxu0 }
 0x613   :  { %v24966_v27 = vadd.f32 %v20704_v33, %v739_v20 }
 0x614   :  { %v21827_v30 = vpop.f32.mrf.mxu0 }
 0x615   :  { %28078 = vst [vmem:[#allocation52_spill] sm:$0xff] %v24966_v27  ;;  %v20724_v30 = vld [vmem:[%s28072_s1 + $0x28] sm:$0xff] }
 0x616   :  { %vm1439_vm11 = vcmp.gt.f32.partialorder %v20724_v30, 0.0 }
 0x661   :  { %v1222_v38 = vpop.permute.xlu1 %1221 }
 0x662   :  { %21881 = vmatmul.mubr.msk.f32.vlgmr.msra.gmra.mxu0 %vm342_vm0, %v1222_v38 }
 0x663   :  { %21895 = vmatpush3.msra.mxu0 %v24632_v9  ;;  %21902 = vmatprep.mubr.msk.f32.mxu0 %vm24384_vm1, %v27973_v12 }
 0x664   :  { %21896 = vmatprep.subr.mxu0 %v27973_v12 }
 0x665   :  { %21897 = vmatpush3.msra.mxu0 %v24639_v13 }
 0x666   :  { %21898 = vmatprep.subr.mxu0 %v27973_v12 }
 0x667   :  { %21899 = vmatpush3.msra.mxu0 %v24650_v16 }
 0x668   :  { %21900 = vmatprep.subr.mxu0 %v27973_v12 }
 0x669   :  { %21901 = vmatpush3.msra.mxu0 %v24655_v17 }
 0x66a   :  { %21916 = vmatprep.subr.mxu0 %v27973_v12 }
 0x66d   :  { %v1341_v39 = vpop.permute.xlu0 %1340 }
 0x66e   :  { %21892 = vmatmul.mubr.msk.f32.vlgmr.msra.gmra.mxu1 %vm342_vm0, %v1341_v39 }
 0x66f   :  { %21906 = vmatpush3.msra.mxu1 %v24682_v21  ;;  %21913 = vmatprep.mubr.msk.f32.mxu1 %vm24384_vm1, %v27973_v12 }
 0x670   :  { %21907 = vmatprep.subr.mxu1 %v27973_v12 }
 0x671   :  { %21908 = vmatpush3.msra.mxu1 %v24686_v22 }
 0x672   :  { %21909 = vmatprep.subr.mxu1 %v27973_v12 }
 0x673   :  { %21910 = vmatpush3.msra.mxu1 %v24693_v23 }
 0x674   :  { %21911 = vmatprep.subr.mxu1 %v27973_v12 }
 0x675   :  { %21912 = vmatpush3.msra.mxu1 %v24698_v24 }
 0x676   :  { %21927 = vmatprep.subr.mxu1 %v27973_v12 }
 0x722   :  { %v1291_v42 = vpop.f32.mrf.mxu0 }
 0x723   :  { %v1295_v43 = vadd.f32 %v1291_v42, %v444_v41  ;;  %v25007_v42 = vsel %vm1439_vm11, 1, %v24385_v25 }
 0x724   :  { %v21882_v45 = vpop.f32.mrf.mxu0 }
 0x725   :  { %23458 = vtanh.f32 %v1295_v43  ;;  %v20723_v61 = vmul.f32 -1.442695, %v1295_v43  ;;  %v25014_v43 = vsel %vm1090_vm8, %v24844_v5, %v24840_v1 }
 0x72e   :  { %v1410_v49 = vpop.f32.mrf.mxu1 }
 0x72f   :  { %v1414_v56 = vadd.f32 %v1410_v49, %v24734_v35  ;;  %v20721_v35 = vld [vmem:[%s28072_s1 + $0x10] sm:$0xff] }
 0x730   :  { %v21893_v33 = vpop.f32.mrf.mxu1  ;;  %vm1320_vm10 = vcmp.gt.f32.partialorder %v20721_v35, 0.0 }
 0x731   :  { %23460 = vtanh.f32 %v1414_v56  ;;  %v20726_v63 = vmul.f32 -1.442695, %v1414_v56  ;;  %v24999_v20 = vsel %vm1320_vm10, 1, %v24385_v25  ;;  %v25024_v33 = vsel %vm1206_vm9, %v24854_v11, %v24850_v7 }
 0x732   :  { %v23459_v57 = vpop.eup %23458  ;;  %23462 = vpow2.f32 %v20723_v61 }
 0x733   :  { %1305 = vrot.lane.b32.xlu1 %v23459_v57, %s24386_s18  ;;  %23464 = vpow2.f32 %v20726_v63 }
 0x73e   :  { %v23461_v60 = vpop.eup %23460 }
 0x73f   :  { %1424 = vrot.lane.b32.xlu0 %v23461_v60, %s24386_s18  ;;  %v23463_v34 = vpop.eup %23462 }
 0x740   :  { %v1299_v2 = vadd.f32 1.0, %v23463_v34  ;;  %v23465_v8 = vpop.eup %23464 }
 0x741   :  { %v1418_v10 = vadd.f32 1.0, %v23465_v8 }
 0x742   :  { %23466 = vrcp.f32 %v1299_v2 }
 0x743   :  { %23468 = vrcp.f32 %v1418_v10 }
 0x74f   :  { %v23467_v14 = vpop.eup %23466 }
 0x750   :  { %v23469_v38 = vpop.eup %23468  ;;  %v1303_v45 = vmul.f32 %v23467_v14, %v25014_v43 }
 0x751   :  { %v1422_v57 = vmul.f32 %v23469_v38, %v25024_v33 }
 0x7a5   :  { %v1306_v15 = vpop.permute.xlu1 %1305 }
 0x7a6   :  { %v1308_v6 = vmul.f32 %v23467_v14, %v1306_v15 }
 0x7a8   :  { %1310 = vrot.lane.b32.xlu1 %v1308_v6, %s24387_s8 }
 0x7ac   :  { %1323 = vperm.xlu1 %23425, %v24999_v20  }
 0x7b1   :  { %v1425_v39 = vpop.permute.xlu0 %1424 }
 0x7b2   :  { %v1427_v41 = vmul.f32 %v23469_v38, %v1425_v39 }
 0x7b4   :  { %1429 = vrot.lane.b32.xlu0 %v1427_v41, %s24387_s8 }
 0x7b8   :  { %1442 = vperm.xlu0 %23424, %v25007_v42  }
 0x81a   :  { %v1311_v49 = vpop.permute.xlu1 %1310 }
 0x81b   :  { %v25017_v56 = vadd.f32 %v1311_v49, %v1303_v45 }
 0x81d   :  { %23470 = vtanh.f32 %v25017_v56 }
 0x826   :  { %v1430_v60 = vpop.permute.xlu0 %1429 }
 0x827   :  { %v25027_v61 = vadd.f32 %v1430_v60, %v1422_v57  ;;  %v25032_v63 = vpop.permute.xlu1 %1323 }
 0x828   :  { %vm1325_vm12 = vcmp.eq.s32.totalorder %v25032_v63, 1 }
 0x829   :  { %23472 = vtanh.f32 %v25027_v61 }
 0x82a   :  { %v23471_v1 = vpop.eup %23470 }
 0x82b   :  { %1316 = vrot.lane.b32.xlu1 %v23471_v1, %s24386_s18 }
 0x833   :  { %v25045_v11 = vpop.permute.xlu0 %1442 }
 0x834   :  { %vm1444_vm13 = vcmp.eq.s32.totalorder %v25045_v11, 1 }
 0x836   :  { %v23473_v5 = vpop.eup %23472 }
 0x837   :  { %1435 = vrot.lane.b32.xlu0 %v23473_v5, %s24386_s18 }
 0x89d   :  { %v1317_v34 = vpop.permute.xlu1 %1316 }
 0x89e   :  { %v25034_v2 = vmul.f32 %v23467_v14, %v1317_v34  ;;  %v449_v14 = vadd.f32 %v24941_v19, %v24741_v37 }
 0x8a0   :  { %v25041_v7 = vsel %vm1325_vm12, %v25034_v2, %v24923_v47 }
 0x8a1   :  { %1459 = vrot.lane.b32.xlu1 %v25041_v7, %s24387_s8 }
 0x8a9   :  { %v1436_v8 = vpop.permute.xlu0 %1435 }
 0x8aa   :  { %v25047_v10 = vmul.f32 %v23469_v38, %v1436_v8  ;;  %v578_v38 = vadd.f32 %v24719_v26, %v24736_v36  ;;  %v20727_v26 = vld [vmem:[%s28072_s1 + $0x18] sm:$0xff] }
 0x8ab   :  { %vm1558_vm14 = vcmp.gt.f32.partialorder %v20727_v26, 0.0 }
 0x8ac   :  { %v25054_v35 = vsel %vm1444_vm13, %v25047_v10, %v24937_v51 }
 0x8ad   :  { %1578 = vrot.lane.b32.xlu0 %v25054_v35, %s24387_s8 }
 0x913   :  { %v1460_v47 = vpop.permute.xlu1 %1459 }
 0x914   :  { %21903 = vmatmul.mubr.msk.f32.vlgmr.msra.gmra.mxu0 %vm342_vm0, %v1460_v47 }
 0x915   :  { %21917 = vmatpush3.msra.mxu0 %v24632_v9  ;;  %21924 = vmatprep.mubr.msk.f32.mxu0 %vm24384_vm1, %v27973_v12 }
 0x916   :  { %21918 = vmatprep.subr.mxu0 %v27973_v12 }
 0x917   :  { %21919 = vmatpush3.msra.mxu0 %v24639_v13 }
 0x918   :  { %21920 = vmatprep.subr.mxu0 %v27973_v12 }
 0x919   :  { %21921 = vmatpush3.msra.mxu0 %v24650_v16 }
 0x91a   :  { %21922 = vmatprep.subr.mxu0 %v27973_v12 }
 0x91b   :  { %21923 = vmatpush3.msra.mxu0 %v24655_v17 }
 0x91c   :  { %21938 = vmatprep.subr.mxu0 %v27973_v12 }
 0x91f   :  { %v1579_v51 = vpop.permute.xlu0 %1578 }
 0x920   :  { %21914 = vmatmul.mubr.msk.f32.vlgmr.msra.gmra.mxu1 %vm342_vm0, %v1579_v51 }
 0x921   :  { %21928 = vmatpush3.msra.mxu1 %v24682_v21  ;;  %21935 = vmatprep.mubr.msk.f32.mxu1 %vm24384_vm1, %v27973_v12 }
 0x922   :  { %21929 = vmatprep.subr.mxu1 %v27973_v12 }
 0x923   :  { %21930 = vmatpush3.msra.mxu1 %v24686_v22 }
 0x924   :  { %21931 = vmatprep.subr.mxu1 %v27973_v12 }
 0x925   :  { %21932 = vmatpush3.msra.mxu1 %v24693_v23 }
 0x926   :  { %21933 = vmatprep.subr.mxu1 %v27973_v12 }
 0x927   :  { %21934 = vmatpush3.msra.mxu1 %v24698_v24 }
 0x928   :  { %21949 = vmatprep.subr.mxu1 %v27973_v12 }
 0x9d4   :  { %v1529_v15 = vpop.f32.mrf.mxu0 }
 0x9d5   :  { %v1533_v6 = vadd.f32 %v1529_v15, %v449_v14  ;;  %v25091_v14 = vsel %vm1558_vm14, 1, %v24385_v25  ;;  %v20730_v15 = vld [vmem:[%s28072_s1 + $0x20] sm:$0xff] }
 0x9d6   :  { %v21904_v30 = vpop.f32.mrf.mxu0  ;;  %vm1677_vm15 = vcmp.gt.f32.partialorder %v20730_v15, 0.0 }
 0x9d7   :  { %23474 = vtanh.f32 %v1533_v6  ;;  %v20729_v60 = vmul.f32 -1.442695, %v1533_v6 }
 0x9e0   :  { %v1648_v39 = vpop.f32.mrf.mxu1 }
 0x9e1   :  { %v1652_v41 = vadd.f32 %v1648_v39, %v578_v38  ;;  %v25099_v39 = vsel %vm1677_vm15, 1, %v24385_v25 }
 0x9e2   :  { %v21915_v45 = vpop.f32.mrf.mxu1 }
 0x9e3   :  { %23476 = vtanh.f32 %v1652_v41  ;;  %v20732_v19 = vmul.f32 -1.442695, %v1652_v41  ;;  %v25106_v41 = vsel %vm1325_vm12, %v25017_v56, %v25014_v43 }
 0x9e4   :  { %v23475_v49 = vpop.eup %23474  ;;  %23478 = vpow2.f32 %v20729_v60  ;;  %v25116_v60 = vsel %vm1444_vm13, %v25027_v61, %v25024_v33 }
 0x9e5   :  { %1543 = vrot.lane.b32.xlu1 %v23475_v49, %s24386_s18  ;;  %23480 = vpow2.f32 %v20732_v19 }
 0x9f0   :  { %v23477_v57 = vpop.eup %23476 }
 0x9f1   :  { %1662 = vrot.lane.b32.xlu0 %v23477_v57, %s24386_s18  ;;  %v23479_v1 = vpop.eup %23478 }
 0x9f2   :  { %v1537_v5 = vadd.f32 1.0, %v23479_v1  ;;  %v23481_v34 = vpop.eup %23480 }
 0x9f3   :  { %v1656_v8 = vadd.f32 1.0, %v23481_v34 }
 0x9f4   :  { %23482 = vrcp.f32 %v1537_v5 }
 0x9f5   :  { %23484 = vrcp.f32 %v1656_v8 }
 0xa01   :  { %v23483_v36 = vpop.eup %23482 }
 0xa02   :  { %v23485_v6 = vpop.eup %23484  ;;  %v1541_v45 = vmul.f32 %v23483_v36, %v25106_v41 }
 0xa03   :  { %v1660_v19 = vmul.f32 %v23485_v6, %v25116_v60 }
 0xa57   :  { %v1544_v47 = vpop.permute.xlu1 %1543 }
 0xa58   :  { %v1546_v51 = vmul.f32 %v23483_v36, %v1544_v47 }
 0xa5a   :  { %1548 = vrot.lane.b32.xlu1 %v1546_v51, %s24387_s8 }
 0xa5e   :  { %1561 = vperm.xlu1 %23425, %v25091_v14  }
 0xa63   :  { %v1663_v30 = vpop.permute.xlu0 %1662 }
 0xa64   :  { %v1665_v38 = vmul.f32 %v23485_v6, %v1663_v30 }
 0xa66   :  { %1667 = vrot.lane.b32.xlu0 %v1665_v38, %s24387_s8 }
 0xa6a   :  { %1680 = vperm.xlu0 %23424, %v25099_v39  }
 0xacc   :  { %v1549_v49 = vpop.permute.xlu1 %1548 }
 0xacd   :  { %v25109_v57 = vadd.f32 %v1549_v49, %v1541_v45 }
 0xacf   :  { %23486 = vtanh.f32 %v25109_v57 }
 0xad8   :  { %v1668_v1 = vpop.permute.xlu0 %1667 }
 0xad9   :  { %v25119_v5 = vadd.f32 %v1668_v1, %v1660_v19  ;;  %v25124_v34 = vpop.permute.xlu1 %1561 }
 0xada   :  { %vm1563_vm2 = vcmp.eq.s32.totalorder %v25124_v34, 1 }
 0xadb   :  { %23488 = vtanh.f32 %v25119_v5 }
 0xadc   :  { %v23487_v43 = vpop.eup %23486 }
 0xadd   :  { %1554 = vrot.lane.b32.xlu1 %v23487_v43, %s24386_s18 }
 0xae5   :  { %v25137_v61 = vpop.permute.xlu0 %1680 }
 0xae6   :  { %vm1682_vm3 = vcmp.eq.s32.totalorder %v25137_v61, 1 }
 0xae8   :  { %v23489_v56 = vpop.eup %23488 }
 0xae9   :  { %1673 = vrot.lane.b32.xlu0 %v23489_v56, %s24386_s18 }
 0xb4f   :  { %v1555_v8 = vpop.permute.xlu1 %1554 }
 0xb50   :  { %v25126_v26 = vmul.f32 %v23483_v36, %v1555_v8 }
 0xb52   :  { %v25133_v33 = vsel %vm1563_vm2, %v25126_v26, %v25041_v7 }
 0xb53   :  { %1696 = vrot.lane.b32.xlu1 %v25133_v33, %s24387_s8 }
 0xb5b   :  { %v1674_v47 = vpop.permute.xlu0 %1673 }
 0xb5c   :  { %v25139_v51 = vmul.f32 %v23485_v6, %v1674_v47  ;;  %v25185_v47 = vsel %vm1563_vm2, %v25109_v57, %v25106_v41 }
 0xb5e   :  { %v25146_v36 = vsel %vm1682_vm3, %v25139_v51, %v25054_v35 }
 0xb5f   :  { %1814 = vrot.lane.b32.xlu0 %v25146_v36, %s24387_s8 }
 0xbc5   :  { %v1697_v7 = vpop.permute.xlu1 %1696 }
 0xbc6   :  { %21925 = vmatmul.mubr.msk.f32.vlgmr.msra.gmra.mxu0 %vm342_vm0, %v1697_v7 }
 0xbc7   :  { %21939 = vmatpush3.msra.mxu0 %v24632_v9  ;;  %21946 = vmatprep.mubr.msk.f32.mxu0 %vm24384_vm1, %v27973_v12  ;;  %v454_v9 = vadd.f32 %v24741_v37, %v24945_v53 }
 0xbc8   :  { %21940 = vmatprep.subr.mxu0 %v27973_v12 }
 0xbc9   :  { %21941 = vmatpush3.msra.mxu0 %v24639_v13 }
 0xbca   :  { %21942 = vmatprep.subr.mxu0 %v27973_v12 }
 0xbcb   :  { %21943 = vmatpush3.msra.mxu0 %v24650_v16 }
 0xbcc   :  { %21944 = vmatprep.subr.mxu0 %v27973_v12 }
 0xbcd   :  { %21945 = vmatpush3.msra.mxu0 %v24655_v17 }
 0xbce   :  { %21960 = vmatprep.subr.mxu0 %v27973_v12 }
 0xbd1   :  { %v1815_v35 = vpop.permute.xlu0 %1814 }
 0xbd2   :  { %21936 = vmatmul.mubr.msk.f32.vlgmr.msra.gmra.mxu1 %vm342_vm0, %v1815_v35 }
 0xbd3   :  { %21950 = vmatpush3.msra.mxu1 %v24682_v21  ;;  %21957 = vmatprep.mubr.msk.f32.mxu1 %vm24384_vm1, %v27973_v12 }
 0xbd4   :  { %21951 = vmatprep.subr.mxu1 %v27973_v12 }
 0xbd5   :  { %21952 = vmatpush3.msra.mxu1 %v24686_v22 }
 0xbd6   :  { %21953 = vmatprep.subr.mxu1 %v27973_v12 }
 0xbd7   :  { %21954 = vmatpush3.msra.mxu1 %v24693_v23 }
 0xbd8   :  { %21955 = vmatprep.subr.mxu1 %v27973_v12 }
 0xbd9   :  { %21956 = vmatpush3.msra.mxu1 %v24698_v24 }
 0xbda   :  { %21971 = vmatprep.subr.mxu1 %v27973_v12 }
 0xc86   :  { %v1766_v13 = vpop.f32.mrf.mxu0 }
 0xc87   :  { %v1770_v16 = vadd.f32 %v1766_v13, %v454_v9 }
 0xc88   :  { %v21926_v17 = vpop.f32.mrf.mxu0 }
 0xc89   :  { %23490 = vtanh.f32 %v1770_v16  ;;  %v20735_v24 = vmul.f32 -1.442695, %v1770_v16 }
 0xc92   :  { %v1884_v21 = vpop.f32.mrf.mxu1 }
 0xc93   :  { %v1888_v22 = vadd.f32 %v1884_v21, %v24727_v31 }
 0xc94   :  { %v21937_v15 = vpop.f32.mrf.mxu1 }
 0xc95   :  { %23492 = vtanh.f32 %v1888_v22  ;;  %v20738_v30 = vmul.f32 -1.442695, %v1888_v22 }
 0xc96   :  { %v23491_v6 = vpop.eup %23490  ;;  %23494 = vpow2.f32 %v20735_v24  ;;  %v25230_v24 = vld [vmem:[#allocation12 + $0x18] sm:$0xff] }
 0xc97   :  { %1780 = vrot.lane.b32.xlu1 %v23491_v6, %s24386_s18  ;;  %23496 = vpow2.f32 %v20738_v30  ;;  %v25236_v30 = vld [vmem:[#allocation12 + $0x10] sm:$0xff] }
 0xca2   :  { %v23493_v23 = vpop.eup %23492 }
 0xca3   :  { %1898 = vrot.lane.b32.xlu0 %v23493_v23, %s24386_s18  ;;  %v23495_v53 = vpop.eup %23494 }
 0xca4   :  { %v1774_v38 = vadd.f32 1.0, %v23495_v53  ;;  %v23497_v45 = vpop.eup %23496  ;;  %v25244_v53 = vld [vmem:[#allocation12] sm:$0xff] }
 0xca5   :  { %v1892_v49 = vadd.f32 1.0, %v23497_v45  ;;  %v25249_v45 = vld [vmem:[#allocation15 + $0x18] sm:$0xff] }
 0xca6   :  { %23498 = vrcp.f32 %v1774_v38 }
 0xca7   :  { %23500 = vrcp.f32 %v1892_v49  ;;  %v25255_v49 = vld [vmem:[#allocation15 + $0x10] sm:$0xff] }
 0xcb3   :  { %v23499_v19 = vpop.eup %23498 }
 0xcb4   :  { %v23501_v43 = vpop.eup %23500  ;;  %v1778_v7 = vmul.f32 %v23499_v19, %v25185_v47 }
 0xd09   :  { %v1781_v31 = vpop.permute.xlu1 %1780 }
 0xd0a   :  { %v1783_v1 = vmul.f32 %v23499_v19, %v1781_v31  ;;  %v25263_v31 = vld [vmem:[#allocation15] sm:$0xff] }
 0xd0c   :  { %1785 = vrot.lane.b32.xlu1 %v1783_v1, %s24387_s8  ;;  %v459_v1 = vadd.f32 %v24943_v52, %v24741_v37 }
 0xd10   :  { %1798 = vperm.xlu1 %23425, %v25099_v39   ;;  %v25195_v39 = vsel %vm1682_vm3, %v25119_v5, %v25116_v60 }
 0xd15   :  { %v1899_v56 = vpop.permute.xlu0 %1898 }
 0xd16   :  { %v1901_v8 = vmul.f32 %v23501_v43, %v1899_v56 }
 0xd18   :  { %1903 = vrot.lane.b32.xlu0 %v1901_v8, %s24387_s8 }
 0xd1c   :  { %1916 = vperm.xlu0 %23424, %v25091_v14   ;;  %v1896_v14 = vmul.f32 %v23501_v43, %v25195_v39 }
 0xd7e   :  { %v1786_v35 = vpop.permute.xlu1 %1785 }
 0xd7f   :  { %v25188_v9 = vadd.f32 %v1786_v35, %v1778_v7  ;;  %v25269_v7 = vld [vmem:[#allocation16] ss:$0 sm:$0xff] }
 0xd80   :  { %v568_v35 = vadd.f32 %v25269_v7, %v24729_v32 }
 0xd81   :  { %23502 = vtanh.f32 %v25188_v9 }
 0xd8a   :  { %v1904_v13 = vpop.permute.xlu0 %1903 }
 0xd8b   :  { %v25198_v16 = vadd.f32 %v1904_v13, %v1896_v14  ;;  %v25203_v17 = vpop.permute.xlu1 %1798 }
 0xd8c   :  { %vm1800_vm4 = vcmp.eq.s32.totalorder %v25203_v17, 1 }
 0xd8d   :  { %23504 = vtanh.f32 %v25198_v16 }
 0xd8e   :  { %v23503_v41 = vpop.eup %23502 }
 0xd8f   :  { %1791 = vrot.lane.b32.xlu1 %v23503_v41, %s24386_s18 }
 0xd97   :  { %v25216_v5 = vpop.permute.xlu0 %1916 }
 0xd98   :  { %vm1918_vm5 = vcmp.eq.s32.totalorder %v25216_v5, 1  ;;  %v1207_v5 = vsel %vm1206_vm9, %v24930_v50, 0.0  ;;  %v1326_v50 = vsel %vm1325_vm12, %v25034_v2, 0.0  ;;  %vm4426_vm9 = vcmask 57344  }
 0xd9a   :  { %v23505_v57 = vpop.eup %23504 }
 0xd9b   :  { %1909 = vrot.lane.b32.xlu0 %v23505_v57, %s24386_s18 }
 0xe01   :  { %v1792_v21 = vpop.permute.xlu1 %1791 }
 0xe02   :  { %v25205_v22 = vmul.f32 %v23499_v19, %v1792_v21  ;;  %v25259_v19 = vld [vmem:[#allocation15 + $0x8] sm:$0xff] }
 0xe04   :  { %v25212_v60 = vsel %vm1800_vm4, %v25205_v22, %v25133_v33 }
 0xe05   :  { %1932 = vrot.lane.b32.xlu1 %v25212_v60, %s24387_s8 }
 0xe0d   :  { %v1910_v15 = vpop.permute.xlu0 %1909 }
 0xe0e   :  { %v25218_v6 = vmul.f32 %v23501_v43, %v1910_v15 }
 0xe10   :  { %v25225_v23 = vsel %vm1918_vm5, %v25218_v6, %v25146_v36  ;;  %v25240_v36 = vld [vmem:[#allocation12 + $0x8] sm:$0xff] }
 0xe11   :  { %2050 = vrot.lane.b32.xlu0 %v25225_v23, %s24387_s8 }
 0xe77   :  { %v1933_v33 = vpop.permute.xlu1 %1932 }
 0xe78   :  { %21947 = vmatmul.mubr.msk.f32.vlgmr.msra.gmra.mxu0 %vm342_vm0, %v1933_v33 }
 0xe79   :  { %21961 = vmatpush3.msra.mxu0 %v25230_v24  ;;  %21968 = vmatprep.mubr.msk.f32.mxu0 %vm24384_vm1, %v27973_v12 }
 0xe7a   :  { %21962 = vmatprep.subr.mxu0 %v27973_v12 }
 0xe7b   :  { %21963 = vmatpush3.msra.mxu0 %v25236_v30 }
 0xe7c   :  { %21964 = vmatprep.subr.mxu0 %v27973_v12 }
 0xe7d   :  { %21965 = vmatpush3.msra.mxu0 %v25240_v36 }
 0xe7e   :  { %21966 = vmatprep.subr.mxu0 %v27973_v12 }
 0xe7f   :  { %21967 = vmatpush3.msra.mxu0 %v25244_v53 }
 0xe80   :  { %21982 = vmatprep.subr.mxu0 %v27973_v12 }
 0xe83   :  { %v2051_v38 = vpop.permute.xlu0 %2050 }
 0xe84   :  { %21958 = vmatmul.mubr.msk.f32.vlgmr.msra.gmra.mxu1 %vm342_vm0, %v2051_v38 }
 0xe85   :  { %21972 = vmatpush3.msra.mxu1 %v25249_v45  ;;  %21979 = vmatprep.mubr.msk.f32.mxu1 %vm24384_vm1, %v27973_v12 }
 0xe86   :  { %21973 = vmatprep.subr.mxu1 %v27973_v12 }
 0xe87   :  { %21974 = vmatpush3.msra.mxu1 %v25255_v49 }
 0xe88   :  { %21975 = vmatprep.subr.mxu1 %v27973_v12 }
 0xe89   :  { %21976 = vmatpush3.msra.mxu1 %v25259_v19 }
 0xe8a   :  { %21977 = vmatprep.subr.mxu1 %v27973_v12 }
 0xe8b   :  { %21978 = vmatpush3.msra.mxu1 %v25263_v31 }
 0xe8c   :  { %21993 = vmatprep.subr.mxu1 %v27973_v12 }
 0xf38   :  { %v2002_v43 = vpop.f32.mrf.mxu0 }
 0xf39   :  { %v2006_v56 = vadd.f32 %v2002_v43, %v459_v1 }
 0xf3a   :  { %v21948_v8 = vpop.f32.mrf.mxu0 }
 0xf3b   :  { %23506 = vtanh.f32 %v2006_v56  ;;  %v20741_v37 = vmul.f32 -1.442695, %v2006_v56  ;;  %v25283_v56 = vsel %vm1800_vm4, %v25188_v9, %v25185_v47 }
 0xf44   :  { %v2120_v14 = vpop.f32.mrf.mxu1 }
 0xf45   :  { %v2124_v13 = vadd.f32 %v2120_v14, %v568_v35 }
 0xf46   :  { %v21959_v41 = vpop.f32.mrf.mxu1 }
 0xf47   :  { %23508 = vtanh.f32 %v2124_v13  ;;  %v20744_v52 = vmul.f32 -1.442695, %v2124_v13 }
 0xf48   :  { %v23507_v57 = vpop.eup %23506  ;;  %23510 = vpow2.f32 %v20741_v37 }
 0xf49   :  { %2016 = vrot.lane.b32.xlu1 %v23507_v57, %s24386_s18  ;;  %23512 = vpow2.f32 %v20744_v52 }
 0xf54   :  { %v23509_v21 = vpop.eup %23508 }
 0xf55   :  { %2134 = vrot.lane.b32.xlu0 %v23509_v21, %s24386_s18  ;;  %v23511_v15 = vpop.eup %23510 }
 0xf56   :  { %v2010_v33 = vadd.f32 1.0, %v23511_v15  ;;  %v23513_v38 = vpop.eup %23512 }
 0xf57   :  { %v2128_v1 = vadd.f32 1.0, %v23513_v38 }
 0xf58   :  { %23514 = vrcp.f32 %v2010_v33 }
 0xf59   :  { %23516 = vrcp.f32 %v2128_v1 }
 0xf65   :  { %v23515_v32 = vpop.eup %23514 }
 0xf66   :  { %v23517_v35 = vpop.eup %23516  ;;  %v2014_v13 = vmul.f32 %v23515_v32, %v25283_v56 }
 0xfbb   :  { %v2017_v43 = vpop.permute.xlu1 %2016 }
 0xfbc   :  { %v2019_v8 = vmul.f32 %v23515_v32, %v2017_v43 }
 0xfbe   :  { %2021 = vrot.lane.b32.xlu1 %v2019_v8, %s24387_s8 }
 0xfc2   :  { %2034 = vperm.xlu1 %23425, %v25007_v42   ;;  %v25293_v42 = vsel %vm1918_vm5, %v25198_v16, %v25195_v39 }
 0xfc7   :  { %v2135_v14 = vpop.permute.xlu0 %2134 }
 0xfc8   :  { %v2137_v41 = vmul.f32 %v23517_v35, %v2135_v14 }
 0xfca   :  { %2139 = vrot.lane.b32.xlu0 %v2137_v41, %s24387_s8 }
 0xfce   :  { %2152 = vperm.xlu0 %23424, %v24999_v20   ;;  %v2132_v20 = vmul.f32 %v23517_v35, %v25293_v42 }
0x1030   :  { %v2022_v57 = vpop.permute.xlu1 %2021 }
0x1031   :  { %v25286_v21 = vadd.f32 %v2022_v57, %v2014_v13 }
0x1033   :  { %23518 = vtanh.f32 %v25286_v21 }
0x103c   :  { %v2140_v37 = vpop.permute.xlu0 %2139 }
0x103d   :  { %v25296_v52 = vadd.f32 %v2140_v37, %v2132_v20  ;;  %v25301_v15 = vpop.permute.xlu1 %2034 }
0x103e   :  { %vm2036_vm6 = vcmp.eq.s32.totalorder %v25301_v15, 1  ;;  %v2793_v15 = vld [vmem:[#allocation19 + $0x8] sm:$0xff] }
0x103f   :  { %23520 = vtanh.f32 %v25296_v52 }
0x1040   :  { %v23519_v47 = vpop.eup %23518 }
0x1041   :  { %2027 = vrot.lane.b32.xlu1 %v23519_v47, %s24386_s18 }
0x1049   :  { %v25314_v16 = vpop.permute.xlu0 %2152 }
0x104a   :  { %vm2154_vm7 = vcmp.eq.s32.totalorder %v25314_v16, 1  ;;  %v2792_v16 = vld [vmem:[#allocation19] sm:$0xff] }
0x104c   :  { %v23521_v9 = vpop.eup %23520 }
0x104d   :  { %2145 = vrot.lane.b32.xlu0 %v23521_v9, %s24386_s18 }
0x10b3   :  { %v2028_v33 = vpop.permute.xlu1 %2027 }
0x10b4   :  { %v25303_v38 = vmul.f32 %v23515_v32, %v2028_v33 }
0x10b6   :  { %v25310_v39 = vsel %vm2036_vm6, %v25303_v38, %v25212_v60  ;;  %v2037_v44 = vsel %vm2036_vm6, %v25303_v38, 0.0 }
0x10b7   :  { %2168 = vrot.lane.b32.xlu1 %v25310_v39, %s24387_s8 }
0x10bf   :  { %v2146_v1 = vpop.permute.xlu0 %2145 }
0x10c0   :  { %v25316_v43 = vmul.f32 %v23517_v35, %v2146_v1 }
0x10c2   :  { %v25323_v32 = vsel %vm2154_vm7, %v25316_v43, %v25225_v23 }
0x10c3   :  { %2286 = vrot.lane.b32.xlu0 %v25323_v32, %s24387_s8 }
0x1129   :  { %v2169_v60 = vpop.permute.xlu1 %2168 }
0x112a   :  { %21969 = vmatmul.mubr.msk.f32.vlgmr.msra.gmra.mxu0 %vm342_vm0, %v2169_v60  ;;  %v25367_v60 = vsel %vm2036_vm6, %v25286_v21, %v25283_v56 }
0x112b   :  { %21983 = vmatpush3.msra.mxu0 %v25230_v24  ;;  %21990 = vmatprep.mubr.msk.f32.mxu0 %vm24384_vm1, %v27973_v12  ;;  %v25352_v24 = vld [vmem:[%s28071_s3] ss:$0 sm:$0xff]  ;;  %s24392_s3 = smov [#allocation36]  }
0x112c   :  { %21984 = vmatprep.subr.mxu0 %v27973_v12  ;;  %s20668_s12 = sshll.u32 %s24392_s3, 4  ;;  %s20669_s12 = int_to_ptr.vmem [resolvable:$true] %s20668_s12 }
0x112d   :  { %21985 = vmatpush3.msra.mxu0 %v25236_v30  ;;  %v464_v30 = vadd.f32 %v25352_v24, %v24949_v55  ;;  %s24319_s27 = scalar_lea.vmem %s20669_s12, 16  ;;  %p24324_p7 = scmp.lt.s32.totalorder %s20669_s12, %s20669_s12 }
0x112e   :  { %21986 = vmatprep.subr.mxu0 %v27973_v12  ;;  %p24320_p6 = scmp.ne.s32.totalorder %s20669_s12, %s24319_s27 }
0x112f   :  { %21987 = vmatpush3.msra.mxu0 %v25240_v36 }
0x1130   :  { %21988 = vmatprep.subr.mxu0 %v27973_v12 }
0x1131   :  { %21989 = vmatpush3.msra.mxu0 %v25244_v53 }
0x1132   :  { %22004 = vmatprep.subr.mxu0 %v27973_v12 }
0x1135   :  { %v2287_v23 = vpop.permute.xlu0 %2286 }
0x1136   :  { %21980 = vmatmul.mubr.msk.f32.vlgmr.msra.gmra.mxu1 %vm342_vm0, %v2287_v23 }
0x1137   :  { %21994 = vmatpush3.msra.mxu1 %v25249_v45  ;;  %22001 = vmatprep.mubr.msk.f32.mxu1 %vm24384_vm1, %v27973_v12 }
0x1138   :  { %21995 = vmatprep.subr.mxu1 %v27973_v12 }
0x1139   :  { %21996 = vmatpush3.msra.mxu1 %v25255_v49 }
0x113a   :  { %21997 = vmatprep.subr.mxu1 %v27973_v12 }
0x113b   :  { %21998 = vmatpush3.msra.mxu1 %v25259_v19 }
0x113c   :  { %21999 = vmatprep.subr.mxu1 %v27973_v12 }
0x113d   :  { %22000 = vmatpush3.msra.mxu1 %v25263_v31 }
0x113e   :  { %22015 = vmatprep.subr.mxu1 %v27973_v12 }
0x11ea   :  { %v2238_v36 = vpop.f32.mrf.mxu0 }
0x11eb   :  { %v2242_v53 = vadd.f32 %v2238_v36, %v464_v30 }
0x11ec   :  { %v21970_v45 = vpop.f32.mrf.mxu0 }
0x11ed   :  { %23522 = vtanh.f32 %v2242_v53  ;;  %v20747_v14 = vmul.f32 -1.442695, %v2242_v53 }
0x11f6   :  { %v2356_v49 = vpop.f32.mrf.mxu1 }
0x11f7   :  { %v2360_v19 = vadd.f32 %v2356_v49, %v24722_v28 }
0x11f8   :  { %v21981_v8 = vpop.f32.mrf.mxu1 }
0x11f9   :  { %23524 = vtanh.f32 %v2360_v19  ;;  %v20750_v41 = vmul.f32 -1.442695, %v2360_v19 }
0x11fa   :  { %v23523_v31 = vpop.eup %23522  ;;  %23526 = vpow2.f32 %v20747_v14 }
0x11fb   :  { %2252 = vrot.lane.b32.xlu1 %v23523_v31, %s24386_s18  ;;  %23528 = vpow2.f32 %v20750_v41 }
0x1206   :  { %v23525_v35 = vpop.eup %23524 }
0x1207   :  { %2370 = vrot.lane.b32.xlu0 %v23525_v35, %s24386_s18  ;;  %v23527_v55 = vpop.eup %23526 }
0x1208   :  { %v2246_v13 = vadd.f32 1.0, %v23527_v55  ;;  %v23529_v57 = vpop.eup %23528  ;;  %v469_v55 = vadd.f32 %v25352_v24, %v24947_v54 }
0x1209   :  { %v2364_v20 = vadd.f32 1.0, %v23529_v57 }
0x120a   :  { %23530 = vrcp.f32 %v2246_v13 }
0x120b   :  { %23532 = vrcp.f32 %v2364_v20  ;;  %v558_v20 = vadd.f32 %v25269_v7, %v24724_v29  ;;  %v20751_v29 = vld [vmem:[%s28072_s1 + $0x38] sm:$0xff] }
0x120c   :  { %vm2503_vm14 = vcmp.gt.f32.partialorder %v20751_v29, 0.0  ;;  %v2638_v29 = vld [vmem:[#allocation18] sm:$0xff] }
0x1217   :  { %v23531_v37 = vpop.eup %23530 }
0x1218   :  { %v23533_v9 = vpop.eup %23532  ;;  %v2250_v23 = vmul.f32 %v23531_v37, %v25367_v60 }
0x126d   :  { %v2253_v28 = vpop.permute.xlu1 %2252 }
0x126e   :  { %v2255_v47 = vmul.f32 %v23531_v37, %v2253_v28 }
0x1270   :  { %2257 = vrot.lane.b32.xlu1 %v2255_v47, %s24387_s8 }
0x1274   :  { %2270 = vperm.xlu1 %23425, %v24834_v0   ;;  %v25377_v0 = vsel %vm2154_vm7, %v25296_v52, %v25293_v42 }
0x1279   :  { %v2371_v33 = vpop.permute.xlu0 %2370 }
0x127a   :  { %v2373_v1 = vmul.f32 %v23533_v9, %v2371_v33 }
0x127c   :  { %2375 = vrot.lane.b32.xlu0 %v2373_v1, %s24387_s8 }
0x1280   :  { %2388 = vperm.xlu0 %23424, %v24823_v59   ;;  %v2368_v59 = vmul.f32 %v23533_v9, %v25377_v0 }
0x12e2   :  { %v2258_v30 = vpop.permute.xlu1 %2257 }
0x12e3   :  { %v25370_v36 = vadd.f32 %v2258_v30, %v2250_v23 }
0x12e5   :  { %23534 = vtanh.f32 %v25370_v36 }
0x12ee   :  { %v2376_v53 = vpop.permute.xlu0 %2375 }
0x12ef   :  { %v25380_v45 = vadd.f32 %v2376_v53, %v2368_v59  ;;  %v25385_v49 = vpop.permute.xlu1 %2270 }
0x12f0   :  { %vm2272_vm10 = vcmp.eq.s32.totalorder %v25385_v49, 1 }
0x12f1   :  { %23536 = vtanh.f32 %v25380_v45 }
0x12f2   :  { %v23535_v56 = vpop.eup %23534 }
0x12f3   :  { %2263 = vrot.lane.b32.xlu1 %v23535_v56, %s24386_s18 }
0x12fb   :  { %v25398_v52 = vpop.permute.xlu0 %2388 }
0x12fc   :  { %vm2390_vm11 = vcmp.eq.s32.totalorder %v25398_v52, 1  ;;  %v1683_v52 = vsel %vm1682_vm3, %v25139_v51, 0.0  ;;  %v2795_v51 = vld [vmem:[#allocation19 + $0x18] sm:$0xff] }
0x12fe   :  { %v23537_v21 = vpop.eup %23536 }
0x12ff   :  { %2381 = vrot.lane.b32.xlu0 %v23537_v21, %s24386_s18  ;;  %v2504_v21 = vsel %vm2503_vm14, 1, %v24385_v25 }
0x1365   :  { %v2264_v19 = vpop.permute.xlu1 %2263 }
0x1366   :  { %v25387_v8 = vmul.f32 %v23531_v37, %v2264_v19  ;;  %v2518_v19 = vld [vmem:[%s28072_s1] sm:$0xff]  ;;  %s24323_s1 = scalar_lea.vmem %s20669_s12, 32 }
0x1367   :  { %vm2620_vm15 = vcmp.gt.f32.partialorder %v2518_v19, 0.0  ;;  %p24325_p8 = scmp.lt.s32.totalorder %s24323_s1, %s24319_s27 }
0x1368   :  { %v25394_v42 = vsel %vm2272_vm10, %v25387_v8, %v25310_v39  ;;  %v2273_v63 = vsel %vm2272_vm10, %v25387_v8, 0.0  ;;  %v2799_v8 = vld [vmem:[#allocation21 + $0x18] sm:$0xff] }
0x1369   :  { %2404 = vrot.lane.b32.xlu1 %v25394_v42, %s24387_s8  ;;  %p24326_p9 = por %p24325_p8, %p24324_p7 }
0x136b   :  { %p24327_p10 = pnand %p24326_p9, %p24320_p6 }
0x1371   :  { %v2382_v31 = vpop.permute.xlu0 %2381 }
0x1372   :  { %v25400_v35 = vmul.f32 %v23533_v9, %v2382_v31 }
0x1374   :  { %v25407_v14 = vsel %vm2390_vm11, %v25400_v35, %v25323_v32 }
0x1375   :  { %2521 = vrot.lane.b32.xlu0 %v25407_v14, %s24387_s8 }
0x13db   :  { %v2405_v39 = vpop.permute.xlu1 %2404 }
0x13dc   :  { %21991 = vmatmul.mubr.msk.f32.vlgmr.msra.gmra.mxu0 %vm342_vm0, %v2405_v39 }
0x13dd   :  { %22012 = vmatprep.mubr.msk.f32.mxu0 %vm24384_vm1, %v27973_v12 }
0x13e7   :  { %v2522_v41 = vpop.permute.xlu0 %2521 }
0x13e8   :  { %22002 = vmatmul.mubr.msk.f32.vlgmr.msra.gmra.mxu1 %vm342_vm0, %v2522_v41 }
0x13e9   :  { %22023 = vmatprep.mubr.msk.f32.mxu1 %vm24384_vm1, %v27973_v12 }
0x149c   :  { %v2474_v32 = vpop.f32.mrf.mxu0 }
0x149d   :  { %v2478_v13 = vadd.f32 %v2474_v32, %v469_v55  ;;  %v2621_v55 = vsel %vm2620_vm15, 1, %v24385_v25  ;;  %v25437_v32 = vsel %vm2272_vm10, %v25370_v36, %v25367_v60  ;;  %vm5669_vm10 = vcmask 1041409  }
0x149e   :  { %v21992_v57 = vpop.f32.mrf.mxu0 }
0x149f   :  { %23538 = vtanh.f32 %v2478_v13  ;;  %v20753_v1 = vmul.f32 -1.442695, %v2478_v13 }
0x14a8   :  { %v2591_v37 = vpop.f32.mrf.mxu1 }
0x14a9   :  { %v2595_v28 = vadd.f32 %v2591_v37, %v558_v20  ;;  %v25447_v37 = vsel %vm2390_vm11, %v25380_v45, %v25377_v0  ;;  %v2636_v0 = vld [vmem:[%s27952_s11 + $0x10] sm:$0xff]  ;;  %v2635_v45 = vld [vmem:[%s27952_s11 + $0x8] sm:$0xff] }
0x14aa   :  { %v22003_v47 = vpop.f32.mrf.mxu1 }
0x14ab   :  { %23540 = vtanh.f32 %v2595_v28  ;;  %v20755_v54 = vmul.f32 -1.442695, %v2595_v28 }
0x14ac   :  { %v23539_v9 = vpop.eup %23538  ;;  %23542 = vpow2.f32 %v20753_v1 }
0x14ad   :  { %2488 = vrot.lane.b32.xlu1 %v23539_v9, %s24386_s18  ;;  %23544 = vpow2.f32 %v20755_v54  ;;  %v2637_v9 = vld [vmem:[%s27952_s11 + $0x18] sm:$0xff]  ;;  %v2641_v54 = vld [vmem:[#allocation18 + $0x18] sm:$0xff] }
0x14ae   :  { %22016 = vmatpush3.msra.mxu1 %v2637_v9  ;;  %22005 = vmatpush3.msra.mxu0 %v2641_v54  ;;  %v3239_v54 = vld [vmem:[#allocation22 + $0x8] sm:$0xff] }
0x14af   :  { %22017 = vmatprep.subr.mxu1 %v27973_v12  ;;  %22006 = vmatprep.subr.mxu0 %v27973_v12 }
0x14b0   :  { %22018 = vmatpush3.msra.mxu1 %v2636_v0  ;;  %v27972_v0 = vlaneseq }
0x14b1   :  { %22019 = vmatprep.subr.mxu1 %v27973_v12 }
0x14b2   :  { %22020 = vmatpush3.msra.mxu1 %v2635_v45 }
0x14b3   :  { %22021 = vmatprep.subr.mxu1 %v27973_v12 }
0x14b8   :  { %v23541_v33 = vpop.eup %23540 }
0x14b9   :  { %2605 = vrot.lane.b32.xlu0 %v23541_v33, %s24386_s18  ;;  %v23543_v24 = vpop.eup %23542  ;;  %v2634_v33 = vld [vmem:[%s27952_s11] sm:$0xff]  ;;  %s24388_s11 = smov 96  }
0x14ba   :  { %v2482_v23 = vadd.f32 1.0, %v23543_v24  ;;  %v23545_v30 = vpop.eup %23544  ;;  %22022 = vmatpush3.msra.mxu1 %v2634_v33  ;;  %v2640_v24 = vld [vmem:[#allocation18 + $0x10] sm:$0xff] }
0x14bb   :  { %v2599_v59 = vadd.f32 1.0, %v23545_v30  ;;  %22037 = vmatprep.subr.mxu1 %v27973_v12  ;;  %22007 = vmatpush3.msra.mxu0 %v2640_v24  ;;  %v2639_v30 = vld [vmem:[#allocation18 + $0x8] sm:$0xff] }
0x14bc   :  { %23546 = vrcp.f32 %v2482_v23  ;;  %22008 = vmatprep.subr.mxu0 %v27973_v12 }
0x14bd   :  { %23548 = vrcp.f32 %v2599_v59  ;;  %22009 = vmatpush3.msra.mxu0 %v2639_v30  ;;  %v25568_v30 = vshrl.u32 %v27972_v0, 7 }
0x14be   :  { %22010 = vmatprep.subr.mxu0 %v27973_v12 }
0x14bf   :  { %22011 = vmatpush3.msra.mxu0 %v2638_v29  ;;  %v24390_v29 = vmov 1934713408  }
0x14c0   :  { %22026 = vmatprep.subr.mxu0 %v27973_v12 }
0x14c9   :  { %v23547_v7 = vpop.eup %23546 }
0x14ca   :  { %v23549_v31 = vpop.eup %23548  ;;  %v2486_v13 = vmul.f32 %v23547_v7, %v25437_v32 }
0x14cb   :  { %v2603_v25 = vmul.f32 %v23549_v31, %v25447_v37 }
0x151f   :  { %v2489_v53 = vpop.permute.xlu1 %2488 }
0x1520   :  { %v2491_v56 = vmul.f32 %v23547_v7, %v2489_v53 }
0x1522   :  { %2493 = vrot.lane.b32.xlu1 %v2491_v56, %s24387_s8  ;;  %v1445_v56 = vsel %vm1444_vm13, %v25047_v10, 0.0  ;;  %v1091_v10 = vsel %vm1090_vm8, %v24916_v46, 0.0  ;;  %v2155_v46 = vsel %vm2154_vm7, %v25316_v43, 0.0  ;;  %v3241_v43 = vld [vmem:[#allocation22 + $0x18] sm:$0xff]  ;;  %vm27978_vm7 = vcmask 64512  }
0x1526   :  { %2506 = vperm.xlu1 %23425, %v2504_v21  }
0x152b   :  { %v2606_v39 = vpop.permute.xlu0 %2605 }
0x152c   :  { %v2608_v41 = vmul.f32 %v23549_v31, %v2606_v39  ;;  %v2391_v39 = vsel %vm2390_vm11, %v25400_v35, 0.0  ;;  %vm5672_vm11 = vcmask 1042434  }
0x152e   :  { %2610 = vrot.lane.b32.xlu0 %v2608_v41, %s24387_s8  ;;  %v2797_v41 = vld [vmem:[#allocation21 + $0x8] sm:$0xff] }
0x1532   :  { %2623 = vperm.xlu0 %23424, %v2621_v55  }
0x1594   :  { %v2494_v57 = vpop.permute.xlu1 %2493 }
0x1595   :  { %v25440_v20 = vadd.f32 %v2494_v57, %v2486_v13  ;;  %v2796_v13 = vld [vmem:[#allocation21] sm:$0xff]  ;;  %v25555_v57 = vld [vmem:[#allocation24 + $0x18] sm:$0xff] }
0x1597   :  { %23550 = vtanh.f32 %v25440_v20 }
0x15a0   :  { %v2611_v28 = vpop.permute.xlu0 %2610 }
0x15a1   :  { %v25450_v47 = vadd.f32 %v2611_v28, %v2603_v25  ;;  %v2507_v1 = vpop.permute.xlu1 %2506 }
0x15a2   :  { %vm2508_vm14 = vcmp.eq.s32.totalorder %v2507_v1, 1  ;;  %v3240_v1 = vld [vmem:[#allocation22 + $0x10] sm:$0xff] }
0x15a3   :  { %23552 = vtanh.f32 %v25450_v47  ;;  %v2517_v34 = vsel %vm2508_vm14, %v25440_v20, %v25437_v32 }
0x15a4   :  { %v23551_v60 = vpop.eup %23550 }
0x15a5   :  { %2499 = vrot.lane.b32.xlu1 %v23551_v60, %s24386_s18 }
0x15ad   :  { %v2624_v21 = vpop.permute.xlu0 %2623 }
0x15ae   :  { %vm2625_vm15 = vcmp.eq.s32.totalorder %v2624_v21, 1 }
0x15af   :  { %v2633_v2 = vsel %vm2625_vm15, %v25450_v47, %v25447_v37 }
0x15b0   :  { %v23553_v36 = vpop.eup %23552 }
0x15b1   :  { %2616 = vrot.lane.b32.xlu0 %v23553_v36, %s24386_s18  ;;  %v24389_v36 = vmov 1983009808  }
0x15b2   :  { %v2961_v9 = vunpack.c.l.s4 %v24389_v36 }
0x1617   :  { %v2500_v23 = vpop.permute.xlu1 %2499 }
0x1618   :  { %v2502_v59 = vmul.f32 %v23547_v7, %v2500_v23  ;;  %v1919_v7 = vsel %vm1918_vm5, %v25218_v6, 0.0  ;;  %v1564_v6 = vsel %vm1563_vm2, %v25126_v26, 0.0  ;;  %v1801_v26 = vsel %vm1800_vm4, %v25205_v22, 0.0  ;;  %v2794_v22 = vld [vmem:[#allocation19 + $0x10] sm:$0xff] }
0x1619   :  { %v2962_v23 = vunpack.c.0.s8 %v2961_v9 }
0x161a   :  { %v2516_v53 = vsel %vm2508_vm14, %v2502_v59, %v25394_v42  ;;  %v2509_v48 = vsel %vm2508_vm14, %v2502_v59, 0.0  ;;  %vm5675_vm14 = vcmask 1043459  }
0x161b   :  { %2718 = vrot.lane.b32.xlu0 %v2516_v53, %s24387_s8  ;;  %v3025_v53 = vunpack.c.l.s4 %v24390_v29 }
0x161f   :  { %1447 = vrot.lane.b32.xlu0 %v1445_v56, %s24387_s8  ;;  %v3238_v56 = vld [vmem:[#allocation22] sm:$0xff] }
0x1623   :  { %1921 = vrot.lane.b32.xlu0 %v1919_v7, %s24387_s8  ;;  %v2617_v19 = vpop.permute.xlu0 %2616 }
0x1624   :  { %v2619_v42 = vmul.f32 %v23549_v31, %v2617_v19  ;;  %v2798_v31 = vld [vmem:[#allocation21 + $0x10] sm:$0xff] }
0x1626   :  { %v2632_v11 = vsel %vm2625_vm15, %v2619_v42, %v25407_v14  ;;  %v2626_v61 = vsel %vm2625_vm15, %v2619_v42, 0.0  ;;  %vm5678_vm15 = vcmask 1044484  }
0x1627   :  { %2393 = vrot.lane.b32.xlu0 %v2391_v39, %s24387_s8  ;;  %2643 = vrot.lane.b32.xlu1 %v2632_v11, %s24387_s8  ;;  %v3101_v39 = vld [vmem:[#allocation3 + $0x38] sm:$0xff] }
0x162b   :  { %1093 = vrot.lane.b32.xlu0 %v1091_v10, %s24387_s8  ;;  %1209 = vrot.lane.b32.xlu1 %v1207_v5, %s24387_s8  ;;  %v25574_v10 = vsub.s32 %v2962_v23, %v25568_v30 }
0x162f   :  { %1566 = vrot.lane.b32.xlu0 %v1564_v6, %s24387_s8  ;;  %1685 = vrot.lane.b32.xlu1 %v1683_v52, %s24387_s8 }
0x1633   :  { %2039 = vrot.lane.b32.xlu0 %v2037_v44, %s24387_s8  ;;  %2157 = vrot.lane.b32.xlu1 %v2155_v46, %s24387_s8  ;;  %v3026_v44 = vunpack.c.0.s8 %v3025_v53  ;;  %v2950_v46 = vld [vmem:[#allocation2] sm:$0xff] }
0x1637   :  { %2511 = vrot.lane.b32.xlu0 %v2509_v48, %s24387_s8  ;;  %1328 = vrot.lane.b32.xlu1 %v1326_v50, %s24387_s8 }
0x163b   :  { %2876 = vrot.lane.b32.xlu0 %v2517_v34, %s24388_s11  ;;  %1803 = vrot.lane.b32.xlu1 %v1801_v26, %s24387_s8 }
0x163f   :  { %2628 = vrot.lane.b32.xlu1 %v2626_v61, %s24387_s8 }
0x1643   :  { %2275 = vrot.lane.b32.xlu1 %v2273_v63, %s24387_s8 }
0x1647   :  { %2801 = vrot.lane.b32.xlu1 %v2633_v2, %s24388_s11 }
0x168d   :  { %v2719_v17 = vpop.permute.xlu0 %2718 }
0x168e   :  { %22024 = vmatmul.mubr.msk.f32.vlgmr.msra.gmra.mxu1 %vm342_vm0, %v2719_v17 }
0x168f   :  { %22038 = vmatpush3.msra.mxu1 %v2795_v51  ;;  %22045 = vmatprep.mubr.msk.f32.mxu1 %vm24384_vm1, %v27973_v12 }
0x1690   :  { %22039 = vmatprep.subr.mxu1 %v27973_v12 }
0x1691   :  { %v1448_v38 = vpop.permute.xlu0 %1447  ;;  %22040 = vmatpush3.msra.mxu1 %v2794_v22 }
0x1692   :  { %1451 = vst.msk [vmem:[#allocation3 + $0x28] sm:$0xff] %vm342_vm0, %v1448_v38  ;;  %22041 = vmatprep.subr.mxu1 %v27973_v12 }
0x1693   :  { %22042 = vmatpush3.msra.mxu1 %v2793_v15 }
0x1694   :  { %22043 = vmatprep.subr.mxu1 %v27973_v12 }
0x1695   :  { %v1922_v49 = vpop.permute.xlu0 %1921  ;;  %22044 = vmatpush3.msra.mxu1 %v2792_v16 }
0x1696   :  { %1925 = vst.msk [vmem:[#allocation3 + $0x18] sm:$0xff] %vm342_vm0, %v1922_v49  ;;  %22068 = vmatprep.subr.mxu1 %v3241_v43  ;;  %v3244_v49 = vld [vmem:[#allocation24 + $0x10] sm:$0xff] }
0x1699   :  { %v2644_v35 = vpop.permute.xlu1 %2643  ;;  %v2394_v14 = vpop.permute.xlu0 %2393  ;;  %v3099_v21 = vld [vmem:[#allocation3 + $0x28] sm:$0xff] }
0x169a   :  { %2397 = vst.msk [vmem:[#allocation3 + $0x8] sm:$0xff] %vm342_vm0, %v2394_v14  ;;  %22013 = vmatmul.mubr.msk.f32.vlgmr.msra.gmra.mxu0 %vm342_vm0, %v2644_v35  ;;  %v3150_v5 = vcombine.low %v3099_v21, %v3101_v39  ;;  %v3151_v48 = vcombine.high %v3099_v21, %v3101_v39 }
0x169b   :  { %22027 = vmatpush3.msra.mxu0 %v2799_v8  ;;  %22034 = vmatprep.mubr.msk.f32.mxu0 %vm24384_vm1, %v27973_v12  ;;  %v25585_v8 = vsub.s32 %v3026_v44, %v25568_v30 }
0x169c   :  { %22028 = vmatprep.subr.mxu0 %v27973_v12  ;;  %v3158_v22 = vrot.slane %v3150_v5, %v25574_v10  ;;  %v25588_v35 = vrot.slane %v3151_v48, %v25574_v10 }
0x169d   :  { %v1210_v55 = vpop.permute.xlu1 %1209  ;;  %v1094_v32 = vpop.permute.xlu0 %1093  ;;  %22029 = vmatpush3.msra.mxu0 %v2798_v31  ;;  %v3097_v6 = vld [vmem:[#allocation3 + $0x18] sm:$0xff] }
0x169e   :  { %1213 = vst.msk [vmem:[#allocation3 + $0x30] sm:$0xff] %vm342_vm0, %v1210_v55  ;;  %1097 = vst.msk [vmem:[#allocation2 + $0x8] sm:$0xff] %vm342_vm0, %v1094_v32  ;;  %22030 = vmatprep.subr.mxu0 %v27973_v12 }
0x169f   :  { %22031 = vmatpush3.msra.mxu0 %v2797_v41 }
0x16a0   :  { %22032 = vmatprep.subr.mxu0 %v27973_v12 }
0x16a1   :  { %v1686_v20 = vpop.permute.xlu1 %1685  ;;  %v1567_v37 = vpop.permute.xlu0 %1566  ;;  %22033 = vmatpush3.msra.mxu0 %v2796_v13  ;;  %v3095_v19 = vld [vmem:[#allocation3 + $0x8] sm:$0xff] }
0x16a2   :  { %1689 = vst.msk [vmem:[#allocation3 + $0x20] sm:$0xff] %vm342_vm0, %v1686_v20  ;;  %1570 = vst.msk [vmem:[#allocation2 + $0x18] sm:$0xff] %vm342_vm0, %v1567_v37  ;;  %22048 = vmatprep.subr.mxu0 %v25555_v57  ;;  %v3118_v50 = vcombine.low %v3095_v19, %v3097_v6  ;;  %v3119_v26 = vcombine.high %v3095_v19, %v3097_v6  ;;  %v3243_v37 = vld [vmem:[#allocation24 + $0x8] sm:$0xff] }
0x16a4   :  { %v3126_v14 = vrot.slane %v3118_v50, %v25574_v10  ;;  %v25593_v32 = vrot.slane %v3119_v26, %v25574_v10 }
0x16a5   :  { %v2158_v25 = vpop.permute.xlu1 %2157  ;;  %v2040_v28 = vpop.permute.xlu0 %2039  ;;  %v3100_v7 = vld [vmem:[#allocation3 + $0x30] sm:$0xff]  ;;  %v2951_v2 = vld [vmem:[#allocation2 + $0x8] sm:$0xff] }
0x16a6   :  { %2161 = vst.msk [vmem:[#allocation3 + $0x10] sm:$0xff] %vm342_vm0, %v2158_v25  ;;  %2043 = vst.msk [vmem:[#allocation2 + $0x28] sm:$0xff] %vm342_vm0, %v2040_v28 }
0x16a9   :  { %v1329_v47 = vpop.permute.xlu1 %1328  ;;  %v2512_v60 = vpop.permute.xlu0 %2511  ;;  %v3098_v24 = vld [vmem:[#allocation3 + $0x20] sm:$0xff]  ;;  %v25576_v34 = vld [vmem:[#allocation2 + $0x18] sm:$0xff] }
0x16aa   :  { %1332 = vst.msk [vmem:[#allocation2 + $0x10] sm:$0xff] %vm342_vm0, %v1329_v47  ;;  %2515 = vst.msk [vmem:[#allocation2 + $0x38] sm:$0xff] %vm342_vm0, %v2512_v60  ;;  %v3134_v42 = vcombine.low %v3098_v24, %v3100_v7  ;;  %v3135_v51 = vcombine.high %v3098_v24, %v3100_v7  ;;  %v2974_v15 = vcombine.low %v2951_v2, %v25576_v34 }
0x16ab   :  { %v2975_v47 = vcombine.high %v2951_v2, %v25576_v34 }
0x16ac   :  { %v3142_v61 = vrot.slane %v3134_v42, %v25574_v10  ;;  %v25600_v28 = vrot.slane %v3135_v51, %v25574_v10  ;;  %v2982_v9 = vrot.slane %v2974_v15, %v25574_v10 }
0x16ad   :  { %v1804_v45 = vpop.permute.xlu1 %1803  ;;  %v2877_v33 = vpop.permute.xlu0 %2876  ;;  %v3096_v38 = vld [vmem:[#allocation3 + $0x10] sm:$0xff]  ;;  %v2955_v31 = vld [vmem:[#allocation2 + $0x28] sm:$0xff] }
0x16ae   :  { %1807 = vst.msk [vmem:[#allocation2 + $0x20] sm:$0xff] %vm342_vm0, %v1804_v45  ;;  %22046 = vmatmul.mubr.msk.f32.vlgmr.msra.gmra.mxu1 %vm342_vm0, %v2877_v33  ;;  %v3198_v25 = vcombine.low %v3142_v61, %v3158_v22  ;;  %v3199_v24 = vcombine.high %v3142_v61, %v3158_v22  ;;  %v2989_v61 = vrot.slane %v2975_v47, %v25574_v10  ;;  %v25663_v47 = vld [vmem:[#allocation27 + $0x8] sm:$0xff] }
0x16af   :  { %22069 = vmatpush3.msra.mxu1 %v3241_v43 }
0x16b0   :  { %22070 = vmatprep.subr.mxu1 %v3240_v1  ;;  %v3206_v21 = vrot.slane %v3198_v25, %v25585_v8  ;;  %v3213_v44 = vrot.slane %v3199_v24, %v25585_v8  ;;  %v25686_v24 = vld [vmem:[#allocation27] sm:$0xff] }
0x16b1   :  { %v2629_v59 = vpop.permute.xlu1 %2628  ;;  %22071 = vmatpush3.msra.mxu1 %v3240_v1  ;;  %v25571_v11 = vld [vmem:[#allocation2 + $0x10] sm:$0xff]  ;;  %v2957_v17 = vld [vmem:[#allocation2 + $0x38] sm:$0xff] }
0x16b2   :  { %2631 = vst.msk [vmem:[#allocation3] sm:$0xff] %vm342_vm0, %v2629_v59  ;;  %22072 = vmatprep.subr.mxu1 %v3239_v54  ;;  %v2958_v63 = vcombine.low %v2950_v46, %v25571_v11  ;;  %v3006_v20 = vcombine.low %v2955_v31, %v2957_v17  ;;  %v2959_v45 = vcombine.high %v2950_v46, %v25571_v11 }
0x16b3   :  { %22073 = vmatpush3.msra.mxu1 %v3239_v54  ;;  %v3007_v33 = vcombine.high %v2955_v31, %v2957_v17  ;;  %v3214_v46 = vcombine.low %v25600_v28, %v25588_v35  ;;  %v3515_v17 = vld [vmem:[#allocation27 + $0x18] sm:$0xff]  ;;  %v3514_v31 = vld [vmem:[#allocation27 + $0x10] sm:$0xff] }
0x16b4   :  { %22074 = vmatprep.subr.mxu1 %v3238_v56  ;;  %v25596_v13 = vrot.slane %v2958_v63, %v25574_v10  ;;  %v2973_v6 = vrot.slane %v2959_v45, %v25574_v10 }
0x16b5   :  { %v2276_v52 = vpop.permute.xlu1 %2275  ;;  %22075 = vmatpush3.msra.mxu1 %v3238_v56  ;;  %v2954_v1 = vld [vmem:[#allocation2 + $0x20] sm:$0xff]  ;;  %v3014_v56 = vrot.slane %v3006_v20, %v25574_v10 }
0x16b6   :  { %2279 = vst.msk [vmem:[#allocation2 + $0x30] sm:$0xff] %vm342_vm0, %v2276_v52  ;;  %22099 = vmatprep.subr.mxu1 %v27973_v12  ;;  %v3022_v7 = vcombine.low %v25596_v13, %v2982_v9  ;;  %v3021_v52 = vrot.slane %v3007_v33, %v25574_v10  ;;  %v3023_v26 = vcombine.high %v25596_v13, %v2982_v9 }
0x16b7   :  { %v3039_v9 = vcombine.high %v2973_v6, %v2989_v61 }
0x16b8   :  { %v3030_v15 = vrot.slane %v3022_v7, %v25585_v8  ;;  %v3517_v7 = vld [vmem:[#allocation28 + $0x8] sm:$0xff] }
0x16b9   :  { %v3094_v16 = vld [vmem:[#allocation3] sm:$0xff]  ;;  %v2802_v43 = vpop.permute.xlu1 %2801 }
0x16ba   :  { %v3102_v41 = vcombine.low %v3094_v16, %v3096_v38  ;;  %v3103_v55 = vcombine.high %v3094_v16, %v3096_v38  ;;  %22035 = vmatmul.mubr.msk.f32.vlgmr.msra.gmra.mxu0 %vm342_vm0, %v2802_v43 }
0x16bb   :  { %22049 = vmatpush3.msra.mxu0 %v25555_v57  ;;  %v3242_v57 = vld [vmem:[#allocation24] sm:$0xff] }
0x16bc   :  { %v3110_v60 = vrot.slane %v3102_v41, %v25574_v10  ;;  %v3117_v36 = vrot.slane %v3103_v55, %v25574_v10  ;;  %22050 = vmatprep.subr.mxu0 %v3244_v49 }
0x16bd   :  { %v2956_v54 = vld [vmem:[#allocation2 + $0x30] sm:$0xff]  ;;  %22051 = vmatpush3.msra.mxu0 %v3244_v49  ;;  %v3215_v49 = vcombine.high %v25600_v28, %v25588_v35 }
0x16be   :  { %v2990_v23 = vcombine.low %v2954_v1, %v2956_v54  ;;  %v2991_v59 = vcombine.high %v2954_v1, %v2956_v54  ;;  %22052 = vmatprep.subr.mxu0 %v3243_v37  ;;  %v3166_v29 = vcombine.low %v3110_v60, %v3126_v14  ;;  %v3167_v53 = vcombine.high %v3110_v60, %v3126_v14 }
0x16bf   :  { %22053 = vmatpush3.msra.mxu0 %v3243_v37  ;;  %v3182_v19 = vcombine.low %v3117_v36, %v25593_v32  ;;  %v3183_v51 = vcombine.high %v3117_v36, %v25593_v32  ;;  %v3038_v14 = vcombine.low %v2973_v6, %v2989_v61  ;;  %v3037_v32 = vrot.slane %v3023_v26, %v25585_v8 }
0x16c0   :  { %v2998_v42 = vrot.slane %v2990_v23, %v25574_v10  ;;  %v3005_v39 = vrot.slane %v2991_v59, %v25574_v10  ;;  %22054 = vmatprep.subr.mxu0 %v3242_v57  ;;  %v3174_v11 = vrot.slane %v3166_v29, %v25585_v8  ;;  %v3181_v5 = vrot.slane %v3167_v53, %v25585_v8  ;;  %v3519_v59 = vld [vmem:[#allocation28 + $0x18] sm:$0xff] }
0x16c1   :  { %22055 = vmatpush3.msra.mxu0 %v3242_v57  ;;  %v3190_v63 = vrot.slane %v3182_v19, %v25585_v8  ;;  %v3222_v10 = vrot.slane %v3214_v46, %v25585_v8  ;;  %v3197_v37 = vrot.slane %v3183_v51, %v25585_v8  ;;  %v3229_v60 = vrot.slane %v3215_v49, %v25585_v8  ;;  %v25722_v19 = vld [vmem:[#allocation28] sm:$0xff] }
0x16c2   :  { %v25620_v48 = vcombine.low %v3174_v11, %v3206_v21  ;;  %v25622_v50 = vcombine.high %v3174_v11, %v3206_v21  ;;  %v3054_v34 = vcombine.low %v2998_v42, %v3014_v56  ;;  %22088 = vmatprep.subr.mxu0 %v27973_v12  ;;  %v3055_v2 = vcombine.high %v2998_v42, %v3014_v56  ;;  %v3518_v21 = vld [vmem:[#allocation28 + $0x10] sm:$0xff] }
0x16c3   :  { %v25631_v22 = vcombine.low %v3181_v5, %v3213_v44  ;;  %v3070_v16 = vcombine.low %v3005_v39, %v3021_v52  ;;  %v25648_v13 = vcombine.high %v3181_v5, %v3213_v44  ;;  %v25650_v20 = vcombine.low %v3190_v63, %v3222_v10 }
0x16c4   :  { %22056 = vmatprep.mubr.msk.f32.mxu0 %vm342_vm0, %v25620_v48  ;;  %v3062_v38 = vrot.slane %v3054_v34, %v25585_v8  ;;  %v3069_v43 = vrot.slane %v3055_v2, %v25585_v8  ;;  %v3071_v28 = vcombine.high %v3005_v39, %v3021_v52  ;;  %v3046_v36 = vrot.slane %v3038_v14, %v25585_v8 }
0x16c5   :  { %22057 = vmatmul.mubr.msk.f32.vlgmr.msra.gmra.mxu0 %vm342_vm0, %v25622_v50  ;;  %v3078_v25 = vrot.slane %v3070_v16, %v25585_v8  ;;  %v25671_v45 = vcombine.high %v3190_v63, %v3222_v10  ;;  %v25676_v1 = vcombine.low %v3197_v37, %v3229_v60  ;;  %v3053_v23 = vrot.slane %v3039_v9, %v25585_v8  ;;  %v23886_v9 = vld [vmem:[%s27961_s20] ss:$0 sm:$0xff] }
0x16c6   :  { %22059 = vmatprep.mubr.msk.f32.mxu0 %vm342_vm0, %v25631_v22  ;;  %v25643_v41 = vcombine.low %v3030_v15, %v3062_v38  ;;  %v25645_v55 = vcombine.high %v3030_v15, %v3062_v38  ;;  %22089 = vmatpush3.msra.mxu0 %v3515_v17  ;;  %v25656_v35 = vcombine.low %v3037_v32, %v3069_v43 }
0x16c7   :  { %22090 = vmatprep.subr.mxu0 %v27973_v12  ;;  %v25673_v33 = vcombine.high %v3037_v32, %v3069_v43  ;;  %v25678_v54 = vcombine.low %v3046_v36, %v3078_v25  ;;  %v3085_v57 = vrot.slane %v3071_v28, %v25585_v8  ;;  %v25693_v29 = vcombine.high %v3197_v37, %v3229_v60 }
0x16c8   :  { %28079 = vst [vmem:[#allocation53_spill] sm:$0xff] %v25643_v41  ;;  %28080 = vst [vmem:[#allocation54_spill] sm:$0xff] %v25645_v55  ;;  %22076 = vmatprep.mubr.msk.f32.mxu1 %vm342_vm0, %v25643_v41  ;;  %22091 = vmatpush3.msra.mxu0 %v3514_v31  ;;  %v25695_v53 = vcombine.high %v3046_v36, %v3078_v25 }
0x16c9   :  { %22060 = vmatmul.mubr.msk.f32.gmra.mxu0 %vm342_vm0, %v25648_v13  ;;  %22077 = vmatmul.mubr.msk.f32.vlgmr.msra.gmra.mxu1 %vm342_vm0, %v25645_v55  ;;  %v25698_v56 = vcombine.low %v3053_v23, %v3085_v57  ;;  %v25710_v8 = vcombine.high %v3053_v23, %v3085_v57  ;;  %v710_v57 = vadd.f32 %v23886_v9, %v24951_v40 }
0x16ca   :  { %22062 = vmatprep.mubr.msk.f32.mxu0 %vm342_vm0, %v25650_v20  ;;  %22079 = vmatprep.mubr.msk.f32.mxu1 %vm342_vm0, %v25656_v35 }
0x16cb   :  { %22092 = vmatprep.subr.mxu0 %v27973_v12  ;;  %22100 = vmatpush3.msra.mxu1 %v3519_v59 }
0x16cc   :  { %22093 = vmatpush3.msra.mxu0 %v25663_v47  ;;  %22101 = vmatprep.subr.mxu1 %v27973_v12 }
0x16cd   :  { %22063 = vmatmul.mubr.msk.f32.gmra.mxu0 %vm342_vm0, %v25671_v45  ;;  %22080 = vmatmul.mubr.msk.f32.gmra.mxu1 %vm342_vm0, %v25673_v33 }
0x16ce   :  { %22065 = vmatprep.mubr.msk.f32.mxu0 %vm342_vm0, %v25676_v1  ;;  %22082 = vmatprep.mubr.msk.f32.mxu1 %vm342_vm0, %v25678_v54 }
0x16cf   :  { %22094 = vmatprep.subr.mxu0 %v27973_v12  ;;  %22102 = vmatpush3.msra.mxu1 %v3518_v21 }
0x16d0   :  { %22095 = vmatpush3.msra.mxu0 %v25686_v24  ;;  %22103 = vmatprep.subr.mxu1 %v27973_v12 }
0x16d1   :  { %22066 = vmatmul.mubr.msk.f32.gmra.mxu0 %vm342_vm0, %v25693_v29  ;;  %22083 = vmatmul.mubr.msk.f32.gmra.mxu1 %vm342_vm0, %v25695_v53 }
0x16d2   :  { %22085 = vmatprep.mubr.msk.f32.mxu1 %vm342_vm0, %v25698_v56  ;;  %22096 = vmatprep.mubr.msk.f32.mxu0 %vm24384_vm1, %v27973_v12 }
0x16d3   :  { %22110 = vmatprep.subr.mxu0 %v27973_v12  ;;  %22104 = vmatpush3.msra.mxu1 %v3517_v7 }
0x16d4   :  { %22105 = vmatprep.subr.mxu1 %v27973_v12 }
0x16d5   :  { %22086 = vmatmul.mubr.msk.f32.gmra.mxu1 %vm342_vm0, %v25710_v8  ;;  %22097 = vmatmul.mubr.f32.vlgmr.msra.gmra.mxu0 %v27973_v12 }
0x16d6   :  { %22107 = vmatprep.mubr.msk.f32.mxu1 %vm24384_vm1, %v27973_v12  ;;  %22112 = vmatprep.mubr.msk.f32.mxu0 %vm24384_vm1, %v27973_v12 }
0x16d7   :  { %22106 = vmatpush3.msra.mxu1 %v25722_v19 }
0x16d8   :  { %22120 = vmatprep.subr.mxu1 %v27973_v12 }
0x174e   :  { %v2788_v42 = vpop.f32.mrf.mxu1 }
0x1750   :  { %v22025_v39 = vpop.f32.mrf.mxu1 }
0x175a   :  { %v2713_v11 = vpop.f32.mrf.mxu0 }
0x175b   :  { %v2789_v5 = vadd.f32 %v2788_v42, %v2713_v11 }
0x175c   :  { %v22014_v6 = vpop.f32.mrf.mxu0 }
0x175d   :  { %22108 = vmatmul.mubr.msk.f32.vlgmr.msra.gmra.mxu1 %vm342_vm0, %v2789_v5 }
0x175e   :  { %22122 = vmatprep.mubr.msk.f32.mxu1 %vm24384_vm1, %v27973_v12 }
0x176e   :  { %v2946_v52 = vpop.f32.mrf.mxu1 }
0x1770   :  { %v22047_v44 = vpop.f32.mrf.mxu1 }
0x177a   :  { %v2871_v46 = vpop.f32.mrf.mxu0 }
0x177b   :  { %v2947_v34 = vadd.f32 %v2946_v52, %v2871_v46 }
0x177c   :  { %v22036_v26 = vpop.f32.mrf.mxu0 }
0x177d   :  { %3692 = vrot.lane.b32.xlu0 %v2947_v34, %s24387_s8 }
0x1785   :  { %v22058_v61 = vpop.f32.mrf.mxu0 }
0x1787   :  { %v3336_v63 = vpop.f32.mrf.mxu0 }
0x1789   :  { %v22061_v2 = vpop.f32.mrf.mxu0  ;;  %v22078_v51 = vpop.f32.mrf.mxu1 }
0x178a   :  { %v25730_v17 = vadd.f32 %v22078_v51, %v22058_v61 }
0x178b   :  { %v3346_v15 = vpop.f32.mrf.mxu0  ;;  %v3465_v38 = vpop.f32.mrf.mxu1 }
0x178c   :  { %28081 = vst [vmem:[#allocation55_spill] sm:$0xff] %v25730_v17  ;;  %v25732_v16 = vadd.f32 %v3465_v38, %v3336_v63 }
0x178d   :  { %v22064_v10 = vpop.f32.mrf.mxu0  ;;  %v22081_v43 = vpop.f32.mrf.mxu1 }
0x178e   :  { %v25734_v49 = vadd.f32 %v22081_v43, %v22061_v2  ;;  %22111 = vmatpush3.xpose.msk.msra.mxu0 %vm342_vm0, %v25732_v16 }
0x178f   :  { %v25738_v14 = vpop.f32.mrf.mxu0  ;;  %v3475_v31 = vpop.f32.mrf.mxu1  ;;  %22115 = vmatprep.subr.mxu0 %v27973_v12 }
0x1790   :  { %v25741_v32 = vadd.f32 %v3475_v31, %v3346_v15 }
0x1791   :  { %v22067_v37 = vpop.f32.mrf.mxu0  ;;  %v22084_v25 = vpop.f32.mrf.mxu1 }
0x1792   :  { %v25743_v28 = vadd.f32 %v22084_v25, %v22064_v10  ;;  %22121 = vmatpush3.xpose.msk.msra.mxu1 %vm342_vm0, %v25741_v32  ;;  %v24391_v10 = vmov 1966171168  }
0x1793   :  { %v25747_v60 = vpop.f32.mrf.mxu0  ;;  %v25749_v36 = vpop.f32.mrf.mxu1  ;;  %22130 = vmatprep.subr.mxu1 %v27973_v12  ;;  %v3715_v43 = vunpack.c.l.s4 %v24391_v10 }
0x1795   :  { %v22087_v23 = vpop.f32.mrf.mxu1  ;;  %v3605_v59 = vpop.f32.mrf.mxu0  ;;  %v3716_v31 = vunpack.c.0.s8 %v3715_v43 }
0x1796   :  { %v25756_v21 = vadd.f32 %v22087_v23, %v22067_v37  ;;  %v3609_v7 = vadd.f32 %v3605_v59, %v710_v57  ;;  %v25772_v57 = vsub.s32 0, %v25568_v30 }
0x1797   :  { %v22098_v42 = vpop.f32.mrf.mxu0  ;;  %v25758_v39 = vpop.f32.mrf.mxu1  ;;  %v25767_v37 = vsub.s32 %v3716_v31, %v25568_v30 }
0x1798   :  { %28082 = vst [vmem:[#allocation56_spill] sm:$0xff] %v25756_v21 }
0x17ef   :  { %v3693_v63 = vpop.permute.xlu0 %3692 }
0x181d   :  { %v3679_v11 = vpop.f32.mrf.mxu1 }
0x181e   :  { %v3683_v5 = vadd.f32 %v3679_v11, %v3609_v7 }
0x181f   :  { %v22109_v6 = vpop.f32.mrf.mxu1 }
0x1820   :  { %23554 = vtanh.f32 %v3683_v5  ;;  %v20777_v44 = vmul.f32 -1.442695, %v3683_v5 }
0x1822   :  { %23556 = vpow2.f32 %v20777_v44 }
0x182d   :  { %v23555_v52 = vpop.eup %23554 }
0x182e   :  { %3697 = vrot.lane.b32.xlu1 %v23555_v52, %s24386_s18 }
0x182f   :  { %v23557_v46 = vpop.eup %23556 }
0x1830   :  { %v3687_v34 = vadd.f32 1.0, %v23557_v46 }
0x1832   :  { %23558 = vrcp.f32 %v3687_v34 }
0x183f   :  { %v23559_v40 = vpop.eup %23558 }
0x1840   :  { %v3695_v2 = vmul.f32 %v23559_v40, %v3693_v63 }
0x18a0   :  { %v3698_v26 = vpop.permute.xlu1 %3697 }
0x18a1   :  { %v3700_v61 = vmul.f32 %v23559_v40, %v3698_v26 }
0x18a3   :  { %3702 = vrot.lane.b32.xlu1 %v3700_v61, %s24387_s8 }
0x1915   :  { %v3703_v51 = vpop.permute.xlu1 %3702 }
0x1916   :  { %v25762_v15 = vadd.f32 %v3703_v51, %v3695_v2 }
0x1918   :  { %23560 = vtanh.f32 %v25762_v15 }
0x1925   :  { %v23561_v38 = vpop.eup %23560 }
0x1926   :  { %3708 = vrot.lane.b32.xlu0 %v23561_v38, %s24386_s18 }
0x1998   :  { %v3709_v25 = vpop.permute.xlu0 %3708 }
0x1999   :  { %v25769_v9 = vmul.f32 %v23559_v40, %v3709_v25 }
0x199b   :  { %v3713_v23 = vcombine.high %v25769_v9, %v25769_v9  ;;  %v3720_v59 = vrot.slane %v25769_v9, %v25767_v37 }
0x199d   :  { %v3727_v7 = vrot.slane %v3713_v23, %v25767_v37  ;;  %v3728_v42 = vcombine.high %v3720_v59, %v3720_v59  ;;  %v3736_v11 = vrot.slane %v3720_v59, %v25767_v37  ;;  %v25807_v23 = vadd.f32 %v25749_v36, %v25738_v14 }
0x199e   :  { %v25821_v14 = vadd.f32 %v25758_v39, %v25747_v60 }
0x199f   :  { %v3765_v5 = vrot.slane %v3736_v11, %v25772_v57  ;;  %v3750_v6 = vrot.slane %v3728_v42, %v25767_v37  ;;  %v3758_v52 = vcombine.high %v3736_v11, %v3736_v11  ;;  %v3729_v44 = vcombine.high %v3727_v7, %v3727_v7  ;;  %v25853_v11 = vld [vmem:[#allocation7] sm:$0x1] }
0x19a0   :  { %v3743_v40 = vrot.slane %v3727_v7, %v25767_v37  ;;  %28083 = vst [vmem:[#allocation57_spill] sm:$0xff] %v25821_v14  ;;  %28084 = vst [vmem:[#allocation58_spill] sm:$0xff] %v25853_v11  ;;  %vm4410_vm8 = vcmp.gt.f32.partialorder %v25853_v11, 0.0 }
0x19a1   :  { %3766 = vrot.lane.b32.xlu1 %v3765_v5, %s24387_s8  ;;  %v3846_v30 = vrot.slane %v3750_v6, %v25772_v57  ;;  %v3760_v46 = vcombine.high %v3750_v6, %v3750_v6  ;;  %v3927_v34 = vrot.slane %v3758_v52, %v25772_v57  ;;  %v3757_v61 = vrot.slane %v3729_v44, %v25767_v37  ;;  %v25856_v5 = vld [vmem:[#allocation7 + $0x1] sm:$0x1]  ;;  %v25860_v44 = vld [vmem:[#allocation7 + $0x2] sm:$0x1] }
0x19a2   :  { %v4089_v63 = vrot.slane %v3743_v40, %v25772_v57  ;;  %v3759_v2 = vcombine.high %v3743_v40, %v3743_v40  ;;  %28085 = vst [vmem:[#allocation59_spill] sm:$0xff] %v25856_v5  ;;  %28086 = vst [vmem:[#allocation60_spill] sm:$0xff] %v25860_v44  ;;  %vm4411_vm12 = vcmp.gt.f32.partialorder %v25856_v5, 0.0  ;;  %vm28014_vm13 = vcmp.gt.f32.partialorder %v25860_v44, 0.0 }
0x19a3   :  { %3847 = vrot.lane.b32.xlu0 %v3846_v30, %s24387_s8  ;;  %v4008_v26 = vrot.slane %v3760_v46, %v25772_v57  ;;  %v4170_v51 = vrot.slane %v3757_v61, %v25772_v57  ;;  %v3761_v38 = vcombine.high %v3757_v61, %v3757_v61 }
0x19a4   :  { %v4251_v10 = vrot.slane %v3759_v2, %v25772_v57 }
0x19a5   :  { %3928 = vrot.lane.b32.xlu1 %v3927_v34, %s24387_s8  ;;  %v4332_v43 = vrot.slane %v3761_v38, %v25772_v57  ;;  %v25864_v34 = vld [vmem:[#allocation7 + $0x3] sm:$0x1] }
0x19a6   :  { %28087 = vst [vmem:[#allocation61_spill] sm:$0xff] %v25864_v34  ;;  %vm27993_vm2 = vcmp.gt.f32.partialorder %v25864_v34, 0.0 }
0x19a7   :  { %4009 = vrot.lane.b32.xlu0 %v4008_v26, %s24387_s8 }
0x19a9   :  { %4090 = vrot.lane.b32.xlu1 %v4089_v63, %s24387_s8  ;;  %v25869_v63 = vld [vmem:[#allocation7 + $0x4] sm:$0x1] }
0x19aa   :  { %28088 = vst [vmem:[#allocation62_spill] sm:$0xff] %v25869_v63  ;;  %vm27996_vm3 = vcmp.gt.f32.partialorder %v25869_v63, 0.0 }
0x19ab   :  { %4171 = vrot.lane.b32.xlu0 %v4170_v51, %s24387_s8 }
0x19ad   :  { %4252 = vrot.lane.b32.xlu1 %v4251_v10, %s24387_s8 }
0x19af   :  { %4333 = vrot.lane.b32.xlu0 %v4332_v43, %s24387_s8  ;;  %v25875_v43 = vld [vmem:[#allocation7 + $0x5] sm:$0x1] }
0x19b0   :  { %28089 = vst [vmem:[#allocation63_spill] sm:$0xff] %v25875_v43  ;;  %vm28013_vm4 = vcmp.gt.f32.partialorder %v25875_v43, 0.0 }
0x1a13   :  { %v3767_v31 = vpop.permute.xlu1 %3766 }
0x1a14   :  { %22113 = vmatmul.mubr.msk.f32.vlgmr.msra.gmra.mxu0 %vm342_vm0, %v3767_v31 }
0x1a15   :  { %22116 = vmatpush3.xpose.msk.msra.mxu0 %vm342_vm0, %v25730_v17  ;;  %v3848_v25 = vpop.permute.xlu0 %3847  ;;  %22117 = vmatprep.mubr.msk.f32.mxu0 %vm24384_vm1, %v27973_v12 }
0x1a16   :  { %22125 = vmatprep.subr.mxu0 %v27973_v12 }
0x1a17   :  { %v3929_v59 = vpop.permute.xlu1 %3928 }
0x1a18   :  { %22118 = vmatmul.mubr.msk.f32.vlgmr.msra.gmra.mxu0 %vm342_vm0, %v3848_v25  ;;  %22123 = vmatmul.mubr.msk.f32.vlgmr.msra.gmra.mxu1 %vm342_vm0, %v3929_v59 }
0x1a19   :  { %22126 = vmatpush3.xpose.msk.msra.mxu0 %vm342_vm0, %v25734_v49  ;;  %22131 = vmatpush3.xpose.msk.msra.mxu1 %vm342_vm0, %v25807_v23  ;;  %v4010_v7 = vpop.permute.xlu0 %4009 }
0x1a1a   :  { %22127 = vmatprep.mubr.msk.f32.mxu0 %vm24384_vm1, %v27973_v12  ;;  %22132 = vmatprep.mubr.msk.f32.mxu1 %vm24384_vm1, %v27973_v12 }
0x1a1b   :  { %v4091_v36 = vpop.permute.xlu1 %4090  ;;  %22135 = vmatprep.subr.mxu0 %v27973_v12  ;;  %22140 = vmatprep.subr.mxu1 %v27973_v12 }
0x1a1c   :  { %22128 = vmatmul.mubr.msk.f32.vlgmr.msra.gmra.mxu0 %vm342_vm0, %v4010_v7  ;;  %22133 = vmatmul.mubr.msk.f32.vlgmr.msra.gmra.mxu1 %vm342_vm0, %v4091_v36  ;;  %v25880_v7 = vld [vmem:[#allocation7 + $0x6] sm:$0x1] }
0x1a1d   :  { %22136 = vmatpush3.xpose.msk.msra.mxu0 %vm342_vm0, %v25743_v28  ;;  %22141 = vmatpush3.xpose.msk.msra.mxu1 %vm342_vm0, %v25821_v14  ;;  %v4172_v42 = vpop.permute.xlu0 %4171  ;;  %28090 = vst [vmem:[#allocation64_spill] sm:$0xff] %v25880_v7  ;;  %vm27981_vm5 = vcmp.gt.f32.partialorder %v25880_v7, 0.0 }
0x1a1e   :  { %22137 = vmatprep.mubr.msk.f32.mxu0 %vm24384_vm1, %v27973_v12  ;;  %22142 = vmatprep.mubr.msk.f32.mxu1 %vm24384_vm1, %v27973_v12 }
0x1a1f   :  { %v4253_v60 = vpop.permute.xlu1 %4252  ;;  %22145 = vmatprep.subr.mxu0 %v27973_v12  ;;  %22150 = vmatprep.subr.mxu1 %v27973_v12 }
0x1a20   :  { %22138 = vmatmul.mubr.msk.f32.vlgmr.msra.gmra.mxu0 %vm342_vm0, %v4172_v42  ;;  %22143 = vmatmul.mubr.msk.f32.vlgmr.msra.gmra.mxu1 %vm342_vm0, %v4253_v60 }
0x1a21   :  { %22146 = vmatpush3.xpose.msk.msra.mxu0 %vm342_vm0, %v25756_v21  ;;  %22151 = vmatpush3.msra.mxu1 %v25643_v41  ;;  %v4334_v39 = vpop.permute.xlu0 %4333 }
0x1a22   :  { %22147 = vmatprep.mubr.msk.f32.mxu0 %vm24384_vm1, %v27973_v12  ;;  %22155 = vmatprep.subr.mxu0 %v27973_v12 }
0x1a23   :  { %22152 = vmatprep.mubr.msk.f32.mxu1 %vm24384_vm1, %v27973_v12  ;;  %22160 = vmatprep.subr.mxu1 %v27973_v12 }
0x1a24   :  { %22148 = vmatmul.mubr.msk.f32.vlgmr.msra.gmra.mxu0 %vm342_vm0, %v4334_v39 }
0x1a25   :  { %22156 = vmatpush3.msra.mxu0 %v25645_v55  ;;  %22157 = vmatprep.mubr.msk.f32.mxu0 %vm24384_vm1, %v27973_v12 }
0x1a26   :  { %22165 = vmatprep.subr.mxu0 %v27973_v12 }
0x1ad4   :  { %v3839_v6 = vpop.f32.mrf.mxu0 }
0x1ad5   :  { %v4418_v52 = vsel %vm4410_vm8, %v3839_v6, -1e+30 }
0x1ad6   :  { %v4427_v30 = vsel %vm4426_vm9, %v4418_v52, -inf  ;;  %v22114_v46 = vpop.f32.mrf.mxu0 }
0x1ad7   :  { %4428 = vmax.xlane.f32.xlu1 %v4427_v30  ;;  %v25887_v30 = vld [vmem:[#allocation7 + $0x7] sm:$0x1] }
0x1ad8   :  { %v3920_v40 = vpop.f32.mrf.mxu0  ;;  %v4001_v26 = vpop.f32.mrf.mxu1  ;;  %28091 = vst [vmem:[#allocation65_spill] sm:$0xff] %v25887_v30  ;;  %vm27980_vm6 = vcmp.gt.f32.partialorder %v25887_v30, 0.0 }
0x1ad9   :  { %v4419_v61 = vsel %vm4411_vm12, %v3920_v40, -1e+30  ;;  %v4420_v10 = vsel %vm28014_vm13, %v4001_v26, -1e+30 }
0x1ada   :  { %v4430_v2 = vsel %vm4426_vm9, %v4419_v61, -inf  ;;  %v22119_v51 = vpop.f32.mrf.mxu0  ;;  %v22124_v38 = vpop.f32.mrf.mxu1  ;;  %v4433_v36 = vsel %vm4426_vm9, %v4420_v10, -inf }
0x1adb   :  { %4431 = vmax.xlane.f32.xlu0 %v4430_v2 }
0x1adc   :  { %v4082_v31 = vpop.f32.mrf.mxu0  ;;  %v4163_v25 = vpop.f32.mrf.mxu1 }
0x1add   :  { %v4421_v59 = vsel %vm27993_vm2, %v4082_v31, -1e+30  ;;  %v4422_v6 = vsel %vm27996_vm3, %v4163_v25, -1e+30 }
0x1ade   :  { %v4436_v42 = vsel %vm4426_vm9, %v4421_v59, -inf  ;;  %v22129_v60 = vpop.f32.mrf.mxu0  ;;  %v22134_v39 = vpop.f32.mrf.mxu1  ;;  %v4439_v2 = vsel %vm4426_vm9, %v4422_v6, -inf }
0x1adf   :  { %4434 = vmax.xlane.f32.xlu0 %v4433_v36  ;;  %4437 = vmax.xlane.f32.xlu1 %v4436_v42 }
0x1ae0   :  { %v4244_v46 = vpop.f32.mrf.mxu0  ;;  %v4325_v40 = vpop.f32.mrf.mxu1 }
0x1ae1   :  { %v4423_v26 = vsel %vm28013_vm4, %v4244_v46, -1e+30  ;;  %v4424_v25 = vsel %vm27981_vm5, %v4325_v40, -1e+30  ;;  %vm5687_vm5 = vcmask 1047559  }
0x1ae2   :  { %v4442_v51 = vsel %vm4426_vm9, %v4423_v26, -inf  ;;  %v22139_v38 = vpop.f32.mrf.mxu0  ;;  %v22144_v31 = vpop.f32.mrf.mxu1  ;;  %v4445_v60 = vsel %vm4426_vm9, %v4424_v25, -inf }
0x1ae3   :  { %4440 = vmax.xlane.f32.xlu0 %v4439_v2  ;;  %4443 = vmax.xlane.f32.xlu1 %v4442_v51 }
0x1ae4   :  { %v4406_v36 = vpop.f32.mrf.mxu0 }
0x1ae5   :  { %v4425_v42 = vsel %vm27980_vm6, %v4406_v36, -1e+30  ;;  %vm5684_vm6 = vcmask 1046534  }
0x1ae6   :  { %v4448_v39 = vsel %vm4426_vm9, %v4425_v42, -inf  ;;  %v22149_v46 = vpop.f32.mrf.mxu0 }
0x1ae7   :  { %4446 = vmax.xlane.f32.xlu0 %v4445_v60  ;;  %4449 = vmax.xlane.f32.xlu1 %v4448_v39 }
0x1b60   :  { %v4429_v38 = vpop.xlane.xlu1 %4428 }
0x1b61   :  { %v4451_v31 = vsub.f32 %v4418_v52, %v4429_v38 }
0x1b63   :  { %v4459_v0 = vmul.f32 1.442695, %v4451_v31 }
0x1b64   :  { %v4432_v12 = vpop.xlane.xlu0 %4431 }
0x1b65   :  { %23562 = vpow2.f32 %v4459_v0  ;;  %v4452_v27 = vsub.f32 %v4419_v61, %v4432_v12 }
0x1b67   :  { %v4461_v40 = vmul.f32 1.442695, %v4452_v27 }
0x1b68   :  { %v4435_v2 = vpop.xlane.xlu0 %4434  ;;  %v4438_v51 = vpop.xlane.xlu1 %4437 }
0x1b69   :  { %23564 = vpow2.f32 %v4461_v40  ;;  %v4453_v18 = vsub.f32 %v4420_v10, %v4435_v2  ;;  %v4454_v3 = vsub.f32 %v4421_v59, %v4438_v51 }
0x1b6b   :  { %v4463_v36 = vmul.f32 1.442695, %v4453_v18  ;;  %v4465_v4 = vmul.f32 1.442695, %v4454_v3 }
0x1b6c   :  { %v4441_v62 = vpop.xlane.xlu0 %4440  ;;  %v4444_v30 = vpop.xlane.xlu1 %4443 }
0x1b6d   :  { %23566 = vpow2.f32 %v4463_v36  ;;  %v4455_v46 = vsub.f32 %v4422_v6, %v4441_v62  ;;  %v4456_v60 = vsub.f32 %v4423_v26, %v4444_v30 }
0x1b6e   :  { %23568 = vpow2.f32 %v4465_v4 }
0x1b6f   :  { %v4467_v39 = vmul.f32 1.442695, %v4455_v46  ;;  %v4469_v52 = vmul.f32 1.442695, %v4456_v60 }
0x1b70   :  { %v4447_v38 = vpop.xlane.xlu0 %4446  ;;  %v4450_v31 = vpop.xlane.xlu1 %4449 }
0x1b71   :  { %23570 = vpow2.f32 %v4467_v39  ;;  %v4457_v12 = vsub.f32 %v4424_v25, %v4447_v38  ;;  %v4458_v27 = vsub.f32 %v4425_v42, %v4450_v31 }
0x1b72   :  { %v23563_v0 = vpop.eup %23562  ;;  %23572 = vpow2.f32 %v4469_v52 }
0x1b73   :  { %v4471_v61 = vmul.f32 1.442695, %v4457_v12  ;;  %v4473_v10 = vmul.f32 1.442695, %v4458_v27  ;;  %v4475_v18 = vsel %vm4426_vm9, %v23563_v0, 0.0 }
0x1b74   :  { %4476 = vadd.xlane.f32.xlu0 %v4475_v18 }
0x1b75   :  { %23574 = vpow2.f32 %v4471_v61 }
0x1b76   :  { %v23565_v3 = vpop.eup %23564  ;;  %23576 = vpow2.f32 %v4473_v10 }
0x1b77   :  { %v4478_v62 = vsel %vm4426_vm9, %v23565_v3, 0.0 }
0x1b78   :  { %4479 = vadd.xlane.f32.xlu1 %v4478_v62  ;;  %v28092_v62 = vmov 0.0  }
0x1b7a   :  { %v23567_v4 = vpop.eup %23566 }
0x1b7b   :  { %v23569_v59 = vpop.eup %23568  ;;  %v4481_v6 = vsel %vm4426_vm9, %v23567_v4, 0.0 }
0x1b7c   :  { %4482 = vadd.xlane.f32.xlu0 %v4481_v6  ;;  %v4484_v30 = vsel %vm4426_vm9, %v23569_v59, 0.0 }
0x1b7d   :  { %4485 = vadd.xlane.f32.xlu1 %v4484_v30 }
0x1b7e   :  { %v23571_v26 = vpop.eup %23570 }
0x1b7f   :  { %v23573_v25 = vpop.eup %23572  ;;  %v4487_v42 = vsel %vm4426_vm9, %v23571_v26, 0.0 }
0x1b80   :  { %4488 = vadd.xlane.f32.xlu0 %v4487_v42  ;;  %v4490_v40 = vsel %vm4426_vm9, %v23573_v25, 0.0 }
0x1b81   :  { %4491 = vadd.xlane.f32.xlu1 %v4490_v40 }
0x1b82   :  { %v23575_v2 = vpop.eup %23574 }
0x1b83   :  { %v23577_v51 = vpop.eup %23576  ;;  %v4493_v36 = vsel %vm4426_vm9, %v23575_v2, 0.0 }
0x1b84   :  { %4494 = vadd.xlane.f32.xlu0 %v4493_v36  ;;  %v4496_v46 = vsel %vm4426_vm9, %v23577_v51, 0.0 }
0x1b85   :  { %4497 = vadd.xlane.f32.xlu1 %v4496_v46 }
0x1b9a   :  { %5761 = vrot.lane.b32.xlu0 %v25769_v9, %s24387_s8 }
0x1bfd   :  { %v4477_v60 = vpop.xlane.xlu0 %4476 }
0x1bfe   :  { %23578 = vrcp.f32 %v4477_v60 }
0x1c01   :  { %v4480_v39 = vpop.xlane.xlu1 %4479 }
0x1c02   :  { %23580 = vrcp.f32 %v4480_v39  ;;  %v25993_v39 = vld [vmem:[#allocation30 + $0x8] sm:$0xff] }
0x1c05   :  { %v4483_v52 = vpop.xlane.xlu0 %4482 }
0x1c06   :  { %23582 = vrcp.f32 %v4483_v52  ;;  %v4486_v38 = vpop.xlane.xlu1 %4485  ;;  %v25997_v52 = vld [vmem:[#allocation30] sm:$0xff] }
0x1c07   :  { %23584 = vrcp.f32 %v4486_v38  ;;  %28093 = vst [vmem:[#allocation66_spill] sm:$0xff] %v25997_v52 }
0x1c09   :  { %v4489_v31 = vpop.xlane.xlu0 %4488 }
0x1c0a   :  { %23586 = vrcp.f32 %v4489_v31  ;;  %v4492_v12 = vpop.xlane.xlu1 %4491  ;;  %v26009_v31 = vld [vmem:[#allocation31 + $0x18] sm:$0xff] }
0x1c0b   :  { %v23579_v27 = vpop.eup %23578  ;;  %23588 = vrcp.f32 %v4492_v12  ;;  %v26013_v12 = vld [vmem:[#allocation31 + $0x10] sm:$0xff] }
0x1c0c   :  { %v4507_v61 = vmul.f32 %v23579_v27, %v23563_v0  ;;  %v26017_v27 = vld [vmem:[#allocation31 + $0x8] sm:$0xff] }
0x1c0d   :  { %v4495_v10 = vpop.xlane.xlu0 %4494 }
0x1c0e   :  { %23590 = vrcp.f32 %v4495_v10  ;;  %v4498_v18 = vpop.xlane.xlu1 %4497  ;;  %22153 = vmatmul.mubr.msk.f32.vlgmr.msra.gmra.mxu1 %vm27978_vm7, %v4507_v61 }
0x1c0f   :  { %v23581_v9 = vpop.eup %23580  ;;  %23592 = vrcp.f32 %v4498_v18  ;;  %22161 = vmatpush3.msra.mxu1 %v25656_v35  ;;  %22162 = vmatprep.mubr.msk.f32.mxu1 %vm24384_vm1, %v28092_v62 }
0x1c10   :  { %v4508_v6 = vmul.f32 %v23581_v9, %v23565_v3  ;;  %22170 = vmatprep.subr.mxu1 %v28092_v62 }
0x1c11   :  { %v26001_v38 = vpop.permute.xlu0 %5761 }
0x1c12   :  { %22158 = vmatmul.mubr.msk.f32.vlgmr.msra.gmra.mxu0 %vm27978_vm7, %v4508_v6 }
0x1c13   :  { %v23583_v30 = vpop.eup %23582  ;;  %22166 = vmatpush3.msra.mxu0 %v25673_v33  ;;  %22167 = vmatprep.mubr.msk.f32.mxu0 %vm24384_vm1, %v28092_v62 }
0x1c14   :  { %v23585_v0 = vpop.eup %23584  ;;  %22175 = vmatprep.subr.mxu0 %v28092_v62  ;;  %v4509_v42 = vmul.f32 %v23583_v30, %v23567_v4 }
0x1c15   :  { %v4510_v40 = vmul.f32 %v23585_v0, %v23569_v59 }
0x1c16   :  { %22163 = vmatmul.mubr.msk.f32.vlgmr.msra.gmra.mxu1 %vm27978_vm7, %v4509_v42 }
0x1c17   :  { %v23587_v36 = vpop.eup %23586  ;;  %22168 = vmatmul.mubr.msk.f32.vlgmr.msra.gmra.mxu0 %vm27978_vm7, %v4510_v40  ;;  %22171 = vmatpush3.msra.mxu1 %v25678_v54 }
0x1c18   :  { %v23589_v3 = vpop.eup %23588  ;;  %22176 = vmatpush3.msra.mxu0 %v25695_v53  ;;  %22172 = vmatprep.mubr.msk.f32.mxu1 %vm24384_vm1, %v28092_v62  ;;  %v4511_v46 = vmul.f32 %v23587_v36, %v23571_v26 }
0x1c19   :  { %22177 = vmatprep.mubr.msk.f32.mxu0 %vm24384_vm1, %v28092_v62  ;;  %22180 = vmatprep.subr.mxu1 %v28092_v62  ;;  %v4512_v4 = vmul.f32 %v23589_v3, %v23573_v25 }
0x1c1a   :  { %22185 = vmatprep.subr.mxu0 %v28092_v62  ;;  %22173 = vmatmul.mubr.msk.f32.vlgmr.msra.gmra.mxu1 %vm27978_vm7, %v4511_v46 }
0x1c1b   :  { %v23591_v59 = vpop.eup %23590  ;;  %22178 = vmatmul.mubr.msk.f32.vlgmr.msra.gmra.mxu0 %vm27978_vm7, %v4512_v4  ;;  %22181 = vmatpush3.msra.mxu1 %v25698_v56 }
0x1c1c   :  { %v23593_v60 = vpop.eup %23592  ;;  %22186 = vmatpush3.msra.mxu0 %v25710_v8  ;;  %22182 = vmatprep.mubr.msk.f32.mxu1 %vm24384_vm1, %v28092_v62  ;;  %v4513_v26 = vmul.f32 %v23591_v59, %v23575_v2  ;;  %v25980_v2 = vld [vmem:[#allocation30 + $0x18] sm:$0xff] }
0x1c1d   :  { %22187 = vmatprep.mubr.msk.f32.mxu0 %vm24384_vm1, %v28092_v62  ;;  %22190 = vmatprep.subr.mxu1 %v28092_v62  ;;  %v4514_v25 = vmul.f32 %v23593_v60, %v23577_v51  ;;  %v25985_v51 = vld [vmem:[#allocation30 + $0x10] sm:$0xff] }
0x1c1e   :  { %22195 = vmatprep.subr.mxu0 %v28092_v62  ;;  %22183 = vmatmul.mubr.msk.f32.vlgmr.msra.gmra.mxu1 %vm27978_vm7, %v4513_v26 }
0x1c1f   :  { %22188 = vmatmul.mubr.msk.f32.vlgmr.msra.gmra.mxu0 %vm27978_vm7, %v4514_v25  ;;  %22191 = vmatpush3.msra.mxu1 %v25620_v48 }
0x1c20   :  { %22196 = vmatpush3.msra.mxu0 %v25622_v50  ;;  %22192 = vmatprep.mubr.msk.f32.mxu1 %vm24384_vm1, %v28092_v62 }
0x1c21   :  { %22197 = vmatprep.mubr.msk.f32.mxu0 %vm24384_vm1, %v28092_v62  ;;  %22200 = vmatprep.subr.mxu1 %v28092_v62 }
0x1c22   :  { %22205 = vmatprep.subr.mxu0 %v28092_v62  ;;  %22193 = vmatmul.mubr.msk.f32.vlgmr.msra.gmra.mxu1 %vm27978_vm7, %v4507_v61  ;;  %v26021_v61 = vld [vmem:[#allocation31] sm:$0xff] }
0x1c23   :  { %22198 = vmatmul.mubr.msk.f32.vlgmr.msra.gmra.mxu0 %vm27978_vm7, %v4508_v6  ;;  %22201 = vmatpush3.msra.mxu1 %v25631_v22  ;;  %28094 = vst [vmem:[#allocation67_spill] sm:$0xff] %v26021_v61 }
0x1c24   :  { %22206 = vmatpush3.msra.mxu0 %v25648_v13  ;;  %22202 = vmatprep.mubr.msk.f32.mxu1 %vm24384_vm1, %v28092_v62 }
0x1c25   :  { %22207 = vmatprep.mubr.msk.f32.mxu0 %vm24384_vm1, %v28092_v62  ;;  %22210 = vmatprep.subr.mxu1 %v28092_v62 }
0x1c26   :  { %22215 = vmatprep.subr.mxu0 %v28092_v62  ;;  %22203 = vmatmul.mubr.msk.f32.vlgmr.msra.gmra.mxu1 %vm27978_vm7, %v4509_v42 }
0x1c27   :  { %22208 = vmatmul.mubr.msk.f32.vlgmr.msra.gmra.mxu0 %vm27978_vm7, %v4510_v40  ;;  %22211 = vmatpush3.msra.mxu1 %v25650_v20 }
0x1c28   :  { %22216 = vmatpush3.msra.mxu0 %v25671_v45  ;;  %22212 = vmatprep.mubr.msk.f32.mxu1 %vm24384_vm1, %v28092_v62 }
0x1c29   :  { %22217 = vmatprep.mubr.msk.f32.mxu0 %vm24384_vm1, %v28092_v62  ;;  %22220 = vmatprep.subr.mxu1 %v28092_v62 }
0x1c2a   :  { %22225 = vmatprep.subr.mxu0 %v28092_v62  ;;  %22213 = vmatmul.mubr.msk.f32.vlgmr.msra.gmra.mxu1 %vm27978_vm7, %v4511_v46 }
0x1c2b   :  { %22218 = vmatmul.mubr.msk.f32.vlgmr.msra.gmra.mxu0 %vm27978_vm7, %v4512_v4  ;;  %22221 = vmatpush3.msra.mxu1 %v25676_v1 }
0x1c2c   :  { %22226 = vmatpush3.msra.mxu0 %v25693_v29  ;;  %22222 = vmatprep.mubr.msk.f32.mxu1 %vm24384_vm1, %v28092_v62 }
0x1c2d   :  { %22227 = vmatprep.mubr.msk.f32.mxu0 %vm24384_vm1, %v28092_v62  ;;  %22241 = vmatprep.subr.mxu0 %v28092_v62 }
0x1c2e   :  { %22223 = vmatmul.mubr.msk.f32.vlgmr.msra.gmra.mxu1 %vm27978_vm7, %v4513_v26  ;;  %22230 = vmatprep.subr.mxu1 %v28092_v62 }
0x1c2f   :  { %22228 = vmatmul.mubr.msk.f32.vlgmr.msra.gmra.mxu0 %vm27978_vm7, %v4514_v25  ;;  %22238 = vmatprep.mubr.msk.f32.mxu1 %vm24384_vm1, %v28092_v62  ;;  %vm5681_vm7 = vcmask 1045509  }
0x1c30   :  { %22242 = vmatpush3.msra.mxu0 %v25980_v2  ;;  %22249 = vmatprep.mubr.msk.f32.mxu0 %vm24384_vm1, %v28092_v62 }
0x1c31   :  { %22243 = vmatprep.subr.mxu0 %v28092_v62  ;;  %22231 = vmatpush3.msra.mxu1 %v26009_v31 }
0x1c32   :  { %22244 = vmatpush3.msra.mxu0 %v25985_v51  ;;  %22232 = vmatprep.subr.mxu1 %v28092_v62 }
0x1c33   :  { %22245 = vmatprep.subr.mxu0 %v28092_v62  ;;  %22233 = vmatpush3.msra.mxu1 %v26013_v12 }
0x1c34   :  { %22246 = vmatpush3.msra.mxu0 %v25993_v39  ;;  %22234 = vmatprep.subr.mxu1 %v28092_v62 }
0x1c35   :  { %22247 = vmatprep.subr.mxu0 %v28092_v62  ;;  %22235 = vmatpush3.msra.mxu1 %v26017_v27 }
0x1c36   :  { %22248 = vmatpush3.msra.mxu0 %v25997_v52  ;;  %22236 = vmatprep.subr.mxu1 %v28092_v62 }
0x1c37   :  { %22250 = vmatmul.mubr.msk.f32.vlgmr.msra.gmra.mxu0 %vm342_vm0, %v26001_v38  ;;  %22263 = vmatprep.subr.mxu0 %v28092_v62 }
0x1c38   :  { %22271 = vmatprep.mubr.msk.f32.mxu0 %vm24384_vm1, %v28092_v62  ;;  %22237 = vmatpush3.msra.mxu1 %v26021_v61 }
0x1c39   :  { %22252 = vmatprep.subr.mxu1 %v28092_v62 }
0x1cce   :  { %v4585_v10 = vpop.f32.mrf.mxu1 }
0x1cd0   :  { %v22154_v18 = vpop.f32.mrf.mxu1 }
0x1cd2   :  { %v4658_v9 = vpop.f32.mrf.mxu0 }
0x1cd3   :  { %v5668_v6 = vrot.slane %v4658_v9, 7 }
0x1cd4   :  { %v22159_v30 = vpop.f32.mrf.mxu0 }
0x1cd5   :  { %v5670_v36 = vsel %vm5669_vm10, %v5668_v6, %v4585_v10 }
0x1cd6   :  { %v4731_v0 = vpop.f32.mrf.mxu1 }
0x1cd7   :  { %v5671_v42 = vrot.slane %v4731_v0, 6  ;;  %v4804_v40 = vpop.f32.mrf.mxu0 }
0x1cd8   :  { %v5674_v3 = vrot.slane %v4804_v40, 5  ;;  %v22164_v46 = vpop.f32.mrf.mxu1 }
0x1cd9   :  { %v5673_v4 = vsel %vm5672_vm11, %v5671_v42, %v5670_v36  ;;  %v22169_v59 = vpop.f32.mrf.mxu0 }
0x1cda   :  { %v4877_v60 = vpop.f32.mrf.mxu1  ;;  %v5676_v18 = vsel %vm5675_vm14, %v5674_v3, %v5673_v4 }
0x1cdb   :  { %v5677_v26 = vrot.slane %v4877_v60, 4  ;;  %v4950_v25 = vpop.f32.mrf.mxu0  ;;  %v26031_v60 = vld [vmem:[#allocation33 + $0x18] sm:$0xff] }
0x1cdc   :  { %v5680_v9 = vrot.slane %v4950_v25, 3  ;;  %v22174_v30 = vpop.f32.mrf.mxu1  ;;  %28095 = vst [vmem:[#allocation68_spill] sm:$0xff] %v26031_v60  ;;  %v26035_v25 = vld [vmem:[#allocation33 + $0x10] sm:$0xff] }
0x1cdd   :  { %v5679_v61 = vsel %vm5678_vm15, %v5677_v26, %v5676_v18  ;;  %v22179_v0 = vpop.f32.mrf.mxu0  ;;  %28096 = vst [vmem:[#allocation69_spill] sm:$0xff] %v26035_v25 }
0x1cde   :  { %v5023_v52 = vpop.f32.mrf.mxu1  ;;  %v5682_v42 = vsel %vm5681_vm7, %v5680_v9, %v5679_v61  ;;  %v26041_v9 = vld [vmem:[#allocation33 + $0x8] sm:$0xff] }
0x1cdf   :  { %v5683_v10 = vrot.slane %v5023_v52, 2  ;;  %v5096_v6 = vpop.f32.mrf.mxu0  ;;  %28097 = vst [vmem:[#allocation70_spill] sm:$0xff] %v26041_v9 }
0x1ce0   :  { %v5686_v40 = vrot.slane %v5096_v6, 1  ;;  %v22184_v36 = vpop.f32.mrf.mxu1  ;;  %v26045_v6 = vld [vmem:[#allocation33] sm:$0xff] }
0x1ce1   :  { %v5685_v46 = vsel %vm5684_vm6, %v5683_v10, %v5682_v42  ;;  %v22189_v59 = vpop.f32.mrf.mxu0  ;;  %28098 = vst [vmem:[#allocation71_spill] sm:$0xff] %v26045_v6 }
0x1ce2   :  { %v5688_v3 = vsel %vm5687_vm5, %v5686_v40, %v5685_v46  ;;  %v5166_v4 = vpop.f32.mrf.mxu1 }
0x1ce3   :  { %v5236_v26 = vpop.f32.mrf.mxu0  ;;  %22239 = vmatmul.mubr.msk.f32.vlgmr.msra.gmra.mxu1 %vm342_vm0, %v5688_v3 }
0x1ce4   :  { %v5843_v52 = vrot.slane %v5236_v26, 7  ;;  %v22194_v18 = vpop.f32.mrf.mxu1  ;;  %22253 = vmatpush3.msra.mxu1 %v26031_v60  ;;  %22260 = vmatprep.mubr.msk.f32.mxu1 %vm24384_vm1, %v28092_v62 }
0x1ce5   :  { %v22199_v61 = vpop.f32.mrf.mxu0  ;;  %22254 = vmatprep.subr.mxu1 %v28092_v62 }
0x1ce6   :  { %v5306_v30 = vpop.f32.mrf.mxu1  ;;  %22255 = vmatpush3.msra.mxu1 %v26035_v25  ;;  %v5844_v42 = vsel %vm5669_vm10, %v5843_v52, %v5166_v4 }
0x1ce7   :  { %v5845_v0 = vrot.slane %v5306_v30, 6  ;;  %v5376_v10 = vpop.f32.mrf.mxu0  ;;  %22256 = vmatprep.subr.mxu1 %v28092_v62 }
0x1ce8   :  { %v5847_v40 = vrot.slane %v5376_v10, 5  ;;  %v22204_v36 = vpop.f32.mrf.mxu1  ;;  %22257 = vmatpush3.msra.mxu1 %v26041_v9 }
0x1ce9   :  { %v5846_v46 = vsel %vm5672_vm11, %v5845_v0, %v5844_v42  ;;  %v22209_v59 = vpop.f32.mrf.mxu0  ;;  %22258 = vmatprep.subr.mxu1 %v28092_v62 }
0x1cea   :  { %v5446_v3 = vpop.f32.mrf.mxu1  ;;  %22259 = vmatpush3.msra.mxu1 %v26045_v6  ;;  %v5848_v61 = vsel %vm5675_vm14, %v5847_v40, %v5846_v46  ;;  %v26059_v40 = vld [vmem:[#allocation27 + $0x18] sm:$0xff]  ;;  %v26065_v46 = vld [vmem:[#allocation27 + $0x10] sm:$0xff] }
0x1ceb   :  { %v5849_v26 = vrot.slane %v5446_v3, 4  ;;  %v5516_v18 = vpop.f32.mrf.mxu0  ;;  %22274 = vmatprep.subr.mxu1 %v28092_v62 }
0x1cec   :  { %v5851_v30 = vrot.slane %v5516_v18, 3  ;;  %v22214_v4 = vpop.f32.mrf.mxu1 }
0x1ced   :  { %v5850_v52 = vsel %vm5678_vm15, %v5849_v26, %v5848_v61  ;;  %v22219_v10 = vpop.f32.mrf.mxu0  ;;  %v26079_v26 = vld [vmem:[#allocation34 + $0x8] sm:$0xff] }
0x1cee   :  { %v5586_v36 = vpop.f32.mrf.mxu1  ;;  %v5852_v42 = vsel %vm5681_vm7, %v5851_v30, %v5850_v52 }
0x1cef   :  { %v5853_v9 = vrot.slane %v5586_v36, 2  ;;  %v5656_v0 = vpop.f32.mrf.mxu0  ;;  %v26091_v36 = vld [vmem:[#allocation28 + $0x18] sm:$0xff] }
0x1cf0   :  { %v5855_v59 = vrot.slane %v5656_v0, 1  ;;  %v22224_v25 = vpop.f32.mrf.mxu1  ;;  %v26099_v0 = vld [vmem:[#allocation28 + $0x10] sm:$0xff] }
0x1cf1   :  { %v5854_v6 = vsel %vm5684_vm6, %v5853_v9, %v5852_v42  ;;  %v22229_v3 = vpop.f32.mrf.mxu0  ;;  %v26106_v42 = vld [vmem:[#allocation28 + $0x8] sm:$0xff] }
0x1cf2   :  { %v5856_v60 = vsel %vm5687_vm5, %v5855_v59, %v5854_v6  ;;  %v26075_v6 = vld [vmem:[#allocation34 + $0x10] sm:$0xff] }
0x1cf3   :  { %22261 = vmatmul.mubr.msk.f32.vlgmr.msra.gmra.mxu1 %vm342_vm0, %v5856_v60  ;;  %v26073_v60 = vld [vmem:[#allocation34 + $0x18] sm:$0xff] }
0x1cf4   :  { %22275 = vmatpush3.msra.mxu1 %v26059_v40  ;;  %22282 = vmatprep.mubr.msk.f32.mxu1 %vm24384_vm1, %v28092_v62 }
0x1cf5   :  { %22276 = vmatprep.subr.mxu1 %v28092_v62  ;;  %22264 = vmatpush3.msra.mxu0 %v26073_v60 }
0x1cf6   :  { %22277 = vmatpush3.msra.mxu1 %v26065_v46  ;;  %22265 = vmatprep.subr.mxu0 %v28092_v62 }
0x1cf7   :  { %v5831_v25 = vpop.f32.mrf.mxu0  ;;  %22278 = vmatprep.subr.mxu1 %v28092_v62  ;;  %22266 = vmatpush3.msra.mxu0 %v26075_v6 }
0x1cf8   :  { %22279 = vmatpush3.msra.mxu1 %v25663_v47  ;;  %22267 = vmatprep.subr.mxu0 %v28092_v62  ;;  %v26083_v47 = vld [vmem:[#allocation34] sm:$0xff] }
0x1cf9   :  { %v22251_v9 = vpop.f32.mrf.mxu0  ;;  %22280 = vmatprep.subr.mxu1 %v28092_v62  ;;  %22268 = vmatpush3.msra.mxu0 %v26079_v26 }
0x1cfa   :  { %22281 = vmatpush3.msra.mxu1 %v25686_v24  ;;  %22269 = vmatprep.subr.mxu0 %v28092_v62 }
0x1cfb   :  { %22296 = vmatprep.subr.mxu1 %v28092_v62  ;;  %22270 = vmatpush3.msra.mxu0 %v26083_v47 }
0x1cfc   :  { %22285 = vmatprep.subr.mxu0 %v28092_v62 }
0x1da3   :  { %v5757_v24 = vpop.f32.mrf.mxu1 }
0x1da4   :  { %v5832_v61 = vadd.f32 %v5831_v25, %v5757_v24 }
0x1da5   :  { %v22240_v18 = vpop.f32.mrf.mxu1 }
0x1db3   :  { %v5925_v30 = vpop.f32.mrf.mxu1 }
0x1db4   :  { %v5929_v4 = vadd.f32 %v5925_v30, %v5832_v61 }
0x1db5   :  { %v22262_v52 = vpop.f32.mrf.mxu1 }
0x1db6   :  { %23594 = vtanh.f32 %v5929_v4 }
0x1dc3   :  { %v23595_v10 = vpop.eup %23594 }
0x1dc4   :  { %22272 = vmatmul.mubr.msk.f32.vlgmr.msra.gmra.mxu0 %vm342_vm0, %v23595_v10  ;;  %22283 = vmatmul.mubr.msk.f32.vlgmr.msra.gmra.mxu1 %vm342_vm0, %v23595_v10 }
0x1dc5   :  { %22286 = vmatpush3.msra.mxu0 %v26091_v36  ;;  %22297 = vmatpush3.xpose.msk.msra.mxu1 %vm342_vm0, %v25732_v16 }
0x1dc6   :  { %22287 = vmatprep.subr.mxu0 %v28092_v62  ;;  %22293 = vmatprep.mubr.msk.f32.mxu0 %vm24384_vm1, %v28092_v62 }
0x1dc7   :  { %22288 = vmatpush3.msra.mxu0 %v26099_v0  ;;  %22298 = vmatprep.mubr.msk.f32.mxu1 %vm24384_vm1, %v28092_v62 }
0x1dc8   :  { %22289 = vmatprep.subr.mxu0 %v28092_v62  ;;  %22306 = vmatprep.subr.mxu1 %v28092_v62 }
0x1dc9   :  { %22290 = vmatpush3.msra.mxu0 %v26106_v42 }
0x1dca   :  { %22291 = vmatprep.subr.mxu0 %v28092_v62 }
0x1dcb   :  { %22292 = vmatpush3.msra.mxu0 %v25722_v19 }
0x1dcc   :  { %22294 = vmatmul.mubr.msk.f32.vlgmr.msra.gmra.mxu0 %vm342_vm0, %v26001_v38  ;;  %22301 = vmatprep.subr.mxu0 %v28092_v62 }
0x1dcd   :  { %22302 = vmatpush3.xpose.msk.msra.mxu0 %vm342_vm0, %v25730_v17  ;;  %22303 = vmatprep.mubr.msk.f32.mxu0 %vm24384_vm1, %v28092_v62 }
0x1dce   :  { %22311 = vmatprep.subr.mxu0 %v28092_v62 }
0x1e84   :  { %v26119_v59 = vpop.f32.mrf.mxu0  ;;  %v6090_v3 = vpop.f32.mrf.mxu1 }
0x1e85   :  { %28099 = vst [vmem:[#allocation72_spill] sm:$0xff] %v26119_v59  ;;  %v6094_v19 = vadd.f32 %v6090_v3, %v24956_v58 }
0x1e86   :  { %v22273_v25 = vpop.f32.mrf.mxu0  ;;  %v22284_v9 = vpop.f32.mrf.mxu1 }
0x1e8c   :  { %v6161_v24 = vpop.f32.mrf.mxu0 }
0x1e8d   :  { %v6165_v18 = vadd.f32 %v6161_v24, %v6094_v19 }
0x1e8e   :  { %v22295_v38 = vpop.f32.mrf.mxu0 }
0x1e8f   :  { %23596 = vtanh.f32 %v6165_v18  ;;  %v20816_v30 = vmul.f32 -1.442695, %v6165_v18 }
0x1e91   :  { %23598 = vpow2.f32 %v20816_v30 }
0x1e9c   :  { %v23597_v61 = vpop.eup %23596 }
0x1e9d   :  { %6175 = vrot.lane.b32.xlu1 %v23597_v61, %s24386_s18 }
0x1e9e   :  { %v23599_v4 = vpop.eup %23598 }
0x1e9f   :  { %v6169_v52 = vadd.f32 1.0, %v23599_v4 }
0x1ea1   :  { %23600 = vrcp.f32 %v6169_v52 }
0x1eae   :  { %v23601_v10 = vpop.eup %23600 }
0x1eaf   :  { %v6173_v25 = vmul.f32 %v23601_v10, %v25762_v15 }
0x1f0f   :  { %v6176_v17 = vpop.permute.xlu1 %6175 }
0x1f10   :  { %v6178_v59 = vmul.f32 %v23601_v10, %v6176_v17 }
0x1f12   :  { %6180 = vrot.lane.b32.xlu1 %v6178_v59, %s24387_s8 }
0x1f84   :  { %v6181_v58 = vpop.permute.xlu1 %6180 }
0x1f85   :  { %v26125_v3 = vadd.f32 %v6181_v58, %v6173_v25 }
0x1f87   :  { %23602 = vtanh.f32 %v26125_v3 }
0x1f94   :  { %v23603_v9 = vpop.eup %23602 }
0x1f95   :  { %6186 = vrot.lane.b32.xlu0 %v23603_v9, %s24386_s18 }
0x2007   :  { %v6187_v19 = vpop.permute.xlu0 %6186 }
0x2008   :  { %v26129_v24 = vmul.f32 %v23601_v10, %v6187_v19 }
0x200a   :  { %v6191_v18 = vcombine.high %v26129_v24, %v26129_v24  ;;  %v6198_v17 = vrot.slane %v26129_v24, %v25767_v37 }
0x200c   :  { %v6205_v59 = vrot.slane %v6191_v18, %v25767_v37  ;;  %v6206_v15 = vcombine.high %v6198_v17, %v6198_v17  ;;  %v6214_v38 = vrot.slane %v6198_v17, %v25767_v37 }
0x200e   :  { %v6243_v61 = vrot.slane %v6214_v38, %v25772_v57  ;;  %v6228_v30 = vrot.slane %v6206_v15, %v25767_v37  ;;  %v6236_v4 = vcombine.high %v6214_v38, %v6214_v38  ;;  %v6207_v52 = vcombine.high %v6205_v59, %v6205_v59 }
0x200f   :  { %v6221_v9 = vrot.slane %v6205_v59, %v25767_v37 }
0x2010   :  { %6244 = vrot.lane.b32.xlu1 %v6243_v61, %s24387_s8  ;;  %v6321_v10 = vrot.slane %v6228_v30, %v25772_v57  ;;  %v6238_v25 = vcombine.high %v6228_v30, %v6228_v30  ;;  %v6399_v58 = vrot.slane %v6236_v4, %v25772_v57  ;;  %v6235_v18 = vrot.slane %v6207_v52, %v25767_v37 }
0x2011   :  { %v6555_v17 = vrot.slane %v6221_v9, %v25772_v57  ;;  %v6237_v15 = vcombine.high %v6221_v9, %v6221_v9 }
0x2012   :  { %6322 = vrot.lane.b32.xlu0 %v6321_v10, %s24387_s8  ;;  %v6477_v19 = vrot.slane %v6238_v25, %v25772_v57  ;;  %v6633_v38 = vrot.slane %v6235_v18, %v25772_v57  ;;  %v6239_v61 = vcombine.high %v6235_v18, %v6235_v18 }
0x2013   :  { %v6711_v59 = vrot.slane %v6237_v15, %v25772_v57 }
0x2014   :  { %6400 = vrot.lane.b32.xlu1 %v6399_v58, %s24387_s8  ;;  %v6789_v30 = vrot.slane %v6239_v61, %v25772_v57 }
0x2016   :  { %6478 = vrot.lane.b32.xlu0 %v6477_v19, %s24387_s8 }
0x2018   :  { %6556 = vrot.lane.b32.xlu1 %v6555_v17, %s24387_s8 }
0x201a   :  { %6634 = vrot.lane.b32.xlu0 %v6633_v38, %s24387_s8 }
0x201c   :  { %6712 = vrot.lane.b32.xlu1 %v6711_v59, %s24387_s8 }
0x201e   :  { %6790 = vrot.lane.b32.xlu0 %v6789_v30, %s24387_s8 }
0x2082   :  { %v6245_v4 = vpop.permute.xlu1 %6244 }
0x2083   :  { %22299 = vmatmul.mubr.msk.f32.vlgmr.msra.gmra.mxu1 %vm342_vm0, %v6245_v4 }
0x2084   :  { %22307 = vmatpush3.xpose.msk.msra.mxu1 %vm342_vm0, %v25741_v32  ;;  %v6323_v52 = vpop.permute.xlu0 %6322  ;;  %22308 = vmatprep.mubr.msk.f32.mxu1 %vm24384_vm1, %v28092_v62 }
0x2085   :  { %22304 = vmatmul.mubr.msk.f32.vlgmr.msra.gmra.mxu0 %vm342_vm0, %v6323_v52  ;;  %22316 = vmatprep.subr.mxu1 %v28092_v62 }
0x2086   :  { %22312 = vmatpush3.xpose.msk.msra.mxu0 %vm342_vm0, %v25734_v49  ;;  %v6401_v10 = vpop.permute.xlu1 %6400  ;;  %22313 = vmatprep.mubr.msk.f32.mxu0 %vm24384_vm1, %v28092_v62 }
0x2087   :  { %22309 = vmatmul.mubr.msk.f32.vlgmr.msra.gmra.mxu1 %vm342_vm0, %v6401_v10  ;;  %22321 = vmatprep.subr.mxu0 %v28092_v62 }
0x2088   :  { %22317 = vmatpush3.xpose.msk.msra.mxu1 %vm342_vm0, %v25807_v23  ;;  %v6479_v25 = vpop.permute.xlu0 %6478  ;;  %22318 = vmatprep.mubr.msk.f32.mxu1 %vm24384_vm1, %v28092_v62 }
0x2089   :  { %22314 = vmatmul.mubr.msk.f32.vlgmr.msra.gmra.mxu0 %vm342_vm0, %v6479_v25  ;;  %22326 = vmatprep.subr.mxu1 %v28092_v62 }
0x208a   :  { %22322 = vmatpush3.xpose.msk.msra.mxu0 %vm342_vm0, %v25743_v28  ;;  %v6557_v58 = vpop.permute.xlu1 %6556  ;;  %22323 = vmatprep.mubr.msk.f32.mxu0 %vm24384_vm1, %v28092_v62 }
0x208b   :  { %22319 = vmatmul.mubr.msk.f32.vlgmr.msra.gmra.mxu1 %vm342_vm0, %v6557_v58  ;;  %22331 = vmatprep.subr.mxu0 %v28092_v62 }
0x208c   :  { %22327 = vmatpush3.xpose.msk.msra.mxu1 %vm342_vm0, %v25821_v14  ;;  %v6635_v9 = vpop.permute.xlu0 %6634  ;;  %22328 = vmatprep.mubr.msk.f32.mxu1 %vm24384_vm1, %v28092_v62 }
0x208d   :  { %22324 = vmatmul.mubr.msk.f32.vlgmr.msra.gmra.mxu0 %vm342_vm0, %v6635_v9  ;;  %22336 = vmatprep.subr.mxu1 %v28092_v62 }
0x208e   :  { %22332 = vmatpush3.xpose.msk.msra.mxu0 %vm342_vm0, %v25756_v21  ;;  %v6713_v19 = vpop.permute.xlu1 %6712  ;;  %22333 = vmatprep.mubr.msk.f32.mxu0 %vm24384_vm1, %v28092_v62 }
0x208f   :  { %22329 = vmatmul.mubr.msk.f32.vlgmr.msra.gmra.mxu1 %vm342_vm0, %v6713_v19  ;;  %22341 = vmatprep.subr.mxu0 %v28092_v62 }
0x2090   :  { %22337 = vmatpush3.msra.mxu1 %v25643_v41  ;;  %v6791_v18 = vpop.permute.xlu0 %6790  ;;  %22338 = vmatprep.mubr.msk.f32.mxu1 %vm24384_vm1, %v28092_v62 }
0x2091   :  { %22334 = vmatmul.mubr.msk.f32.vlgmr.msra.gmra.mxu0 %vm342_vm0, %v6791_v18  ;;  %22346 = vmatprep.subr.mxu1 %v28092_v62 }
0x2092   :  { %22342 = vmatpush3.msra.mxu0 %v25645_v55  ;;  %22343 = vmatprep.mubr.msk.f32.mxu0 %vm24384_vm1, %v28092_v62 }
0x2093   :  { %22351 = vmatprep.subr.mxu0 %v28092_v62 }
0x2143   :  { %v6314_v17 = vpop.f32.mrf.mxu1 }
0x2144   :  { %v6864_v15 = vsel %vm4410_vm8, %v6314_v17, -1e+30 }
0x2145   :  { %v6872_v38 = vsel %vm4426_vm9, %v6864_v15, -inf  ;;  %v22300_v61 = vpop.f32.mrf.mxu1  ;;  %v6392_v59 = vpop.f32.mrf.mxu0 }
0x2146   :  { %v6865_v30 = vsel %vm4411_vm12, %v6392_v59, -1e+30  ;;  %6873 = vmax.xlane.f32.xlu1 %v6872_v38 }
0x2147   :  { %v6875_v4 = vsel %vm4426_vm9, %v6865_v30, -inf  ;;  %v22305_v52 = vpop.f32.mrf.mxu0  ;;  %v6470_v10 = vpop.f32.mrf.mxu1 }
0x2148   :  { %v6866_v25 = vsel %vm28014_vm13, %v6470_v10, -1e+30  ;;  %6876 = vmax.xlane.f32.xlu0 %v6875_v4 }
0x2149   :  { %v22310_v58 = vpop.f32.mrf.mxu1  ;;  %v6548_v9 = vpop.f32.mrf.mxu0  ;;  %v6878_v18 = vsel %vm4426_vm9, %v6866_v25, -inf }
0x214a   :  { %v6867_v19 = vsel %vm27993_vm2, %v6548_v9, -1e+30  ;;  %vm28100_vm2 = vcmp.gt.f32.partialorder %v25880_v7, 0.0 }
0x214b   :  { %v6881_v17 = vsel %vm4426_vm9, %v6867_v19, -inf  ;;  %v22315_v61 = vpop.f32.mrf.mxu0  ;;  %v6626_v59 = vpop.f32.mrf.mxu1 }
0x214c   :  { %v6868_v38 = vsel %vm27996_vm3, %v6626_v59, -1e+30  ;;  %6879 = vmax.xlane.f32.xlu0 %v6878_v18  ;;  %6882 = vmax.xlane.f32.xlu1 %v6881_v17  ;;  %v28101_v18 = vld [vmem:[#allocation65_spill] sm:$0xff] }
0x214d   :  { %v22320_v52 = vpop.f32.mrf.mxu1  ;;  %v6704_v44 = vpop.f32.mrf.mxu0  ;;  %v6884_v10 = vsel %vm4426_vm9, %v6868_v38, -inf  ;;  %vm28102_vm3 = vcmp.gt.f32.partialorder %v28101_v18, 0.0 }
0x214e   :  { %v6869_v4 = vsel %vm28013_vm4, %v6704_v44, -1e+30 }
0x214f   :  { %v6887_v58 = vsel %vm4426_vm9, %v6869_v4, -inf  ;;  %v22325_v9 = vpop.f32.mrf.mxu0  ;;  %v6782_v34 = vpop.f32.mrf.mxu1 }
0x2150   :  { %v6870_v61 = vsel %vm28100_vm2, %v6782_v34, -1e+30  ;;  %6885 = vmax.xlane.f32.xlu0 %v6884_v10  ;;  %6888 = vmax.xlane.f32.xlu1 %v6887_v58  ;;  %vm28103_vm2 = vcmask 64512  }
0x2151   :  { %v22330_v63 = vpop.f32.mrf.mxu1  ;;  %v6860_v59 = vpop.f32.mrf.mxu0  ;;  %v6890_v52 = vsel %vm4426_vm9, %v6870_v61, -inf  ;;  %vm28105_vm4 = vmmov %vm28103_vm2 }
0x2152   :  { %v6871_v17 = vsel %vm28102_vm3, %v6860_v59, -1e+30  ;;  %vm28104_vm3 = vmmov %vm28103_vm2 }
0x2153   :  { %v6893_v44 = vsel %vm4426_vm9, %v6871_v17, -inf  ;;  %v22335_v43 = vpop.f32.mrf.mxu0  ;;  %vm28110_vm13 = vmmov %vm28103_vm2 }
0x2154   :  { %6891 = vmax.xlane.f32.xlu0 %v6890_v52  ;;  %6894 = vmax.xlane.f32.xlu1 %v6893_v44 }
0x21cf   :  { %v6874_v5 = vpop.xlane.xlu1 %6873 }
0x21d0   :  { %v6896_v9 = vsub.f32 %v6864_v15, %v6874_v5 }
0x21d1   :  { %v6877_v11 = vpop.xlane.xlu0 %6876 }
0x21d2   :  { %v6904_v55 = vmul.f32 1.442695, %v6896_v9  ;;  %v6897_v7 = vsub.f32 %v6865_v30, %v6877_v11 }
0x21d4   :  { %23604 = vpow2.f32 %v6904_v55  ;;  %v6906_v34 = vmul.f32 1.442695, %v6897_v7 }
0x21d5   :  { %v6880_v10 = vpop.xlane.xlu0 %6879  ;;  %v6883_v63 = vpop.xlane.xlu1 %6882 }
0x21d6   :  { %23606 = vpow2.f32 %v6906_v34  ;;  %v6898_v58 = vsub.f32 %v6866_v25, %v6880_v10  ;;  %v6899_v18 = vsub.f32 %v6867_v19, %v6883_v63 }
0x21d8   :  { %v6908_v59 = vmul.f32 1.442695, %v6898_v58  ;;  %v6910_v41 = vmul.f32 1.442695, %v6899_v18 }
0x21d9   :  { %v6886_v21 = vpop.xlane.xlu0 %6885  ;;  %v6889_v14 = vpop.xlane.xlu1 %6888 }
0x21da   :  { %23608 = vpow2.f32 %v6908_v59  ;;  %v6900_v43 = vsub.f32 %v6868_v38, %v6886_v21  ;;  %v6901_v52 = vsub.f32 %v6869_v4, %v6889_v14 }
0x21db   :  { %23610 = vpow2.f32 %v6910_v41 }
0x21dc   :  { %v6912_v44 = vmul.f32 1.442695, %v6900_v43  ;;  %v6914_v5 = vmul.f32 1.442695, %v6901_v52 }
0x21dd   :  { %v6892_v15 = vpop.xlane.xlu0 %6891  ;;  %v6895_v9 = vpop.xlane.xlu1 %6894 }
0x21de   :  { %23612 = vpow2.f32 %v6912_v44  ;;  %v6902_v55 = vsub.f32 %v6870_v61, %v6892_v15  ;;  %v6903_v11 = vsub.f32 %v6871_v17, %v6895_v9 }
0x21df   :  { %23614 = vpow2.f32 %v6914_v5 }
0x21e0   :  { %v6916_v7 = vmul.f32 1.442695, %v6902_v55  ;;  %v6918_v30 = vmul.f32 1.442695, %v6903_v11 }
0x21e1   :  { %v23605_v25 = vpop.eup %23604 }
0x21e2   :  { %23616 = vpow2.f32 %v6916_v7  ;;  %v6920_v19 = vsel %vm4426_vm9, %v23605_v25, 0.0 }
0x21e3   :  { %v23607_v18 = vpop.eup %23606  ;;  %23618 = vpow2.f32 %v6918_v30  ;;  %6921 = vadd.xlane.f32.xlu0 %v6920_v19 }
0x21e4   :  { %v6923_v21 = vsel %vm4426_vm9, %v23607_v18, 0.0 }
0x21e5   :  { %6924 = vadd.xlane.f32.xlu1 %v6923_v21 }
0x21e7   :  { %v23609_v41 = vpop.eup %23608 }
0x21e8   :  { %v23611_v14 = vpop.eup %23610  ;;  %v6926_v38 = vsel %vm4426_vm9, %v23609_v41, 0.0 }
0x21e9   :  { %6927 = vadd.xlane.f32.xlu0 %v6926_v38  ;;  %v6929_v4 = vsel %vm4426_vm9, %v23611_v14, 0.0 }
0x21ea   :  { %6930 = vadd.xlane.f32.xlu1 %v6929_v4 }
0x21eb   :  { %v23613_v61 = vpop.eup %23612 }
0x21ec   :  { %v23615_v17 = vpop.eup %23614  ;;  %v6932_v34 = vsel %vm4426_vm9, %v23613_v61, 0.0 }
0x21ed   :  { %6933 = vadd.xlane.f32.xlu0 %v6932_v34  ;;  %v6935_v10 = vsel %vm4426_vm9, %v23615_v17, 0.0 }
0x21ee   :  { %6936 = vadd.xlane.f32.xlu1 %v6935_v10 }
0x21ef   :  { %v23617_v63 = vpop.eup %23616 }
0x21f0   :  { %v23619_v58 = vpop.eup %23618  ;;  %v6938_v59 = vsel %vm4426_vm9, %v23617_v63, 0.0 }
0x21f1   :  { %6939 = vadd.xlane.f32.xlu0 %v6938_v59  ;;  %v6941_v43 = vsel %vm4426_vm9, %v23619_v58, 0.0 }
0x21f2   :  { %6942 = vadd.xlane.f32.xlu1 %v6941_v43 }
0x2207   :  { %8198 = vrot.lane.b32.xlu0 %v26129_v24, %s24387_s8 }
0x226c   :  { %v6922_v52 = vpop.xlane.xlu0 %6921 }
0x226d   :  { %23620 = vrcp.f32 %v6922_v52 }
0x226e   :  { %v6925_v44 = vpop.xlane.xlu1 %6924 }
0x226f   :  { %23622 = vrcp.f32 %v6925_v44 }
0x2272   :  { %v6928_v5 = vpop.xlane.xlu0 %6927 }
0x2273   :  { %23624 = vrcp.f32 %v6928_v5  ;;  %v6931_v15 = vpop.xlane.xlu1 %6930 }
0x2274   :  { %23626 = vrcp.f32 %v6931_v15 }
0x2276   :  { %v6934_v9 = vpop.xlane.xlu0 %6933 }
0x2277   :  { %23628 = vrcp.f32 %v6934_v9  ;;  %v6937_v55 = vpop.xlane.xlu1 %6936 }
0x2278   :  { %23630 = vrcp.f32 %v6937_v55 }
0x227a   :  { %v23621_v11 = vpop.eup %23620  ;;  %v6940_v7 = vpop.xlane.xlu0 %6939 }
0x227b   :  { %23632 = vrcp.f32 %v6940_v7  ;;  %v6943_v30 = vpop.xlane.xlu1 %6942  ;;  %v6952_v19 = vmul.f32 %v23621_v11, %v23605_v25 }
0x227c   :  { %v23623_v21 = vpop.eup %23622  ;;  %23634 = vrcp.f32 %v6943_v30 }
0x227d   :  { %22339 = vmatmul.mubr.msk.f32.vlgmr.msra.gmra.mxu1 %vm28103_vm2, %v6952_v19  ;;  %v6953_v24 = vmul.f32 %v23623_v21, %v23607_v18 }
0x227e   :  { %22347 = vmatpush3.msra.mxu1 %v25656_v35  ;;  %22348 = vmatprep.mubr.msk.f32.mxu1 %vm24384_vm1, %v28092_v62 }
0x227f   :  { %22344 = vmatmul.mubr.msk.f32.vlgmr.msra.gmra.mxu0 %vm28104_vm3, %v6953_v24  ;;  %22356 = vmatprep.subr.mxu1 %v28092_v62  ;;  %vm28106_vm3 = vmmov %vm28103_vm2 }
0x2280   :  { %v23625_v38 = vpop.eup %23624  ;;  %22352 = vmatpush3.msra.mxu0 %v25673_v33  ;;  %22353 = vmatprep.mubr.msk.f32.mxu0 %vm24384_vm1, %v28092_v62 }
0x2281   :  { %v23627_v25 = vpop.eup %23626  ;;  %22361 = vmatprep.subr.mxu0 %v28092_v62  ;;  %v6954_v4 = vmul.f32 %v23625_v38, %v23609_v41 }
0x2282   :  { %v6955_v18 = vmul.f32 %v23627_v25, %v23611_v14 }
0x2283   :  { %22349 = vmatmul.mubr.msk.f32.vlgmr.msra.gmra.mxu1 %vm28103_vm2, %v6954_v4 }
0x2284   :  { %v23629_v34 = vpop.eup %23628  ;;  %22354 = vmatmul.mubr.msk.f32.vlgmr.msra.gmra.mxu0 %vm28105_vm4, %v6955_v18  ;;  %22357 = vmatpush3.msra.mxu1 %v25678_v54  ;;  %vm28107_vm4 = vmmov %vm28103_vm2 }
0x2285   :  { %v23631_v10 = vpop.eup %23630  ;;  %22362 = vmatpush3.msra.mxu0 %v25695_v53  ;;  %22358 = vmatprep.mubr.msk.f32.mxu1 %vm24384_vm1, %v28092_v62  ;;  %v6956_v59 = vmul.f32 %v23629_v34, %v23613_v61 }
0x2286   :  { %22363 = vmatprep.mubr.msk.f32.mxu0 %vm24384_vm1, %v28092_v62  ;;  %22366 = vmatprep.subr.mxu1 %v28092_v62  ;;  %v6957_v41 = vmul.f32 %v23631_v10, %v23615_v17 }
0x2287   :  { %22371 = vmatprep.subr.mxu0 %v28092_v62  ;;  %22359 = vmatmul.mubr.msk.f32.vlgmr.msra.gmra.mxu1 %vm28106_vm3, %v6956_v59  ;;  %vm28108_vm3 = vmmov %vm28103_vm2 }
0x2288   :  { %v23633_v14 = vpop.eup %23632  ;;  %22364 = vmatmul.mubr.msk.f32.vlgmr.msra.gmra.mxu0 %vm28107_vm4, %v6957_v41  ;;  %22367 = vmatpush3.msra.mxu1 %v25698_v56  ;;  %vm28109_vm4 = vmmov %vm28103_vm2 }
0x2289   :  { %v23635_v43 = vpop.eup %23634  ;;  %22372 = vmatpush3.msra.mxu0 %v25710_v8  ;;  %22368 = vmatprep.mubr.msk.f32.mxu1 %vm24384_vm1, %v28092_v62  ;;  %v6958_v61 = vmul.f32 %v23633_v14, %v23617_v63  ;;  %v28116_v63 = vld [vmem:[#allocation67_spill] sm:$0xff] }
0x228a   :  { %22373 = vmatprep.mubr.msk.f32.mxu0 %vm24384_vm1, %v28092_v62  ;;  %22376 = vmatprep.subr.mxu1 %v28092_v62  ;;  %v6959_v17 = vmul.f32 %v23635_v43, %v23619_v58 }
0x228b   :  { %22381 = vmatprep.subr.mxu0 %v28092_v62  ;;  %22369 = vmatmul.mubr.msk.f32.vlgmr.msra.gmra.mxu1 %vm28103_vm2, %v6958_v61 }
0x228c   :  { %22374 = vmatmul.mubr.msk.f32.vlgmr.msra.gmra.mxu0 %vm28108_vm3, %v6959_v17  ;;  %22377 = vmatpush3.msra.mxu1 %v25620_v48  ;;  %vm28111_vm3 = vmmov %vm28103_vm2 }
0x228d   :  { %22382 = vmatpush3.msra.mxu0 %v25622_v50  ;;  %22378 = vmatprep.mubr.msk.f32.mxu1 %vm24384_vm1, %v28092_v62 }
0x228e   :  { %22383 = vmatprep.mubr.msk.f32.mxu0 %vm24384_vm1, %v28092_v62  ;;  %22386 = vmatprep.subr.mxu1 %v28092_v62 }
0x228f   :  { %22391 = vmatprep.subr.mxu0 %v28092_v62  ;;  %22379 = vmatmul.mubr.msk.f32.vlgmr.msra.gmra.mxu1 %vm28109_vm4, %v6952_v19  ;;  %vm28113_vm4 = vmmov %vm28103_vm2 }
0x2290   :  { %22384 = vmatmul.mubr.msk.f32.vlgmr.msra.gmra.mxu0 %vm28110_vm13, %v6953_v24  ;;  %22387 = vmatpush3.msra.mxu1 %v25631_v22  ;;  %vm28112_vm13 = vmmov %vm28103_vm2 }
0x2291   :  { %22392 = vmatpush3.msra.mxu0 %v25648_v13  ;;  %22388 = vmatprep.mubr.msk.f32.mxu1 %vm24384_vm1, %v28092_v62 }
0x2292   :  { %22393 = vmatprep.mubr.msk.f32.mxu0 %vm24384_vm1, %v28092_v62  ;;  %22396 = vmatprep.subr.mxu1 %v28092_v62 }
0x2293   :  { %22401 = vmatprep.subr.mxu0 %v28092_v62  ;;  %22389 = vmatmul.mubr.msk.f32.vlgmr.msra.gmra.mxu1 %vm28103_vm2, %v6954_v4 }
0x2294   :  { %22394 = vmatmul.mubr.msk.f32.vlgmr.msra.gmra.mxu0 %vm28111_vm3, %v6955_v18  ;;  %22397 = vmatpush3.msra.mxu1 %v25650_v20  ;;  %vm28114_vm3 = vmmov %vm28103_vm2 }
0x2295   :  { %22402 = vmatpush3.msra.mxu0 %v25671_v45  ;;  %22398 = vmatprep.mubr.msk.f32.mxu1 %vm24384_vm1, %v28092_v62 }
0x2296   :  { %22403 = vmatprep.mubr.msk.f32.mxu0 %vm24384_vm1, %v28092_v62  ;;  %22406 = vmatprep.subr.mxu1 %v28092_v62 }
0x2297   :  { %22411 = vmatprep.subr.mxu0 %v28092_v62  ;;  %22399 = vmatmul.mubr.msk.f32.vlgmr.msra.gmra.mxu1 %vm28112_vm13, %v6956_v59 }
0x2298   :  { %22404 = vmatmul.mubr.msk.f32.vlgmr.msra.gmra.mxu0 %vm28113_vm4, %v6957_v41  ;;  %22407 = vmatpush3.msra.mxu1 %v25676_v1 }
0x2299   :  { %22412 = vmatpush3.msra.mxu0 %v25693_v29  ;;  %22408 = vmatprep.mubr.msk.f32.mxu1 %vm24384_vm1, %v28092_v62 }
0x229a   :  { %22413 = vmatprep.mubr.msk.f32.mxu0 %vm24384_vm1, %v28092_v62  ;;  %22427 = vmatprep.subr.mxu0 %v28092_v62 }
0x229b   :  { %22409 = vmatmul.mubr.msk.f32.vlgmr.msra.gmra.mxu1 %vm28103_vm2, %v6958_v61  ;;  %22416 = vmatprep.subr.mxu1 %v28092_v62 }
0x229c   :  { %22414 = vmatmul.mubr.msk.f32.vlgmr.msra.gmra.mxu0 %vm28114_vm3, %v6959_v17  ;;  %22417 = vmatpush3.msra.mxu1 %v26009_v31  ;;  %v28115_v31 = vld [vmem:[#allocation66_spill] sm:$0xff] }
0x229d   :  { %22428 = vmatpush3.msra.mxu0 %v25980_v2  ;;  %22435 = vmatprep.mubr.msk.f32.mxu0 %vm24384_vm1, %v28092_v62  ;;  %v26322_v2 = vpop.permute.xlu0 %8198 }
0x229e   :  { %22429 = vmatprep.subr.mxu0 %v28092_v62  ;;  %22418 = vmatprep.subr.mxu1 %v28092_v62 }
0x229f   :  { %22430 = vmatpush3.msra.mxu0 %v25985_v51  ;;  %22419 = vmatpush3.msra.mxu1 %v26013_v12 }
0x22a0   :  { %22431 = vmatprep.subr.mxu0 %v28092_v62  ;;  %22420 = vmatprep.subr.mxu1 %v28092_v62 }
0x22a1   :  { %22432 = vmatpush3.msra.mxu0 %v25993_v39  ;;  %22421 = vmatpush3.msra.mxu1 %v26017_v27 }
0x22a2   :  { %22433 = vmatprep.subr.mxu0 %v28092_v62  ;;  %22422 = vmatprep.subr.mxu1 %v28092_v62 }
0x22a3   :  { %22434 = vmatpush3.msra.mxu0 %v28115_v31  ;;  %22423 = vmatpush3.msra.mxu1 %v28116_v63  ;;  %v28117_v63 = vld [vmem:[#allocation68_spill] sm:$0xff] }
0x22a4   :  { %22436 = vmatmul.mubr.msk.f32.vlgmr.msra.gmra.mxu0 %vm342_vm0, %v26322_v2  ;;  %22424 = vmatprep.mubr.msk.f32.mxu1 %vm24384_vm1, %v28092_v62 }
0x22a5   :  { %22438 = vmatprep.subr.mxu1 %v28092_v62  ;;  %22449 = vmatprep.subr.mxu0 %v28092_v62 }
0x22a6   :  { %22450 = vmatpush3.msra.mxu0 %v26073_v60  ;;  %22457 = vmatprep.mubr.msk.f32.mxu0 %vm24384_vm1, %v28092_v62 }
0x22a7   :  { %22451 = vmatprep.subr.mxu0 %v28092_v62 }
0x22a8   :  { %22452 = vmatpush3.msra.mxu0 %v26075_v6 }
0x22a9   :  { %22453 = vmatprep.subr.mxu0 %v28092_v62 }
0x22aa   :  { %22454 = vmatpush3.msra.mxu0 %v26079_v26 }
0x22ab   :  { %22455 = vmatprep.subr.mxu0 %v28092_v62 }
0x22ac   :  { %22456 = vmatpush3.msra.mxu0 %v26083_v47 }
0x22ad   :  { %22471 = vmatprep.subr.mxu0 %v28092_v62 }
0x233d   :  { %v7029_v51 = vpop.f32.mrf.mxu1 }
0x233f   :  { %v22340_v39 = vpop.f32.mrf.mxu1  ;;  %v7102_v12 = vpop.f32.mrf.mxu0 }
0x2340   :  { %v8112_v27 = vrot.slane %v7102_v12, 7  ;;  %v28118_v12 = vld [vmem:[#allocation69_spill] sm:$0xff] }
0x2341   :  { %v22345_v60 = vpop.f32.mrf.mxu0 }
0x2342   :  { %v8113_v6 = vsel %vm5669_vm10, %v8112_v27, %v7029_v51 }
0x2343   :  { %v7175_v58 = vpop.f32.mrf.mxu1 }
0x2344   :  { %v8114_v52 = vrot.slane %v7175_v58, 6  ;;  %v7248_v44 = vpop.f32.mrf.mxu0 }
0x2345   :  { %v8116_v5 = vrot.slane %v7248_v44, 5  ;;  %v22350_v15 = vpop.f32.mrf.mxu1 }
0x2346   :  { %v8115_v26 = vsel %vm5672_vm11, %v8114_v52, %v8113_v6  ;;  %v22355_v9 = vpop.f32.mrf.mxu0  ;;  %v28119_v6 = vld [vmem:[#allocation70_spill] sm:$0xff] }
0x2347   :  { %v7321_v55 = vpop.f32.mrf.mxu1  ;;  %v8117_v7 = vsel %vm5675_vm14, %v8116_v5, %v8115_v26  ;;  %v28120_v9 = vld [vmem:[#allocation71_spill] sm:$0xff] }
0x2348   :  { %v8118_v11 = vrot.slane %v7321_v55, 4  ;;  %v7394_v47 = vpop.f32.mrf.mxu0 }
0x2349   :  { %v8120_v30 = vrot.slane %v7394_v47, 3  ;;  %v22360_v19 = vpop.f32.mrf.mxu1 }
0x234a   :  { %v8119_v21 = vsel %vm5678_vm15, %v8118_v11, %v8117_v7  ;;  %v22365_v24 = vpop.f32.mrf.mxu0 }
0x234b   :  { %v7467_v38 = vpop.f32.mrf.mxu1  ;;  %v8121_v18 = vsel %vm5681_vm7, %v8120_v30, %v8119_v21 }
0x234c   :  { %v8122_v25 = vrot.slane %v7467_v38, 2  ;;  %v7540_v4 = vpop.f32.mrf.mxu0 }
0x234d   :  { %v8124_v34 = vrot.slane %v7540_v4, 1  ;;  %v22370_v10 = vpop.f32.mrf.mxu1 }
0x234e   :  { %v8123_v59 = vsel %vm5684_vm6, %v8122_v25, %v8121_v18  ;;  %v22375_v41 = vpop.f32.mrf.mxu0 }
0x234f   :  { %v8125_v14 = vsel %vm5687_vm5, %v8124_v34, %v8123_v59  ;;  %v7610_v43 = vpop.f32.mrf.mxu1 }
0x2350   :  { %v7680_v61 = vpop.f32.mrf.mxu0  ;;  %22425 = vmatmul.mubr.msk.f32.vlgmr.msra.gmra.mxu1 %vm342_vm0, %v8125_v14 }
0x2351   :  { %v8280_v17 = vrot.slane %v7680_v61, 7  ;;  %v22380_v31 = vpop.f32.mrf.mxu1  ;;  %22439 = vmatpush3.msra.mxu1 %v28117_v63  ;;  %22446 = vmatprep.mubr.msk.f32.mxu1 %vm24384_vm1, %v28092_v62 }
0x2352   :  { %v22385_v51 = vpop.f32.mrf.mxu0  ;;  %22440 = vmatprep.subr.mxu1 %v28092_v62 }
0x2353   :  { %v7750_v39 = vpop.f32.mrf.mxu1  ;;  %22441 = vmatpush3.msra.mxu1 %v28118_v12  ;;  %v8281_v58 = vsel %vm5669_vm10, %v8280_v17, %v7610_v43  ;;  %v26374_v43 = vld [vmem:[#allocation27 + $0x8] sm:$0xff]  ;;  %v26378_v17 = vld [vmem:[#allocation27] sm:$0xff] }
0x2354   :  { %v8282_v27 = vrot.slane %v7750_v39, 6  ;;  %v7820_v60 = vpop.f32.mrf.mxu0  ;;  %22442 = vmatprep.subr.mxu1 %v28092_v62 }
0x2355   :  { %v8284_v52 = vrot.slane %v7820_v60, 5  ;;  %v22390_v44 = vpop.f32.mrf.mxu1  ;;  %22443 = vmatpush3.msra.mxu1 %v28119_v6 }
0x2356   :  { %v8283_v5 = vsel %vm5672_vm11, %v8282_v27, %v8281_v58  ;;  %v22395_v15 = vpop.f32.mrf.mxu0  ;;  %22444 = vmatprep.subr.mxu1 %v28092_v62 }
0x2357   :  { %v7890_v26 = vpop.f32.mrf.mxu1  ;;  %22445 = vmatpush3.msra.mxu1 %v28120_v9  ;;  %v8285_v47 = vsel %vm5675_vm14, %v8284_v52, %v8283_v5  ;;  %v28123_v52 = vld [vmem:[#allocation48_spill] sm:$0xff] }
0x2358   :  { %v8286_v55 = vrot.slane %v7890_v26, 4  ;;  %v7960_v11 = vpop.f32.mrf.mxu0  ;;  %22460 = vmatprep.subr.mxu1 %v28092_v62 }
0x2359   :  { %v8288_v7 = vrot.slane %v7960_v11, 3  ;;  %v22400_v30 = vpop.f32.mrf.mxu1 }
0x235a   :  { %v8287_v19 = vsel %vm5678_vm15, %v8286_v55, %v8285_v47  ;;  %v22405_v21 = vpop.f32.mrf.mxu0 }
0x235b   :  { %v8030_v24 = vpop.f32.mrf.mxu1  ;;  %v8289_v4 = vsel %vm5681_vm7, %v8288_v7, %v8287_v19 }
0x235c   :  { %v8290_v38 = vrot.slane %v8030_v24, 2  ;;  %v8100_v25 = vpop.f32.mrf.mxu0 }
0x235d   :  { %v8292_v18 = vrot.slane %v8100_v25, 1  ;;  %v22410_v34 = vpop.f32.mrf.mxu1 }
0x235e   :  { %v8291_v10 = vsel %vm5684_vm6, %v8290_v38, %v8289_v4  ;;  %v22415_v59 = vpop.f32.mrf.mxu0 }
0x235f   :  { %v8293_v41 = vsel %vm5687_vm5, %v8292_v18, %v8291_v10 }
0x2360   :  { %22447 = vmatmul.mubr.msk.f32.vlgmr.msra.gmra.mxu1 %vm342_vm0, %v8293_v41 }
0x2361   :  { %22461 = vmatpush3.msra.mxu1 %v26059_v40  ;;  %22468 = vmatprep.mubr.msk.f32.mxu1 %vm24384_vm1, %v28092_v62 }
0x2362   :  { %22462 = vmatprep.subr.mxu1 %v28092_v62 }
0x2363   :  { %22463 = vmatpush3.msra.mxu1 %v26065_v46 }
0x2364   :  { %v8268_v14 = vpop.f32.mrf.mxu0  ;;  %22464 = vmatprep.subr.mxu1 %v28092_v62 }
0x2365   :  { %22465 = vmatpush3.msra.mxu1 %v26374_v43 }
0x2366   :  { %v22437_v61 = vpop.f32.mrf.mxu0  ;;  %22466 = vmatprep.subr.mxu1 %v28092_v62 }
0x2367   :  { %22467 = vmatpush3.msra.mxu1 %v26378_v17 }
0x2368   :  { %22482 = vmatprep.subr.mxu1 %v28092_v62 }
0x2410   :  { %v8194_v40 = vpop.f32.mrf.mxu1 }
0x2411   :  { %v8269_v63 = vadd.f32 %v8268_v14, %v8194_v40 }
0x2412   :  { %v22426_v31 = vpop.f32.mrf.mxu1 }
0x2420   :  { %v8362_v46 = vpop.f32.mrf.mxu1 }
0x2421   :  { %v8366_v51 = vadd.f32 %v8362_v46, %v8269_v63 }
0x2422   :  { %v22448_v39 = vpop.f32.mrf.mxu1 }
0x2423   :  { %23636 = vtanh.f32 %v8366_v51 }
0x2430   :  { %v23637_v12 = vpop.eup %23636 }
0x2431   :  { %22458 = vmatmul.mubr.msk.f32.vlgmr.msra.gmra.mxu0 %vm342_vm0, %v23637_v12  ;;  %22469 = vmatmul.mubr.msk.f32.vlgmr.msra.gmra.mxu1 %vm342_vm0, %v23637_v12 }
0x2432   :  { %22472 = vmatpush3.msra.mxu0 %v26091_v36  ;;  %22483 = vmatpush3.xpose.msk.msra.mxu1 %vm342_vm0, %v25732_v16  ;;  %v26397_v36 = vld [vmem:[#allocation28] sm:$0xff] }
0x2433   :  { %22473 = vmatprep.subr.mxu0 %v28092_v62  ;;  %22479 = vmatprep.mubr.msk.f32.mxu0 %vm24384_vm1, %v28092_v62 }
0x2434   :  { %22474 = vmatpush3.msra.mxu0 %v26099_v0  ;;  %22484 = vmatprep.mubr.msk.f32.mxu1 %vm24384_vm1, %v28092_v62  ;;  %v28121_v0 = vld [vmem:[#allocation55_spill] sm:$0xff] }
0x2435   :  { %22475 = vmatprep.subr.mxu0 %v28092_v62  ;;  %22492 = vmatprep.subr.mxu1 %v28092_v62 }
0x2436   :  { %22476 = vmatpush3.msra.mxu0 %v26106_v42 }
0x2437   :  { %22477 = vmatprep.subr.mxu0 %v28092_v62 }
0x2438   :  { %22478 = vmatpush3.msra.mxu0 %v26397_v36 }
0x2439   :  { %22480 = vmatmul.mubr.msk.f32.vlgmr.msra.gmra.mxu0 %vm342_vm0, %v26322_v2  ;;  %22487 = vmatprep.subr.mxu0 %v28092_v62 }
0x243a   :  { %22488 = vmatpush3.xpose.msk.msra.mxu0 %vm342_vm0, %v28121_v0  ;;  %22489 = vmatprep.mubr.msk.f32.mxu0 %vm24384_vm1, %v28092_v62 }
0x243b   :  { %22497 = vmatprep.subr.mxu0 %v28092_v62 }
0x24f1   :  { %v26408_v42 = vpop.f32.mrf.mxu0  ;;  %v8528_v27 = vpop.f32.mrf.mxu1 }
0x24f2   :  { %28122 = vst [vmem:[#allocation66_spill] sm:$0xff] %v26408_v42  ;;  %v8532_v44 = vadd.f32 %v8528_v27, %v28123_v52 }
0x24f3   :  { %v22459_v60 = vpop.f32.mrf.mxu0  ;;  %v22470_v58 = vpop.f32.mrf.mxu1 }
0x24f9   :  { %v8599_v6 = vpop.f32.mrf.mxu0 }
0x24fa   :  { %v8603_v5 = vadd.f32 %v8599_v6, %v8532_v44 }
0x24fb   :  { %v22481_v2 = vpop.f32.mrf.mxu0 }
0x24fc   :  { %23638 = vtanh.f32 %v8603_v5  ;;  %v20856_v26 = vmul.f32 -1.442695, %v8603_v5 }
0x24fe   :  { %23640 = vpow2.f32 %v20856_v26 }
0x2509   :  { %v23639_v15 = vpop.eup %23638 }
0x250a   :  { %8613 = vrot.lane.b32.xlu1 %v23639_v15, %s24386_s18 }
0x250b   :  { %v23641_v9 = vpop.eup %23640 }
0x250c   :  { %v8607_v55 = vadd.f32 1.0, %v23641_v9  ;;  %v28124_v9 = vld [vmem:[#allocation57_spill] sm:$0xff] }
0x250e   :  { %23642 = vrcp.f32 %v8607_v55 }
0x251b   :  { %v23643_v11 = vpop.eup %23642 }
0x251c   :  { %v8611_v30 = vmul.f32 %v23643_v11, %v26125_v3 }
0x257c   :  { %v8614_v47 = vpop.permute.xlu1 %8613 }
0x257d   :  { %v8616_v7 = vmul.f32 %v23643_v11, %v8614_v47 }
0x257f   :  { %8618 = vrot.lane.b32.xlu1 %v8616_v7, %s24387_s8  ;;  %v28126_v7 = vld [vmem:[#allocation53_spill] sm:$0xff] }
0x25f1   :  { %v8619_v19 = vpop.permute.xlu1 %8618 }
0x25f2   :  { %v26414_v21 = vadd.f32 %v8619_v19, %v8611_v30  ;;  %v28127_v19 = vld [vmem:[#allocation54_spill] sm:$0xff] }
0x25f4   :  { %23644 = vtanh.f32 %v26414_v21 }
0x2601   :  { %v23645_v24 = vpop.eup %23644 }
0x2602   :  { %8624 = vrot.lane.b32.xlu0 %v23645_v24, %s24386_s18 }
0x2674   :  { %v8625_v38 = vpop.permute.xlu0 %8624 }
0x2675   :  { %v26418_v25 = vmul.f32 %v23643_v11, %v8625_v38  ;;  %v28125_v11 = vld [vmem:[#allocation56_spill] sm:$0xff] }
0x2677   :  { %v8629_v4 = vcombine.high %v26418_v25, %v26418_v25  ;;  %v8636_v18 = vrot.slane %v26418_v25, %v25767_v37 }
0x2679   :  { %v8643_v34 = vrot.slane %v8629_v4, %v25767_v37  ;;  %v8644_v3 = vcombine.high %v8636_v18, %v8636_v18  ;;  %v8652_v10 = vrot.slane %v8636_v18, %v25767_v37 }
0x267b   :  { %v8681_v59 = vrot.slane %v8652_v10, %v25772_v57  ;;  %v8666_v41 = vrot.slane %v8644_v3, %v25767_v37  ;;  %v8674_v14 = vcombine.high %v8652_v10, %v8652_v10  ;;  %v8645_v61 = vcombine.high %v8643_v34, %v8643_v34 }
0x267c   :  { %v8659_v46 = vrot.slane %v8643_v34, %v25767_v37 }
0x267d   :  { %8682 = vrot.lane.b32.xlu1 %v8681_v59, %s24387_s8  ;;  %v8759_v40 = vrot.slane %v8666_v41, %v25772_v57  ;;  %v8676_v31 = vcombine.high %v8666_v41, %v8666_v41  ;;  %v8837_v63 = vrot.slane %v8674_v14, %v25772_v57  ;;  %v8673_v39 = vrot.slane %v8645_v61, %v25767_v37 }
0x267e   :  { %v8993_v12 = vrot.slane %v8659_v46, %v25772_v57  ;;  %v8675_v27 = vcombine.high %v8659_v46, %v8659_v46 }
0x267f   :  { %8760 = vrot.lane.b32.xlu0 %v8759_v40, %s24387_s8  ;;  %v8915_v51 = vrot.slane %v8676_v31, %v25772_v57  ;;  %v9071_v60 = vrot.slane %v8673_v39, %v25772_v57  ;;  %v8677_v58 = vcombine.high %v8673_v39, %v8673_v39  ;;  %v28130_v40 = vld [vmem:[#allocation60_spill] sm:$0xff] }
0x2680   :  { %v9149_v52 = vrot.slane %v8675_v27, %v25772_v57  ;;  %vm28131_vm13 = vcmp.gt.f32.partialorder %v28130_v40, 0.0 }
0x2681   :  { %8838 = vrot.lane.b32.xlu1 %v8837_v63, %s24387_s8  ;;  %v9227_v44 = vrot.slane %v8677_v58, %v25772_v57 }
0x2683   :  { %8916 = vrot.lane.b32.xlu0 %v8915_v51, %s24387_s8  ;;  %v28132_v51 = vld [vmem:[#allocation61_spill] sm:$0xff] }
0x2684   :  { %vm28133_vm4 = vcmp.gt.f32.partialorder %v28132_v51, 0.0 }
0x2685   :  { %8994 = vrot.lane.b32.xlu1 %v8993_v12, %s24387_s8 }
0x2687   :  { %9072 = vrot.lane.b32.xlu0 %v9071_v60, %s24387_s8 }
0x2689   :  { %9150 = vrot.lane.b32.xlu1 %v9149_v52, %s24387_s8  ;;  %v28134_v52 = vld [vmem:[#allocation62_spill] sm:$0xff] }
0x268a   :  { %vm28135_vm2 = vcmp.gt.f32.partialorder %v28134_v52, 0.0 }
0x268b   :  { %9228 = vrot.lane.b32.xlu0 %v9227_v44, %s24387_s8 }
0x26ef   :  { %v8683_v6 = vpop.permute.xlu1 %8682 }
0x26f0   :  { %22485 = vmatmul.mubr.msk.f32.vlgmr.msra.gmra.mxu1 %vm342_vm0, %v8683_v6 }
0x26f1   :  { %22493 = vmatpush3.xpose.msk.msra.mxu1 %vm342_vm0, %v25741_v32  ;;  %v8761_v5 = vpop.permute.xlu0 %8760  ;;  %22494 = vmatprep.mubr.msk.f32.mxu1 %vm24384_vm1, %v28092_v62 }
0x26f2   :  { %22490 = vmatmul.mubr.msk.f32.vlgmr.msra.gmra.mxu0 %vm342_vm0, %v8761_v5  ;;  %22502 = vmatprep.subr.mxu1 %v28092_v62 }
0x26f3   :  { %22498 = vmatpush3.xpose.msk.msra.mxu0 %vm342_vm0, %v25734_v49  ;;  %v8839_v2 = vpop.permute.xlu1 %8838  ;;  %22499 = vmatprep.mubr.msk.f32.mxu0 %vm24384_vm1, %v28092_v62 }
0x26f4   :  { %22495 = vmatmul.mubr.msk.f32.vlgmr.msra.gmra.mxu1 %vm342_vm0, %v8839_v2  ;;  %22507 = vmatprep.subr.mxu0 %v28092_v62  ;;  %v28136_v2 = vld [vmem:[#allocation63_spill] sm:$0xff] }
0x26f5   :  { %22503 = vmatpush3.xpose.msk.msra.mxu1 %vm342_vm0, %v25807_v23  ;;  %v8917_v15 = vpop.permute.xlu0 %8916  ;;  %22504 = vmatprep.mubr.msk.f32.mxu1 %vm24384_vm1, %v28092_v62  ;;  %vm28137_vm3 = vcmp.gt.f32.partialorder %v28136_v2, 0.0 }
0x26f6   :  { %22500 = vmatmul.mubr.msk.f32.vlgmr.msra.gmra.mxu0 %vm342_vm0, %v8917_v15  ;;  %22512 = vmatprep.subr.mxu1 %v28092_v62 }
0x26f7   :  { %22508 = vmatpush3.xpose.msk.msra.mxu0 %vm342_vm0, %v25743_v28  ;;  %v8995_v26 = vpop.permute.xlu1 %8994  ;;  %22509 = vmatprep.mubr.msk.f32.mxu0 %vm24384_vm1, %v28092_v62 }
0x26f8   :  { %22505 = vmatmul.mubr.msk.f32.vlgmr.msra.gmra.mxu1 %vm342_vm0, %v8995_v26  ;;  %22517 = vmatprep.subr.mxu0 %v28092_v62 }
0x26f9   :  { %22513 = vmatpush3.xpose.msk.msra.mxu1 %vm342_vm0, %v28124_v9  ;;  %v9073_v55 = vpop.permute.xlu0 %9072  ;;  %22514 = vmatprep.mubr.msk.f32.mxu1 %vm24384_vm1, %v28092_v62 }
0x26fa   :  { %22510 = vmatmul.mubr.msk.f32.vlgmr.msra.gmra.mxu0 %vm342_vm0, %v9073_v55  ;;  %22522 = vmatprep.subr.mxu1 %v28092_v62 }
0x26fb   :  { %22518 = vmatpush3.xpose.msk.msra.mxu0 %vm342_vm0, %v28125_v11  ;;  %v9151_v47 = vpop.permute.xlu1 %9150  ;;  %22519 = vmatprep.mubr.msk.f32.mxu0 %vm24384_vm1, %v28092_v62 }
0x26fc   :  { %22515 = vmatmul.mubr.msk.f32.vlgmr.msra.gmra.mxu1 %vm342_vm0, %v9151_v47  ;;  %22527 = vmatprep.subr.mxu0 %v28092_v62 }
0x26fd   :  { %22523 = vmatpush3.msra.mxu1 %v28126_v7  ;;  %v9229_v30 = vpop.permute.xlu0 %9228  ;;  %22524 = vmatprep.mubr.msk.f32.mxu1 %vm24384_vm1, %v28092_v62 }
0x26fe   :  { %22520 = vmatmul.mubr.msk.f32.vlgmr.msra.gmra.mxu0 %vm342_vm0, %v9229_v30  ;;  %22532 = vmatprep.subr.mxu1 %v28092_v62 }
0x26ff   :  { %22528 = vmatpush3.msra.mxu0 %v28127_v19  ;;  %22529 = vmatprep.mubr.msk.f32.mxu0 %vm24384_vm1, %v28092_v62 }
0x2700   :  { %22537 = vmatprep.subr.mxu0 %v28092_v62 }
0x27b0   :  { %v8752_v24 = vpop.f32.mrf.mxu1 }
0x27b1   :  { %v9302_v4 = vsel %vm4410_vm8, %v8752_v24, -1e+30  ;;  %v28138_v24 = vld [vmem:[#allocation64_spill] sm:$0xff] }
0x27b2   :  { %v9310_v18 = vsel %vm4426_vm9, %v9302_v4, -inf  ;;  %v22486_v34 = vpop.f32.mrf.mxu1  ;;  %v8830_v3 = vpop.f32.mrf.mxu0 }
0x27b3   :  { %v9303_v59 = vsel %vm4411_vm12, %v8830_v3, -1e+30  ;;  %9311 = vmax.xlane.f32.xlu1 %v9310_v18 }
0x27b4   :  { %v9313_v41 = vsel %vm4426_vm9, %v9303_v59, -inf  ;;  %v22491_v14 = vpop.f32.mrf.mxu0  ;;  %v8908_v61 = vpop.f32.mrf.mxu1 }
0x27b5   :  { %v9304_v31 = vsel %vm28131_vm13, %v8908_v61, -1e+30  ;;  %9314 = vmax.xlane.f32.xlu0 %v9313_v41  ;;  %vm28139_vm13 = vcmp.gt.f32.partialorder %v28138_v24, 0.0  ;;  %v28140_v41 = vld [vmem:[#allocation65_spill] sm:$0xff] }
0x27b6   :  { %v22496_v63 = vpop.f32.mrf.mxu1  ;;  %v8986_v46 = vpop.f32.mrf.mxu0  ;;  %v9316_v12 = vsel %vm4426_vm9, %v9304_v31, -inf }
0x27b7   :  { %v9305_v39 = vsel %vm28133_vm4, %v8986_v46, -1e+30  ;;  %vm28141_vm4 = vcmp.gt.f32.partialorder %v28140_v41, 0.0 }
0x27b8   :  { %v9319_v27 = vsel %vm4426_vm9, %v9305_v39, -inf  ;;  %v22501_v60 = vpop.f32.mrf.mxu0  ;;  %v9064_v58 = vpop.f32.mrf.mxu1 }
0x27b9   :  { %v9306_v44 = vsel %vm28135_vm2, %v9064_v58, -1e+30  ;;  %9317 = vmax.xlane.f32.xlu0 %v9316_v12  ;;  %9320 = vmax.xlane.f32.xlu1 %v9319_v27  ;;  %vm28142_vm2 = vcmask 64512  }
0x27ba   :  { %v22506_v6 = vpop.f32.mrf.mxu1  ;;  %v9142_v5 = vpop.f32.mrf.mxu0  ;;  %v9322_v26 = vsel %vm4426_vm9, %v9306_v44, -inf }
0x27bb   :  { %v9307_v15 = vsel %vm28137_vm3, %v9142_v5, -1e+30  ;;  %vm28143_vm3 = vmmov %vm28142_vm2 }
0x27bc   :  { %v9325_v55 = vsel %vm4426_vm9, %v9307_v15, -inf  ;;  %v22511_v47 = vpop.f32.mrf.mxu0  ;;  %v9220_v30 = vpop.f32.mrf.mxu1 }
0x27bd   :  { %v9308_v18 = vsel %vm28139_vm13, %v9220_v30, -1e+30  ;;  %9323 = vmax.xlane.f32.xlu0 %v9322_v26  ;;  %9326 = vmax.xlane.f32.xlu1 %v9325_v55  ;;  %vm28144_vm13 = vmmov %vm28142_vm2 }
0x27be   :  { %v22516_v34 = vpop.f32.mrf.mxu1  ;;  %v9298_v3 = vpop.f32.mrf.mxu0  ;;  %v9328_v61 = vsel %vm4426_vm9, %v9308_v18, -inf }
0x27bf   :  { %v9309_v14 = vsel %vm28141_vm4, %v9298_v3, -1e+30  ;;  %vm28145_vm4 = vmmov %vm28142_vm2 }
0x27c0   :  { %v9331_v63 = vsel %vm4426_vm9, %v9309_v14, -inf  ;;  %v22521_v46 = vpop.f32.mrf.mxu0 }
0x27c1   :  { %9329 = vmax.xlane.f32.xlu0 %v9328_v61  ;;  %9332 = vmax.xlane.f32.xlu1 %v9331_v63 }
0x283c   :  { %v9312_v12 = vpop.xlane.xlu1 %9311 }
0x283d   :  { %v9334_v27 = vsub.f32 %v9302_v4, %v9312_v12 }
0x283e   :  { %v9315_v60 = vpop.xlane.xlu0 %9314 }
0x283f   :  { %v9342_v58 = vmul.f32 1.442695, %v9334_v27  ;;  %v9335_v6 = vsub.f32 %v9303_v59, %v9315_v60 }
0x2841   :  { %23646 = vpow2.f32 %v9342_v58  ;;  %v9344_v5 = vmul.f32 1.442695, %v9335_v6 }
0x2842   :  { %v9318_v26 = vpop.xlane.xlu0 %9317  ;;  %v9321_v55 = vpop.xlane.xlu1 %9320 }
0x2843   :  { %23648 = vpow2.f32 %v9344_v5  ;;  %v9336_v47 = vsub.f32 %v9304_v31, %v9318_v26  ;;  %v9337_v30 = vsub.f32 %v9305_v39, %v9321_v55 }
0x2845   :  { %v9346_v34 = vmul.f32 1.442695, %v9336_v47  ;;  %v9348_v3 = vmul.f32 1.442695, %v9337_v30 }
0x2846   :  { %v9324_v42 = vpop.xlane.xlu0 %9323  ;;  %v9327_v41 = vpop.xlane.xlu1 %9326 }
0x2847   :  { %23650 = vpow2.f32 %v9346_v34  ;;  %v9338_v46 = vsub.f32 %v9306_v44, %v9324_v42  ;;  %v9339_v61 = vsub.f32 %v9307_v15, %v9327_v41 }
0x2848   :  { %23652 = vpow2.f32 %v9348_v3 }
0x2849   :  { %v9350_v63 = vmul.f32 1.442695, %v9338_v46  ;;  %v9352_v4 = vmul.f32 1.442695, %v9339_v61 }
0x284a   :  { %v9330_v12 = vpop.xlane.xlu0 %9329  ;;  %v9333_v27 = vpop.xlane.xlu1 %9332 }
0x284b   :  { %23654 = vpow2.f32 %v9350_v63  ;;  %v9340_v59 = vsub.f32 %v9308_v18, %v9330_v12  ;;  %v9341_v60 = vsub.f32 %v9309_v14, %v9333_v27 }
0x284c   :  { %23656 = vpow2.f32 %v9352_v4 }
0x284d   :  { %v9354_v58 = vmul.f32 1.442695, %v9340_v59  ;;  %v9356_v6 = vmul.f32 1.442695, %v9341_v60 }
0x284e   :  { %v23647_v31 = vpop.eup %23646 }
0x284f   :  { %23658 = vpow2.f32 %v9354_v58  ;;  %v9358_v39 = vsel %vm4426_vm9, %v23647_v31, 0.0 }
0x2850   :  { %v23649_v5 = vpop.eup %23648  ;;  %23660 = vpow2.f32 %v9356_v6  ;;  %9359 = vadd.xlane.f32.xlu0 %v9358_v39 }
0x2851   :  { %v9361_v42 = vsel %vm4426_vm9, %v23649_v5, 0.0 }
0x2852   :  { %9362 = vadd.xlane.f32.xlu1 %v9361_v42 }
0x2854   :  { %v23651_v44 = vpop.eup %23650 }
0x2855   :  { %v23653_v15 = vpop.eup %23652  ;;  %v9364_v41 = vsel %vm4426_vm9, %v23651_v44, 0.0 }
0x2856   :  { %9365 = vadd.xlane.f32.xlu0 %v9364_v41  ;;  %v9367_v18 = vsel %vm4426_vm9, %v23653_v15, 0.0 }
0x2857   :  { %9368 = vadd.xlane.f32.xlu1 %v9367_v18 }
0x2858   :  { %v23655_v14 = vpop.eup %23654 }
0x2859   :  { %v23657_v26 = vpop.eup %23656  ;;  %v9370_v55 = vsel %vm4426_vm9, %v23655_v14, 0.0 }
0x285a   :  { %9371 = vadd.xlane.f32.xlu0 %v9370_v55  ;;  %v9373_v47 = vsel %vm4426_vm9, %v23657_v26, 0.0 }
0x285b   :  { %9374 = vadd.xlane.f32.xlu1 %v9373_v47 }
0x285c   :  { %v23659_v30 = vpop.eup %23658 }
0x285d   :  { %v23661_v34 = vpop.eup %23660  ;;  %v9376_v3 = vsel %vm4426_vm9, %v23659_v30, 0.0 }
0x285e   :  { %9377 = vadd.xlane.f32.xlu0 %v9376_v3  ;;  %v9379_v46 = vsel %vm4426_vm9, %v23661_v34, 0.0 }
0x285f   :  { %9380 = vadd.xlane.f32.xlu1 %v9379_v46 }
0x2874   :  { %10636 = vrot.lane.b32.xlu0 %v26418_v25, %s24387_s8 }
0x28d9   :  { %v9360_v61 = vpop.xlane.xlu0 %9359 }
0x28da   :  { %23662 = vrcp.f32 %v9360_v61  ;;  %v26607_v61 = vld [vmem:[#allocation30 + $0x10] sm:$0xff] }
0x28db   :  { %v9363_v63 = vpop.xlane.xlu1 %9362 }
0x28dc   :  { %23664 = vrcp.f32 %v9363_v63  ;;  %v26610_v63 = vld [vmem:[#allocation31 + $0x10] sm:$0xff] }
0x28df   :  { %v9366_v4 = vpop.xlane.xlu0 %9365 }
0x28e0   :  { %23666 = vrcp.f32 %v9366_v4  ;;  %v9369_v12 = vpop.xlane.xlu1 %9368  ;;  %v26615_v4 = vld [vmem:[#allocation30 + $0x8] sm:$0xff] }
0x28e1   :  { %23668 = vrcp.f32 %v9369_v12  ;;  %v26618_v12 = vld [vmem:[#allocation31 + $0x8] sm:$0xff] }
0x28e2   :  { %28155 = vst [vmem:[#allocation67_spill] sm:$0xff] %v26618_v12 }
0x28e3   :  { %v9372_v27 = vpop.xlane.xlu0 %9371 }
0x28e4   :  { %23670 = vrcp.f32 %v9372_v27  ;;  %v9375_v59 = vpop.xlane.xlu1 %9374 }
0x28e5   :  { %23672 = vrcp.f32 %v9375_v59  ;;  %v26625_v59 = vld [vmem:[#allocation30] sm:$0xff] }
0x28e6   :  { %28156 = vst [vmem:[#allocation68_spill] sm:$0xff] %v26625_v59 }
0x28e7   :  { %v23663_v60 = vpop.eup %23662  ;;  %v9378_v58 = vpop.xlane.xlu0 %9377 }
0x28e8   :  { %23674 = vrcp.f32 %v9378_v58  ;;  %v9381_v6 = vpop.xlane.xlu1 %9380  ;;  %v9390_v39 = vmul.f32 %v23663_v60, %v23647_v31  ;;  %v26628_v60 = vld [vmem:[#allocation31] sm:$0xff]  ;;  %v26637_v58 = vld [vmem:[#allocation34 + $0x18] sm:$0xff] }
0x28e9   :  { %v23665_v42 = vpop.eup %23664  ;;  %23676 = vrcp.f32 %v9381_v6  ;;  %28157 = vst [vmem:[#allocation69_spill] sm:$0xff] %v26628_v60  ;;  %28158 = vst [vmem:[#allocation70_spill] sm:$0xff] %v26637_v58  ;;  %v26643_v6 = vld [vmem:[#allocation34 + $0x10] sm:$0xff] }
0x28ea   :  { %v9391_v25 = vmul.f32 %v23665_v42, %v23649_v5  ;;  %22525 = vmatmul.mubr.msk.f32.vlgmr.msra.gmra.mxu1 %vm28142_vm2, %v9390_v39  ;;  %28159 = vst [vmem:[#allocation71_spill] sm:$0xff] %v26643_v6  ;;  %v26651_v42 = vld [vmem:[#allocation34] sm:$0xff] }
0x28eb   :  { %22533 = vmatpush3.msra.mxu1 %v25656_v35  ;;  %22534 = vmatprep.mubr.msk.f32.mxu1 %vm24384_vm1, %v28092_v62  ;;  %v26623_v27 = vpop.permute.xlu0 %10636  ;;  %28161 = vst [vmem:[#allocation48_spill] sm:$0xff] %v26651_v42 }
0x28ec   :  { %22530 = vmatmul.mubr.msk.f32.vlgmr.msra.gmra.mxu0 %vm28143_vm3, %v9391_v25  ;;  %22542 = vmatprep.subr.mxu1 %v28092_v62  ;;  %vm28146_vm3 = vmmov %vm28142_vm2 }
0x28ed   :  { %v23667_v41 = vpop.eup %23666  ;;  %22538 = vmatpush3.msra.mxu0 %v25673_v33  ;;  %22539 = vmatprep.mubr.msk.f32.mxu0 %vm24384_vm1, %v28092_v62 }
0x28ee   :  { %v23669_v31 = vpop.eup %23668  ;;  %22547 = vmatprep.subr.mxu0 %v28092_v62  ;;  %v9392_v5 = vmul.f32 %v23667_v41, %v23651_v44 }
0x28ef   :  { %v9393_v18 = vmul.f32 %v23669_v31, %v23653_v15 }
0x28f0   :  { %22535 = vmatmul.mubr.msk.f32.vlgmr.msra.gmra.mxu1 %vm28144_vm13, %v9392_v5  ;;  %vm28147_vm13 = vmmov %vm28142_vm2 }
0x28f1   :  { %v23671_v55 = vpop.eup %23670  ;;  %22540 = vmatmul.mubr.msk.f32.vlgmr.msra.gmra.mxu0 %vm28145_vm4, %v9393_v18  ;;  %22543 = vmatpush3.msra.mxu1 %v25678_v54  ;;  %vm28148_vm4 = vmmov %vm28142_vm2 }
0x28f2   :  { %v23673_v47 = vpop.eup %23672  ;;  %v9394_v3 = vmul.f32 %v23671_v55, %v23655_v14  ;;  %22548 = vmatpush3.msra.mxu0 %v25695_v53  ;;  %22544 = vmatprep.mubr.msk.f32.mxu1 %vm24384_vm1, %v28092_v62 }
0x28f3   :  { %v9395_v46 = vmul.f32 %v23673_v47, %v23657_v26  ;;  %22549 = vmatprep.mubr.msk.f32.mxu0 %vm24384_vm1, %v28092_v62  ;;  %22552 = vmatprep.subr.mxu1 %v28092_v62 }
0x28f4   :  { %22557 = vmatprep.subr.mxu0 %v28092_v62  ;;  %22545 = vmatmul.mubr.msk.f32.vlgmr.msra.gmra.mxu1 %vm28142_vm2, %v9394_v3 }
0x28f5   :  { %v23675_v44 = vpop.eup %23674  ;;  %22550 = vmatmul.mubr.msk.f32.vlgmr.msra.gmra.mxu0 %vm28146_vm3, %v9395_v46  ;;  %22553 = vmatpush3.msra.mxu1 %v25698_v56  ;;  %vm28149_vm3 = vmmov %vm28142_vm2 }
0x28f6   :  { %v23677_v15 = vpop.eup %23676  ;;  %v9396_v14 = vmul.f32 %v23675_v44, %v23659_v30  ;;  %22558 = vmatpush3.msra.mxu0 %v25710_v8  ;;  %22554 = vmatprep.mubr.msk.f32.mxu1 %vm24384_vm1, %v28092_v62  ;;  %v26597_v30 = vld [vmem:[#allocation31 + $0x18] sm:$0xff] }
0x28f7   :  { %v9397_v26 = vmul.f32 %v23677_v15, %v23661_v34  ;;  %22559 = vmatprep.mubr.msk.f32.mxu0 %vm24384_vm1, %v28092_v62  ;;  %22562 = vmatprep.subr.mxu1 %v28092_v62  ;;  %v26600_v34 = vld [vmem:[#allocation30 + $0x18] sm:$0xff] }
0x28f8   :  { %22567 = vmatprep.subr.mxu0 %v28092_v62  ;;  %22555 = vmatmul.mubr.msk.f32.vlgmr.msra.gmra.mxu1 %vm28147_vm13, %v9396_v14  ;;  %vm28150_vm13 = vmmov %vm28142_vm2 }
0x28f9   :  { %22560 = vmatmul.mubr.msk.f32.vlgmr.msra.gmra.mxu0 %vm28148_vm4, %v9397_v26  ;;  %22563 = vmatpush3.msra.mxu1 %v25620_v48  ;;  %vm28151_vm4 = vmmov %vm28142_vm2 }
0x28fa   :  { %22568 = vmatpush3.msra.mxu0 %v25622_v50  ;;  %22564 = vmatprep.mubr.msk.f32.mxu1 %vm24384_vm1, %v28092_v62 }
0x28fb   :  { %22569 = vmatprep.mubr.msk.f32.mxu0 %vm24384_vm1, %v28092_v62  ;;  %22572 = vmatprep.subr.mxu1 %v28092_v62 }
0x28fc   :  { %22577 = vmatprep.subr.mxu0 %v28092_v62  ;;  %22565 = vmatmul.mubr.msk.f32.vlgmr.msra.gmra.mxu1 %vm28142_vm2, %v9390_v39  ;;  %v26647_v39 = vld [vmem:[#allocation34 + $0x8] sm:$0xff] }
0x28fd   :  { %22570 = vmatmul.mubr.msk.f32.vlgmr.msra.gmra.mxu0 %vm28149_vm3, %v9391_v25  ;;  %22573 = vmatpush3.msra.mxu1 %v25631_v22  ;;  %vm28152_vm3 = vmmov %vm28142_vm2  ;;  %28160 = vst [vmem:[#allocation55_spill] sm:$0xff] %v26647_v39 }
0x28fe   :  { %22578 = vmatpush3.msra.mxu0 %v25648_v13  ;;  %22574 = vmatprep.mubr.msk.f32.mxu1 %vm24384_vm1, %v28092_v62 }
0x28ff   :  { %22579 = vmatprep.mubr.msk.f32.mxu0 %vm24384_vm1, %v28092_v62  ;;  %22582 = vmatprep.subr.mxu1 %v28092_v62 }
0x2900   :  { %22587 = vmatprep.subr.mxu0 %v28092_v62  ;;  %22575 = vmatmul.mubr.msk.f32.vlgmr.msra.gmra.mxu1 %vm28150_vm13, %v9392_v5  ;;  %vm28153_vm13 = vmmov %vm28142_vm2 }
0x2901   :  { %22580 = vmatmul.mubr.msk.f32.vlgmr.msra.gmra.mxu0 %vm28151_vm4, %v9393_v18  ;;  %22583 = vmatpush3.msra.mxu1 %v25650_v20  ;;  %vm28154_vm4 = vmmov %vm28142_vm2 }
0x2902   :  { %22588 = vmatpush3.msra.mxu0 %v25671_v45  ;;  %22584 = vmatprep.mubr.msk.f32.mxu1 %vm24384_vm1, %v28092_v62 }
0x2903   :  { %22589 = vmatprep.mubr.msk.f32.mxu0 %vm24384_vm1, %v28092_v62  ;;  %22592 = vmatprep.subr.mxu1 %v28092_v62 }
0x2904   :  { %22597 = vmatprep.subr.mxu0 %v28092_v62  ;;  %22585 = vmatmul.mubr.msk.f32.vlgmr.msra.gmra.mxu1 %vm28142_vm2, %v9394_v3  ;;  %vm28166_vm2 = vcmp.gt.f32.partialorder %v28130_v40, 0.0 }
0x2905   :  { %22590 = vmatmul.mubr.msk.f32.vlgmr.msra.gmra.mxu0 %vm28152_vm3, %v9395_v46  ;;  %22593 = vmatpush3.msra.mxu1 %v25676_v1  ;;  %vm28167_vm3 = vcmp.gt.f32.partialorder %v28132_v51, 0.0 }
0x2906   :  { %22598 = vmatpush3.msra.mxu0 %v25693_v29  ;;  %22594 = vmatprep.mubr.msk.f32.mxu1 %vm24384_vm1, %v28092_v62 }
0x2907   :  { %22599 = vmatprep.mubr.msk.f32.mxu0 %vm24384_vm1, %v28092_v62  ;;  %22613 = vmatprep.subr.mxu0 %v28092_v62 }
0x2908   :  { %22595 = vmatmul.mubr.msk.f32.vlgmr.msra.gmra.mxu1 %vm28153_vm13, %v9396_v14  ;;  %22602 = vmatprep.subr.mxu1 %v28092_v62  ;;  %vm28168_vm13 = vcmp.gt.f32.partialorder %v28134_v52, 0.0 }
0x2909   :  { %22600 = vmatmul.mubr.msk.f32.vlgmr.msra.gmra.mxu0 %vm28154_vm4, %v9397_v26  ;;  %22603 = vmatpush3.msra.mxu1 %v26597_v30  ;;  %vm28169_vm4 = vcmp.gt.f32.partialorder %v28136_v2, 0.0 }
0x290a   :  { %22614 = vmatpush3.msra.mxu0 %v26600_v34  ;;  %22621 = vmatprep.mubr.msk.f32.mxu0 %vm24384_vm1, %v28092_v62 }
0x290b   :  { %22615 = vmatprep.subr.mxu0 %v28092_v62  ;;  %22604 = vmatprep.subr.mxu1 %v28092_v62 }
0x290c   :  { %22616 = vmatpush3.msra.mxu0 %v26607_v61  ;;  %22605 = vmatpush3.msra.mxu1 %v26610_v63 }
0x290d   :  { %22617 = vmatprep.subr.mxu0 %v28092_v62  ;;  %22606 = vmatprep.subr.mxu1 %v28092_v62 }
0x290e   :  { %22618 = vmatpush3.msra.mxu0 %v26615_v4  ;;  %22607 = vmatpush3.msra.mxu1 %v26618_v12 }
0x290f   :  { %22619 = vmatprep.subr.mxu0 %v28092_v62  ;;  %22608 = vmatprep.subr.mxu1 %v28092_v62 }
0x2910   :  { %22620 = vmatpush3.msra.mxu0 %v26625_v59  ;;  %22609 = vmatpush3.msra.mxu1 %v26628_v60 }
0x2911   :  { %22622 = vmatmul.mubr.msk.f32.vlgmr.msra.gmra.mxu0 %vm342_vm0, %v26623_v27  ;;  %22610 = vmatprep.mubr.msk.f32.mxu1 %vm24384_vm1, %v28092_v62 }
0x2912   :  { %22624 = vmatprep.subr.mxu1 %v28092_v62  ;;  %22635 = vmatprep.subr.mxu0 %v28092_v62 }
0x2913   :  { %22636 = vmatpush3.msra.mxu0 %v26637_v58  ;;  %22643 = vmatprep.mubr.msk.f32.mxu0 %vm24384_vm1, %v28092_v62 }
0x2914   :  { %22637 = vmatprep.subr.mxu0 %v28092_v62 }
0x2915   :  { %22638 = vmatpush3.msra.mxu0 %v26643_v6 }
0x2916   :  { %22639 = vmatprep.subr.mxu0 %v28092_v62 }
0x2917   :  { %22640 = vmatpush3.msra.mxu0 %v26647_v39 }
0x2918   :  { %22641 = vmatprep.subr.mxu0 %v28092_v62 }
0x2919   :  { %22642 = vmatpush3.msra.mxu0 %v26651_v42 }
0x291a   :  { %22657 = vmatprep.subr.mxu0 %v28092_v62 }
0x29aa   :  { %v9467_v25 = vpop.f32.mrf.mxu1 }
0x29ac   :  { %v22526_v41 = vpop.f32.mrf.mxu1  ;;  %v9540_v31 = vpop.f32.mrf.mxu0 }
0x29ad   :  { %v10550_v5 = vrot.slane %v9540_v31, 7 }
0x29ae   :  { %v22531_v18 = vpop.f32.mrf.mxu0 }
0x29af   :  { %v10551_v46 = vsel %vm5669_vm10, %v10550_v5, %v9467_v25 }
0x29b0   :  { %v9613_v55 = vpop.f32.mrf.mxu1 }
0x29b1   :  { %v10552_v47 = vrot.slane %v9613_v55, 6  ;;  %v9686_v3 = vpop.f32.mrf.mxu0 }
0x29b2   :  { %v10554_v44 = vrot.slane %v9686_v3, 5  ;;  %v22536_v15 = vpop.f32.mrf.mxu1 }
0x29b3   :  { %v10553_v14 = vsel %vm5672_vm11, %v10552_v47, %v10551_v46  ;;  %v22541_v26 = vpop.f32.mrf.mxu0 }
0x29b4   :  { %v9759_v39 = vpop.f32.mrf.mxu1  ;;  %v10555_v58 = vsel %vm5675_vm14, %v10554_v44, %v10553_v14 }
0x29b5   :  { %v10556_v6 = vrot.slane %v9759_v39, 4  ;;  %v9832_v42 = vpop.f32.mrf.mxu0 }
0x29b6   :  { %v10558_v60 = vrot.slane %v9832_v42, 3  ;;  %v22546_v41 = vpop.f32.mrf.mxu1 }
0x29b7   :  { %v10557_v31 = vsel %vm5678_vm15, %v10556_v6, %v10555_v58  ;;  %v22551_v18 = vpop.f32.mrf.mxu0  ;;  %v26663_v58 = vld [vmem:[#allocation33 + $0x18] sm:$0xff] }
0x29b8   :  { %v9905_v59 = vpop.f32.mrf.mxu1  ;;  %v10559_v25 = vsel %vm5681_vm7, %v10558_v60, %v10557_v31  ;;  %v26669_v60 = vld [vmem:[#allocation33 + $0x10] sm:$0xff] }
0x29b9   :  { %v10560_v55 = vrot.slane %v9905_v59, 2  ;;  %v9978_v12 = vpop.f32.mrf.mxu0 }
0x29ba   :  { %v10562_v5 = vrot.slane %v9978_v12, 1  ;;  %v22556_v3 = vpop.f32.mrf.mxu1 }
0x29bb   :  { %v10561_v47 = vsel %vm5684_vm6, %v10560_v55, %v10559_v25  ;;  %v22561_v46 = vpop.f32.mrf.mxu0  ;;  %v26674_v55 = vld [vmem:[#allocation33 + $0x8] sm:$0xff] }
0x29bc   :  { %v10563_v39 = vsel %vm5687_vm5, %v10562_v5, %v10561_v47  ;;  %v10048_v15 = vpop.f32.mrf.mxu1  ;;  %28162 = vst [vmem:[#allocation57_spill] sm:$0xff] %v26674_v55  ;;  %v26679_v47 = vld [vmem:[#allocation33] sm:$0xff] }
0x29bd   :  { %v10118_v26 = vpop.f32.mrf.mxu0  ;;  %22611 = vmatmul.mubr.msk.f32.vlgmr.msra.gmra.mxu1 %vm342_vm0, %v10563_v39  ;;  %28163 = vst [vmem:[#allocation56_spill] sm:$0xff] %v26679_v47 }
0x29be   :  { %v10718_v42 = vrot.slane %v10118_v26, 7  ;;  %v22566_v44 = vpop.f32.mrf.mxu1  ;;  %22625 = vmatpush3.msra.mxu1 %v26663_v58  ;;  %22632 = vmatprep.mubr.msk.f32.mxu1 %vm24384_vm1, %v28092_v62 }
0x29bf   :  { %v22571_v12 = vpop.f32.mrf.mxu0  ;;  %22626 = vmatprep.subr.mxu1 %v28092_v62 }
0x29c0   :  { %v10188_v59 = vpop.f32.mrf.mxu1  ;;  %22627 = vmatpush3.msra.mxu1 %v26669_v60  ;;  %v10719_v41 = vsel %vm5669_vm10, %v10718_v42, %v10048_v15 }
0x29c1   :  { %v10720_v6 = vrot.slane %v10188_v59, 6  ;;  %v10258_v14 = vpop.f32.mrf.mxu0  ;;  %22628 = vmatprep.subr.mxu1 %v28092_v62 }
0x29c2   :  { %v10722_v31 = vrot.slane %v10258_v14, 5  ;;  %v22576_v18 = vpop.f32.mrf.mxu1  ;;  %22629 = vmatpush3.msra.mxu1 %v26674_v55 }
0x29c3   :  { %v10721_v25 = vsel %vm5672_vm11, %v10720_v6, %v10719_v41  ;;  %v22581_v5 = vpop.f32.mrf.mxu0  ;;  %22630 = vmatprep.subr.mxu1 %v28092_v62 }
0x29c4   :  { %v10328_v3 = vpop.f32.mrf.mxu1  ;;  %22631 = vmatpush3.msra.mxu1 %v26679_v47  ;;  %v10723_v15 = vsel %vm5675_vm14, %v10722_v31, %v10721_v25  ;;  %v26689_v31 = vld [vmem:[#allocation27 + $0x18] sm:$0xff]  ;;  %v26695_v25 = vld [vmem:[#allocation27 + $0x10] sm:$0xff] }
0x29c5   :  { %v10724_v46 = vrot.slane %v10328_v3, 4  ;;  %v10398_v39 = vpop.f32.mrf.mxu0  ;;  %22646 = vmatprep.subr.mxu1 %v28092_v62 }
0x29c6   :  { %v10726_v26 = vrot.slane %v10398_v39, 3  ;;  %v22586_v42 = vpop.f32.mrf.mxu1 }
0x29c7   :  { %v10725_v44 = vsel %vm5678_vm15, %v10724_v46, %v10723_v15  ;;  %v22591_v12 = vpop.f32.mrf.mxu0 }
0x29c8   :  { %v10468_v59 = vpop.f32.mrf.mxu1  ;;  %v10727_v41 = vsel %vm5681_vm7, %v10726_v26, %v10725_v44 }
0x29c9   :  { %v10728_v6 = vrot.slane %v10468_v59, 2  ;;  %v10538_v14 = vpop.f32.mrf.mxu0  ;;  %v26720_v59 = vld [vmem:[#allocation28 + $0x8] sm:$0xff] }
0x29ca   :  { %v10730_v18 = vrot.slane %v10538_v14, 1  ;;  %v22596_v5 = vpop.f32.mrf.mxu1 }
0x29cb   :  { %v10729_v47 = vsel %vm5684_vm6, %v10728_v6, %v10727_v41  ;;  %v22601_v3 = vpop.f32.mrf.mxu0  ;;  %v28165_v5 = vld [vmem:[#allocation49_spill] sm:$0xff] }
0x29cc   :  { %v10731_v55 = vsel %vm5687_vm5, %v10730_v18, %v10729_v47 }
0x29cd   :  { %22633 = vmatmul.mubr.msk.f32.vlgmr.msra.gmra.mxu1 %vm342_vm0, %v10731_v55 }
0x29ce   :  { %22647 = vmatpush3.msra.mxu1 %v26689_v31  ;;  %22654 = vmatprep.mubr.msk.f32.mxu1 %vm24384_vm1, %v28092_v62 }
0x29cf   :  { %22648 = vmatprep.subr.mxu1 %v28092_v62 }
0x29d0   :  { %22649 = vmatpush3.msra.mxu1 %v26695_v25 }
0x29d1   :  { %v10706_v46 = vpop.f32.mrf.mxu0  ;;  %22650 = vmatprep.subr.mxu1 %v28092_v62 }
0x29d2   :  { %22651 = vmatpush3.msra.mxu1 %v26374_v43  ;;  %v26705_v43 = vld [vmem:[#allocation28 + $0x18] sm:$0xff] }
0x29d3   :  { %v22623_v47 = vpop.f32.mrf.mxu0  ;;  %22652 = vmatprep.subr.mxu1 %v28092_v62 }
0x29d4   :  { %22653 = vmatpush3.msra.mxu1 %v26378_v17  ;;  %v26713_v17 = vld [vmem:[#allocation28 + $0x10] sm:$0xff] }
0x29d5   :  { %22668 = vmatprep.subr.mxu1 %v28092_v62 }
0x2a7d   :  { %v10632_v55 = vpop.f32.mrf.mxu1 }
0x2a7e   :  { %v10707_v15 = vadd.f32 %v10706_v46, %v10632_v55 }
0x2a7f   :  { %v22612_v39 = vpop.f32.mrf.mxu1 }
0x2a8d   :  { %v10800_v26 = vpop.f32.mrf.mxu1 }
0x2a8e   :  { %v10804_v42 = vadd.f32 %v10800_v26, %v10707_v15 }
0x2a8f   :  { %v22634_v44 = vpop.f32.mrf.mxu1 }
0x2a90   :  { %23678 = vtanh.f32 %v10804_v42 }
0x2a9d   :  { %v23679_v12 = vpop.eup %23678 }
0x2a9e   :  { %22644 = vmatmul.mubr.msk.f32.vlgmr.msra.gmra.mxu0 %vm342_vm0, %v23679_v12  ;;  %22655 = vmatmul.mubr.msk.f32.vlgmr.msra.gmra.mxu1 %vm342_vm0, %v23679_v12 }
0x2a9f   :  { %22658 = vmatpush3.msra.mxu0 %v26705_v43  ;;  %22669 = vmatpush3.xpose.msk.msra.mxu1 %vm342_vm0, %v25732_v16 }
0x2aa0   :  { %22659 = vmatprep.subr.mxu0 %v28092_v62  ;;  %22665 = vmatprep.mubr.msk.f32.mxu0 %vm24384_vm1, %v28092_v62 }
0x2aa1   :  { %22660 = vmatpush3.msra.mxu0 %v26713_v17  ;;  %22670 = vmatprep.mubr.msk.f32.mxu1 %vm24384_vm1, %v28092_v62 }
0x2aa2   :  { %22661 = vmatprep.subr.mxu0 %v28092_v62  ;;  %22678 = vmatprep.subr.mxu1 %v28092_v62 }
0x2aa3   :  { %22662 = vmatpush3.msra.mxu0 %v26720_v59 }
0x2aa4   :  { %22663 = vmatprep.subr.mxu0 %v28092_v62 }
0x2aa5   :  { %22664 = vmatpush3.msra.mxu0 %v26397_v36 }
0x2aa6   :  { %22666 = vmatmul.mubr.msk.f32.vlgmr.msra.gmra.mxu0 %vm342_vm0, %v26623_v27  ;;  %22673 = vmatprep.subr.mxu0 %v28092_v62 }
0x2aa7   :  { %22674 = vmatpush3.xpose.msk.msra.mxu0 %vm342_vm0, %v28121_v0  ;;  %22675 = vmatprep.mubr.msk.f32.mxu0 %vm24384_vm1, %v28092_v62 }
0x2aa8   :  { %22683 = vmatprep.subr.mxu0 %v28092_v62 }
0x2b5e   :  { %v26733_v6 = vpop.f32.mrf.mxu0  ;;  %v10966_v14 = vpop.f32.mrf.mxu1 }
0x2b5f   :  { %28164 = vst [vmem:[#allocation73_spill] sm:$0xff] %v26733_v6  ;;  %v10970_v36 = vadd.f32 %v10966_v14, %v28165_v5 }
0x2b60   :  { %v22645_v41 = vpop.f32.mrf.mxu0  ;;  %v22656_v18 = vpop.f32.mrf.mxu1 }
0x2b66   :  { %v11037_v3 = vpop.f32.mrf.mxu0 }
0x2b67   :  { %v11041_v46 = vadd.f32 %v11037_v3, %v10970_v36 }
0x2b68   :  { %v22667_v27 = vpop.f32.mrf.mxu0 }
0x2b69   :  { %23680 = vtanh.f32 %v11041_v46  ;;  %v20896_v55 = vmul.f32 -1.442695, %v11041_v46 }
0x2b6b   :  { %23682 = vpow2.f32 %v20896_v55 }
0x2b76   :  { %v23681_v47 = vpop.eup %23680 }
0x2b77   :  { %11051 = vrot.lane.b32.xlu1 %v23681_v47, %s24386_s18 }
0x2b78   :  { %v23683_v39 = vpop.eup %23682 }
0x2b79   :  { %v11045_v15 = vadd.f32 1.0, %v23683_v39 }
0x2b7b   :  { %23684 = vrcp.f32 %v11045_v15 }
0x2b88   :  { %v23685_v26 = vpop.eup %23684 }
0x2b89   :  { %v11049_v12 = vmul.f32 %v23685_v26, %v26414_v21 }
0x2be9   :  { %v11052_v42 = vpop.permute.xlu1 %11051 }
0x2bea   :  { %v11054_v44 = vmul.f32 %v23685_v26, %v11052_v42 }
0x2bec   :  { %11056 = vrot.lane.b32.xlu1 %v11054_v44, %s24387_s8 }
0x2c5e   :  { %v11057_v14 = vpop.permute.xlu1 %11056 }
0x2c5f   :  { %v26739_v41 = vadd.f32 %v11057_v14, %v11049_v12 }
0x2c61   :  { %23686 = vtanh.f32 %v26739_v41 }
0x2c6e   :  { %v23687_v18 = vpop.eup %23686 }
0x2c6f   :  { %11062 = vrot.lane.b32.xlu0 %v23687_v18, %s24386_s18 }
0x2ce1   :  { %v11063_v5 = vpop.permute.xlu0 %11062 }
0x2ce2   :  { %v26743_v36 = vmul.f32 %v23685_v26, %v11063_v5 }
0x2ce4   :  { %v11067_v3 = vcombine.high %v26743_v36, %v26743_v36  ;;  %v11074_v46 = vrot.slane %v26743_v36, %v25767_v37 }
0x2ce6   :  { %v11081_v27 = vrot.slane %v11067_v3, %v25767_v37  ;;  %v11082_v21 = vcombine.high %v11074_v46, %v11074_v46  ;;  %v11090_v47 = vrot.slane %v11074_v46, %v25767_v37 }
0x2ce8   :  { %v11119_v55 = vrot.slane %v11090_v47, %v25772_v57  ;;  %v11104_v39 = vrot.slane %v11082_v21, %v25767_v37  ;;  %v11112_v15 = vcombine.high %v11090_v47, %v11090_v47  ;;  %v11083_v42 = vcombine.high %v11081_v27, %v11081_v27 }
0x2ce9   :  { %v11097_v14 = vrot.slane %v11081_v27, %v25767_v37 }
0x2cea   :  { %11120 = vrot.lane.b32.xlu1 %v11119_v55, %s24387_s8  ;;  %v11197_v26 = vrot.slane %v11104_v39, %v25772_v57  ;;  %v11114_v44 = vcombine.high %v11104_v39, %v11104_v39  ;;  %v11275_v12 = vrot.slane %v11112_v15, %v25772_v57  ;;  %v11111_v5 = vrot.slane %v11083_v42, %v25767_v37 }
0x2ceb   :  { %v11431_v3 = vrot.slane %v11097_v14, %v25772_v57  ;;  %v11113_v46 = vcombine.high %v11097_v14, %v11097_v14 }
0x2cec   :  { %11198 = vrot.lane.b32.xlu0 %v11197_v26, %s24387_s8  ;;  %v11353_v18 = vrot.slane %v11114_v44, %v25772_v57  ;;  %v11509_v21 = vrot.slane %v11111_v5, %v25772_v57  ;;  %v11115_v47 = vcombine.high %v11111_v5, %v11111_v5 }
0x2ced   :  { %v11587_v27 = vrot.slane %v11113_v46, %v25772_v57 }
0x2cee   :  { %11276 = vrot.lane.b32.xlu1 %v11275_v12, %s24387_s8  ;;  %v11665_v55 = vrot.slane %v11115_v47, %v25772_v57 }
0x2cf0   :  { %11354 = vrot.lane.b32.xlu0 %v11353_v18, %s24387_s8 }
0x2cf2   :  { %11432 = vrot.lane.b32.xlu1 %v11431_v3, %s24387_s8 }
0x2cf4   :  { %11510 = vrot.lane.b32.xlu0 %v11509_v21, %s24387_s8 }
0x2cf6   :  { %11588 = vrot.lane.b32.xlu1 %v11587_v27, %s24387_s8 }
0x2cf8   :  { %11666 = vrot.lane.b32.xlu0 %v11665_v55, %s24387_s8 }
0x2d5c   :  { %v11121_v39 = vpop.permute.xlu1 %11120 }
0x2d5d   :  { %22671 = vmatmul.mubr.msk.f32.vlgmr.msra.gmra.mxu1 %vm342_vm0, %v11121_v39 }
0x2d5e   :  { %22679 = vmatpush3.xpose.msk.msra.mxu1 %vm342_vm0, %v25741_v32  ;;  %v11199_v15 = vpop.permute.xlu0 %11198  ;;  %22680 = vmatprep.mubr.msk.f32.mxu1 %vm24384_vm1, %v28092_v62 }
0x2d5f   :  { %22676 = vmatmul.mubr.msk.f32.vlgmr.msra.gmra.mxu0 %vm342_vm0, %v11199_v15  ;;  %22688 = vmatprep.subr.mxu1 %v28092_v62 }
0x2d60   :  { %22684 = vmatpush3.xpose.msk.msra.mxu0 %vm342_vm0, %v25734_v49  ;;  %v11277_v42 = vpop.permute.xlu1 %11276  ;;  %22685 = vmatprep.mubr.msk.f32.mxu0 %vm24384_vm1, %v28092_v62 }
0x2d61   :  { %22681 = vmatmul.mubr.msk.f32.vlgmr.msra.gmra.mxu1 %vm342_vm0, %v11277_v42  ;;  %22693 = vmatprep.subr.mxu0 %v28092_v62 }
0x2d62   :  { %22689 = vmatpush3.xpose.msk.msra.mxu1 %vm342_vm0, %v25807_v23  ;;  %v11355_v26 = vpop.permute.xlu0 %11354  ;;  %22690 = vmatprep.mubr.msk.f32.mxu1 %vm24384_vm1, %v28092_v62 }
0x2d63   :  { %22686 = vmatmul.mubr.msk.f32.vlgmr.msra.gmra.mxu0 %vm342_vm0, %v11355_v26  ;;  %22698 = vmatprep.subr.mxu1 %v28092_v62 }
0x2d64   :  { %22694 = vmatpush3.xpose.msk.msra.mxu0 %vm342_vm0, %v25743_v28  ;;  %v11433_v44 = vpop.permute.xlu1 %11432  ;;  %22695 = vmatprep.mubr.msk.f32.mxu0 %vm24384_vm1, %v28092_v62 }
0x2d65   :  { %22691 = vmatmul.mubr.msk.f32.vlgmr.msra.gmra.mxu1 %vm342_vm0, %v11433_v44  ;;  %22703 = vmatprep.subr.mxu0 %v28092_v62 }
0x2d66   :  { %22699 = vmatpush3.xpose.msk.msra.mxu1 %vm342_vm0, %v28124_v9  ;;  %v11511_v12 = vpop.permute.xlu0 %11510  ;;  %22700 = vmatprep.mubr.msk.f32.mxu1 %vm24384_vm1, %v28092_v62 }
0x2d67   :  { %22696 = vmatmul.mubr.msk.f32.vlgmr.msra.gmra.mxu0 %vm342_vm0, %v11511_v12  ;;  %22708 = vmatprep.subr.mxu1 %v28092_v62 }
0x2d68   :  { %22704 = vmatpush3.xpose.msk.msra.mxu0 %vm342_vm0, %v28125_v11  ;;  %v11589_v14 = vpop.permute.xlu1 %11588  ;;  %22705 = vmatprep.mubr.msk.f32.mxu0 %vm24384_vm1, %v28092_v62 }
0x2d69   :  { %22701 = vmatmul.mubr.msk.f32.vlgmr.msra.gmra.mxu1 %vm342_vm0, %v11589_v14  ;;  %22713 = vmatprep.subr.mxu0 %v28092_v62 }
0x2d6a   :  { %22709 = vmatpush3.msra.mxu1 %v28126_v7  ;;  %v11667_v18 = vpop.permute.xlu0 %11666  ;;  %22710 = vmatprep.mubr.msk.f32.mxu1 %vm24384_vm1, %v28092_v62 }
0x2d6b   :  { %22706 = vmatmul.mubr.msk.f32.vlgmr.msra.gmra.mxu0 %vm342_vm0, %v11667_v18  ;;  %22718 = vmatprep.subr.mxu1 %v28092_v62 }
0x2d6c   :  { %22714 = vmatpush3.msra.mxu0 %v28127_v19  ;;  %22715 = vmatprep.mubr.msk.f32.mxu0 %vm24384_vm1, %v28092_v62 }
0x2d6d   :  { %22723 = vmatprep.subr.mxu0 %v28092_v62 }
0x2e1d   :  { %v11190_v5 = vpop.f32.mrf.mxu1 }
0x2e1e   :  { %v11740_v3 = vsel %vm4410_vm8, %v11190_v5, -1e+30 }
0x2e1f   :  { %v11748_v46 = vsel %vm4426_vm9, %v11740_v3, -inf  ;;  %v22672_v21 = vpop.f32.mrf.mxu1  ;;  %v11268_v47 = vpop.f32.mrf.mxu0 }
0x2e20   :  { %v11741_v27 = vsel %vm4411_vm12, %v11268_v47, -1e+30  ;;  %11749 = vmax.xlane.f32.xlu1 %v11748_v46 }
0x2e21   :  { %v11751_v55 = vsel %vm4426_vm9, %v11741_v27, -inf  ;;  %v22677_v39 = vpop.f32.mrf.mxu0  ;;  %v11346_v15 = vpop.f32.mrf.mxu1 }
0x2e22   :  { %v11742_v42 = vsel %vm28166_vm2, %v11346_v15, -1e+30  ;;  %11752 = vmax.xlane.f32.xlu0 %v11751_v55  ;;  %vm28170_vm2 = vcmp.gt.f32.partialorder %v28138_v24, 0.0 }
0x2e23   :  { %v22682_v26 = vpop.f32.mrf.mxu1  ;;  %v11424_v44 = vpop.f32.mrf.mxu0  ;;  %v11754_v14 = vsel %vm4426_vm9, %v11742_v42, -inf }
0x2e24   :  { %v11743_v12 = vsel %vm28167_vm3, %v11424_v44, -1e+30 }
0x2e25   :  { %v11757_v18 = vsel %vm4426_vm9, %v11743_v12, -inf  ;;  %v22687_v5 = vpop.f32.mrf.mxu0  ;;  %v11502_v21 = vpop.f32.mrf.mxu1 }
0x2e26   :  { %v11744_v46 = vsel %vm28168_vm13, %v11502_v21, -1e+30  ;;  %11755 = vmax.xlane.f32.xlu0 %v11754_v14  ;;  %11758 = vmax.xlane.f32.xlu1 %v11757_v18  ;;  %v28171_v14 = vld [vmem:[#allocation65_spill] sm:$0xff]  ;;  %vm28173_vm13 = vcmask 64512  }
0x2e27   :  { %v22692_v47 = vpop.f32.mrf.mxu1  ;;  %v11580_v39 = vpop.f32.mrf.mxu0  ;;  %v11760_v15 = vsel %vm4426_vm9, %v11744_v46, -inf  ;;  %vm28172_vm3 = vcmp.gt.f32.partialorder %v28171_v14, 0.0 }
0x2e28   :  { %v11745_v55 = vsel %vm28169_vm4, %v11580_v39, -1e+30  ;;  %vm28174_vm4 = vmmov %vm28173_vm13 }
0x2e29   :  { %v11763_v26 = vsel %vm4426_vm9, %v11745_v55, -inf  ;;  %v22697_v44 = vpop.f32.mrf.mxu0  ;;  %v11658_v6 = vpop.f32.mrf.mxu1 }
0x2e2a   :  { %v11746_v5 = vsel %vm28170_vm2, %v11658_v6, -1e+30  ;;  %11761 = vmax.xlane.f32.xlu0 %v11760_v15  ;;  %11764 = vmax.xlane.f32.xlu1 %v11763_v26  ;;  %vm28175_vm2 = vmmov %vm28174_vm4 }
0x2e2b   :  { %v22702_v52 = vpop.f32.mrf.mxu1  ;;  %v11736_v21 = vpop.f32.mrf.mxu0  ;;  %v11766_v47 = vsel %vm4426_vm9, %v11746_v5, -inf }
0x2e2c   :  { %v11747_v18 = vsel %vm28172_vm3, %v11736_v21, -1e+30  ;;  %vm28176_vm3 = vmmov %vm28175_vm2 }
0x2e2d   :  { %v11769_v39 = vsel %vm4426_vm9, %v11747_v18, -inf  ;;  %v22707_v2 = vpop.f32.mrf.mxu0 }
0x2e2e   :  { %11767 = vmax.xlane.f32.xlu0 %v11766_v47  ;;  %11770 = vmax.xlane.f32.xlu1 %v11769_v39 }
0x2ea9   :  { %v11750_v51 = vpop.xlane.xlu1 %11749 }
0x2eaa   :  { %v11772_v44 = vsub.f32 %v11740_v3, %v11750_v51 }
0x2eab   :  { %v11753_v40 = vpop.xlane.xlu0 %11752 }
0x2eac   :  { %v11780_v10 = vmul.f32 1.442695, %v11772_v44  ;;  %v11773_v24 = vsub.f32 %v11741_v27, %v11753_v40 }
0x2eae   :  { %23688 = vpow2.f32 %v11780_v10  ;;  %v11782_v6 = vmul.f32 1.442695, %v11773_v24 }
0x2eaf   :  { %v11756_v15 = vpop.xlane.xlu0 %11755  ;;  %v11759_v52 = vpop.xlane.xlu1 %11758 }
0x2eb0   :  { %23690 = vpow2.f32 %v11782_v6  ;;  %v11774_v26 = vsub.f32 %v11742_v42, %v11756_v15  ;;  %v11775_v14 = vsub.f32 %v11743_v12, %v11759_v52 }
0x2eb2   :  { %v11784_v21 = vmul.f32 1.442695, %v11774_v26  ;;  %v11786_v38 = vmul.f32 1.442695, %v11775_v14 }
0x2eb3   :  { %v11762_v19 = vpop.xlane.xlu0 %11761  ;;  %v11765_v7 = vpop.xlane.xlu1 %11764 }
0x2eb4   :  { %23692 = vpow2.f32 %v11784_v21  ;;  %v11776_v2 = vsub.f32 %v11744_v46, %v11762_v19  ;;  %v11777_v47 = vsub.f32 %v11745_v55, %v11765_v7 }
0x2eb5   :  { %23694 = vpow2.f32 %v11786_v38 }
0x2eb6   :  { %v11788_v39 = vmul.f32 1.442695, %v11776_v2  ;;  %v11790_v51 = vmul.f32 1.442695, %v11777_v47 }
0x2eb7   :  { %v11768_v3 = vpop.xlane.xlu0 %11767  ;;  %v11771_v44 = vpop.xlane.xlu1 %11770 }
0x2eb8   :  { %23696 = vpow2.f32 %v11788_v39  ;;  %v11778_v10 = vsub.f32 %v11746_v5, %v11768_v3  ;;  %v11779_v40 = vsub.f32 %v11747_v18, %v11771_v44 }
0x2eb9   :  { %23698 = vpow2.f32 %v11790_v51 }
0x2eba   :  { %v11792_v24 = vmul.f32 1.442695, %v11778_v10  ;;  %v11794_v27 = vmul.f32 1.442695, %v11779_v40 }
0x2ebb   :  { %v23689_v42 = vpop.eup %23688 }
0x2ebc   :  { %23700 = vpow2.f32 %v11792_v24  ;;  %v11796_v12 = vsel %vm4426_vm9, %v23689_v42, 0.0 }
0x2ebd   :  { %v23691_v14 = vpop.eup %23690  ;;  %23702 = vpow2.f32 %v11794_v27  ;;  %11797 = vadd.xlane.f32.xlu0 %v11796_v12 }
0x2ebe   :  { %v11799_v7 = vsel %vm4426_vm9, %v23691_v14, 0.0 }
0x2ebf   :  { %11800 = vadd.xlane.f32.xlu1 %v11799_v7 }
0x2ec1   :  { %v23693_v19 = vpop.eup %23692 }
0x2ec2   :  { %v23695_v38 = vpop.eup %23694  ;;  %v11802_v46 = vsel %vm4426_vm9, %v23693_v19, 0.0 }
0x2ec3   :  { %11803 = vadd.xlane.f32.xlu0 %v11802_v46  ;;  %v11805_v55 = vsel %vm4426_vm9, %v23695_v38, 0.0 }
0x2ec4   :  { %11806 = vadd.xlane.f32.xlu1 %v11805_v55 }
0x2ec5   :  { %v23697_v5 = vpop.eup %23696 }
0x2ec6   :  { %v23699_v18 = vpop.eup %23698  ;;  %v11808_v6 = vsel %vm4426_vm9, %v23697_v5, 0.0 }
0x2ec7   :  { %11809 = vadd.xlane.f32.xlu0 %v11808_v6  ;;  %v11811_v15 = vsel %vm4426_vm9, %v23699_v18, 0.0 }
0x2ec8   :  { %11812 = vadd.xlane.f32.xlu1 %v11811_v15 }
0x2ec9   :  { %v23701_v52 = vpop.eup %23700 }
0x2eca   :  { %v23703_v26 = vpop.eup %23702  ;;  %v11814_v21 = vsel %vm4426_vm9, %v23701_v52, 0.0 }
0x2ecb   :  { %11815 = vadd.xlane.f32.xlu0 %v11814_v21  ;;  %v11817_v2 = vsel %vm4426_vm9, %v23703_v26, 0.0 }
0x2ecc   :  { %11818 = vadd.xlane.f32.xlu1 %v11817_v2 }
0x2ee1   :  { %13074 = vrot.lane.b32.xlu0 %v26743_v36, %s24387_s8 }
0x2f46   :  { %v11798_v47 = vpop.xlane.xlu0 %11797 }
0x2f47   :  { %23704 = vrcp.f32 %v11798_v47  ;;  %v28192_v47 = vld [vmem:[#allocation48_spill] sm:$0xff] }
0x2f48   :  { %v11801_v39 = vpop.xlane.xlu1 %11800 }
0x2f49   :  { %23706 = vrcp.f32 %v11801_v39 }
0x2f4c   :  { %v11804_v51 = vpop.xlane.xlu0 %11803 }
0x2f4d   :  { %23708 = vrcp.f32 %v11804_v51  ;;  %v11807_v3 = vpop.xlane.xlu1 %11806 }
0x2f4e   :  { %23710 = vrcp.f32 %v11807_v3 }
0x2f50   :  { %v11810_v44 = vpop.xlane.xlu0 %11809 }
0x2f51   :  { %23712 = vrcp.f32 %v11810_v44  ;;  %v11813_v10 = vpop.xlane.xlu1 %11812 }
0x2f52   :  { %23714 = vrcp.f32 %v11813_v10 }
0x2f54   :  { %v23705_v40 = vpop.eup %23704  ;;  %v11816_v24 = vpop.xlane.xlu0 %11815 }
0x2f55   :  { %v11828_v27 = vmul.f32 %v23705_v40, %v23689_v42  ;;  %23716 = vrcp.f32 %v11816_v24  ;;  %v11819_v12 = vpop.xlane.xlu1 %11818 }
0x2f56   :  { %v23707_v7 = vpop.eup %23706  ;;  %23718 = vrcp.f32 %v11819_v12 }
0x2f57   :  { %v11829_v36 = vmul.f32 %v23707_v7, %v23691_v14  ;;  %22711 = vmatmul.mubr.msk.f32.vlgmr.msra.gmra.mxu1 %vm28173_vm13, %v11828_v27  ;;  %vm28177_vm13 = vmmov %vm28175_vm2 }
0x2f58   :  { %22719 = vmatpush3.msra.mxu1 %v25656_v35  ;;  %22720 = vmatprep.mubr.msk.f32.mxu1 %vm24384_vm1, %v28092_v62 }
0x2f59   :  { %22716 = vmatmul.mubr.msk.f32.vlgmr.msra.gmra.mxu0 %vm28174_vm4, %v11829_v36  ;;  %22728 = vmatprep.subr.mxu1 %v28092_v62  ;;  %vm28178_vm4 = vmmov %vm28175_vm2 }
0x2f5a   :  { %v23709_v46 = vpop.eup %23708  ;;  %22724 = vmatpush3.msra.mxu0 %v25673_v33  ;;  %22725 = vmatprep.mubr.msk.f32.mxu0 %vm24384_vm1, %v28092_v62 }
0x2f5b   :  { %v23711_v42 = vpop.eup %23710  ;;  %v11830_v55 = vmul.f32 %v23709_v46, %v23693_v19  ;;  %22733 = vmatprep.subr.mxu0 %v28092_v62 }
0x2f5c   :  { %v11831_v14 = vmul.f32 %v23711_v42, %v23695_v38 }
0x2f5d   :  { %22721 = vmatmul.mubr.msk.f32.vlgmr.msra.gmra.mxu1 %vm28175_vm2, %v11830_v55 }
0x2f5e   :  { %v23713_v6 = vpop.eup %23712  ;;  %22726 = vmatmul.mubr.msk.f32.vlgmr.msra.gmra.mxu0 %vm28176_vm3, %v11831_v14  ;;  %22729 = vmatpush3.msra.mxu1 %v25678_v54  ;;  %vm28179_vm3 = vmmov %vm28175_vm2 }
0x2f5f   :  { %v23715_v15 = vpop.eup %23714  ;;  %v11832_v21 = vmul.f32 %v23713_v6, %v23697_v5  ;;  %22734 = vmatpush3.msra.mxu0 %v25695_v53  ;;  %22730 = vmatprep.mubr.msk.f32.mxu1 %vm24384_vm1, %v28092_v62 }
0x2f60   :  { %v11833_v2 = vmul.f32 %v23715_v15, %v23699_v18  ;;  %22735 = vmatprep.mubr.msk.f32.mxu0 %vm24384_vm1, %v28092_v62  ;;  %22738 = vmatprep.subr.mxu1 %v28092_v62 }
0x2f61   :  { %22743 = vmatprep.subr.mxu0 %v28092_v62  ;;  %22731 = vmatmul.mubr.msk.f32.vlgmr.msra.gmra.mxu1 %vm28177_vm13, %v11832_v21  ;;  %vm28180_vm13 = vmmov %vm28175_vm2 }
0x2f62   :  { %v23717_v19 = vpop.eup %23716  ;;  %22736 = vmatmul.mubr.msk.f32.vlgmr.msra.gmra.mxu0 %vm28178_vm4, %v11833_v2  ;;  %22739 = vmatpush3.msra.mxu1 %v25698_v56  ;;  %vm28181_vm4 = vmmov %vm28175_vm2 }
0x2f63   :  { %v23719_v38 = vpop.eup %23718  ;;  %v11834_v5 = vmul.f32 %v23717_v19, %v23701_v52  ;;  %22744 = vmatpush3.msra.mxu0 %v25710_v8  ;;  %22740 = vmatprep.mubr.msk.f32.mxu1 %vm24384_vm1, %v28092_v62  ;;  %v28187_v52 = vld [vmem:[#allocation68_spill] sm:$0xff] }
0x2f64   :  { %v11835_v18 = vmul.f32 %v23719_v38, %v23703_v26  ;;  %22745 = vmatprep.mubr.msk.f32.mxu0 %vm24384_vm1, %v28092_v62  ;;  %22748 = vmatprep.subr.mxu1 %v28092_v62  ;;  %v28188_v26 = vld [vmem:[#allocation69_spill] sm:$0xff] }
0x2f65   :  { %22753 = vmatprep.subr.mxu0 %v28092_v62  ;;  %22741 = vmatmul.mubr.msk.f32.vlgmr.msra.gmra.mxu1 %vm28175_vm2, %v11834_v5 }
0x2f66   :  { %22746 = vmatmul.mubr.msk.f32.vlgmr.msra.gmra.mxu0 %vm28179_vm3, %v11835_v18  ;;  %22749 = vmatpush3.msra.mxu1 %v25620_v48  ;;  %vm28182_vm3 = vmmov %vm28175_vm2 }
0x2f67   :  { %22754 = vmatpush3.msra.mxu0 %v25622_v50  ;;  %22750 = vmatprep.mubr.msk.f32.mxu1 %vm24384_vm1, %v28092_v62 }
0x2f68   :  { %22755 = vmatprep.mubr.msk.f32.mxu0 %vm24384_vm1, %v28092_v62  ;;  %22758 = vmatprep.subr.mxu1 %v28092_v62 }
0x2f69   :  { %22763 = vmatprep.subr.mxu0 %v28092_v62  ;;  %22751 = vmatmul.mubr.msk.f32.vlgmr.msra.gmra.mxu1 %vm28180_vm13, %v11828_v27  ;;  %vm28183_vm13 = vmmov %vm28175_vm2 }
0x2f6a   :  { %22756 = vmatmul.mubr.msk.f32.vlgmr.msra.gmra.mxu0 %vm28181_vm4, %v11829_v36  ;;  %22759 = vmatpush3.msra.mxu1 %v25631_v22  ;;  %vm28184_vm4 = vmmov %vm28175_vm2 }
0x2f6b   :  { %22764 = vmatpush3.msra.mxu0 %v25648_v13  ;;  %22760 = vmatprep.mubr.msk.f32.mxu1 %vm24384_vm1, %v28092_v62 }
0x2f6c   :  { %22765 = vmatprep.mubr.msk.f32.mxu0 %vm24384_vm1, %v28092_v62  ;;  %22768 = vmatprep.subr.mxu1 %v28092_v62 }
0x2f6d   :  { %22773 = vmatprep.subr.mxu0 %v28092_v62  ;;  %22761 = vmatmul.mubr.msk.f32.vlgmr.msra.gmra.mxu1 %vm28175_vm2, %v11830_v55 }
0x2f6e   :  { %22766 = vmatmul.mubr.msk.f32.vlgmr.msra.gmra.mxu0 %vm28182_vm3, %v11831_v14  ;;  %22769 = vmatpush3.msra.mxu1 %v25650_v20  ;;  %vm28185_vm3 = vmmov %vm28175_vm2 }
0x2f6f   :  { %22774 = vmatpush3.msra.mxu0 %v25671_v45  ;;  %22770 = vmatprep.mubr.msk.f32.mxu1 %vm24384_vm1, %v28092_v62 }
0x2f70   :  { %22775 = vmatprep.mubr.msk.f32.mxu0 %vm24384_vm1, %v28092_v62  ;;  %22778 = vmatprep.subr.mxu1 %v28092_v62 }
0x2f71   :  { %22783 = vmatprep.subr.mxu0 %v28092_v62  ;;  %22771 = vmatmul.mubr.msk.f32.vlgmr.msra.gmra.mxu1 %vm28183_vm13, %v11832_v21 }
0x2f72   :  { %22776 = vmatmul.mubr.msk.f32.vlgmr.msra.gmra.mxu0 %vm28184_vm4, %v11833_v2  ;;  %22779 = vmatpush3.msra.mxu1 %v25676_v1 }
0x2f73   :  { %22784 = vmatpush3.msra.mxu0 %v25693_v29  ;;  %22780 = vmatprep.mubr.msk.f32.mxu1 %vm24384_vm1, %v28092_v62 }
0x2f74   :  { %22785 = vmatprep.mubr.msk.f32.mxu0 %vm24384_vm1, %v28092_v62  ;;  %22799 = vmatprep.subr.mxu0 %v28092_v62 }
0x2f75   :  { %22781 = vmatmul.mubr.msk.f32.vlgmr.msra.gmra.mxu1 %vm28175_vm2, %v11834_v5  ;;  %22788 = vmatprep.subr.mxu1 %v28092_v62 }
0x2f76   :  { %22786 = vmatmul.mubr.msk.f32.vlgmr.msra.gmra.mxu0 %vm28185_vm3, %v11835_v18  ;;  %22789 = vmatpush3.msra.mxu1 %v26597_v30  ;;  %v28186_v30 = vld [vmem:[#allocation67_spill] sm:$0xff] }
0x2f77   :  { %22800 = vmatpush3.msra.mxu0 %v26600_v34  ;;  %22807 = vmatprep.mubr.msk.f32.mxu0 %vm24384_vm1, %v28092_v62  ;;  %v26936_v34 = vpop.permute.xlu0 %13074 }
0x2f78   :  { %22801 = vmatprep.subr.mxu0 %v28092_v62  ;;  %22790 = vmatprep.subr.mxu1 %v28092_v62 }
0x2f79   :  { %22802 = vmatpush3.msra.mxu0 %v26607_v61  ;;  %22791 = vmatpush3.msra.mxu1 %v26610_v63  ;;  %v28189_v61 = vld [vmem:[#allocation70_spill] sm:$0xff]  ;;  %v28190_v63 = vld [vmem:[#allocation71_spill] sm:$0xff] }
0x2f7a   :  { %22803 = vmatprep.subr.mxu0 %v28092_v62  ;;  %22792 = vmatprep.subr.mxu1 %v28092_v62 }
0x2f7b   :  { %22804 = vmatpush3.msra.mxu0 %v26615_v4  ;;  %22793 = vmatpush3.msra.mxu1 %v28186_v30  ;;  %v28191_v4 = vld [vmem:[#allocation55_spill] sm:$0xff] }
0x2f7c   :  { %22805 = vmatprep.subr.mxu0 %v28092_v62  ;;  %22794 = vmatprep.subr.mxu1 %v28092_v62 }
0x2f7d   :  { %22806 = vmatpush3.msra.mxu0 %v28187_v52  ;;  %22795 = vmatpush3.msra.mxu1 %v28188_v26 }
0x2f7e   :  { %22808 = vmatmul.mubr.msk.f32.vlgmr.msra.gmra.mxu0 %vm342_vm0, %v26936_v34  ;;  %22796 = vmatprep.mubr.msk.f32.mxu1 %vm24384_vm1, %v28092_v62 }
0x2f7f   :  { %22810 = vmatprep.subr.mxu1 %v28092_v62  ;;  %22821 = vmatprep.subr.mxu0 %v28092_v62 }
0x2f80   :  { %22822 = vmatpush3.msra.mxu0 %v28189_v61  ;;  %22829 = vmatprep.mubr.msk.f32.mxu0 %vm24384_vm1, %v28092_v62 }
0x2f81   :  { %22823 = vmatprep.subr.mxu0 %v28092_v62 }
0x2f82   :  { %22824 = vmatpush3.msra.mxu0 %v28190_v63 }
0x2f83   :  { %22825 = vmatprep.subr.mxu0 %v28092_v62 }
0x2f84   :  { %22826 = vmatpush3.msra.mxu0 %v28191_v4 }
0x2f85   :  { %22827 = vmatprep.subr.mxu0 %v28092_v62 }
0x2f86   :  { %22828 = vmatpush3.msra.mxu0 %v28192_v47 }
0x2f87   :  { %22843 = vmatprep.subr.mxu0 %v28092_v62 }
0x3017   :  { %v11905_v39 = vpop.f32.mrf.mxu1 }
0x3019   :  { %v22712_v51 = vpop.f32.mrf.mxu1  ;;  %v11978_v3 = vpop.f32.mrf.mxu0 }
0x301a   :  { %v12988_v44 = vrot.slane %v11978_v3, 7 }
0x301b   :  { %v22717_v10 = vpop.f32.mrf.mxu0 }
0x301c   :  { %v12989_v12 = vsel %vm5669_vm10, %v12988_v44, %v11905_v39 }
0x301d   :  { %v12051_v40 = vpop.f32.mrf.mxu1 }
0x301e   :  { %v12990_v24 = vrot.slane %v12051_v40, 6  ;;  %v12124_v27 = vpop.f32.mrf.mxu0 }
0x301f   :  { %v12992_v7 = vrot.slane %v12124_v27, 5  ;;  %v22722_v36 = vpop.f32.mrf.mxu1 }
0x3020   :  { %v12991_v46 = vsel %vm5672_vm11, %v12990_v24, %v12989_v12  ;;  %v22727_v42 = vpop.f32.mrf.mxu0 }
0x3021   :  { %v12197_v55 = vpop.f32.mrf.mxu1  ;;  %v12993_v15 = vsel %vm5675_vm14, %v12992_v7, %v12991_v46  ;;  %v28193_v46 = vld [vmem:[#allocation57_spill] sm:$0xff] }
0x3022   :  { %v12994_v14 = vrot.slane %v12197_v55, 4  ;;  %v12270_v6 = vpop.f32.mrf.mxu0 }
0x3023   :  { %v12996_v21 = vrot.slane %v12270_v6, 3  ;;  %v22732_v2 = vpop.f32.mrf.mxu1 }
0x3024   :  { %v12995_v19 = vsel %vm5678_vm15, %v12994_v14, %v12993_v15  ;;  %v22737_v38 = vpop.f32.mrf.mxu0  ;;  %v28194_v14 = vld [vmem:[#allocation56_spill] sm:$0xff] }
0x3025   :  { %v12343_v5 = vpop.f32.mrf.mxu1  ;;  %v12997_v52 = vsel %vm5681_vm7, %v12996_v21, %v12995_v19 }
0x3026   :  { %v12998_v18 = vrot.slane %v12343_v5, 2  ;;  %v12416_v30 = vpop.f32.mrf.mxu0 }
0x3027   :  { %v13000_v26 = vrot.slane %v12416_v30, 1  ;;  %v22742_v61 = vpop.f32.mrf.mxu1 }
0x3028   :  { %v12999_v63 = vsel %vm5684_vm6, %v12998_v18, %v12997_v52  ;;  %v22747_v4 = vpop.f32.mrf.mxu0 }
0x3029   :  { %v13001_v47 = vsel %vm5687_vm5, %v13000_v26, %v12999_v63  ;;  %v12486_v39 = vpop.f32.mrf.mxu1 }
0x302a   :  { %v12556_v51 = vpop.f32.mrf.mxu0  ;;  %22797 = vmatmul.mubr.msk.f32.vlgmr.msra.gmra.mxu1 %vm342_vm0, %v13001_v47 }
0x302b   :  { %v13156_v3 = vrot.slane %v12556_v51, 7  ;;  %v22752_v44 = vpop.f32.mrf.mxu1  ;;  %22811 = vmatpush3.msra.mxu1 %v26663_v58  ;;  %22818 = vmatprep.mubr.msk.f32.mxu1 %vm24384_vm1, %v28092_v62  ;;  %v26988_v51 = vld [vmem:[#allocation27 + $0x8] sm:$0xff] }
0x302c   :  { %v22757_v10 = vpop.f32.mrf.mxu0  ;;  %22812 = vmatprep.subr.mxu1 %v28092_v62  ;;  %v26992_v44 = vld [vmem:[#allocation27] sm:$0xff] }
0x302d   :  { %v12626_v40 = vpop.f32.mrf.mxu1  ;;  %22813 = vmatpush3.msra.mxu1 %v26669_v60  ;;  %v13157_v12 = vsel %vm5669_vm10, %v13156_v3, %v12486_v39 }
0x302e   :  { %v13158_v24 = vrot.slane %v12626_v40, 6  ;;  %v12696_v27 = vpop.f32.mrf.mxu0  ;;  %22814 = vmatprep.subr.mxu1 %v28092_v62 }
0x302f   :  { %v13160_v7 = vrot.slane %v12696_v27, 5  ;;  %v22762_v36 = vpop.f32.mrf.mxu1  ;;  %22815 = vmatpush3.msra.mxu1 %v28193_v46  ;;  %v28196_v46 = vld [vmem:[#allocation50_spill] sm:$0xff] }
0x3030   :  { %v13159_v58 = vsel %vm5672_vm11, %v13158_v24, %v13157_v12  ;;  %v22767_v42 = vpop.f32.mrf.mxu0  ;;  %22816 = vmatprep.subr.mxu1 %v28092_v62 }
0x3031   :  { %v12766_v55 = vpop.f32.mrf.mxu1  ;;  %22817 = vmatpush3.msra.mxu1 %v28194_v14  ;;  %v13161_v15 = vsel %vm5675_vm14, %v13160_v7, %v13159_v58 }
0x3032   :  { %v13162_v6 = vrot.slane %v12766_v55, 4  ;;  %v12836_v60 = vpop.f32.mrf.mxu0  ;;  %22832 = vmatprep.subr.mxu1 %v28092_v62 }
0x3033   :  { %v13164_v21 = vrot.slane %v12836_v60, 3  ;;  %v22772_v2 = vpop.f32.mrf.mxu1 }
0x3034   :  { %v13163_v19 = vsel %vm5678_vm15, %v13162_v6, %v13161_v15  ;;  %v22777_v38 = vpop.f32.mrf.mxu0 }
0x3035   :  { %v12906_v5 = vpop.f32.mrf.mxu1  ;;  %v13165_v52 = vsel %vm5681_vm7, %v13164_v21, %v13163_v19 }
0x3036   :  { %v13166_v18 = vrot.slane %v12906_v5, 2  ;;  %v12976_v30 = vpop.f32.mrf.mxu0 }
0x3037   :  { %v13168_v26 = vrot.slane %v12976_v30, 1  ;;  %v22782_v61 = vpop.f32.mrf.mxu1 }
0x3038   :  { %v13167_v63 = vsel %vm5684_vm6, %v13166_v18, %v13165_v52  ;;  %v22787_v4 = vpop.f32.mrf.mxu0 }
0x3039   :  { %v13169_v47 = vsel %vm5687_vm5, %v13168_v26, %v13167_v63 }
0x303a   :  { %22819 = vmatmul.mubr.msk.f32.vlgmr.msra.gmra.mxu1 %vm342_vm0, %v13169_v47 }
0x303b   :  { %22833 = vmatpush3.msra.mxu1 %v26689_v31  ;;  %22840 = vmatprep.mubr.msk.f32.mxu1 %vm24384_vm1, %v28092_v62 }
0x303c   :  { %22834 = vmatprep.subr.mxu1 %v28092_v62 }
0x303d   :  { %22835 = vmatpush3.msra.mxu1 %v26695_v25 }
0x303e   :  { %v13144_v39 = vpop.f32.mrf.mxu0  ;;  %22836 = vmatprep.subr.mxu1 %v28092_v62 }
0x303f   :  { %22837 = vmatpush3.msra.mxu1 %v26988_v51 }
0x3040   :  { %v22809_v3 = vpop.f32.mrf.mxu0  ;;  %22838 = vmatprep.subr.mxu1 %v28092_v62 }
0x3041   :  { %22839 = vmatpush3.msra.mxu1 %v26992_v44 }
0x3042   :  { %22854 = vmatprep.subr.mxu1 %v28092_v62 }
0x30ea   :  { %v13070_v31 = vpop.f32.mrf.mxu1 }
0x30eb   :  { %v13145_v40 = vadd.f32 %v13144_v39, %v13070_v31 }
0x30ec   :  { %v22798_v10 = vpop.f32.mrf.mxu1 }
0x30fa   :  { %v13238_v25 = vpop.f32.mrf.mxu1 }
0x30fb   :  { %v13242_v24 = vadd.f32 %v13238_v25, %v13145_v40 }
0x30fc   :  { %v22820_v27 = vpop.f32.mrf.mxu1 }
0x30fd   :  { %23720 = vtanh.f32 %v13242_v24 }
0x310a   :  { %v23721_v12 = vpop.eup %23720 }
0x310b   :  { %22830 = vmatmul.mubr.msk.f32.vlgmr.msra.gmra.mxu0 %vm342_vm0, %v23721_v12  ;;  %22841 = vmatmul.mubr.msk.f32.vlgmr.msra.gmra.mxu1 %vm342_vm0, %v23721_v12 }
0x310c   :  { %22844 = vmatpush3.msra.mxu0 %v26705_v43  ;;  %22855 = vmatpush3.xpose.msk.msra.mxu1 %vm342_vm0, %v25732_v16  ;;  %v27011_v43 = vld [vmem:[#allocation28] sm:$0xff] }
0x310d   :  { %22845 = vmatprep.subr.mxu0 %v28092_v62  ;;  %22851 = vmatprep.mubr.msk.f32.mxu0 %vm24384_vm1, %v28092_v62 }
0x310e   :  { %22846 = vmatpush3.msra.mxu0 %v26713_v17  ;;  %22856 = vmatprep.mubr.msk.f32.mxu1 %vm24384_vm1, %v28092_v62 }
0x310f   :  { %22847 = vmatprep.subr.mxu0 %v28092_v62  ;;  %22864 = vmatprep.subr.mxu1 %v28092_v62 }
0x3110   :  { %22848 = vmatpush3.msra.mxu0 %v26720_v59 }
0x3111   :  { %22849 = vmatprep.subr.mxu0 %v28092_v62 }
0x3112   :  { %22850 = vmatpush3.msra.mxu0 %v27011_v43 }
0x3113   :  { %22852 = vmatmul.mubr.msk.f32.vlgmr.msra.gmra.mxu0 %vm342_vm0, %v26936_v34  ;;  %22859 = vmatprep.subr.mxu0 %v28092_v62 }
0x3114   :  { %22860 = vmatpush3.xpose.msk.msra.mxu0 %vm342_vm0, %v28121_v0  ;;  %22861 = vmatprep.mubr.msk.f32.mxu0 %vm24384_vm1, %v28092_v62 }
0x3115   :  { %22869 = vmatprep.subr.mxu0 %v28092_v62 }
0x31cb   :  { %v27022_v17 = vpop.f32.mrf.mxu0  ;;  %v13404_v59 = vpop.f32.mrf.mxu1 }
0x31cc   :  { %28195 = vst [vmem:[#allocation49_spill] sm:$0xff] %v27022_v17  ;;  %v13408_v58 = vadd.f32 %v13404_v59, %v28196_v46 }
0x31cd   :  { %v22831_v7 = vpop.f32.mrf.mxu0  ;;  %v22842_v36 = vpop.f32.mrf.mxu1 }
0x31d3   :  { %v13475_v42 = vpop.f32.mrf.mxu0 }
0x31d4   :  { %v13479_v55 = vadd.f32 %v13475_v42, %v13408_v58 }
0x31d5   :  { %v22853_v34 = vpop.f32.mrf.mxu0 }
0x31d6   :  { %23722 = vtanh.f32 %v13479_v55  ;;  %v20936_v6 = vmul.f32 -1.442695, %v13479_v55 }
0x31d8   :  { %23724 = vpow2.f32 %v20936_v6 }
0x31e3   :  { %v23723_v14 = vpop.eup %23722 }
0x31e4   :  { %13489 = vrot.lane.b32.xlu1 %v23723_v14, %s24386_s18 }
0x31e5   :  { %v23725_v60 = vpop.eup %23724 }
0x31e6   :  { %v13483_v15 = vadd.f32 1.0, %v23725_v60 }
0x31e8   :  { %23726 = vrcp.f32 %v13483_v15 }
0x31f5   :  { %v23727_v21 = vpop.eup %23726 }
0x31f6   :  { %v13487_v38 = vmul.f32 %v23727_v21, %v26739_v41 }
0x3256   :  { %v13490_v2 = vpop.permute.xlu1 %13489 }
0x3257   :  { %v13492_v19 = vmul.f32 %v23727_v21, %v13490_v2 }
0x3259   :  { %13494 = vrot.lane.b32.xlu1 %v13492_v19, %s24387_s8  ;;  %v28197_v19 = vld [vmem:[#allocation53_spill] sm:$0xff] }
0x32cb   :  { %v13495_v5 = vpop.permute.xlu1 %13494 }
0x32cc   :  { %v27028_v18 = vadd.f32 %v13495_v5, %v13487_v38  ;;  %v28198_v5 = vld [vmem:[#allocation54_spill] sm:$0xff] }
0x32ce   :  { %23728 = vtanh.f32 %v27028_v18 }
0x32db   :  { %v23729_v30 = vpop.eup %23728 }
0x32dc   :  { %13500 = vrot.lane.b32.xlu0 %v23729_v30, %s24386_s18 }
0x334e   :  { %v13501_v52 = vpop.permute.xlu0 %13500 }
0x334f   :  { %v27032_v26 = vmul.f32 %v23727_v21, %v13501_v52 }
0x3351   :  { %v13505_v61 = vcombine.high %v27032_v26, %v27032_v26  ;;  %v13512_v63 = vrot.slane %v27032_v26, %v25767_v37 }
0x3353   :  { %v13519_v4 = vrot.slane %v13505_v61, %v25767_v37  ;;  %v13520_v41 = vcombine.high %v13512_v63, %v13512_v63  ;;  %v13528_v47 = vrot.slane %v13512_v63, %v25767_v37 }
0x3355   :  { %v13557_v39 = vrot.slane %v13528_v47, %v25772_v57  ;;  %v13542_v3 = vrot.slane %v13520_v41, %v25767_v37  ;;  %v13550_v31 = vcombine.high %v13528_v47, %v13528_v47  ;;  %v13521_v10 = vcombine.high %v13519_v4, %v13519_v4 }
0x3356   :  { %v13535_v27 = vrot.slane %v13519_v4, %v25767_v37 }
0x3357   :  { %13558 = vrot.lane.b32.xlu1 %v13557_v39, %s24387_s8  ;;  %v13635_v40 = vrot.slane %v13542_v3, %v25772_v57  ;;  %v13552_v25 = vcombine.high %v13542_v3, %v13542_v3  ;;  %v13713_v24 = vrot.slane %v13550_v31, %v25772_v57  ;;  %v13549_v59 = vrot.slane %v13521_v10, %v25767_v37 }
0x3358   :  { %v13869_v7 = vrot.slane %v13535_v27, %v25772_v57  ;;  %v13551_v36 = vcombine.high %v13535_v27, %v13535_v27 }
0x3359   :  { %13636 = vrot.lane.b32.xlu0 %v13635_v40, %s24387_s8  ;;  %v13791_v12 = vrot.slane %v13552_v25, %v25772_v57  ;;  %v13947_v46 = vrot.slane %v13549_v59, %v25772_v57  ;;  %v13553_v58 = vcombine.high %v13549_v59, %v13549_v59  ;;  %v28201_v40 = vld [vmem:[#allocation60_spill] sm:$0xff] }
0x335a   :  { %v14025_v42 = vrot.slane %v13551_v36, %v25772_v57  ;;  %vm28202_vm13 = vcmp.gt.f32.partialorder %v28201_v40, 0.0 }
0x335b   :  { %13714 = vrot.lane.b32.xlu1 %v13713_v24, %s24387_s8  ;;  %v14103_v55 = vrot.slane %v13553_v58, %v25772_v57 }
0x335d   :  { %13792 = vrot.lane.b32.xlu0 %v13791_v12, %s24387_s8  ;;  %v28203_v12 = vld [vmem:[#allocation61_spill] sm:$0xff] }
0x335e   :  { %vm28204_vm4 = vcmp.gt.f32.partialorder %v28203_v12, 0.0 }
0x335f   :  { %13870 = vrot.lane.b32.xlu1 %v13869_v7, %s24387_s8 }
0x3361   :  { %13948 = vrot.lane.b32.xlu0 %v13947_v46, %s24387_s8 }
0x3363   :  { %14026 = vrot.lane.b32.xlu1 %v14025_v42, %s24387_s8  ;;  %v28205_v42 = vld [vmem:[#allocation62_spill] sm:$0xff] }
0x3364   :  { %vm28206_vm2 = vcmp.gt.f32.partialorder %v28205_v42, 0.0 }
0x3365   :  { %14104 = vrot.lane.b32.xlu0 %v14103_v55, %s24387_s8 }
0x33c9   :  { %v13559_v34 = vpop.permute.xlu1 %13558 }
0x33ca   :  { %22857 = vmatmul.mubr.msk.f32.vlgmr.msra.gmra.mxu1 %vm342_vm0, %v13559_v34 }
0x33cb   :  { %22865 = vmatpush3.xpose.msk.msra.mxu1 %vm342_vm0, %v25741_v32  ;;  %v13637_v14 = vpop.permute.xlu0 %13636  ;;  %22866 = vmatprep.mubr.msk.f32.mxu1 %vm24384_vm1, %v28092_v62 }
0x33cc   :  { %22862 = vmatmul.mubr.msk.f32.vlgmr.msra.gmra.mxu0 %vm342_vm0, %v13637_v14  ;;  %22874 = vmatprep.subr.mxu1 %v28092_v62 }
0x33cd   :  { %22870 = vmatpush3.xpose.msk.msra.mxu0 %vm342_vm0, %v25734_v49  ;;  %v13715_v6 = vpop.permute.xlu1 %13714  ;;  %22871 = vmatprep.mubr.msk.f32.mxu0 %vm24384_vm1, %v28092_v62 }
0x33ce   :  { %22867 = vmatmul.mubr.msk.f32.vlgmr.msra.gmra.mxu1 %vm342_vm0, %v13715_v6  ;;  %22879 = vmatprep.subr.mxu0 %v28092_v62  ;;  %v28207_v6 = vld [vmem:[#allocation63_spill] sm:$0xff] }
0x33cf   :  { %22875 = vmatpush3.xpose.msk.msra.mxu1 %vm342_vm0, %v25807_v23  ;;  %v13793_v60 = vpop.permute.xlu0 %13792  ;;  %22876 = vmatprep.mubr.msk.f32.mxu1 %vm24384_vm1, %v28092_v62  ;;  %vm28208_vm3 = vcmp.gt.f32.partialorder %v28207_v6, 0.0 }
0x33d0   :  { %22872 = vmatmul.mubr.msk.f32.vlgmr.msra.gmra.mxu0 %vm342_vm0, %v13793_v60  ;;  %22884 = vmatprep.subr.mxu1 %v28092_v62 }
0x33d1   :  { %22880 = vmatpush3.xpose.msk.msra.mxu0 %vm342_vm0, %v25743_v28  ;;  %v13871_v15 = vpop.permute.xlu1 %13870  ;;  %22881 = vmatprep.mubr.msk.f32.mxu0 %vm24384_vm1, %v28092_v62 }
0x33d2   :  { %22877 = vmatmul.mubr.msk.f32.vlgmr.msra.gmra.mxu1 %vm342_vm0, %v13871_v15  ;;  %22889 = vmatprep.subr.mxu0 %v28092_v62 }
0x33d3   :  { %22885 = vmatpush3.xpose.msk.msra.mxu1 %vm342_vm0, %v28124_v9  ;;  %v13949_v21 = vpop.permute.xlu0 %13948  ;;  %22886 = vmatprep.mubr.msk.f32.mxu1 %vm24384_vm1, %v28092_v62 }
0x33d4   :  { %22882 = vmatmul.mubr.msk.f32.vlgmr.msra.gmra.mxu0 %vm342_vm0, %v13949_v21  ;;  %22894 = vmatprep.subr.mxu1 %v28092_v62 }
0x33d5   :  { %22890 = vmatpush3.xpose.msk.msra.mxu0 %vm342_vm0, %v28125_v11  ;;  %v14027_v2 = vpop.permute.xlu1 %14026  ;;  %22891 = vmatprep.mubr.msk.f32.mxu0 %vm24384_vm1, %v28092_v62 }
0x33d6   :  { %22887 = vmatmul.mubr.msk.f32.vlgmr.msra.gmra.mxu1 %vm342_vm0, %v14027_v2  ;;  %22899 = vmatprep.subr.mxu0 %v28092_v62 }
0x33d7   :  { %22895 = vmatpush3.msra.mxu1 %v28197_v19  ;;  %v14105_v38 = vpop.permute.xlu0 %14104  ;;  %22896 = vmatprep.mubr.msk.f32.mxu1 %vm24384_vm1, %v28092_v62 }
0x33d8   :  { %22892 = vmatmul.mubr.msk.f32.vlgmr.msra.gmra.mxu0 %vm342_vm0, %v14105_v38  ;;  %22904 = vmatprep.subr.mxu1 %v28092_v62 }
0x33d9   :  { %22900 = vmatpush3.msra.mxu0 %v28198_v5  ;;  %22901 = vmatprep.mubr.msk.f32.mxu0 %vm24384_vm1, %v28092_v62 }
0x33da   :  { %22909 = vmatprep.subr.mxu0 %v28092_v62 }
0x348a   :  { %v13628_v30 = vpop.f32.mrf.mxu1 }
0x348b   :  { %v14178_v61 = vsel %vm4410_vm8, %v13628_v30, -1e+30  ;;  %v28209_v30 = vld [vmem:[#allocation64_spill] sm:$0xff] }
0x348c   :  { %v14186_v63 = vsel %vm4426_vm9, %v14178_v61, -inf  ;;  %v22858_v4 = vpop.f32.mrf.mxu1  ;;  %v13706_v41 = vpop.f32.mrf.mxu0 }
0x348d   :  { %v14179_v39 = vsel %vm4411_vm12, %v13706_v41, -1e+30  ;;  %14187 = vmax.xlane.f32.xlu1 %v14186_v63 }
0x348e   :  { %v14189_v3 = vsel %vm4426_vm9, %v14179_v39, -inf  ;;  %v22863_v31 = vpop.f32.mrf.mxu0  ;;  %v13784_v10 = vpop.f32.mrf.mxu1 }
0x348f   :  { %v14180_v25 = vsel %vm28202_vm13, %v13784_v10, -1e+30  ;;  %14190 = vmax.xlane.f32.xlu0 %v14189_v3  ;;  %vm28210_vm13 = vcmp.gt.f32.partialorder %v28209_v30, 0.0  ;;  %v28211_v3 = vld [vmem:[#allocation65_spill] sm:$0xff] }
0x3490   :  { %v22868_v24 = vpop.f32.mrf.mxu1  ;;  %v13862_v27 = vpop.f32.mrf.mxu0  ;;  %v14192_v7 = vsel %vm4426_vm9, %v14180_v25, -inf }
0x3491   :  { %v14181_v59 = vsel %vm28204_vm4, %v13862_v27, -1e+30  ;;  %vm28212_vm4 = vcmp.gt.f32.partialorder %v28211_v3, 0.0 }
0x3492   :  { %v14195_v36 = vsel %vm4426_vm9, %v14181_v59, -inf  ;;  %v22873_v46 = vpop.f32.mrf.mxu0  ;;  %v13940_v58 = vpop.f32.mrf.mxu1 }
0x3493   :  { %v14182_v55 = vsel %vm28206_vm2, %v13940_v58, -1e+30  ;;  %14193 = vmax.xlane.f32.xlu0 %v14192_v7  ;;  %14196 = vmax.xlane.f32.xlu1 %v14195_v36  ;;  %vm28213_vm2 = vcmask 64512  }
0x3494   :  { %v22878_v34 = vpop.f32.mrf.mxu1  ;;  %v14018_v14 = vpop.f32.mrf.mxu0  ;;  %v14198_v15 = vsel %vm4426_vm9, %v14182_v55, -inf }
0x3495   :  { %v14183_v60 = vsel %vm28208_vm3, %v14018_v14, -1e+30  ;;  %vm28214_vm3 = vmmov %vm28213_vm2 }
0x3496   :  { %v14201_v21 = vsel %vm4426_vm9, %v14183_v60, -inf  ;;  %v22883_v2 = vpop.f32.mrf.mxu0  ;;  %v14096_v38 = vpop.f32.mrf.mxu1 }
0x3497   :  { %v14184_v63 = vsel %vm28210_vm13, %v14096_v38, -1e+30  ;;  %14199 = vmax.xlane.f32.xlu0 %v14198_v15  ;;  %14202 = vmax.xlane.f32.xlu1 %v14201_v21  ;;  %vm28215_vm13 = vmmov %vm28213_vm2 }
0x3498   :  { %v22888_v4 = vpop.f32.mrf.mxu1  ;;  %v14174_v41 = vpop.f32.mrf.mxu0  ;;  %v14204_v10 = vsel %vm4426_vm9, %v14184_v63, -inf }
0x3499   :  { %v14185_v31 = vsel %vm28212_vm4, %v14174_v41, -1e+30  ;;  %vm28216_vm4 = vmmov %vm28213_vm2 }
0x349a   :  { %v14207_v24 = vsel %vm4426_vm9, %v14185_v31, -inf  ;;  %v22893_v27 = vpop.f32.mrf.mxu0 }
0x349b   :  { %14205 = vmax.xlane.f32.xlu0 %v14204_v10  ;;  %14208 = vmax.xlane.f32.xlu1 %v14207_v24 }
0x3516   :  { %v14188_v7 = vpop.xlane.xlu1 %14187 }
0x3517   :  { %v14210_v36 = vsub.f32 %v14178_v61, %v14188_v7 }
0x3518   :  { %v14191_v46 = vpop.xlane.xlu0 %14190 }
0x3519   :  { %v14218_v58 = vmul.f32 1.442695, %v14210_v36  ;;  %v14211_v34 = vsub.f32 %v14179_v39, %v14191_v46 }
0x351b   :  { %23730 = vpow2.f32 %v14218_v58  ;;  %v14220_v14 = vmul.f32 1.442695, %v14211_v34 }
0x351c   :  { %v14194_v15 = vpop.xlane.xlu0 %14193  ;;  %v14197_v21 = vpop.xlane.xlu1 %14196 }
0x351d   :  { %23732 = vpow2.f32 %v14220_v14  ;;  %v14212_v2 = vsub.f32 %v14180_v25, %v14194_v15  ;;  %v14213_v38 = vsub.f32 %v14181_v59, %v14197_v21 }
0x351f   :  { %v14222_v4 = vmul.f32 1.442695, %v14212_v2  ;;  %v14224_v41 = vmul.f32 1.442695, %v14213_v38 }
0x3520   :  { %v14200_v17 = vpop.xlane.xlu0 %14199  ;;  %v14203_v3 = vpop.xlane.xlu1 %14202 }
0x3521   :  { %23734 = vpow2.f32 %v14222_v4  ;;  %v14214_v27 = vsub.f32 %v14182_v55, %v14200_v17  ;;  %v14215_v10 = vsub.f32 %v14183_v60, %v14203_v3 }
0x3522   :  { %23736 = vpow2.f32 %v14224_v41 }
0x3523   :  { %v14226_v24 = vmul.f32 1.442695, %v14214_v27  ;;  %v14228_v61 = vmul.f32 1.442695, %v14215_v10 }
0x3524   :  { %v14206_v7 = vpop.xlane.xlu0 %14205  ;;  %v14209_v36 = vpop.xlane.xlu1 %14208 }
0x3525   :  { %23738 = vpow2.f32 %v14226_v24  ;;  %v14216_v39 = vsub.f32 %v14184_v63, %v14206_v7  ;;  %v14217_v46 = vsub.f32 %v14185_v31, %v14209_v36 }
0x3526   :  { %23740 = vpow2.f32 %v14228_v61 }
0x3527   :  { %v14230_v58 = vmul.f32 1.442695, %v14216_v39  ;;  %v14232_v34 = vmul.f32 1.442695, %v14217_v46 }
0x3528   :  { %v23731_v25 = vpop.eup %23730 }
0x3529   :  { %23742 = vpow2.f32 %v14230_v58  ;;  %v14234_v59 = vsel %vm4426_vm9, %v23731_v25, 0.0 }
0x352a   :  { %v23733_v14 = vpop.eup %23732  ;;  %23744 = vpow2.f32 %v14232_v34  ;;  %14235 = vadd.xlane.f32.xlu0 %v14234_v59 }
0x352b   :  { %v14237_v17 = vsel %vm4426_vm9, %v23733_v14, 0.0 }
0x352c   :  { %14238 = vadd.xlane.f32.xlu1 %v14237_v17 }
0x352e   :  { %v23735_v55 = vpop.eup %23734 }
0x352f   :  { %v23737_v60 = vpop.eup %23736  ;;  %v14240_v3 = vsel %vm4426_vm9, %v23735_v55, 0.0 }
0x3530   :  { %14241 = vadd.xlane.f32.xlu0 %v14240_v3  ;;  %v14243_v63 = vsel %vm4426_vm9, %v23737_v60, 0.0 }
0x3531   :  { %14244 = vadd.xlane.f32.xlu1 %v14243_v63 }
0x3532   :  { %v23739_v31 = vpop.eup %23738 }
0x3533   :  { %v23741_v15 = vpop.eup %23740  ;;  %v14246_v21 = vsel %vm4426_vm9, %v23739_v31, 0.0 }
0x3534   :  { %14247 = vadd.xlane.f32.xlu0 %v14246_v21  ;;  %v14249_v2 = vsel %vm4426_vm9, %v23741_v15, 0.0 }
0x3535   :  { %14250 = vadd.xlane.f32.xlu1 %v14249_v2 }
0x3536   :  { %v23743_v38 = vpop.eup %23742 }
0x3537   :  { %v23745_v4 = vpop.eup %23744  ;;  %v14252_v41 = vsel %vm4426_vm9, %v23743_v38, 0.0 }
0x3538   :  { %14253 = vadd.xlane.f32.xlu0 %v14252_v41  ;;  %v14255_v27 = vsel %vm4426_vm9, %v23745_v4, 0.0 }
0x3539   :  { %14256 = vadd.xlane.f32.xlu1 %v14255_v27 }
0x354e   :  { %15512 = vrot.lane.b32.xlu0 %v27032_v26, %s24387_s8 }
0x35b3   :  { %v14236_v10 = vpop.xlane.xlu0 %14235 }
0x35b4   :  { %23746 = vrcp.f32 %v14236_v10  ;;  %v27221_v10 = vld [vmem:[#allocation30 + $0x10] sm:$0xff] }
0x35b5   :  { %v14239_v24 = vpop.xlane.xlu1 %14238 }
0x35b6   :  { %23748 = vrcp.f32 %v14239_v24  ;;  %v27224_v24 = vld [vmem:[#allocation31 + $0x10] sm:$0xff] }
0x35b9   :  { %v14242_v61 = vpop.xlane.xlu0 %14241 }
0x35ba   :  { %23750 = vrcp.f32 %v14242_v61  ;;  %v14245_v7 = vpop.xlane.xlu1 %14244  ;;  %v27229_v61 = vld [vmem:[#allocation30 + $0x8] sm:$0xff] }
0x35bb   :  { %23752 = vrcp.f32 %v14245_v7  ;;  %v27232_v7 = vld [vmem:[#allocation31 + $0x8] sm:$0xff] }
0x35bc   :  { %28226 = vst [vmem:[#allocation67_spill] sm:$0xff] %v27232_v7 }
0x35bd   :  { %v14248_v36 = vpop.xlane.xlu0 %14247 }
0x35be   :  { %23754 = vrcp.f32 %v14248_v36  ;;  %v14251_v39 = vpop.xlane.xlu1 %14250 }
0x35bf   :  { %23756 = vrcp.f32 %v14251_v39  ;;  %v27239_v39 = vld [vmem:[#allocation30] sm:$0xff] }
0x35c0   :  { %28227 = vst [vmem:[#allocation68_spill] sm:$0xff] %v27239_v39 }
0x35c1   :  { %v23747_v46 = vpop.eup %23746  ;;  %v14254_v58 = vpop.xlane.xlu0 %14253 }
0x35c2   :  { %v14266_v34 = vmul.f32 %v23747_v46, %v23731_v25  ;;  %23758 = vrcp.f32 %v14254_v58  ;;  %v14257_v59 = vpop.xlane.xlu1 %14256  ;;  %v27242_v46 = vld [vmem:[#allocation31] sm:$0xff]  ;;  %v27251_v58 = vld [vmem:[#allocation34 + $0x18] sm:$0xff] }
0x35c3   :  { %v23749_v17 = vpop.eup %23748  ;;  %23760 = vrcp.f32 %v14257_v59  ;;  %28228 = vst [vmem:[#allocation69_spill] sm:$0xff] %v27242_v46  ;;  %28229 = vst [vmem:[#allocation70_spill] sm:$0xff] %v27251_v58  ;;  %v27261_v59 = vld [vmem:[#allocation34 + $0x8] sm:$0xff] }
0x35c4   :  { %v14267_v26 = vmul.f32 %v23749_v17, %v23733_v14  ;;  %22897 = vmatmul.mubr.msk.f32.vlgmr.msra.gmra.mxu1 %vm28213_vm2, %v14266_v34  ;;  %28231 = vst [vmem:[#allocation55_spill] sm:$0xff] %v27261_v59  ;;  %v27265_v17 = vld [vmem:[#allocation34] sm:$0xff] }
0x35c5   :  { %22905 = vmatpush3.msra.mxu1 %v25656_v35  ;;  %22906 = vmatprep.mubr.msk.f32.mxu1 %vm24384_vm1, %v28092_v62  ;;  %v27237_v36 = vpop.permute.xlu0 %15512  ;;  %28232 = vst [vmem:[#allocation48_spill] sm:$0xff] %v27265_v17 }
0x35c6   :  { %22902 = vmatmul.mubr.msk.f32.vlgmr.msra.gmra.mxu0 %vm28214_vm3, %v14267_v26  ;;  %22914 = vmatprep.subr.mxu1 %v28092_v62  ;;  %vm28217_vm3 = vmmov %vm28213_vm2 }
0x35c7   :  { %v23751_v3 = vpop.eup %23750  ;;  %22910 = vmatpush3.msra.mxu0 %v25673_v33  ;;  %22911 = vmatprep.mubr.msk.f32.mxu0 %vm24384_vm1, %v28092_v62 }
0x35c8   :  { %v23753_v25 = vpop.eup %23752  ;;  %v14268_v63 = vmul.f32 %v23751_v3, %v23735_v55  ;;  %22919 = vmatprep.subr.mxu0 %v28092_v62 }
0x35c9   :  { %v14269_v14 = vmul.f32 %v23753_v25, %v23737_v60 }
0x35ca   :  { %22907 = vmatmul.mubr.msk.f32.vlgmr.msra.gmra.mxu1 %vm28215_vm13, %v14268_v63  ;;  %vm28218_vm13 = vmmov %vm28213_vm2 }
0x35cb   :  { %v23755_v21 = vpop.eup %23754  ;;  %22912 = vmatmul.mubr.msk.f32.vlgmr.msra.gmra.mxu0 %vm28216_vm4, %v14269_v14  ;;  %22915 = vmatpush3.msra.mxu1 %v25678_v54  ;;  %vm28219_vm4 = vmmov %vm28213_vm2 }
0x35cc   :  { %v23757_v2 = vpop.eup %23756  ;;  %v14270_v41 = vmul.f32 %v23755_v21, %v23739_v31  ;;  %22920 = vmatpush3.msra.mxu0 %v25695_v53  ;;  %22916 = vmatprep.mubr.msk.f32.mxu1 %vm24384_vm1, %v28092_v62 }
0x35cd   :  { %v14271_v27 = vmul.f32 %v23757_v2, %v23741_v15  ;;  %22921 = vmatprep.mubr.msk.f32.mxu0 %vm24384_vm1, %v28092_v62  ;;  %22924 = vmatprep.subr.mxu1 %v28092_v62 }
0x35ce   :  { %22929 = vmatprep.subr.mxu0 %v28092_v62  ;;  %22917 = vmatmul.mubr.msk.f32.vlgmr.msra.gmra.mxu1 %vm28213_vm2, %v14270_v41 }
0x35cf   :  { %v23759_v55 = vpop.eup %23758  ;;  %22922 = vmatmul.mubr.msk.f32.vlgmr.msra.gmra.mxu0 %vm28217_vm3, %v14271_v27  ;;  %22925 = vmatpush3.msra.mxu1 %v25698_v56  ;;  %vm28220_vm3 = vmmov %vm28213_vm2 }
0x35d0   :  { %v23761_v60 = vpop.eup %23760  ;;  %v14272_v31 = vmul.f32 %v23759_v55, %v23743_v38  ;;  %22930 = vmatpush3.msra.mxu0 %v25710_v8  ;;  %22926 = vmatprep.mubr.msk.f32.mxu1 %vm24384_vm1, %v28092_v62  ;;  %v27211_v38 = vld [vmem:[#allocation31 + $0x18] sm:$0xff] }
0x35d1   :  { %v14273_v15 = vmul.f32 %v23761_v60, %v23745_v4  ;;  %22931 = vmatprep.mubr.msk.f32.mxu0 %vm24384_vm1, %v28092_v62  ;;  %22934 = vmatprep.subr.mxu1 %v28092_v62  ;;  %v27214_v4 = vld [vmem:[#allocation30 + $0x18] sm:$0xff] }
0x35d2   :  { %22939 = vmatprep.subr.mxu0 %v28092_v62  ;;  %22927 = vmatmul.mubr.msk.f32.vlgmr.msra.gmra.mxu1 %vm28218_vm13, %v14272_v31  ;;  %vm28221_vm13 = vmmov %vm28213_vm2 }
0x35d3   :  { %22932 = vmatmul.mubr.msk.f32.vlgmr.msra.gmra.mxu0 %vm28219_vm4, %v14273_v15  ;;  %22935 = vmatpush3.msra.mxu1 %v25620_v48  ;;  %vm28222_vm4 = vmmov %vm28213_vm2 }
0x35d4   :  { %22940 = vmatpush3.msra.mxu0 %v25622_v50  ;;  %22936 = vmatprep.mubr.msk.f32.mxu1 %vm24384_vm1, %v28092_v62 }
0x35d5   :  { %22941 = vmatprep.mubr.msk.f32.mxu0 %vm24384_vm1, %v28092_v62  ;;  %22944 = vmatprep.subr.mxu1 %v28092_v62 }
0x35d6   :  { %22949 = vmatprep.subr.mxu0 %v28092_v62  ;;  %22937 = vmatmul.mubr.msk.f32.vlgmr.msra.gmra.mxu1 %vm28213_vm2, %v14266_v34  ;;  %v27257_v34 = vld [vmem:[#allocation34 + $0x10] sm:$0xff] }
0x35d7   :  { %22942 = vmatmul.mubr.msk.f32.vlgmr.msra.gmra.mxu0 %vm28220_vm3, %v14267_v26  ;;  %22945 = vmatpush3.msra.mxu1 %v25631_v22  ;;  %vm28223_vm3 = vmmov %vm28213_vm2  ;;  %28230 = vst [vmem:[#allocation71_spill] sm:$0xff] %v27257_v34 }
0x35d8   :  { %22950 = vmatpush3.msra.mxu0 %v25648_v13  ;;  %22946 = vmatprep.mubr.msk.f32.mxu1 %vm24384_vm1, %v28092_v62 }
0x35d9   :  { %22951 = vmatprep.mubr.msk.f32.mxu0 %vm24384_vm1, %v28092_v62  ;;  %22954 = vmatprep.subr.mxu1 %v28092_v62 }
0x35da   :  { %22959 = vmatprep.subr.mxu0 %v28092_v62  ;;  %22947 = vmatmul.mubr.msk.f32.vlgmr.msra.gmra.mxu1 %vm28221_vm13, %v14268_v63  ;;  %vm28224_vm13 = vmmov %vm28213_vm2 }
0x35db   :  { %22952 = vmatmul.mubr.msk.f32.vlgmr.msra.gmra.mxu0 %vm28222_vm4, %v14269_v14  ;;  %22955 = vmatpush3.msra.mxu1 %v25650_v20  ;;  %vm28225_vm4 = vmmov %vm28213_vm2 }
0x35dc   :  { %22960 = vmatpush3.msra.mxu0 %v25671_v45  ;;  %22956 = vmatprep.mubr.msk.f32.mxu1 %vm24384_vm1, %v28092_v62 }
0x35dd   :  { %22961 = vmatprep.mubr.msk.f32.mxu0 %vm24384_vm1, %v28092_v62  ;;  %22964 = vmatprep.subr.mxu1 %v28092_v62 }
0x35de   :  { %22969 = vmatprep.subr.mxu0 %v28092_v62  ;;  %22957 = vmatmul.mubr.msk.f32.vlgmr.msra.gmra.mxu1 %vm28213_vm2, %v14270_v41  ;;  %vm28237_vm2 = vcmp.gt.f32.partialorder %v28201_v40, 0.0 }
0x35df   :  { %22962 = vmatmul.mubr.msk.f32.vlgmr.msra.gmra.mxu0 %vm28223_vm3, %v14271_v27  ;;  %22965 = vmatpush3.msra.mxu1 %v25676_v1  ;;  %vm28238_vm3 = vcmp.gt.f32.partialorder %v28203_v12, 0.0 }
0x35e0   :  { %22970 = vmatpush3.msra.mxu0 %v25693_v29  ;;  %22966 = vmatprep.mubr.msk.f32.mxu1 %vm24384_vm1, %v28092_v62 }
0x35e1   :  { %22971 = vmatprep.mubr.msk.f32.mxu0 %vm24384_vm1, %v28092_v62  ;;  %22985 = vmatprep.subr.mxu0 %v28092_v62 }
0x35e2   :  { %22967 = vmatmul.mubr.msk.f32.vlgmr.msra.gmra.mxu1 %vm28224_vm13, %v14272_v31  ;;  %22974 = vmatprep.subr.mxu1 %v28092_v62  ;;  %vm28239_vm13 = vcmp.gt.f32.partialorder %v28205_v42, 0.0  ;;  %v28242_v42 = vld [vmem:[#allocation65_spill] sm:$0xff] }
0x35e3   :  { %22972 = vmatmul.mubr.msk.f32.vlgmr.msra.gmra.mxu0 %vm28225_vm4, %v14273_v15  ;;  %22975 = vmatpush3.msra.mxu1 %v27211_v38  ;;  %vm28240_vm4 = vcmp.gt.f32.partialorder %v28207_v6, 0.0 }
0x35e4   :  { %22986 = vmatpush3.msra.mxu0 %v27214_v4  ;;  %22993 = vmatprep.mubr.msk.f32.mxu0 %vm24384_vm1, %v28092_v62 }
0x35e5   :  { %22987 = vmatprep.subr.mxu0 %v28092_v62  ;;  %22976 = vmatprep.subr.mxu1 %v28092_v62 }
0x35e6   :  { %22988 = vmatpush3.msra.mxu0 %v27221_v10  ;;  %22977 = vmatpush3.msra.mxu1 %v27224_v24 }
0x35e7   :  { %22989 = vmatprep.subr.mxu0 %v28092_v62  ;;  %22978 = vmatprep.subr.mxu1 %v28092_v62 }
0x35e8   :  { %22990 = vmatpush3.msra.mxu0 %v27229_v61  ;;  %22979 = vmatpush3.msra.mxu1 %v27232_v7 }
0x35e9   :  { %22991 = vmatprep.subr.mxu0 %v28092_v62  ;;  %22980 = vmatprep.subr.mxu1 %v28092_v62 }
0x35ea   :  { %22992 = vmatpush3.msra.mxu0 %v27239_v39  ;;  %22981 = vmatpush3.msra.mxu1 %v27242_v46 }
0x35eb   :  { %22994 = vmatmul.mubr.msk.f32.vlgmr.msra.gmra.mxu0 %vm342_vm0, %v27237_v36  ;;  %22982 = vmatprep.mubr.msk.f32.mxu1 %vm24384_vm1, %v28092_v62 }
0x35ec   :  { %22996 = vmatprep.subr.mxu1 %v28092_v62  ;;  %23007 = vmatprep.subr.mxu0 %v28092_v62 }
0x35ed   :  { %23008 = vmatpush3.msra.mxu0 %v27251_v58  ;;  %23015 = vmatprep.mubr.msk.f32.mxu0 %vm24384_vm1, %v28092_v62 }
0x35ee   :  { %23009 = vmatprep.subr.mxu0 %v28092_v62 }
0x35ef   :  { %23010 = vmatpush3.msra.mxu0 %v27257_v34 }
0x35f0   :  { %23011 = vmatprep.subr.mxu0 %v28092_v62 }
0x35f1   :  { %23012 = vmatpush3.msra.mxu0 %v27261_v59 }
0x35f2   :  { %23013 = vmatprep.subr.mxu0 %v28092_v62 }
0x35f3   :  { %23014 = vmatpush3.msra.mxu0 %v27265_v17 }
0x35f4   :  { %23029 = vmatprep.subr.mxu0 %v28092_v62 }
0x3684   :  { %v14343_v26 = vpop.f32.mrf.mxu1 }
0x3686   :  { %v22898_v3 = vpop.f32.mrf.mxu1  ;;  %v14416_v25 = vpop.f32.mrf.mxu0 }
0x3687   :  { %v15426_v63 = vrot.slane %v14416_v25, 7 }
0x3688   :  { %v22903_v14 = vpop.f32.mrf.mxu0 }
0x3689   :  { %v15427_v27 = vsel %vm5669_vm10, %v15426_v63, %v14343_v26 }
0x368a   :  { %v14489_v21 = vpop.f32.mrf.mxu1 }
0x368b   :  { %v15428_v2 = vrot.slane %v14489_v21, 6  ;;  %v14562_v41 = vpop.f32.mrf.mxu0 }
0x368c   :  { %v15430_v55 = vrot.slane %v14562_v41, 5  ;;  %v22908_v60 = vpop.f32.mrf.mxu1 }
0x368d   :  { %v15429_v31 = vsel %vm5672_vm11, %v15428_v2, %v15427_v27  ;;  %v22913_v15 = vpop.f32.mrf.mxu0 }
0x368e   :  { %v14635_v59 = vpop.f32.mrf.mxu1  ;;  %v15431_v58 = vsel %vm5675_vm14, %v15430_v55, %v15429_v31 }
0x368f   :  { %v15432_v34 = vrot.slane %v14635_v59, 4  ;;  %v14708_v17 = vpop.f32.mrf.mxu0 }
0x3690   :  { %v15434_v46 = vrot.slane %v14708_v17, 3  ;;  %v22918_v3 = vpop.f32.mrf.mxu1 }
0x3691   :  { %v15433_v25 = vsel %vm5678_vm15, %v15432_v34, %v15431_v58  ;;  %v22923_v14 = vpop.f32.mrf.mxu0  ;;  %v27277_v58 = vld [vmem:[#allocation33 + $0x18] sm:$0xff] }
0x3692   :  { %v14781_v39 = vpop.f32.mrf.mxu1  ;;  %v15435_v26 = vsel %vm5681_vm7, %v15434_v46, %v15433_v25  ;;  %v27283_v46 = vld [vmem:[#allocation33 + $0x10] sm:$0xff] }
0x3693   :  { %v15436_v21 = vrot.slane %v14781_v39, 2  ;;  %v14854_v7 = vpop.f32.mrf.mxu0 }
0x3694   :  { %v15438_v63 = vrot.slane %v14854_v7, 1  ;;  %v22928_v41 = vpop.f32.mrf.mxu1 }
0x3695   :  { %v15437_v2 = vsel %vm5684_vm6, %v15436_v21, %v15435_v26  ;;  %v22933_v27 = vpop.f32.mrf.mxu0  ;;  %v27288_v21 = vld [vmem:[#allocation33 + $0x8] sm:$0xff] }
0x3696   :  { %v15439_v59 = vsel %vm5687_vm5, %v15438_v63, %v15437_v2  ;;  %v14924_v60 = vpop.f32.mrf.mxu1  ;;  %28233 = vst [vmem:[#allocation57_spill] sm:$0xff] %v27288_v21  ;;  %v27293_v2 = vld [vmem:[#allocation33] sm:$0xff] }
0x3697   :  { %v14994_v15 = vpop.f32.mrf.mxu0  ;;  %22983 = vmatmul.mubr.msk.f32.vlgmr.msra.gmra.mxu1 %vm342_vm0, %v15439_v59  ;;  %28234 = vst [vmem:[#allocation56_spill] sm:$0xff] %v27293_v2 }
0x3698   :  { %v15594_v17 = vrot.slane %v14994_v15, 7  ;;  %v22938_v55 = vpop.f32.mrf.mxu1  ;;  %22997 = vmatpush3.msra.mxu1 %v27277_v58  ;;  %23004 = vmatprep.mubr.msk.f32.mxu1 %vm24384_vm1, %v28092_v62 }
0x3699   :  { %v22943_v7 = vpop.f32.mrf.mxu0  ;;  %22998 = vmatprep.subr.mxu1 %v28092_v62 }
0x369a   :  { %v15064_v39 = vpop.f32.mrf.mxu1  ;;  %22999 = vmatpush3.msra.mxu1 %v27283_v46  ;;  %v15595_v3 = vsel %vm5669_vm10, %v15594_v17, %v14924_v60 }
0x369b   :  { %v15596_v34 = vrot.slane %v15064_v39, 6  ;;  %v15134_v31 = vpop.f32.mrf.mxu0  ;;  %23000 = vmatprep.subr.mxu1 %v28092_v62 }
0x369c   :  { %v15598_v25 = vrot.slane %v15134_v31, 5  ;;  %v22948_v14 = vpop.f32.mrf.mxu1  ;;  %23001 = vmatpush3.msra.mxu1 %v27288_v21 }
0x369d   :  { %v15597_v26 = vsel %vm5672_vm11, %v15596_v34, %v15595_v3  ;;  %v22953_v63 = vpop.f32.mrf.mxu0  ;;  %23002 = vmatprep.subr.mxu1 %v28092_v62 }
0x369e   :  { %v15204_v41 = vpop.f32.mrf.mxu1  ;;  %23003 = vmatpush3.msra.mxu1 %v27293_v2  ;;  %v15599_v60 = vsel %vm5675_vm14, %v15598_v25, %v15597_v26  ;;  %v27303_v25 = vld [vmem:[#allocation27 + $0x18] sm:$0xff]  ;;  %v27309_v26 = vld [vmem:[#allocation27 + $0x10] sm:$0xff] }
0x369f   :  { %v15600_v27 = vrot.slane %v15204_v41, 4  ;;  %v15274_v59 = vpop.f32.mrf.mxu0  ;;  %23018 = vmatprep.subr.mxu1 %v28092_v62 }
0x36a0   :  { %v15602_v15 = vrot.slane %v15274_v59, 3  ;;  %v22958_v17 = vpop.f32.mrf.mxu1 }
0x36a1   :  { %v15601_v55 = vsel %vm5678_vm15, %v15600_v27, %v15599_v60  ;;  %v22963_v7 = vpop.f32.mrf.mxu0 }
0x36a2   :  { %v15344_v39 = vpop.f32.mrf.mxu1  ;;  %v15603_v3 = vsel %vm5681_vm7, %v15602_v15, %v15601_v55 }
0x36a3   :  { %v15604_v34 = vrot.slane %v15344_v39, 2  ;;  %v15414_v31 = vpop.f32.mrf.mxu0  ;;  %v27334_v39 = vld [vmem:[#allocation28 + $0x8] sm:$0xff] }
0x36a4   :  { %v15606_v14 = vrot.slane %v15414_v31, 1  ;;  %v22968_v63 = vpop.f32.mrf.mxu1 }
0x36a5   :  { %v15605_v2 = vsel %vm5684_vm6, %v15604_v34, %v15603_v3  ;;  %v22973_v41 = vpop.f32.mrf.mxu0  ;;  %v28236_v63 = vld [vmem:[#allocation51_spill] sm:$0xff] }
0x36a6   :  { %v15607_v21 = vsel %vm5687_vm5, %v15606_v14, %v15605_v2 }
0x36a7   :  { %23005 = vmatmul.mubr.msk.f32.vlgmr.msra.gmra.mxu1 %vm342_vm0, %v15607_v21 }
0x36a8   :  { %23019 = vmatpush3.msra.mxu1 %v27303_v25  ;;  %23026 = vmatprep.mubr.msk.f32.mxu1 %vm24384_vm1, %v28092_v62 }
0x36a9   :  { %23020 = vmatprep.subr.mxu1 %v28092_v62 }
0x36aa   :  { %23021 = vmatpush3.msra.mxu1 %v27309_v26 }
0x36ab   :  { %v15582_v27 = vpop.f32.mrf.mxu0  ;;  %23022 = vmatprep.subr.mxu1 %v28092_v62 }
0x36ac   :  { %23023 = vmatpush3.msra.mxu1 %v26988_v51  ;;  %v27319_v51 = vld [vmem:[#allocation28 + $0x18] sm:$0xff] }
0x36ad   :  { %v22995_v2 = vpop.f32.mrf.mxu0  ;;  %23024 = vmatprep.subr.mxu1 %v28092_v62 }
0x36ae   :  { %23025 = vmatpush3.msra.mxu1 %v26992_v44  ;;  %v27327_v44 = vld [vmem:[#allocation28 + $0x10] sm:$0xff] }
0x36af   :  { %23040 = vmatprep.subr.mxu1 %v28092_v62 }
0x3757   :  { %v15508_v21 = vpop.f32.mrf.mxu1 }
0x3758   :  { %v15583_v60 = vadd.f32 %v15582_v27, %v15508_v21 }
0x3759   :  { %v22984_v59 = vpop.f32.mrf.mxu1 }
0x3767   :  { %v15676_v15 = vpop.f32.mrf.mxu1 }
0x3768   :  { %v15680_v17 = vadd.f32 %v15676_v15, %v15583_v60 }
0x3769   :  { %v23006_v55 = vpop.f32.mrf.mxu1 }
0x376a   :  { %23762 = vtanh.f32 %v15680_v17 }
0x3777   :  { %v23763_v7 = vpop.eup %23762 }
0x3778   :  { %23016 = vmatmul.mubr.msk.f32.vlgmr.msra.gmra.mxu0 %vm342_vm0, %v23763_v7  ;;  %23027 = vmatmul.mubr.msk.f32.vlgmr.msra.gmra.mxu1 %vm342_vm0, %v23763_v7 }
0x3779   :  { %23030 = vmatpush3.msra.mxu0 %v27319_v51  ;;  %23041 = vmatpush3.xpose.msk.msra.mxu1 %vm342_vm0, %v25732_v16 }
0x377a   :  { %23031 = vmatprep.subr.mxu0 %v28092_v62  ;;  %23037 = vmatprep.mubr.msk.f32.mxu0 %vm24384_vm1, %v28092_v62 }
0x377b   :  { %23032 = vmatpush3.msra.mxu0 %v27327_v44  ;;  %23042 = vmatprep.mubr.msk.f32.mxu1 %vm24384_vm1, %v28092_v62 }
0x377c   :  { %23033 = vmatprep.subr.mxu0 %v28092_v62  ;;  %23050 = vmatprep.subr.mxu1 %v28092_v62 }
0x377d   :  { %23034 = vmatpush3.msra.mxu0 %v27334_v39 }
0x377e   :  { %23035 = vmatprep.subr.mxu0 %v28092_v62 }
0x377f   :  { %23036 = vmatpush3.msra.mxu0 %v27011_v43 }
0x3780   :  { %23038 = vmatmul.mubr.msk.f32.vlgmr.msra.gmra.mxu0 %vm342_vm0, %v27237_v36  ;;  %23045 = vmatprep.subr.mxu0 %v28092_v62 }
0x3781   :  { %23046 = vmatpush3.xpose.msk.msra.mxu0 %vm342_vm0, %v28121_v0  ;;  %23047 = vmatprep.mubr.msk.f32.mxu0 %vm24384_vm1, %v28092_v62 }
0x3782   :  { %23055 = vmatprep.subr.mxu0 %v28092_v62 }
0x3838   :  { %v27347_v34 = vpop.f32.mrf.mxu0  ;;  %v15842_v31 = vpop.f32.mrf.mxu1 }
0x3839   :  { %28235 = vst [vmem:[#allocation50_spill] sm:$0xff] %v27347_v34  ;;  %v15846_v43 = vadd.f32 %v15842_v31, %v28236_v63 }
0x383a   :  { %v23017_v3 = vpop.f32.mrf.mxu0  ;;  %v23028_v14 = vpop.f32.mrf.mxu1 }
0x3840   :  { %v15913_v41 = vpop.f32.mrf.mxu0 }
0x3841   :  { %v15917_v27 = vadd.f32 %v15913_v41, %v15846_v43 }
0x3842   :  { %v23039_v36 = vpop.f32.mrf.mxu0 }
0x3843   :  { %23764 = vtanh.f32 %v15917_v27  ;;  %v20976_v21 = vmul.f32 -1.442695, %v15917_v27 }
0x3845   :  { %23766 = vpow2.f32 %v20976_v21 }
0x3850   :  { %v23765_v2 = vpop.eup %23764 }
0x3851   :  { %15927 = vrot.lane.b32.xlu1 %v23765_v2, %s24386_s18 }
0x3852   :  { %v23767_v59 = vpop.eup %23766 }
0x3853   :  { %v15921_v60 = vadd.f32 1.0, %v23767_v59 }
0x3855   :  { %23768 = vrcp.f32 %v15921_v60 }
0x3862   :  { %v23769_v15 = vpop.eup %23768 }
0x3863   :  { %v15925_v7 = vmul.f32 %v23769_v15, %v27028_v18 }
0x38c3   :  { %v15928_v17 = vpop.permute.xlu1 %15927 }
0x38c4   :  { %v15930_v55 = vmul.f32 %v23769_v15, %v15928_v17 }
0x38c6   :  { %15932 = vrot.lane.b32.xlu1 %v15930_v55, %s24387_s8 }
0x3938   :  { %v15933_v31 = vpop.permute.xlu1 %15932 }
0x3939   :  { %v27353_v3 = vadd.f32 %v15933_v31, %v15925_v7 }
0x393b   :  { %23770 = vtanh.f32 %v27353_v3 }
0x3948   :  { %v23771_v14 = vpop.eup %23770 }
0x3949   :  { %15938 = vrot.lane.b32.xlu0 %v23771_v14, %s24386_s18 }
0x39bb   :  { %v15939_v63 = vpop.permute.xlu0 %15938 }
0x39bc   :  { %v27357_v43 = vmul.f32 %v23769_v15, %v15939_v63 }
0x39be   :  { %v15943_v41 = vcombine.high %v27357_v43, %v27357_v43  ;;  %v15950_v27 = vrot.slane %v27357_v43, %v25767_v37 }
0x39c0   :  { %v15957_v36 = vrot.slane %v15943_v41, %v25767_v37  ;;  %v15958_v18 = vcombine.high %v15950_v27, %v15950_v27  ;;  %v15966_v2 = vrot.slane %v15950_v27, %v25767_v37 }
0x39c2   :  { %v15980_v21 = vrot.slane %v15958_v18, %v25767_v37  ;;  %v15988_v59 = vcombine.high %v15966_v2, %v15966_v2  ;;  %v15995_v60 = vrot.slane %v15966_v2, %v25772_v57  ;;  %v15959_v17 = vcombine.high %v15957_v36, %v15957_v36 }
0x39c3   :  { %v15973_v7 = vrot.slane %v15957_v36, %v25767_v37 }
0x39c4   :  { %v16073_v15 = vrot.slane %v15980_v21, %v25772_v57  ;;  %v15990_v55 = vcombine.high %v15980_v21, %v15980_v21  ;;  %15996 = vrot.lane.b32.xlu1 %v15995_v60, %s24387_s8  ;;  %v16151_v31 = vrot.slane %v15988_v59, %v25772_v57  ;;  %v15987_v63 = vrot.slane %v15959_v17, %v25767_v37 }
0x39c5   :  { %v16307_v41 = vrot.slane %v15973_v7, %v25772_v57  ;;  %v15989_v27 = vcombine.high %v15973_v7, %v15973_v7 }
0x39c6   :  { %16074 = vrot.lane.b32.xlu0 %v16073_v15, %s24387_s8  ;;  %v16229_v14 = vrot.slane %v15990_v55, %v25772_v57  ;;  %v16385_v18 = vrot.slane %v15987_v63, %v25772_v57  ;;  %v15991_v2 = vcombine.high %v15987_v63, %v15987_v63 }
0x39c7   :  { %v16463_v36 = vrot.slane %v15989_v27, %v25772_v57 }
0x39c8   :  { %16152 = vrot.lane.b32.xlu1 %v16151_v31, %s24387_s8  ;;  %v16541_v21 = vrot.slane %v15991_v2, %v25772_v57 }
0x39ca   :  { %16230 = vrot.lane.b32.xlu0 %v16229_v14, %s24387_s8 }
0x39cc   :  { %16308 = vrot.lane.b32.xlu1 %v16307_v41, %s24387_s8 }
0x39ce   :  { %16386 = vrot.lane.b32.xlu0 %v16385_v18, %s24387_s8 }
0x39d0   :  { %16464 = vrot.lane.b32.xlu1 %v16463_v36, %s24387_s8 }
0x39d2   :  { %16542 = vrot.lane.b32.xlu0 %v16541_v21, %s24387_s8 }
0x3a36   :  { %v15997_v59 = vpop.permute.xlu1 %15996 }
0x3a37   :  { %23043 = vmatmul.mubr.msk.f32.vlgmr.msra.gmra.mxu1 %vm342_vm0, %v15997_v59 }
0x3a38   :  { %v16075_v60 = vpop.permute.xlu0 %16074  ;;  %23051 = vmatpush3.xpose.msk.msra.mxu1 %vm342_vm0, %v25741_v32  ;;  %23052 = vmatprep.mubr.msk.f32.mxu1 %vm24384_vm1, %v28092_v62 }
0x3a39   :  { %23048 = vmatmul.mubr.msk.f32.vlgmr.msra.gmra.mxu0 %vm342_vm0, %v16075_v60  ;;  %23060 = vmatprep.subr.mxu1 %v28092_v62 }
0x3a3a   :  { %23056 = vmatpush3.xpose.msk.msra.mxu0 %vm342_vm0, %v25734_v49  ;;  %v16153_v17 = vpop.permute.xlu1 %16152  ;;  %23057 = vmatprep.mubr.msk.f32.mxu0 %vm24384_vm1, %v28092_v62 }
0x3a3b   :  { %23053 = vmatmul.mubr.msk.f32.vlgmr.msra.gmra.mxu1 %vm342_vm0, %v16153_v17  ;;  %23065 = vmatprep.subr.mxu0 %v28092_v62 }
0x3a3c   :  { %v16231_v15 = vpop.permute.xlu0 %16230  ;;  %23061 = vmatpush3.xpose.msk.msra.mxu1 %vm342_vm0, %v25807_v23  ;;  %23062 = vmatprep.mubr.msk.f32.mxu1 %vm24384_vm1, %v28092_v62 }
0x3a3d   :  { %23058 = vmatmul.mubr.msk.f32.vlgmr.msra.gmra.mxu0 %vm342_vm0, %v16231_v15  ;;  %23070 = vmatprep.subr.mxu1 %v28092_v62 }
0x3a3e   :  { %23066 = vmatpush3.xpose.msk.msra.mxu0 %vm342_vm0, %v25743_v28  ;;  %v16309_v55 = vpop.permute.xlu1 %16308  ;;  %23067 = vmatprep.mubr.msk.f32.mxu0 %vm24384_vm1, %v28092_v62 }
0x3a3f   :  { %23063 = vmatmul.mubr.msk.f32.vlgmr.msra.gmra.mxu1 %vm342_vm0, %v16309_v55  ;;  %23075 = vmatprep.subr.mxu0 %v28092_v62 }
0x3a40   :  { %v16387_v7 = vpop.permute.xlu0 %16386  ;;  %23071 = vmatpush3.xpose.msk.msra.mxu1 %vm342_vm0, %v28124_v9  ;;  %23072 = vmatprep.mubr.msk.f32.mxu1 %vm24384_vm1, %v28092_v62 }
0x3a41   :  { %23068 = vmatmul.mubr.msk.f32.vlgmr.msra.gmra.mxu0 %vm342_vm0, %v16387_v7  ;;  %23080 = vmatprep.subr.mxu1 %v28092_v62 }
0x3a42   :  { %23076 = vmatpush3.xpose.msk.msra.mxu0 %vm342_vm0, %v28125_v11  ;;  %v16465_v31 = vpop.permute.xlu1 %16464  ;;  %23077 = vmatprep.mubr.msk.f32.mxu0 %vm24384_vm1, %v28092_v62 }
0x3a43   :  { %23073 = vmatmul.mubr.msk.f32.vlgmr.msra.gmra.mxu1 %vm342_vm0, %v16465_v31  ;;  %23085 = vmatprep.subr.mxu0 %v28092_v62 }
0x3a44   :  { %v16543_v14 = vpop.permute.xlu0 %16542  ;;  %23081 = vmatpush3.msra.mxu1 %v28197_v19  ;;  %23082 = vmatprep.mubr.msk.f32.mxu1 %vm24384_vm1, %v28092_v62 }
0x3a45   :  { %23078 = vmatmul.mubr.msk.f32.vlgmr.msra.gmra.mxu0 %vm342_vm0, %v16543_v14  ;;  %23090 = vmatprep.subr.mxu1 %v28092_v62 }
0x3a46   :  { %23086 = vmatpush3.msra.mxu0 %v28198_v5  ;;  %23087 = vmatprep.mubr.msk.f32.mxu0 %vm24384_vm1, %v28092_v62 }
0x3a47   :  { %23095 = vmatprep.subr.mxu0 %v28092_v62 }
0x3af7   :  { %v16066_v63 = vpop.f32.mrf.mxu1 }
0x3af8   :  { %v16616_v41 = vsel %vm4410_vm8, %v16066_v63, -1e+30 }
0x3af9   :  { %v16144_v27 = vpop.f32.mrf.mxu0  ;;  %v16624_v18 = vsel %vm4426_vm9, %v16616_v41, -inf  ;;  %v23044_v2 = vpop.f32.mrf.mxu1 }
0x3afa   :  { %v16617_v36 = vsel %vm4411_vm12, %v16144_v27, -1e+30  ;;  %16625 = vmax.xlane.f32.xlu1 %v16624_v18 }
0x3afb   :  { %v16627_v21 = vsel %vm4426_vm9, %v16617_v36, -inf  ;;  %v23049_v59 = vpop.f32.mrf.mxu0  ;;  %v16222_v60 = vpop.f32.mrf.mxu1 }
0x3afc   :  { %16628 = vmax.xlane.f32.xlu0 %v16627_v21  ;;  %v16618_v17 = vsel %vm28237_vm2, %v16222_v60, -1e+30  ;;  %vm28241_vm2 = vcmp.gt.f32.partialorder %v28209_v30, 0.0 }
0x3afd   :  { %v16300_v15 = vpop.f32.mrf.mxu0  ;;  %v23054_v55 = vpop.f32.mrf.mxu1  ;;  %v16630_v31 = vsel %vm4426_vm9, %v16618_v17, -inf }
0x3afe   :  { %v16619_v7 = vsel %vm28238_vm3, %v16300_v15, -1e+30  ;;  %vm28243_vm3 = vcmp.gt.f32.partialorder %v28242_v42, 0.0 }
0x3aff   :  { %v16633_v14 = vsel %vm4426_vm9, %v16619_v7, -inf  ;;  %v23059_v63 = vpop.f32.mrf.mxu0  ;;  %v16378_v27 = vpop.f32.mrf.mxu1 }
0x3b00   :  { %16631 = vmax.xlane.f32.xlu0 %v16630_v31  ;;  %16634 = vmax.xlane.f32.xlu1 %v16633_v14  ;;  %v16620_v18 = vsel %vm28239_vm13, %v16378_v27, -1e+30  ;;  %vm28244_vm13 = vcmask 64512  }
0x3b01   :  { %v16456_v2 = vpop.f32.mrf.mxu0  ;;  %v23064_v21 = vpop.f32.mrf.mxu1  ;;  %v16636_v60 = vsel %vm4426_vm9, %v16620_v18, -inf }
0x3b02   :  { %v16621_v59 = vsel %vm28240_vm4, %v16456_v2, -1e+30  ;;  %vm28245_vm4 = vmmov %vm28244_vm13 }
0x3b03   :  { %v16639_v15 = vsel %vm4426_vm9, %v16621_v59, -inf  ;;  %v23069_v55 = vpop.f32.mrf.mxu0  ;;  %v16534_v34 = vpop.f32.mrf.mxu1 }
0x3b04   :  { %16637 = vmax.xlane.f32.xlu0 %v16636_v60  ;;  %16640 = vmax.xlane.f32.xlu1 %v16639_v15  ;;  %v16622_v31 = vsel %vm28241_vm2, %v16534_v34, -1e+30  ;;  %vm28246_vm2 = vmmov %vm28245_vm4 }
0x3b05   :  { %v16612_v14 = vpop.f32.mrf.mxu0  ;;  %v23074_v63 = vpop.f32.mrf.mxu1  ;;  %v16642_v21 = vsel %vm4426_vm9, %v16622_v31, -inf }
0x3b06   :  { %v16623_v27 = vsel %vm28243_vm3, %v16612_v14, -1e+30  ;;  %vm28247_vm3 = vmmov %vm28246_vm2 }
0x3b07   :  { %v16645_v2 = vsel %vm4426_vm9, %v16623_v27, -inf  ;;  %v23079_v6 = vpop.f32.mrf.mxu0 }
0x3b08   :  { %16643 = vmax.xlane.f32.xlu0 %v16642_v21  ;;  %16646 = vmax.xlane.f32.xlu1 %v16645_v2 }
0x3b83   :  { %v16626_v12 = vpop.xlane.xlu1 %16625 }
0x3b84   :  { %v16648_v55 = vsub.f32 %v16616_v41, %v16626_v12 }
0x3b85   :  { %v16629_v40 = vpop.xlane.xlu0 %16628 }
0x3b86   :  { %v16649_v60 = vsub.f32 %v16617_v36, %v16629_v40  ;;  %v16656_v15 = vmul.f32 1.442695, %v16648_v55 }
0x3b88   :  { %v16658_v47 = vmul.f32 1.442695, %v16649_v60  ;;  %23772 = vpow2.f32 %v16656_v15 }
0x3b89   :  { %v16632_v34 = vpop.xlane.xlu0 %16631  ;;  %v16635_v30 = vpop.xlane.xlu1 %16634 }
0x3b8a   :  { %23774 = vpow2.f32 %v16658_v47  ;;  %v16650_v63 = vsub.f32 %v16618_v17, %v16632_v34  ;;  %v16651_v42 = vsub.f32 %v16619_v7, %v16635_v30 }
0x3b8c   :  { %v16660_v14 = vmul.f32 1.442695, %v16650_v63  ;;  %v16662_v52 = vmul.f32 1.442695, %v16651_v42 }
0x3b8d   :  { %v16638_v5 = vpop.xlane.xlu0 %16637  ;;  %v16641_v19 = vpop.xlane.xlu1 %16640 }
0x3b8e   :  { %23776 = vpow2.f32 %v16660_v14  ;;  %v16652_v6 = vsub.f32 %v16620_v18, %v16638_v5  ;;  %v16653_v21 = vsub.f32 %v16621_v59, %v16641_v19 }
0x3b8f   :  { %23778 = vpow2.f32 %v16662_v52 }
0x3b90   :  { %v16664_v2 = vmul.f32 1.442695, %v16652_v6  ;;  %v16666_v12 = vmul.f32 1.442695, %v16653_v21 }
0x3b91   :  { %v16644_v41 = vpop.xlane.xlu0 %16643  ;;  %v16647_v40 = vpop.xlane.xlu1 %16646 }
0x3b92   :  { %23780 = vpow2.f32 %v16664_v2  ;;  %v16654_v36 = vsub.f32 %v16622_v31, %v16644_v41  ;;  %v16655_v55 = vsub.f32 %v16623_v27, %v16647_v40 }
0x3b93   :  { %23782 = vpow2.f32 %v16666_v12 }
0x3b94   :  { %v16668_v60 = vmul.f32 1.442695, %v16654_v36  ;;  %v16670_v47 = vmul.f32 1.442695, %v16655_v55 }
0x3b95   :  { %v23773_v17 = vpop.eup %23772 }
0x3b96   :  { %23784 = vpow2.f32 %v16668_v60  ;;  %v16672_v42 = vsel %vm4426_vm9, %v23773_v17, 0.0 }
0x3b97   :  { %v23775_v30 = vpop.eup %23774  ;;  %23786 = vpow2.f32 %v16670_v47  ;;  %16673 = vadd.xlane.f32.xlu0 %v16672_v42 }
0x3b98   :  { %v16675_v19 = vsel %vm4426_vm9, %v23775_v30, 0.0 }
0x3b99   :  { %16676 = vadd.xlane.f32.xlu1 %v16675_v19 }
0x3b9b   :  { %v23777_v5 = vpop.eup %23776 }
0x3b9c   :  { %v23779_v52 = vpop.eup %23778  ;;  %v16678_v7 = vsel %vm4426_vm9, %v23777_v5, 0.0 }
0x3b9d   :  { %16679 = vadd.xlane.f32.xlu0 %v16678_v7  ;;  %v16681_v18 = vsel %vm4426_vm9, %v23779_v52, 0.0 }
0x3b9e   :  { %16682 = vadd.xlane.f32.xlu1 %v16681_v18 }
0x3b9f   :  { %v23781_v59 = vpop.eup %23780 }
0x3ba0   :  { %v23783_v31 = vpop.eup %23782  ;;  %v16684_v27 = vsel %vm4426_vm9, %v23781_v59, 0.0 }
0x3ba1   :  { %16685 = vadd.xlane.f32.xlu0 %v16684_v27  ;;  %v16687_v15 = vsel %vm4426_vm9, %v23783_v31, 0.0 }
0x3ba2   :  { %16688 = vadd.xlane.f32.xlu1 %v16687_v15 }
0x3ba3   :  { %v23785_v34 = vpop.eup %23784 }
0x3ba4   :  { %v23787_v63 = vpop.eup %23786  ;;  %v16690_v14 = vsel %vm4426_vm9, %v23785_v34, 0.0 }
0x3ba5   :  { %16691 = vadd.xlane.f32.xlu0 %v16690_v14  ;;  %v16693_v6 = vsel %vm4426_vm9, %v23787_v63, 0.0 }
0x3ba6   :  { %16694 = vadd.xlane.f32.xlu1 %v16693_v6 }
0x3bbb   :  { %17950 = vrot.lane.b32.xlu0 %v27357_v43, %s24387_s8 }
0x3c20   :  { %v16674_v21 = vpop.xlane.xlu0 %16673 }
0x3c21   :  { %23788 = vrcp.f32 %v16674_v21  ;;  %v28263_v21 = vld [vmem:[#allocation48_spill] sm:$0xff] }
0x3c22   :  { %v16677_v2 = vpop.xlane.xlu1 %16676 }
0x3c23   :  { %23790 = vrcp.f32 %v16677_v2 }
0x3c26   :  { %v16680_v12 = vpop.xlane.xlu0 %16679 }
0x3c27   :  { %23792 = vrcp.f32 %v16680_v12  ;;  %v16683_v41 = vpop.xlane.xlu1 %16682 }
0x3c28   :  { %23794 = vrcp.f32 %v16683_v41 }
0x3c2a   :  { %v16686_v40 = vpop.xlane.xlu0 %16685 }
0x3c2b   :  { %23796 = vrcp.f32 %v16686_v40  ;;  %v16689_v36 = vpop.xlane.xlu1 %16688 }
0x3c2c   :  { %23798 = vrcp.f32 %v16689_v36 }
0x3c2e   :  { %v16692_v55 = vpop.xlane.xlu0 %16691  ;;  %v23789_v60 = vpop.eup %23788 }
0x3c2f   :  { %23800 = vrcp.f32 %v16692_v55  ;;  %v16695_v47 = vpop.xlane.xlu1 %16694  ;;  %v16704_v19 = vmul.f32 %v23789_v60, %v23773_v17 }
0x3c30   :  { %v23791_v42 = vpop.eup %23790  ;;  %23802 = vrcp.f32 %v16695_v47 }
0x3c31   :  { %v16705_v43 = vmul.f32 %v23791_v42, %v23775_v30  ;;  %23083 = vmatmul.mubr.msk.f32.vlgmr.msra.gmra.mxu1 %vm28244_vm13, %v16704_v19  ;;  %vm28248_vm13 = vmmov %vm28246_vm2 }
0x3c32   :  { %23091 = vmatpush3.msra.mxu1 %v25656_v35  ;;  %23092 = vmatprep.mubr.msk.f32.mxu1 %vm24384_vm1, %v28092_v62 }
0x3c33   :  { %23088 = vmatmul.mubr.msk.f32.vlgmr.msra.gmra.mxu0 %vm28245_vm4, %v16705_v43  ;;  %23100 = vmatprep.subr.mxu1 %v28092_v62  ;;  %vm28249_vm4 = vmmov %vm28246_vm2 }
0x3c34   :  { %v23793_v7 = vpop.eup %23792  ;;  %23096 = vmatpush3.msra.mxu0 %v25673_v33  ;;  %23097 = vmatprep.mubr.msk.f32.mxu0 %vm24384_vm1, %v28092_v62 }
0x3c35   :  { %v23795_v18 = vpop.eup %23794  ;;  %v16706_v27 = vmul.f32 %v23793_v7, %v23777_v5  ;;  %23105 = vmatprep.subr.mxu0 %v28092_v62 }
0x3c36   :  { %v16707_v17 = vmul.f32 %v23795_v18, %v23779_v52 }
0x3c37   :  { %23093 = vmatmul.mubr.msk.f32.vlgmr.msra.gmra.mxu1 %vm28246_vm2, %v16706_v27 }
0x3c38   :  { %v23797_v30 = vpop.eup %23796  ;;  %23098 = vmatmul.mubr.msk.f32.vlgmr.msra.gmra.mxu0 %vm28247_vm3, %v16707_v17  ;;  %23101 = vmatpush3.msra.mxu1 %v25678_v54  ;;  %vm28250_vm3 = vmmov %vm28246_vm2 }
0x3c39   :  { %v23799_v15 = vpop.eup %23798  ;;  %v16708_v14 = vmul.f32 %v23797_v30, %v23781_v59  ;;  %23106 = vmatpush3.msra.mxu0 %v25695_v53  ;;  %23102 = vmatprep.mubr.msk.f32.mxu1 %vm24384_vm1, %v28092_v62 }
0x3c3a   :  { %v16709_v5 = vmul.f32 %v23799_v15, %v23783_v31  ;;  %23107 = vmatprep.mubr.msk.f32.mxu0 %vm24384_vm1, %v28092_v62  ;;  %23110 = vmatprep.subr.mxu1 %v28092_v62 }
0x3c3b   :  { %23115 = vmatprep.subr.mxu0 %v28092_v62  ;;  %23103 = vmatmul.mubr.msk.f32.vlgmr.msra.gmra.mxu1 %vm28248_vm13, %v16708_v14  ;;  %vm28251_vm13 = vmmov %vm28246_vm2 }
0x3c3c   :  { %v23801_v52 = vpop.eup %23800  ;;  %23108 = vmatmul.mubr.msk.f32.vlgmr.msra.gmra.mxu0 %vm28249_vm4, %v16709_v5  ;;  %23111 = vmatpush3.msra.mxu1 %v25698_v56  ;;  %vm28252_vm4 = vmmov %vm28246_vm2 }
0x3c3d   :  { %v23803_v59 = vpop.eup %23802  ;;  %v16710_v6 = vmul.f32 %v23801_v52, %v23785_v34  ;;  %23116 = vmatpush3.msra.mxu0 %v25710_v8  ;;  %23112 = vmatprep.mubr.msk.f32.mxu1 %vm24384_vm1, %v28092_v62  ;;  %v28258_v34 = vld [vmem:[#allocation68_spill] sm:$0xff] }
0x3c3e   :  { %v16711_v31 = vmul.f32 %v23803_v59, %v23787_v63  ;;  %23117 = vmatprep.mubr.msk.f32.mxu0 %vm24384_vm1, %v28092_v62  ;;  %23120 = vmatprep.subr.mxu1 %v28092_v62  ;;  %v28259_v63 = vld [vmem:[#allocation69_spill] sm:$0xff] }
0x3c3f   :  { %23125 = vmatprep.subr.mxu0 %v28092_v62  ;;  %23113 = vmatmul.mubr.msk.f32.vlgmr.msra.gmra.mxu1 %vm28246_vm2, %v16710_v6 }
0x3c40   :  { %23118 = vmatmul.mubr.msk.f32.vlgmr.msra.gmra.mxu0 %vm28250_vm3, %v16711_v31  ;;  %23121 = vmatpush3.msra.mxu1 %v25620_v48  ;;  %vm28253_vm3 = vmmov %vm28246_vm2 }
0x3c41   :  { %23126 = vmatpush3.msra.mxu0 %v25622_v50  ;;  %23122 = vmatprep.mubr.msk.f32.mxu1 %vm24384_vm1, %v28092_v62 }
0x3c42   :  { %23127 = vmatprep.mubr.msk.f32.mxu0 %vm24384_vm1, %v28092_v62  ;;  %23130 = vmatprep.subr.mxu1 %v28092_v62 }
0x3c43   :  { %23135 = vmatprep.subr.mxu0 %v28092_v62  ;;  %23123 = vmatmul.mubr.msk.f32.vlgmr.msra.gmra.mxu1 %vm28251_vm13, %v16704_v19  ;;  %vm28254_vm13 = vmmov %vm28246_vm2 }
0x3c44   :  { %23128 = vmatmul.mubr.msk.f32.vlgmr.msra.gmra.mxu0 %vm28252_vm4, %v16705_v43  ;;  %23131 = vmatpush3.msra.mxu1 %v25631_v22  ;;  %vm28255_vm4 = vmmov %vm28246_vm2 }
0x3c45   :  { %23136 = vmatpush3.msra.mxu0 %v25648_v13  ;;  %23132 = vmatprep.mubr.msk.f32.mxu1 %vm24384_vm1, %v28092_v62 }
0x3c46   :  { %23137 = vmatprep.mubr.msk.f32.mxu0 %vm24384_vm1, %v28092_v62  ;;  %23140 = vmatprep.subr.mxu1 %v28092_v62 }
0x3c47   :  { %23145 = vmatprep.subr.mxu0 %v28092_v62  ;;  %23133 = vmatmul.mubr.msk.f32.vlgmr.msra.gmra.mxu1 %vm28246_vm2, %v16706_v27 }
0x3c48   :  { %23138 = vmatmul.mubr.msk.f32.vlgmr.msra.gmra.mxu0 %vm28253_vm3, %v16707_v17  ;;  %23141 = vmatpush3.msra.mxu1 %v25650_v20  ;;  %vm28256_vm3 = vmmov %vm28246_vm2 }
0x3c49   :  { %23146 = vmatpush3.msra.mxu0 %v25671_v45  ;;  %23142 = vmatprep.mubr.msk.f32.mxu1 %vm24384_vm1, %v28092_v62 }
0x3c4a   :  { %23147 = vmatprep.mubr.msk.f32.mxu0 %vm24384_vm1, %v28092_v62  ;;  %23150 = vmatprep.subr.mxu1 %v28092_v62 }
0x3c4b   :  { %23155 = vmatprep.subr.mxu0 %v28092_v62  ;;  %23143 = vmatmul.mubr.msk.f32.vlgmr.msra.gmra.mxu1 %vm28254_vm13, %v16708_v14 }
0x3c4c   :  { %23148 = vmatmul.mubr.msk.f32.vlgmr.msra.gmra.mxu0 %vm28255_vm4, %v16709_v5  ;;  %23151 = vmatpush3.msra.mxu1 %v25676_v1 }
0x3c4d   :  { %23156 = vmatpush3.msra.mxu0 %v25693_v29  ;;  %23152 = vmatprep.mubr.msk.f32.mxu1 %vm24384_vm1, %v28092_v62 }
0x3c4e   :  { %23157 = vmatprep.mubr.msk.f32.mxu0 %vm24384_vm1, %v28092_v62  ;;  %23171 = vmatprep.subr.mxu0 %v28092_v62 }
0x3c4f   :  { %23153 = vmatmul.mubr.msk.f32.vlgmr.msra.gmra.mxu1 %vm28246_vm2, %v16710_v6  ;;  %23160 = vmatprep.subr.mxu1 %v28092_v62 }
0x3c50   :  { %23158 = vmatmul.mubr.msk.f32.vlgmr.msra.gmra.mxu0 %vm28256_vm3, %v16711_v31  ;;  %23161 = vmatpush3.msra.mxu1 %v27211_v38  ;;  %v28257_v38 = vld [vmem:[#allocation67_spill] sm:$0xff] }
0x3c51   :  { %23172 = vmatpush3.msra.mxu0 %v27214_v4  ;;  %23179 = vmatprep.mubr.msk.f32.mxu0 %vm24384_vm1, %v28092_v62  ;;  %v27550_v4 = vpop.permute.xlu0 %17950 }
0x3c52   :  { %23173 = vmatprep.subr.mxu0 %v28092_v62  ;;  %23162 = vmatprep.subr.mxu1 %v28092_v62 }
0x3c53   :  { %23174 = vmatpush3.msra.mxu0 %v27221_v10  ;;  %23163 = vmatpush3.msra.mxu1 %v27224_v24  ;;  %v28260_v10 = vld [vmem:[#allocation70_spill] sm:$0xff]  ;;  %v28261_v24 = vld [vmem:[#allocation71_spill] sm:$0xff] }
0x3c54   :  { %23175 = vmatprep.subr.mxu0 %v28092_v62  ;;  %23164 = vmatprep.subr.mxu1 %v28092_v62 }
0x3c55   :  { %23176 = vmatpush3.msra.mxu0 %v27229_v61  ;;  %23165 = vmatpush3.msra.mxu1 %v28257_v38  ;;  %v28262_v61 = vld [vmem:[#allocation55_spill] sm:$0xff] }
0x3c56   :  { %23177 = vmatprep.subr.mxu0 %v28092_v62  ;;  %23166 = vmatprep.subr.mxu1 %v28092_v62 }
0x3c57   :  { %23178 = vmatpush3.msra.mxu0 %v28258_v34  ;;  %23167 = vmatpush3.msra.mxu1 %v28259_v63 }
0x3c58   :  { %23180 = vmatmul.mubr.msk.f32.vlgmr.msra.gmra.mxu0 %vm342_vm0, %v27550_v4  ;;  %23168 = vmatprep.mubr.msk.f32.mxu1 %vm24384_vm1, %v28092_v62 }
0x3c59   :  { %23182 = vmatprep.subr.mxu1 %v28092_v62  ;;  %23193 = vmatprep.subr.mxu0 %v28092_v62 }
0x3c5a   :  { %23194 = vmatpush3.msra.mxu0 %v28260_v10  ;;  %23201 = vmatprep.mubr.msk.f32.mxu0 %vm24384_vm1, %v28092_v62 }
0x3c5b   :  { %23195 = vmatprep.subr.mxu0 %v28092_v62 }
0x3c5c   :  { %23196 = vmatpush3.msra.mxu0 %v28261_v24 }
0x3c5d   :  { %23197 = vmatprep.subr.mxu0 %v28092_v62 }
0x3c5e   :  { %23198 = vmatpush3.msra.mxu0 %v28262_v61 }
0x3c5f   :  { %23199 = vmatprep.subr.mxu0 %v28092_v62 }
0x3c60   :  { %23200 = vmatpush3.msra.mxu0 %v28263_v21 }
0x3c61   :  { %23215 = vmatprep.subr.mxu0 %v28092_v62 }
0x3cf1   :  { %v16781_v2 = vpop.f32.mrf.mxu1 }
0x3cf3   :  { %v16854_v12 = vpop.f32.mrf.mxu0  ;;  %v23084_v41 = vpop.f32.mrf.mxu1 }
0x3cf4   :  { %v17864_v40 = vrot.slane %v16854_v12, 7 }
0x3cf5   :  { %v23089_v36 = vpop.f32.mrf.mxu0 }
0x3cf6   :  { %v17865_v42 = vsel %vm5669_vm10, %v17864_v40, %v16781_v2 }
0x3cf7   :  { %v16927_v55 = vpop.f32.mrf.mxu1 }
0x3cf8   :  { %v17866_v60 = vrot.slane %v16927_v55, 6  ;;  %v17000_v47 = vpop.f32.mrf.mxu0 }
0x3cf9   :  { %v17868_v19 = vrot.slane %v17000_v47, 5  ;;  %v23094_v43 = vpop.f32.mrf.mxu1 }
0x3cfa   :  { %v17867_v7 = vsel %vm5672_vm11, %v17866_v60, %v17865_v42  ;;  %v23099_v18 = vpop.f32.mrf.mxu0 }
0x3cfb   :  { %v17073_v27 = vpop.f32.mrf.mxu1  ;;  %v17869_v15 = vsel %vm5675_vm14, %v17868_v19, %v17867_v7  ;;  %v28264_v7 = vld [vmem:[#allocation57_spill] sm:$0xff] }
0x3cfc   :  { %v17870_v17 = vrot.slane %v17073_v27, 4  ;;  %v17146_v30 = vpop.f32.mrf.mxu0 }
0x3cfd   :  { %v17872_v14 = vrot.slane %v17146_v30, 3  ;;  %v23104_v5 = vpop.f32.mrf.mxu1 }
0x3cfe   :  { %v17871_v52 = vsel %vm5678_vm15, %v17870_v17, %v17869_v15  ;;  %v23109_v59 = vpop.f32.mrf.mxu0  ;;  %v28265_v17 = vld [vmem:[#allocation56_spill] sm:$0xff] }
0x3cff   :  { %v17219_v6 = vpop.f32.mrf.mxu1  ;;  %v17873_v34 = vsel %vm5681_vm7, %v17872_v14, %v17871_v52 }
0x3d00   :  { %v17874_v31 = vrot.slane %v17219_v6, 2  ;;  %v17292_v38 = vpop.f32.mrf.mxu0 }
0x3d01   :  { %v17876_v63 = vrot.slane %v17292_v38, 1  ;;  %v23114_v10 = vpop.f32.mrf.mxu1 }
0x3d02   :  { %v17875_v24 = vsel %vm5684_vm6, %v17874_v31, %v17873_v34  ;;  %v23119_v61 = vpop.f32.mrf.mxu0 }
0x3d03   :  { %v17877_v21 = vsel %vm5687_vm5, %v17876_v63, %v17875_v24  ;;  %v17362_v2 = vpop.f32.mrf.mxu1 }
0x3d04   :  { %v17432_v12 = vpop.f32.mrf.mxu0  ;;  %23169 = vmatmul.mubr.msk.f32.vlgmr.msra.gmra.mxu1 %vm342_vm0, %v17877_v21 }
0x3d05   :  { %v18032_v41 = vrot.slane %v17432_v12, 7  ;;  %v23124_v40 = vpop.f32.mrf.mxu1  ;;  %23183 = vmatpush3.msra.mxu1 %v27277_v58  ;;  %23190 = vmatprep.mubr.msk.f32.mxu1 %vm24384_vm1, %v28092_v62  ;;  %v23940_v12 = vld [vmem:[#allocation27 + $0x8] sm:$0xff] }
0x3d06   :  { %v23129_v36 = vpop.f32.mrf.mxu0  ;;  %23184 = vmatprep.subr.mxu1 %v28092_v62  ;;  %v23941_v40 = vld [vmem:[#allocation27] sm:$0xff] }
0x3d07   :  { %v17502_v55 = vpop.f32.mrf.mxu1  ;;  %23185 = vmatpush3.msra.mxu1 %v27283_v46  ;;  %v18033_v42 = vsel %vm5669_vm10, %v18032_v41, %v17362_v2 }
0x3d08   :  { %v18034_v60 = vrot.slane %v17502_v55, 6  ;;  %v17572_v47 = vpop.f32.mrf.mxu0  ;;  %23186 = vmatprep.subr.mxu1 %v28092_v62 }
0x3d09   :  { %v18036_v19 = vrot.slane %v17572_v47, 5  ;;  %v23134_v43 = vpop.f32.mrf.mxu1  ;;  %23187 = vmatpush3.msra.mxu1 %v28264_v7 }
0x3d0a   :  { %v18035_v58 = vsel %vm5672_vm11, %v18034_v60, %v18033_v42  ;;  %v23139_v18 = vpop.f32.mrf.mxu0  ;;  %23188 = vmatprep.subr.mxu1 %v28092_v62  ;;  %v28266_v43 = vld [vmem:[#allocation52_spill] sm:$0xff] }
0x3d0b   :  { %v17642_v27 = vpop.f32.mrf.mxu1  ;;  %23189 = vmatpush3.msra.mxu1 %v28265_v17  ;;  %v18037_v15 = vsel %vm5675_vm14, %v18036_v19, %v18035_v58 }
0x3d0c   :  { %v18038_v30 = vrot.slane %v17642_v27, 4  ;;  %v17712_v46 = vpop.f32.mrf.mxu0  ;;  %23204 = vmatprep.subr.mxu1 %v28092_v62 }
0x3d0d   :  { %v18040_v14 = vrot.slane %v17712_v46, 3  ;;  %v23144_v5 = vpop.f32.mrf.mxu1 }
0x3d0e   :  { %v18039_v52 = vsel %vm5678_vm15, %v18038_v30, %v18037_v15  ;;  %v23149_v59 = vpop.f32.mrf.mxu0 }
0x3d0f   :  { %v17782_v6 = vpop.f32.mrf.mxu1  ;;  %v18041_v34 = vsel %vm5681_vm7, %v18040_v14, %v18039_v52 }
0x3d10   :  { %v18042_v31 = vrot.slane %v17782_v6, 2  ;;  %v17852_v38 = vpop.f32.mrf.mxu0 }
0x3d11   :  { %v18044_v63 = vrot.slane %v17852_v38, 1  ;;  %v23154_v10 = vpop.f32.mrf.mxu1 }
0x3d12   :  { %v18043_v24 = vsel %vm5684_vm6, %v18042_v31, %v18041_v34  ;;  %v23159_v61 = vpop.f32.mrf.mxu0 }
0x3d13   :  { %v18045_v21 = vsel %vm5687_vm5, %v18044_v63, %v18043_v24 }
0x3d14   :  { %23191 = vmatmul.mubr.msk.f32.vlgmr.msra.gmra.mxu1 %vm342_vm0, %v18045_v21 }
0x3d15   :  { %23205 = vmatpush3.msra.mxu1 %v27303_v25  ;;  %23212 = vmatprep.mubr.msk.f32.mxu1 %vm24384_vm1, %v28092_v62 }
0x3d16   :  { %23206 = vmatprep.subr.mxu1 %v28092_v62 }
0x3d17   :  { %23207 = vmatpush3.msra.mxu1 %v27309_v26 }
0x3d18   :  { %v18020_v2 = vpop.f32.mrf.mxu0  ;;  %23208 = vmatprep.subr.mxu1 %v28092_v62 }
0x3d19   :  { %23209 = vmatpush3.msra.mxu1 %v23940_v12 }
0x3d1a   :  { %v23181_v41 = vpop.f32.mrf.mxu0  ;;  %23210 = vmatprep.subr.mxu1 %v28092_v62 }
0x3d1b   :  { %23211 = vmatpush3.msra.mxu1 %v23941_v40 }
0x3d1c   :  { %23226 = vmatprep.subr.mxu1 %v28092_v62 }
0x3dc4   :  { %v17946_v25 = vpop.f32.mrf.mxu1 }
0x3dc5   :  { %v18021_v55 = vadd.f32 %v18020_v2, %v17946_v25 }
0x3dc6   :  { %v23170_v36 = vpop.f32.mrf.mxu1 }
0x3dd4   :  { %v18114_v60 = vpop.f32.mrf.mxu1 }
0x3dd5   :  { %v18118_v47 = vadd.f32 %v18114_v60, %v18021_v55 }
0x3dd6   :  { %v23192_v42 = vpop.f32.mrf.mxu1 }
0x3dd7   :  { %23804 = vtanh.f32 %v18118_v47 }
0x3de4   :  { %v23805_v26 = vpop.eup %23804 }
0x3de5   :  { %23202 = vmatmul.mubr.msk.f32.vlgmr.msra.gmra.mxu0 %vm342_vm0, %v23805_v26  ;;  %23213 = vmatmul.mubr.msk.f32.vlgmr.msra.gmra.mxu1 %vm342_vm0, %v23805_v26 }
0x3de6   :  { %23216 = vmatpush3.msra.mxu0 %v27319_v51  ;;  %23227 = vmatpush3.xpose.msk.msra.mxu1 %vm342_vm0, %v25732_v16  ;;  %v23942_v51 = vld [vmem:[#allocation28] sm:$0xff] }
0x3de7   :  { %23217 = vmatprep.subr.mxu0 %v28092_v62  ;;  %23223 = vmatprep.mubr.msk.f32.mxu0 %vm24384_vm1, %v28092_v62 }
0x3de8   :  { %23218 = vmatpush3.msra.mxu0 %v27327_v44  ;;  %23228 = vmatprep.mubr.msk.f32.mxu1 %vm24384_vm1, %v28092_v62 }
0x3de9   :  { %23219 = vmatprep.subr.mxu0 %v28092_v62  ;;  %23236 = vmatprep.subr.mxu1 %v28092_v62 }
0x3dea   :  { %23220 = vmatpush3.msra.mxu0 %v27334_v39 }
0x3deb   :  { %23221 = vmatprep.subr.mxu0 %v28092_v62 }
0x3dec   :  { %23222 = vmatpush3.msra.mxu0 %v23942_v51 }
0x3ded   :  { %23224 = vmatmul.mubr.msk.f32.vlgmr.msra.gmra.mxu0 %vm342_vm0, %v27550_v4  ;;  %23231 = vmatprep.subr.mxu0 %v28092_v62 }
0x3dee   :  { %23232 = vmatpush3.xpose.msk.msra.mxu0 %vm342_vm0, %v28121_v0  ;;  %23233 = vmatprep.mubr.msk.f32.mxu0 %vm24384_vm1, %v28092_v62 }
0x3def   :  { %23241 = vmatprep.subr.mxu0 %v28092_v62 }
0x3ea5   :  { %v27627_v16 = vpop.f32.mrf.mxu0  ;;  %v18280_v44 = vpop.f32.mrf.mxu1 }
0x3ea6   :  { %v18284_v7 = vadd.f32 %v18280_v44, %v28266_v43 }
0x3ea7   :  { %v23203_v39 = vpop.f32.mrf.mxu0  ;;  %v23214_v19 = vpop.f32.mrf.mxu1 }
0x3ead   :  { %v18351_v58 = vpop.f32.mrf.mxu0 }
0x3eae   :  { %v18355_v18 = vadd.f32 %v18351_v58, %v18284_v7  ;;  %v28268_v7 = vld [vmem:[#allocation54_spill] sm:$0xff] }
0x3eaf   :  { %v23225_v4 = vpop.f32.mrf.mxu0 }
0x3eb0   :  { %23806 = vtanh.f32 %v18355_v18  ;;  %v21016_v0 = vmul.f32 -1.442695, %v18355_v18 }
0x3eb2   :  { %23808 = vpow2.f32 %v21016_v0 }
0x3ebd   :  { %v23807_v27 = vpop.eup %23806 }
0x3ebe   :  { %18365 = vrot.lane.b32.xlu1 %v23807_v27, %s24386_s18 }
0x3ebf   :  { %v23809_v17 = vpop.eup %23808 }
0x3ec0   :  { %v18359_v30 = vadd.f32 1.0, %v23809_v17 }
0x3ec2   :  { %23810 = vrcp.f32 %v18359_v30 }
0x3ecf   :  { %v23811_v46 = vpop.eup %23810 }
0x3ed0   :  { %v18363_v5 = vmul.f32 %v23811_v46, %v27353_v3 }
0x3f30   :  { %v18366_v15 = vpop.permute.xlu1 %18365 }
0x3f31   :  { %v18368_v14 = vmul.f32 %v23811_v46, %v18366_v15 }
0x3f33   :  { %18370 = vrot.lane.b32.xlu1 %v18368_v14, %s24387_s8 }
0x3fa5   :  { %v18371_v52 = vpop.permute.xlu1 %18370 }
0x3fa6   :  { %v18373_v59 = vadd.f32 %v18371_v52, %v18363_v5  ;;  %v28271_v5 = vld [vmem:[#allocation60_spill] sm:$0xff] }
0x3fa7   :  { %vm28272_vm13 = vcmp.gt.f32.partialorder %v28271_v5, 0.0 }
0x3fa8   :  { %23812 = vtanh.f32 %v18373_v59 }
0x3fb5   :  { %v23813_v6 = vpop.eup %23812 }
0x3fb6   :  { %18376 = vrot.lane.b32.xlu0 %v23813_v6, %s24386_s18 }
0x4028   :  { %v18377_v31 = vpop.permute.xlu0 %18376 }
0x4029   :  { %v27634_v38 = vmul.f32 %v23811_v46, %v18377_v31  ;;  %v28273_v31 = vld [vmem:[#allocation61_spill] sm:$0xff] }
0x402b   :  { %v18381_v34 = vcombine.high %v27634_v38, %v27634_v38  ;;  %v18388_v63 = vrot.slane %v27634_v38, %v25767_v37 }
0x402d   :  { %v18395_v10 = vrot.slane %v18381_v34, %v25767_v37  ;;  %v18396_v24 = vcombine.high %v18388_v63, %v18388_v63  ;;  %v18404_v3 = vrot.slane %v18388_v63, %v25767_v37 }
0x402f   :  { %v18418_v61 = vrot.slane %v18396_v24, %v25767_v37  ;;  %v18426_v21 = vcombine.high %v18404_v3, %v18404_v3  ;;  %v18433_v2 = vrot.slane %v18404_v3, %v25772_v57  ;;  %v18397_v12 = vcombine.high %v18395_v10, %v18395_v10 }
0x4030   :  { %v18411_v25 = vrot.slane %v18395_v10, %v25767_v37 }
0x4031   :  { %v18511_v41 = vrot.slane %v18418_v61, %v25772_v57  ;;  %v18428_v40 = vcombine.high %v18418_v61, %v18418_v61  ;;  %18434 = vrot.lane.b32.xlu1 %v18433_v2, %s24387_s8  ;;  %v18589_v36 = vrot.slane %v18426_v21, %v25772_v57  ;;  %v18425_v60 = vrot.slane %v18397_v12, %v25767_v37  ;;  %v28275_v61 = vld [vmem:[#allocation62_spill] sm:$0xff] }
0x4032   :  { %v18745_v47 = vrot.slane %v18411_v25, %v25772_v57  ;;  %v18427_v42 = vcombine.high %v18411_v25, %v18411_v25 }
0x4033   :  { %18512 = vrot.lane.b32.xlu0 %v18511_v41, %s24387_s8  ;;  %v18667_v55 = vrot.slane %v18428_v40, %v25772_v57  ;;  %v18823_v26 = vrot.slane %v18425_v60, %v25772_v57  ;;  %v18429_v51 = vcombine.high %v18425_v60, %v18425_v60  ;;  %v28277_v41 = vld [vmem:[#allocation63_spill] sm:$0xff] }
0x4034   :  { %v18901_v44 = vrot.slane %v18427_v42, %v25772_v57  ;;  %vm28278_vm4 = vcmp.gt.f32.partialorder %v28277_v41, 0.0 }
0x4035   :  { %18590 = vrot.lane.b32.xlu1 %v18589_v36, %s24387_s8  ;;  %v18979_v39 = vrot.slane %v18429_v51, %v25772_v57 }
0x4037   :  { %18668 = vrot.lane.b32.xlu0 %v18667_v55, %s24387_s8 }
0x4039   :  { %18746 = vrot.lane.b32.xlu1 %v18745_v47, %s24387_s8  ;;  %v28279_v47 = vld [vmem:[#allocation64_spill] sm:$0xff] }
0x403a   :  { %vm28280_vm2 = vcmp.gt.f32.partialorder %v28279_v47, 0.0 }
0x403b   :  { %18824 = vrot.lane.b32.xlu0 %v18823_v26, %s24387_s8 }
0x403d   :  { %18902 = vrot.lane.b32.xlu1 %v18901_v44, %s24387_s8  ;;  %v28281_v44 = vld [vmem:[#allocation65_spill] sm:$0xff] }
0x403e   :  { %vm28282_vm3 = vcmp.gt.f32.partialorder %v28281_v44, 0.0  ;;  %v28285_v44 = vld [vmem:[#allocation73_spill] sm:$0xff] }
0x403f   :  { %18980 = vrot.lane.b32.xlu0 %v18979_v39, %s24387_s8 }
0x40a3   :  { %v18435_v37 = vpop.permute.xlu1 %18434 }
0x40a4   :  { %23229 = vmatmul.mubr.msk.f32.vlgmr.msra.gmra.mxu1 %vm342_vm0, %v18435_v37 }
0x40a5   :  { %v18513_v19 = vpop.permute.xlu0 %18512  ;;  %23237 = vmatpush3.xpose.msk.msra.mxu1 %vm342_vm0, %v25741_v32  ;;  %23238 = vmatprep.mubr.msk.f32.mxu1 %vm24384_vm1, %v28092_v62 }
0x40a6   :  { %23234 = vmatmul.mubr.msk.f32.vlgmr.msra.gmra.mxu0 %vm342_vm0, %v18513_v19  ;;  %23246 = vmatprep.subr.mxu1 %v28092_v62 }
0x40a7   :  { %23242 = vmatpush3.xpose.msk.msra.mxu0 %vm342_vm0, %v25734_v49  ;;  %v18591_v57 = vpop.permute.xlu1 %18590  ;;  %23243 = vmatprep.mubr.msk.f32.mxu0 %vm24384_vm1, %v28092_v62 }
0x40a8   :  { %23239 = vmatmul.mubr.msk.f32.vlgmr.msra.gmra.mxu1 %vm342_vm0, %v18591_v57  ;;  %23251 = vmatprep.subr.mxu0 %v28092_v62 }
0x40a9   :  { %v18669_v43 = vpop.permute.xlu0 %18668  ;;  %23247 = vmatpush3.xpose.msk.msra.mxu1 %vm342_vm0, %v25807_v23  ;;  %23248 = vmatprep.mubr.msk.f32.mxu1 %vm24384_vm1, %v28092_v62 }
0x40aa   :  { %23244 = vmatmul.mubr.msk.f32.vlgmr.msra.gmra.mxu0 %vm342_vm0, %v18669_v43  ;;  %23256 = vmatprep.subr.mxu1 %v28092_v62 }
0x40ab   :  { %23252 = vmatpush3.xpose.msk.msra.mxu0 %vm342_vm0, %v25743_v28  ;;  %v18747_v49 = vpop.permute.xlu1 %18746  ;;  %23253 = vmatprep.mubr.msk.f32.mxu0 %vm24384_vm1, %v28092_v62 }
0x40ac   :  { %23249 = vmatmul.mubr.msk.f32.vlgmr.msra.gmra.mxu1 %vm342_vm0, %v18747_v49  ;;  %23261 = vmatprep.subr.mxu0 %v28092_v62 }
0x40ad   :  { %v18825_v32 = vpop.permute.xlu0 %18824  ;;  %23257 = vmatpush3.xpose.msk.msra.mxu1 %vm342_vm0, %v28124_v9  ;;  %23258 = vmatprep.mubr.msk.f32.mxu1 %vm24384_vm1, %v28092_v62  ;;  %v28267_v9 = vld [vmem:[#allocation53_spill] sm:$0xff] }
0x40ae   :  { %23254 = vmatmul.mubr.msk.f32.vlgmr.msra.gmra.mxu0 %vm342_vm0, %v18825_v32  ;;  %23266 = vmatprep.subr.mxu1 %v28092_v62 }
0x40af   :  { %23262 = vmatpush3.xpose.msk.msra.mxu0 %vm342_vm0, %v28125_v11  ;;  %v18903_v28 = vpop.permute.xlu1 %18902  ;;  %23263 = vmatprep.mubr.msk.f32.mxu0 %vm24384_vm1, %v28092_v62 }
0x40b0   :  { %23259 = vmatmul.mubr.msk.f32.vlgmr.msra.gmra.mxu1 %vm342_vm0, %v18903_v28  ;;  %23271 = vmatprep.subr.mxu0 %v28092_v62 }
0x40b1   :  { %v18981_v23 = vpop.permute.xlu0 %18980  ;;  %23267 = vmatpush3.msra.mxu1 %v28267_v9  ;;  %23268 = vmatprep.mubr.msk.f32.mxu1 %vm24384_vm1, %v28092_v62 }
0x40b2   :  { %23264 = vmatmul.mubr.msk.f32.vlgmr.msra.gmra.mxu0 %vm342_vm0, %v18981_v23  ;;  %23276 = vmatprep.subr.mxu1 %v28092_v62 }
0x40b3   :  { %23272 = vmatpush3.msra.mxu0 %v28268_v7  ;;  %23273 = vmatprep.mubr.msk.f32.mxu0 %vm24384_vm1, %v28092_v62 }
0x40b4   :  { %23281 = vmatprep.subr.mxu0 %v28092_v62 }
0x4164   :  { %v18504_v11 = vpop.f32.mrf.mxu1 }
0x4165   :  { %v19054_v18 = vsel %vm4410_vm8, %v18504_v11, -1e+30  ;;  %vm28274_vm8 = vcmp.gt.f32.partialorder %v28273_v31, 0.0 }
0x4166   :  { %v18582_v4 = vpop.f32.mrf.mxu0  ;;  %v19062_v27 = vsel %vm4426_vm9, %v19054_v18, -inf  ;;  %v23230_v0 = vpop.f32.mrf.mxu1 }
0x4167   :  { %v19055_v30 = vsel %vm4411_vm12, %v18582_v4, -1e+30  ;;  %19063 = vmax.xlane.f32.xlu1 %v19062_v27  ;;  %vm28276_vm12 = vcmp.gt.f32.partialorder %v28275_v61, 0.0 }
0x4168   :  { %v19065_v46 = vsel %vm4426_vm9, %v19055_v30, -inf  ;;  %v23235_v15 = vpop.f32.mrf.mxu0  ;;  %v18660_v14 = vpop.f32.mrf.mxu1 }
0x4169   :  { %19066 = vmax.xlane.f32.xlu0 %v19065_v46  ;;  %v19056_v52 = vsel %vm28272_vm13, %v18660_v14, -1e+30 }
0x416a   :  { %v18738_v59 = vpop.f32.mrf.mxu0  ;;  %v23240_v6 = vpop.f32.mrf.mxu1  ;;  %v19068_v63 = vsel %vm4426_vm9, %v19056_v52, -inf }
0x416b   :  { %v19057_v34 = vsel %vm28274_vm8, %v18738_v59, -1e+30 }
0x416c   :  { %v19071_v10 = vsel %vm4426_vm9, %v19057_v34, -inf  ;;  %v23245_v24 = vpop.f32.mrf.mxu0  ;;  %v18816_v3 = vpop.f32.mrf.mxu1 }
0x416d   :  { %19069 = vmax.xlane.f32.xlu0 %v19068_v63  ;;  %19072 = vmax.xlane.f32.xlu1 %v19071_v10  ;;  %v19058_v21 = vsel %vm28276_vm12, %v18816_v3, -1e+30 }
0x416e   :  { %v18894_v2 = vpop.f32.mrf.mxu0  ;;  %v23250_v12 = vpop.f32.mrf.mxu1  ;;  %v19074_v25 = vsel %vm4426_vm9, %v19058_v21, -inf }
0x416f   :  { %v19059_v40 = vsel %vm28278_vm4, %v18894_v2, -1e+30 }
0x4170   :  { %v19077_v36 = vsel %vm4426_vm9, %v19059_v40, -inf  ;;  %v23255_v55 = vpop.f32.mrf.mxu0  ;;  %v18972_v60 = vpop.f32.mrf.mxu1 }
0x4171   :  { %19075 = vmax.xlane.f32.xlu0 %v19074_v25  ;;  %19078 = vmax.xlane.f32.xlu1 %v19077_v36  ;;  %v19060_v42 = vsel %vm28280_vm2, %v18972_v60, -1e+30 }
0x4172   :  { %v19050_v26 = vpop.f32.mrf.mxu0  ;;  %v23260_v51 = vpop.f32.mrf.mxu1  ;;  %v19080_v37 = vsel %vm4426_vm9, %v19060_v42, -inf }
0x4173   :  { %v19061_v39 = vsel %vm28282_vm3, %v19050_v26, -1e+30  ;;  %v28283_v26 = vld [vmem:[#allocation72_spill] sm:$0xff]  ;;  %v28284_v51 = vld [vmem:[#allocation66_spill] sm:$0xff] }
0x4174   :  { %v19083_v19 = vsel %vm4426_vm9, %v19061_v39, -inf  ;;  %v23265_v57 = vpop.f32.mrf.mxu0 }
0x4175   :  { %19081 = vmax.xlane.f32.xlu0 %v19080_v37  ;;  %19084 = vmax.xlane.f32.xlu1 %v19083_v19  ;;  %v28287_v37 = vld [vmem:[#allocation50_spill] sm:$0xff] }
0x41f0   :  { %v19064_v43 = vpop.xlane.xlu1 %19063 }
0x41f1   :  { %v19086_v49 = vsub.f32 %v19054_v18, %v19064_v43 }
0x41f2   :  { %v19067_v32 = vpop.xlane.xlu0 %19066 }
0x41f3   :  { %v19087_v28 = vsub.f32 %v19055_v30, %v19067_v32  ;;  %v19094_v23 = vmul.f32 1.442695, %v19086_v49 }
0x41f5   :  { %v19096_v9 = vmul.f32 1.442695, %v19087_v28  ;;  %23814 = vpow2.f32 %v19094_v23 }
0x41f6   :  { %v19070_v7 = vpop.xlane.xlu0 %19069  ;;  %v19073_v11 = vpop.xlane.xlu1 %19072 }
0x41f7   :  { %23816 = vpow2.f32 %v19096_v9  ;;  %v19088_v58 = vsub.f32 %v19056_v52, %v19070_v7  ;;  %v19089_v4 = vsub.f32 %v19057_v34, %v19073_v11 }
0x41f9   :  { %v19098_v27 = vmul.f32 1.442695, %v19088_v58  ;;  %v19100_v0 = vmul.f32 1.442695, %v19089_v4 }
0x41fa   :  { %v19076_v17 = vpop.xlane.xlu0 %19075  ;;  %v19079_v46 = vpop.xlane.xlu1 %19078 }
0x41fb   :  { %23818 = vpow2.f32 %v19098_v27  ;;  %v19090_v15 = vsub.f32 %v19058_v21, %v19076_v17  ;;  %v19091_v14 = vsub.f32 %v19059_v40, %v19079_v46 }
0x41fc   :  { %23820 = vpow2.f32 %v19100_v0 }
0x41fd   :  { %v19102_v5 = vmul.f32 1.442695, %v19090_v15  ;;  %v19104_v18 = vmul.f32 1.442695, %v19091_v14 }
0x41fe   :  { %v19082_v59 = vpop.xlane.xlu0 %19081  ;;  %v19085_v30 = vpop.xlane.xlu1 %19084 }
0x41ff   :  { %23822 = vpow2.f32 %v19102_v5  ;;  %v19092_v6 = vsub.f32 %v19060_v42, %v19082_v59  ;;  %v19093_v31 = vsub.f32 %v19061_v39, %v19085_v30  ;;  %v28286_v39 = vld [vmem:[#allocation49_spill] sm:$0xff] }
0x4200   :  { %23824 = vpow2.f32 %v19104_v18 }
0x4201   :  { %v19106_v63 = vmul.f32 1.442695, %v19092_v6  ;;  %v19108_v10 = vmul.f32 1.442695, %v19093_v31 }
0x4202   :  { %v23815_v52 = vpop.eup %23814 }
0x4203   :  { %23826 = vpow2.f32 %v19106_v63  ;;  %v19110_v24 = vsel %vm4426_vm9, %v23815_v52, 0.0 }
0x4204   :  { %v23817_v34 = vpop.eup %23816  ;;  %23828 = vpow2.f32 %v19108_v10  ;;  %19111 = vadd.xlane.f32.xlu0 %v19110_v24 }
0x4205   :  { %v19113_v3 = vsel %vm4426_vm9, %v23817_v34, 0.0 }
0x4206   :  { %19114 = vadd.xlane.f32.xlu1 %v19113_v3  ;;  %v23952_v3 = vld [vmem:[#allocation34 + $0x10] sm:$0xff] }
0x4208   :  { %v23819_v61 = vpop.eup %23818 }
0x4209   :  { %v23821_v21 = vpop.eup %23820  ;;  %v19116_v2 = vsel %vm4426_vm9, %v23819_v61, 0.0 }
0x420a   :  { %19117 = vadd.xlane.f32.xlu0 %v19116_v2  ;;  %v19119_v12 = vsel %vm4426_vm9, %v23821_v21, 0.0  ;;  %v23954_v2 = vld [vmem:[#allocation34] sm:$0xff] }
0x420b   :  { %19120 = vadd.xlane.f32.xlu1 %v19119_v12 }
0x420c   :  { %v23823_v41 = vpop.eup %23822 }
0x420d   :  { %v27735_v40 = vpop.eup %23824  ;;  %v19122_v25 = vsel %vm4426_vm9, %v23823_v41, 0.0 }
0x420e   :  { %19123 = vadd.xlane.f32.xlu0 %v19122_v25  ;;  %v19125_v36 = vsel %vm4426_vm9, %v27735_v40, 0.0 }
0x420f   :  { %19126 = vadd.xlane.f32.xlu1 %v19125_v36 }
0x4210   :  { %v27740_v55 = vpop.eup %23826 }
0x4211   :  { %v27742_v60 = vpop.eup %23828  ;;  %v19128_v47 = vsel %vm4426_vm9, %v27740_v55, 0.0 }
0x4212   :  { %19129 = vadd.xlane.f32.xlu0 %v19128_v47  ;;  %v19131_v42 = vsel %vm4426_vm9, %v27742_v60, 0.0  ;;  %vm28288_vm9 = vcmask 64512  }
0x4213   :  { %19132 = vadd.xlane.f32.xlu1 %v19131_v42  ;;  %vm28289_vm13 = vmmov %vm28288_vm9 }
0x4214   :  { %vm28290_vm8 = vmmov %vm28288_vm9 }
0x4215   :  { %vm28291_vm12 = vmmov %vm28290_vm8 }
0x4216   :  { %vm28292_vm4 = vmmov %vm28290_vm8 }
0x4217   :  { %6004 = vmax.xlane.f32.xlu1 %v28283_v26  ;;  %vm28293_vm2 = vmmov %vm28292_vm4 }
0x4218   :  { %vm28294_vm3 = vmmov %vm28293_vm2 }
0x421b   :  { %8441 = vmax.xlane.f32.xlu1 %v28284_v51 }
0x421f   :  { %10879 = vmax.xlane.f32.xlu1 %v28285_v44 }
0x4223   :  { %13317 = vmax.xlane.f32.xlu1 %v28286_v39 }
0x4227   :  { %15755 = vmax.xlane.f32.xlu1 %v28287_v37 }
0x4228   :  { %20388 = vrot.lane.b32.xlu0 %v27634_v38, %s24387_s8  ;;  %s28303_s8 = sld [smem:[#allocation78_spill]] }
0x422b   :  { %18193 = vmax.xlane.f32.xlu1 %v27627_v16 }
0x422e   :  { %v6015_v10 = vld [vmem:[%s28303_s8] sm:$0xff]  ;;  %v20893_v24 = vld [vmem:[%s28303_s8 + $0x10] sm:$0xff] }
0x428d   :  { %v19112_v19 = vpop.xlane.xlu0 %19111 }
0x428e   :  { %23830 = vrcp.f32 %v19112_v19 }
0x428f   :  { %v19115_v57 = vpop.xlane.xlu1 %19114 }
0x4290   :  { %23832 = vrcp.f32 %v19115_v57 }
0x4293   :  { %v19118_v43 = vpop.xlane.xlu0 %19117 }
0x4294   :  { %23834 = vrcp.f32 %v19118_v43  ;;  %v19121_v49 = vpop.xlane.xlu1 %19120 }
0x4295   :  { %23836 = vrcp.f32 %v19121_v49 }
0x4297   :  { %v19124_v32 = vpop.xlane.xlu0 %19123 }
0x4298   :  { %23838 = vrcp.f32 %v19124_v32  ;;  %v19127_v28 = vpop.xlane.xlu1 %19126 }
0x4299   :  { %23840 = vrcp.f32 %v19127_v28 }
0x429b   :  { %v19130_v23 = vpop.xlane.xlu0 %19129  ;;  %v23831_v9 = vpop.eup %23830 }
0x429c   :  { %23842 = vrcp.f32 %v19130_v23  ;;  %v19133_v7 = vpop.xlane.xlu1 %19132  ;;  %v19142_v38 = vmul.f32 %v23831_v9, %v23815_v52  ;;  %v23950_v52 = vld [vmem:[#allocation31] sm:$0xff] }
0x429d   :  { %v23833_v11 = vpop.eup %23832  ;;  %23844 = vrcp.f32 %v19133_v7 }
0x429e   :  { %v19143_v58 = vmul.f32 %v23833_v11, %v23817_v34  ;;  %23269 = vmatmul.mubr.msk.f32.vlgmr.msra.gmra.mxu1 %vm28288_vm9, %v19142_v38  ;;  %vm28295_vm9 = vmmov %vm28293_vm2  ;;  %v23951_v34 = vld [vmem:[#allocation34 + $0x18] sm:$0xff] }
0x429f   :  { %23277 = vmatpush3.msra.mxu1 %v25656_v35  ;;  %23278 = vmatprep.mubr.msk.f32.mxu1 %vm24384_vm1, %v28092_v62 }
0x42a0   :  { %v27758_v4 = vpop.xlane.xlu1 %6004  ;;  %23274 = vmatmul.mubr.msk.f32.vlgmr.msra.gmra.mxu0 %vm28289_vm13, %v19143_v58  ;;  %23286 = vmatprep.subr.mxu1 %v28092_v62  ;;  %vm28296_vm13 = vmmov %vm28293_vm2 }
0x42a1   :  { %v23835_v27 = vpop.eup %23834  ;;  %v6006_v0 = vsub.f32 %v28283_v26, %v27758_v4  ;;  %23282 = vmatpush3.msra.mxu0 %v25673_v33  ;;  %23283 = vmatprep.mubr.msk.f32.mxu0 %vm24384_vm1, %v28092_v62 }
0x42a2   :  { %v23837_v17 = vpop.eup %23836  ;;  %v19144_v46 = vmul.f32 %v23835_v27, %v23819_v61  ;;  %23291 = vmatprep.subr.mxu0 %v28092_v62  ;;  %v23953_v61 = vld [vmem:[#allocation34 + $0x8] sm:$0xff] }
0x42a3   :  { %v19145_v35 = vmul.f32 %v23837_v17, %v23821_v21  ;;  %v6007_v15 = vmul.f32 1.442695, %v6006_v0  ;;  %v21013_v21 = vld [vmem:[%s28303_s8 + $0x28] sm:$0xff] }
0x42a4   :  { %v27770_v14 = vpop.xlane.xlu1 %8441  ;;  %23279 = vmatmul.mubr.msk.f32.vlgmr.msra.gmra.mxu1 %vm28290_vm8, %v19144_v46  ;;  %vm28297_vm8 = vmmov %vm28293_vm2 }
0x42a5   :  { %v23839_v5 = vpop.eup %23838  ;;  %23846 = vpow2.f32 %v6007_v15  ;;  %v8443_v33 = vsub.f32 %v28284_v51, %v27770_v14  ;;  %23284 = vmatmul.mubr.msk.f32.vlgmr.msra.gmra.mxu0 %vm28291_vm12, %v19145_v35  ;;  %23287 = vmatpush3.msra.mxu1 %v25678_v54  ;;  %vm28298_vm12 = vmmov %vm28293_vm2 }
0x42a6   :  { %v23841_v18 = vpop.eup %23840  ;;  %v19146_v59 = vmul.f32 %v23839_v5, %v23823_v41  ;;  %23292 = vmatpush3.msra.mxu0 %v25695_v53  ;;  %23288 = vmatprep.mubr.msk.f32.mxu1 %vm24384_vm1, %v28092_v62 }
0x42a7   :  { %v19147_v30 = vmul.f32 %v23841_v18, %v27735_v40  ;;  %v8444_v6 = vmul.f32 1.442695, %v8443_v33  ;;  %23293 = vmatprep.mubr.msk.f32.mxu0 %vm24384_vm1, %v28092_v62  ;;  %23296 = vmatprep.subr.mxu1 %v28092_v62 }
0x42a8   :  { %23301 = vmatprep.subr.mxu0 %v28092_v62  ;;  %23289 = vmatmul.mubr.msk.f32.vlgmr.msra.gmra.mxu1 %vm28292_vm4, %v19146_v59  ;;  %vm28299_vm4 = vmmov %vm28293_vm2 }
0x42a9   :  { %v23843_v54 = vpop.eup %23842  ;;  %23848 = vpow2.f32 %v8444_v6  ;;  %23294 = vmatmul.mubr.msk.f32.vlgmr.msra.gmra.mxu0 %vm28293_vm2, %v19147_v30  ;;  %23297 = vmatpush3.msra.mxu1 %v25698_v56 }
0x42aa   :  { %v23845_v53 = vpop.eup %23844  ;;  %v19148_v31 = vmul.f32 %v23843_v54, %v27740_v55  ;;  %23302 = vmatpush3.msra.mxu0 %v25710_v8  ;;  %23298 = vmatprep.mubr.msk.f32.mxu1 %vm24384_vm1, %v28092_v62  ;;  %v23949_v8 = vld [vmem:[#allocation30] sm:$0xff]  ;;  %v23955_v54 = vld [vmem:[#allocation33 + $0x18] sm:$0xff] }
0x42ab   :  { %v19149_v63 = vmul.f32 %v23845_v53, %v27742_v60  ;;  %23303 = vmatprep.mubr.msk.f32.mxu0 %vm24384_vm1, %v28092_v62  ;;  %23306 = vmatprep.subr.mxu1 %v28092_v62 }
0x42ac   :  { %23311 = vmatprep.subr.mxu0 %v28092_v62  ;;  %23299 = vmatmul.mubr.msk.f32.vlgmr.msra.gmra.mxu1 %vm28294_vm3, %v19148_v31  ;;  %vm28300_vm3 = vmmov %vm28293_vm2 }
0x42ad   :  { %23304 = vmatmul.mubr.msk.f32.vlgmr.msra.gmra.mxu0 %vm28295_vm9, %v19149_v63  ;;  %23307 = vmatpush3.msra.mxu1 %v25620_v48  ;;  %vm28301_vm9 = vmmov %vm28293_vm2 }
0x42ae   :  { %23312 = vmatpush3.msra.mxu0 %v25622_v50  ;;  %23308 = vmatprep.mubr.msk.f32.mxu1 %vm24384_vm1, %v28092_v62  ;;  %v23943_v50 = vld [vmem:[#allocation31 + $0x18] sm:$0xff] }
0x42af   :  { %23313 = vmatprep.mubr.msk.f32.mxu0 %vm24384_vm1, %v28092_v62  ;;  %23316 = vmatprep.subr.mxu1 %v28092_v62 }
0x42b0   :  { %23321 = vmatprep.subr.mxu0 %v28092_v62  ;;  %23309 = vmatmul.mubr.msk.f32.vlgmr.msra.gmra.mxu1 %vm28296_vm13, %v19142_v38  ;;  %vm28302_vm13 = vmmov %vm28293_vm2 }
0x42b1   :  { %23314 = vmatmul.mubr.msk.f32.vlgmr.msra.gmra.mxu0 %vm28297_vm8, %v19143_v58  ;;  %23317 = vmatpush3.msra.mxu1 %v25631_v22  ;;  %v23944_v22 = vld [vmem:[#allocation30 + $0x18] sm:$0xff] }
0x42b2   :  { %v23847_v56 = vpop.eup %23846  ;;  %23322 = vmatpush3.msra.mxu0 %v25648_v13  ;;  %23318 = vmatprep.mubr.msk.f32.mxu1 %vm24384_vm1, %v28092_v62  ;;  %v23945_v13 = vld [vmem:[#allocation30 + $0x10] sm:$0xff] }
0x42b3   :  { %6009 = vadd.xlane.f32.xlu1 %v23847_v56  ;;  %23323 = vmatprep.mubr.msk.f32.mxu0 %vm24384_vm1, %v28092_v62 }
0x42b4   :  { %23326 = vmatprep.subr.mxu1 %v28092_v62  ;;  %23331 = vmatprep.subr.mxu0 %v28092_v62 }
0x42b5   :  { %23319 = vmatmul.mubr.msk.f32.vlgmr.msra.gmra.mxu1 %vm28298_vm12, %v19144_v46  ;;  %23324 = vmatmul.mubr.msk.f32.vlgmr.msra.gmra.mxu0 %vm28299_vm4, %v19145_v35 }
0x42b6   :  { %v23849_v48 = vpop.eup %23848  ;;  %23327 = vmatpush3.msra.mxu1 %v25650_v20  ;;  %23332 = vmatpush3.msra.mxu0 %v25671_v45  ;;  %v23946_v20 = vld [vmem:[#allocation31 + $0x10] sm:$0xff]  ;;  %v23947_v45 = vld [vmem:[#allocation30 + $0x8] sm:$0xff] }
0x42b7   :  { %8446 = vadd.xlane.f32.xlu1 %v23849_v48  ;;  %23328 = vmatprep.mubr.msk.f32.mxu1 %vm24384_vm1, %v28092_v62 }
0x42b8   :  { %23333 = vmatprep.mubr.msk.f32.mxu0 %vm24384_vm1, %v28092_v62  ;;  %23336 = vmatprep.subr.mxu1 %v28092_v62 }
0x42b9   :  { %23341 = vmatprep.subr.mxu0 %v28092_v62  ;;  %23329 = vmatmul.mubr.msk.f32.vlgmr.msra.gmra.mxu1 %vm28293_vm2, %v19146_v59 }
0x42ba   :  { %23334 = vmatmul.mubr.msk.f32.vlgmr.msra.gmra.mxu0 %vm28300_vm3, %v19147_v30  ;;  %23337 = vmatpush3.msra.mxu1 %v25676_v1  ;;  %v23948_v1 = vld [vmem:[#allocation31 + $0x8] sm:$0xff] }
0x42bb   :  { %23342 = vmatpush3.msra.mxu0 %v25693_v29  ;;  %23338 = vmatprep.mubr.msk.f32.mxu1 %vm24384_vm1, %v28092_v62  ;;  %v20389_v29 = vpop.permute.xlu0 %20388 }
0x42bc   :  { %23343 = vmatprep.mubr.msk.f32.mxu0 %vm24384_vm1, %v28092_v62  ;;  %23357 = vmatprep.subr.mxu0 %v28092_v62 }
0x42bd   :  { %23339 = vmatmul.mubr.msk.f32.vlgmr.msra.gmra.mxu1 %vm28301_vm9, %v19148_v31  ;;  %23346 = vmatprep.subr.mxu1 %v28092_v62 }
0x42be   :  { %23344 = vmatmul.mubr.msk.f32.vlgmr.msra.gmra.mxu0 %vm28302_vm13, %v19149_v63  ;;  %23347 = vmatpush3.msra.mxu1 %v23943_v50  ;;  %v23956_v63 = vld [vmem:[#allocation33 + $0x10] sm:$0xff] }
0x42bf   :  { %23358 = vmatpush3.msra.mxu0 %v23944_v22  ;;  %23365 = vmatprep.mubr.msk.f32.mxu0 %vm24384_vm1, %v28092_v62  ;;  %v23957_v22 = vld [vmem:[#allocation33 + $0x8] sm:$0xff] }
0x42c0   :  { %23359 = vmatprep.subr.mxu0 %v28092_v62  ;;  %23348 = vmatprep.subr.mxu1 %v28092_v62 }
0x42c1   :  { %23360 = vmatpush3.msra.mxu0 %v23945_v13  ;;  %23349 = vmatpush3.msra.mxu1 %v23946_v20 }
0x42c2   :  { %23361 = vmatprep.subr.mxu0 %v28092_v62  ;;  %23350 = vmatprep.subr.mxu1 %v28092_v62 }
0x42c3   :  { %23362 = vmatpush3.msra.mxu0 %v23947_v45  ;;  %23351 = vmatpush3.msra.mxu1 %v23948_v1 }
0x42c4   :  { %23363 = vmatprep.subr.mxu0 %v28092_v62  ;;  %23352 = vmatprep.subr.mxu1 %v28092_v62 }
0x42c5   :  { %23364 = vmatpush3.msra.mxu0 %v23949_v8  ;;  %23353 = vmatpush3.msra.mxu1 %v23950_v52  ;;  %v23958_v8 = vld [vmem:[#allocation33] sm:$0xff] }
0x42c6   :  { %23366 = vmatmul.mubr.msk.f32.vlgmr.msra.gmra.mxu0 %vm342_vm0, %v20389_v29  ;;  %23354 = vmatprep.mubr.msk.f32.mxu1 %vm24384_vm1, %v28092_v62 }
0x42c7   :  { %23368 = vmatprep.subr.mxu1 %v28092_v62  ;;  %23379 = vmatprep.subr.mxu0 %v28092_v62 }
0x42c8   :  { %6017 = vperm.xlu1 %23425, %v6015_v10   ;;  %23380 = vmatpush3.msra.mxu0 %v23951_v34 }
0x42c9   :  { %23381 = vmatprep.subr.mxu0 %v28092_v62  ;;  %23387 = vmatprep.mubr.msk.f32.mxu0 %vm24384_vm1, %v28092_v62 }
0x42ca   :  { %23382 = vmatpush3.msra.mxu0 %v23952_v3 }
0x42cb   :  { %23383 = vmatprep.subr.mxu0 %v28092_v62 }
0x42cc   :  { %10893 = vperm.xlu1 %23425, %v20893_v24   ;;  %23384 = vmatpush3.msra.mxu0 %v23953_v61 }
0x42cd   :  { %23385 = vmatprep.subr.mxu0 %v28092_v62 }
0x42ce   :  { %23386 = vmatpush3.msra.mxu0 %v23954_v2 }
0x42d0   :  { %18207 = vperm.xlu1 %23425, %v21013_v21  }
0x435e   :  { %v19219_v12 = vpop.f32.mrf.mxu1 }
0x4360   :  { %v19292_v41 = vpop.f32.mrf.mxu0  ;;  %v23270_v40 = vpop.f32.mrf.mxu1 }
0x4361   :  { %v20302_v25 = vrot.slane %v19292_v41, 7 }
0x4362   :  { %v23275_v36 = vpop.f32.mrf.mxu0 }
0x4363   :  { %v20303_v42 = vsel %vm5669_vm10, %v20302_v25, %v19219_v12 }
0x4364   :  { %v19365_v55 = vpop.f32.mrf.mxu1 }
0x4365   :  { %v20304_v60 = vrot.slane %v19365_v55, 6  ;;  %v19438_v47 = vpop.f32.mrf.mxu0 }
0x4366   :  { %v20306_v19 = vrot.slane %v19438_v47, 5  ;;  %v23280_v57 = vpop.f32.mrf.mxu1 }
0x4367   :  { %v20305_v43 = vsel %vm5672_vm11, %v20304_v60, %v20303_v42  ;;  %v23285_v49 = vpop.f32.mrf.mxu0 }
0x4368   :  { %v19511_v32 = vpop.f32.mrf.mxu1  ;;  %v20307_v9 = vsel %vm5675_vm14, %v20306_v19, %v20305_v43 }
0x4369   :  { %v20308_v28 = vrot.slane %v19511_v32, 4  ;;  %v19584_v23 = vpop.f32.mrf.mxu0 }
0x436a   :  { %v20310_v7 = vrot.slane %v19584_v23, 3  ;;  %v23290_v11 = vpop.f32.mrf.mxu1 }
0x436b   :  { %v20309_v38 = vsel %vm5678_vm15, %v20308_v28, %v20307_v9  ;;  %v23295_v58 = vpop.f32.mrf.mxu0 }
0x436c   :  { %v19657_v27 = vpop.f32.mrf.mxu1  ;;  %v20311_v46 = vsel %vm5681_vm7, %v20310_v7, %v20309_v38  ;;  %v27888_v7 = vpop.xlane.xlu1 %10879 }
0x436d   :  { %v20312_v0 = vrot.slane %v19657_v27, 2  ;;  %v19730_v17 = vpop.f32.mrf.mxu0  ;;  %v10881_v38 = vsub.f32 %v28285_v44, %v27888_v7 }
0x436e   :  { %v20314_v35 = vrot.slane %v19730_v17, 1  ;;  %v23300_v15 = vpop.f32.mrf.mxu1 }
0x436f   :  { %v20313_v5 = vsel %vm5684_vm6, %v20312_v0, %v20311_v46  ;;  %v23305_v33 = vpop.f32.mrf.mxu0  ;;  %v10882_v27 = vmul.f32 1.442695, %v10881_v38 }
0x4370   :  { %v20315_v18 = vsel %vm5687_vm5, %v20314_v35, %v20313_v5  ;;  %v19800_v59 = vpop.f32.mrf.mxu1  ;;  %v27890_v11 = vpop.xlane.xlu1 %13317 }
0x4371   :  { %v19870_v30 = vpop.f32.mrf.mxu0  ;;  %23355 = vmatmul.mubr.msk.f32.vlgmr.msra.gmra.mxu1 %vm342_vm0, %v20315_v18  ;;  %v13319_v0 = vsub.f32 %v28286_v39, %v27890_v11 }
0x4372   :  { %v23310_v6 = vpop.f32.mrf.mxu1  ;;  %23369 = vmatpush3.msra.mxu1 %v23955_v54  ;;  %23376 = vmatprep.mubr.msk.f32.mxu1 %vm24384_vm1, %v28092_v62  ;;  %v20470_v53 = vrot.slane %v19870_v30, 7 }
0x4373   :  { %v23315_v31 = vpop.f32.mrf.mxu0  ;;  %23370 = vmatprep.subr.mxu1 %v28092_v62  ;;  %v13320_v17 = vmul.f32 1.442695, %v13319_v0 }
0x4374   :  { %23371 = vmatpush3.msra.mxu1 %v23956_v63  ;;  %v20471_v13 = vsel %vm5669_vm10, %v20470_v53, %v19800_v59  ;;  %v27894_v58 = vpop.xlane.xlu1 %15755  ;;  %v20853_v31 = vld [vmem:[%s28303_s8 + $0x8] sm:$0xff]  ;;  %v20933_v63 = vld [vmem:[%s28303_s8 + $0x18] sm:$0xff] }
0x4375   :  { %v19940_v56 = vpop.f32.mrf.mxu1  ;;  %v20010_v48 = vpop.f32.mrf.mxu0  ;;  %23372 = vmatprep.subr.mxu1 %v28092_v62  ;;  %v15757_v46 = vsub.f32 %v28287_v37, %v27894_v58 }
0x4376   :  { %v20472_v50 = vrot.slane %v19940_v56, 6  ;;  %23373 = vmatpush3.msra.mxu1 %v23957_v22  ;;  %v20474_v20 = vrot.slane %v20010_v48, 5  ;;  %v20973_v56 = vld [vmem:[%s28303_s8 + $0x20] sm:$0xff] }
0x4377   :  { %v23320_v45 = vpop.f32.mrf.mxu1  ;;  %v23325_v1 = vpop.f32.mrf.mxu0  ;;  %23374 = vmatprep.subr.mxu1 %v28092_v62  ;;  %v15758_v15 = vmul.f32 1.442695, %v15757_v46 }
0x4378   :  { %v20473_v29 = vsel %vm5672_vm11, %v20472_v50, %v20471_v13  ;;  %23375 = vmatpush3.msra.mxu1 %v23958_v8  ;;  %v27900_v35 = vpop.xlane.xlu1 %18193 }
0x4379   :  { %v20080_v10 = vpop.f32.mrf.mxu1  ;;  %v20475_v24 = vsel %vm5675_vm14, %v20474_v20, %v20473_v29  ;;  %v18195_v5 = vsub.f32 %v27627_v16, %v27900_v35  ;;  %v21053_v20 = vld [vmem:[%s28303_s8 + $0x30] sm:$0xff]  ;;  %vm20660_vm14 = vcmask 0  }
0x437a   :  { %v20476_v52 = vrot.slane %v20080_v10, 4  ;;  %v20150_v34 = vpop.f32.mrf.mxu0 }
0x437b   :  { %v20478_v3 = vrot.slane %v20150_v34, 3  ;;  %v23330_v61 = vpop.f32.mrf.mxu1  ;;  %v18196_v33 = vmul.f32 1.442695, %v18195_v5 }
0x437c   :  { %v20477_v21 = vsel %vm5678_vm15, %v20476_v52, %v20475_v24  ;;  %v23335_v2 = vpop.f32.mrf.mxu0  ;;  %v6010_v1 = vpop.xlane.xlu1 %6009 }
0x437d   :  { %v20220_v12 = vpop.f32.mrf.mxu1  ;;  %v20479_v25 = vsel %vm5681_vm7, %v20478_v3, %v20477_v21 }
0x437e   :  { %v20480_v41 = vrot.slane %v20220_v12, 2  ;;  %v20290_v40 = vpop.f32.mrf.mxu0 }
0x437f   :  { %v20482_v62 = vrot.slane %v20290_v40, 1  ;;  %v23340_v36 = vpop.f32.mrf.mxu1 }
0x4380   :  { %v20481_v55 = vsel %vm5684_vm6, %v20480_v41, %v20479_v25  ;;  %v23345_v60 = vpop.f32.mrf.mxu0  ;;  %v8447_v8 = vpop.xlane.xlu1 %8446 }
0x4381   :  { %v20483_v47 = vsel %vm5687_vm5, %v20482_v62, %v20481_v55  ;;  %v28304_v60 = vlaneseq }
0x4382   :  { %23377 = vmatmul.mubr.msk.f32.vlgmr.msra.gmra.mxu1 %vm342_vm0, %v20483_v47 }
0x4383   :  { %v3537_v47 = vand.u32 127, %v28304_v60 }
0x4386   :  { %v20458_v42 = vpop.f32.mrf.mxu0 }
0x4388   :  { %v23367_v19 = vpop.f32.mrf.mxu0 }
0x4431   :  { %v20384_v57 = vpop.f32.mrf.mxu1 }
0x4432   :  { %v20459_v49 = vadd.f32 %v20458_v42, %v20384_v57  ;;  %v6018_v42 = vpop.permute.xlu1 %6017 }
0x4433   :  { %v23356_v43 = vpop.f32.mrf.mxu1  ;;  %vm6019_vm1 = vcmp.eq.s32.totalorder %v3537_v47, %v6018_v42 }
0x4436   :  { %v10894_v38 = vpop.permute.xlu1 %10893 }
0x4437   :  { %vm10895_vm5 = vcmp.eq.s32.totalorder %v3537_v47, %v10894_v38 }
0x4442   :  { %v20552_v32 = vpop.f32.mrf.mxu1 }
0x4443   :  { %v20556_v28 = vadd.f32 %v20552_v32, %v20459_v49 }
0x4444   :  { %v23378_v23 = vpop.f32.mrf.mxu1 }
0x4445   :  { %23850 = vtanh.f32 %v20556_v28 }
0x4446   :  { %23852 = vpow2.f32 %v10882_v27 }
0x4447   :  { %23854 = vpow2.f32 %v13320_v17 }
0x4448   :  { %23856 = vpow2.f32 %v15758_v15 }
0x4449   :  { %23858 = vpow2.f32 %v18196_v33  ;;  %v18208_v33 = vpop.permute.xlu1 %18207 }
0x444a   :  { %vm18209_vm10 = vcmp.eq.s32.totalorder %v3537_v47, %v18208_v33 }
0x4452   :  { %v23851_v9 = vpop.eup %23850 }
0x4453   :  { %23388 = vmatmul.mubr.msk.f32.vlgmr.msra.gmra.mxu0 %vm342_vm0, %v23851_v9  ;;  %v23853_v30 = vpop.eup %23852 }
0x4454   :  { %v23855_v6 = vpop.eup %23854 }
0x4455   :  { %v23857_v54 = vpop.eup %23856 }
0x4456   :  { %v23859_v53 = vpop.eup %23858 }
0x4513   :  { %v27904_v18 = vpop.f32.mrf.mxu0 }
0x4514   :  { %20631 = vmax.xlane.f32.xlu0 %v27904_v18 }
0x4515   :  { %v23389_v59 = vpop.f32.mrf.mxu0 }
0x4518   :  { %10884 = vadd.xlane.f32.xlu0 %v23853_v30 }
0x451c   :  { %13322 = vadd.xlane.f32.xlu0 %v23855_v6 }
0x4520   :  { %15760 = vadd.xlane.f32.xlu0 %v23857_v54 }
0x4524   :  { %18198 = vadd.xlane.f32.xlu0 %v23859_v53 }
0x453a   :  { %8455 = vperm.xlu0 %23424, %v20853_v31  }
0x453e   :  { %13331 = vperm.xlu0 %23424, %v20933_v63  }
0x4542   :  { %15769 = vperm.xlu0 %23424, %v20973_v56  }
0x459d   :  { %v27916_v48 = vpop.xlane.xlu0 %20631 }
0x459e   :  { %v20633_v50 = vsub.f32 %v27904_v18, %v27916_v48 }
0x45a0   :  { %v20634_v22 = vmul.f32 1.442695, %v20633_v50 }
0x45a1   :  { %v10885_v45 = vpop.xlane.xlu0 %10884 }
0x45a2   :  { %23860 = vpow2.f32 %v20634_v22 }
0x45a3   :  { %23862 = vlog2.f32 %v6010_v1 }
0x45a4   :  { %23864 = vlog2.f32 %v8447_v8 }
0x45a5   :  { %v13323_v29 = vpop.xlane.xlu0 %13322  ;;  %23866 = vlog2.f32 %v10885_v45 }
0x45a6   :  { %23868 = vlog2.f32 %v13323_v29 }
0x45a9   :  { %v15761_v10 = vpop.xlane.xlu0 %15760 }
0x45aa   :  { %23870 = vlog2.f32 %v15761_v10 }
0x45ad   :  { %v18199_v52 = vpop.xlane.xlu0 %18198 }
0x45ae   :  { %23872 = vlog2.f32 %v18199_v52 }
0x45af   :  { %v23861_v13 = vpop.eup %23860 }
0x45b0   :  { %20636 = vadd.xlane.f32.xlu0 %v23861_v13  ;;  %v23863_v24 = vpop.eup %23862 }
0x45b1   :  { %v23865_v3 = vpop.eup %23864  ;;  %v6012_v21 = vmul.f32 0.6931472, %v23863_v24 }
0x45b2   :  { %v8449_v2 = vmul.f32 0.6931472, %v23865_v3  ;;  %v23867_v12 = vpop.eup %23866 }
0x45b3   :  { %v23869_v41 = vpop.eup %23868  ;;  %v6013_v40 = vadd.f32 %v6012_v21, %v27758_v4  ;;  %v10887_v62 = vmul.f32 0.6931472, %v23867_v12 }
0x45b4   :  { %v8450_v36 = vadd.f32 %v8449_v2, %v27770_v14  ;;  %v13325_v19 = vmul.f32 0.6931472, %v23869_v41 }
0x45b5   :  { %v8456_v34 = vpop.permute.xlu0 %8455  ;;  %v6014_v57 = vsub.f32 %v28283_v26, %v6013_v40  ;;  %v10888_v49 = vadd.f32 %v10887_v62, %v27888_v7 }
0x45b6   :  { %vm8457_vm0 = vcmp.eq.s32.totalorder %v3537_v47, %v8456_v34  ;;  %v8451_v28 = vsub.f32 %v28284_v51, %v8450_v36  ;;  %v13326_v9 = vadd.f32 %v13325_v19, %v27890_v11 }
0x45b7   :  { %v23871_v55 = vpop.eup %23870  ;;  %v6020_v14 = vsel %vm6019_vm1, %v6014_v57, 0.0  ;;  %v10889_v0 = vsub.f32 %v28285_v44, %v10888_v49 }
0x45b8   :  { %v15763_v32 = vmul.f32 0.6931472, %v23871_v55  ;;  %v8458_v23 = vsel %vm8457_vm0, %v8451_v28, 0.0  ;;  %v13327_v46 = vsub.f32 %v28286_v39, %v13326_v9 }
0x45b9   :  { %v13332_v61 = vpop.permute.xlu0 %13331  ;;  %v8459_v17 = vadd.f32 %v8458_v23, %v6020_v14  ;;  %v10896_v7 = vsel %vm10895_vm5, %v10889_v0, 0.0 }
0x45ba   :  { %v15764_v26 = vadd.f32 %v15763_v32, %v27894_v58  ;;  %vm13333_vm6 = vcmp.eq.s32.totalorder %v3537_v47, %v13332_v61 }
0x45bb   :  { %v23873_v4 = vpop.eup %23872  ;;  %v10897_v5 = vadd.f32 %v10896_v7, %v8459_v17  ;;  %v13334_v11 = vsel %vm13333_vm6, %v13327_v46, 0.0 }
0x45bc   :  { %v18201_v27 = vmul.f32 0.6931472, %v23873_v4  ;;  %v15765_v15 = vsub.f32 %v28287_v37, %v15764_v26 }
0x45bd   :  { %v15770_v25 = vpop.permute.xlu0 %15769  ;;  %v13335_v6 = vadd.f32 %v13334_v11, %v10897_v5 }
0x45be   :  { %v18202_v51 = vadd.f32 %v18201_v27, %v27900_v35  ;;  %vm15771_vm7 = vcmp.eq.s32.totalorder %v3537_v47, %v15770_v25 }
0x45bf   :  { %v15772_v59 = vsel %vm15771_vm7, %v15765_v15, 0.0 }
0x45c0   :  { %v18203_v30 = vsub.f32 %v27627_v16, %v18202_v51  ;;  %v15773_v54 = vadd.f32 %v15772_v59, %v13335_v6 }
0x45c2   :  { %v18210_v39 = vsel %vm18209_vm10, %v18203_v30, 0.0 }
0x45c3   :  { %v18211_v63 = vadd.f32 %v18210_v39, %v15773_v54 }
0x45c6   :  { %20645 = vperm.xlu0 %23424, %v21053_v20  }
0x4639   :  { %v20637_v43 = vpop.xlane.xlu0 %20636 }
0x463a   :  { %23874 = vlog2.f32 %v20637_v43 }
0x4641   :  { %v20646_v31 = vpop.permute.xlu0 %20645 }
0x4642   :  { %vm20647_vm11 = vcmp.eq.s32.totalorder %v3537_v47, %v20646_v31 }
0x4647   :  { %v23875_v44 = vpop.eup %23874 }
0x4648   :  { %v20639_v58 = vmul.f32 0.6931472, %v23875_v44 }
0x464a   :  { %v20640_v53 = vadd.f32 %v20639_v58, %v27916_v48 }
0x464c   :  { %v20641_v35 = vsub.f32 %v27904_v18, %v20640_v53 }
0x464e   :  { %v20648_v37 = vsel %vm20647_vm11, %v20641_v35, 0.0 }
0x464f   :  { %v20649_v56 = vadd.f32 %v20648_v37, %v18211_v63 }
0x4651   :  { %20650 = vadd.xlane.f32.xlu1 %v20649_v56 }
0x46da   :  { %v20651_v50 = vpop.xlane.xlu1 %20650 }
0x46db   :  { %v20652_v22 = vrot.slane %v20651_v50, 4 }
0x46dd   :  { %v20653_v13 = vadd.f32 %v20652_v22, %v20651_v50 }
0x46df   :  { %v20654_v16 = vrot.slane %v20653_v13, 2 }
0x46e1   :  { %v20655_v20 = vadd.f32 %v20654_v16, %v20653_v13 }
0x46e3   :  { %v20656_v45 = vrot.slane %v20655_v20, 1 }
0x46e5   :  { %v20657_v1 = vadd.f32 %v20656_v45, %v20655_v20 }
0x46e7   :  { %23390 = vpush %v20657_v1 }
0x4718   :  { %s23391_s5 = spop %23390 }
0x4719   :  { %v20659_v48 = vstv %s23391_s5 }
0x471a   :  { %20661 = vst.msk [vmem:[#allocation36] sm:$0x1] %vm20660_vm14, %v20659_v48 }
0x471b   :  { %24330 = shalt.err (!%p24327_p10)
}
0x471c   :  { %20671 = dma.vmem_to_hbm [thread:$0]  %s20669_s12, 16, %s27966_s25, [#allocation9]  }
0x471d   :  { %24359 = dma.done.wait [#allocation9], 16  }
0x471e   :  { %24360 = vsyncadd [#allocation9], 4294967280 }
0x471f   :  { %20675 = vsyncpa [#allocation8], 1 }
0x4720   :  { %20676 = vsyncpa [#allocation11], 1 }
0x4721   :  { %20677 = vsyncpa [#allocation14], 1 }
0x4722   :  { %20678 = vsyncpa [#allocation17], 1 }
0x4723   :  { %20679 = vsyncpa [#allocation20], 1 }
0x4724   :  { %20680 = vsyncpa [#allocation23], 1 }
0x4725   :  { %20681 = vsyncpa [#allocation26], 1 }
0x4726   :  { %20682 = vsyncpa [#allocation29], 1 }
0x4727   :  { %20683 = vsyncpa [#allocation32], 1 }
0x4728   :  { %20684 = vsyncpa [#allocation35], 1 }
0x4729   :  { %20685 = vsyncpa [#allocation9], 1 }

</bundles_post_ra>
